<compile_context>
chip_gen: v7x
topology: tpu7x:2x2x1
jax: 0.10.0
libtpu: 0.0.40
codegen_flags: <defaults>
</compile_context>

<pallas_src>
import functools

import numpy as np

import jax
import jax.numpy as jnp
from jax.experimental import pallas as pl
from jax.experimental.pallas import tpu as pltpu

NUM_CLASSES = 10  # TODO(synk): len(train_dataset.classes) is data-dependent; fixed to 10 here.


# -------------------- offline weight preparation (outside jit, once) --------------------
def _prepare_conv(w_oihw, b):
    """torch conv weight (Cout, Cin, 3, 3) -> (16, Cout, Kc) phase/group matrices.

    weff[(ph*2+pw)*4 + dr*2+dc][cout, (pa*2+pb)*Cin + cin] = w[cout, cin, kh, kw]
    with kh = 2*dr + pa - ph, kw = 2*dc + pb - pw (0 if out of range), so that
    conv(2i+ph, 2j+pw) = sum_{dr,dc} weff[...] @ s2d_input[:, i+dr, j+dc].
    """
    w = np.asarray(jax.device_get(w_oihw), dtype=np.float32)
    b = np.asarray(jax.device_get(b), dtype=np.float32)
    cout, cin = w.shape[0], w.shape[1]
    kc = ((4 * cin + 7) // 8) * 8
    weff = np.zeros((16, cout, kc), np.float32)
    for ph in range(2):
        for pw in range(2):
            for dr in range(2):
                for dc in range(2):
                    g = (ph * 2 + pw) * 4 + dr * 2 + dc
                    for pa in range(2):
                        for pb in range(2):
                            kh = 2 * dr + pa - ph
                            kw = 2 * dc + pb - pw
                            if 0 <= kh < 3 and 0 <= kw < 3:
                                q = pa * 2 + pb
                                weff[g, :, q * cin:(q + 1) * cin] = w[:, :, kh, kw]
    return (jnp.asarray(weff, jnp.bfloat16),
            jnp.asarray(b.reshape(cout, 1), jnp.float32))


def _prepare_fc(w1_oi, b1, w2_oi, b2):
    """fc1 (128, K) / fc2 (C, 128) torch layouts -> pre-transposed, hidden split 2x64."""
    w1 = np.asarray(jax.device_get(w1_oi), dtype=np.float32)   # (H1, K)
    b1 = np.asarray(jax.device_get(b1), dtype=np.float32)
    w2 = np.asarray(jax.device_get(w2_oi), dtype=np.float32)   # (C, H1)
    b2 = np.asarray(jax.device_get(b2), dtype=np.float32)
    h1, k = w1.shape
    c = w2.shape[0]
    hh = h1 // 2
    w1p = np.transpose(w1).reshape(k, 2, hh).transpose(1, 0, 2)     # (2, K, 64)
    b1p = b1.reshape(2, 1, hh)                                      # (2, 1, 64)
    w2p = np.transpose(w2).reshape(2, hh, c)                        # (2, 64, C)
    return (jnp.asarray(w1p, jnp.bfloat16), jnp.asarray(b1p, jnp.float32),
            jnp.asarray(w2p, jnp.float32), jnp.asarray(b2.reshape(1, c), jnp.float32))


def prepare_params(raw):
    w1, b1 = _prepare_conv(raw["w1"], raw["b1"])
    w2, b2 = _prepare_conv(raw["w2"], raw["b2"])
    fw1, fb1, fw2, fb2 = _prepare_fc(raw["wfc1"], raw["bfc1"], raw["wfc2"], raw["bfc2"])
    return {"conv1_w": w1, "conv1_b": b1, "conv2_w": w2, "conv2_b": b2,
            "fc1_w": fw1, "fc1_b": fb1, "fc2_w": fw2, "fc2_b": fb2}


# -------------------- fused conv3x3(pad=1) + bias + ReLU + maxpool2x2 --------------------
def _conv_kernel(xa_ref, xb_ref, w_ref, b_ref, o_ref, *, wo, chunk):
    # xa_ref/xb_ref: (1, Kc, (Ho+1)*Wo) bf16 s2d slabs (dc=0 / dc=1 column shift)
    # w_ref: (16, Cout, Kc) bf16 phase/group weights; b_ref: (Cout, 1) f32
    # o_ref: (1, Cout, Ho*Wo) bf16
    t_total = o_ref.shape[2]
    bias = b_ref[...]                                       # (Cout, 1) f32
    for c0 in range(0, t_total, chunk):
        acc = None
        for ph in range(2):
            for pw in range(2):
                s = None
                for dr in range(2):
                    for dc in range(2):
                        xr = xa_ref if dc == 0 else xb_ref
                        rhs = xr[0, :, pl.ds(dr * wo + c0, chunk)]        # (Kc, chunk) bf16
                        lhs = w_ref[(ph * 2 + pw) * 4 + dr * 2 + dc]      # (Cout, Kc) bf16
                        p = jnp.dot(lhs, rhs, preferred_element_type=jnp.float32)
                        s = p if s is None else s + p
                acc = s if acc is None else jnp.maximum(acc, s)
        # relu(max_ph(Wx) + b) == maxpool(relu(Wx + b)): relu monotone, b constant.
        o_ref[0, :, pl.ds(c0, chunk)] = jnp.maximum(acc + bias, 0.0).astype(o_ref.dtype)


def conv3x3_relu_maxpool(x_nchw, weff, bias):
    """x: (N, Cin, H, W) bf16; weff: (16, Cout, Kc) bf16; bias: (Cout, 1) f32.

    Returns pool(relu(conv(x) + b)) as (N, Cout, (H//2)*(W//2)) bf16 (channel-major).
    """
    N, Cin, H, W = x_nchw.shape
    Cout, Kc = weff.shape[1], weff.shape[2]
    Ho, Wo = H // 2, W // 2
    L = (Ho + 1) * Wo
    T = Ho * Wo
    chunk = 2048 if T % 2048 == 0 and T > 2048 else T

    # Small XLA layout plumbing (~1 MiB bf16): pad + 2x2 space-to-depth + two
    # column-shifted flat slabs.  Replaces the old multi-MiB im2col tensors.
    xp = jnp.pad(x_nchw, ((0, 0), (0, 0), (1, 1), (1, 1)))
    xs = xp.reshape(N, Cin, Ho + 1, 2, Wo + 1, 2)
    xs = jnp.transpose(xs, (0, 3, 5, 1, 2, 4))              # (N, pa, pb, Cin, Ho+1, Wo+1)
    x4 = xs.reshape(N, 4 * Cin, Ho + 1, Wo + 1)
    if Kc != 4 * Cin:
        x4 = jnp.pad(x4, ((0, 0), (0, Kc - 4 * Cin), (0, 0), (0, 0)))
    xa = x4[..., :Wo].reshape(N, Kc, L)                     # dc = 0
    xb = x4[..., 1:].reshape(N, Kc, L)                      # dc = 1

    return pl.pallas_call(
        functools.partial(_conv_kernel, wo=Wo, chunk=chunk),
        out_shape=jax.ShapeDtypeStruct((N, Cout, T), jnp.bfloat16),
        grid_spec=pltpu.PrefetchScalarGridSpec(
            num_scalar_prefetch=0,
            grid=(N,),
            in_specs=[
                pl.BlockSpec((1, Kc, L), lambda n: (n, 0, 0)),
                pl.BlockSpec((1, Kc, L), lambda n: (n, 0, 0)),
                pl.BlockSpec((16, Cout, Kc), lambda n: (0, 0, 0)),
                pl.BlockSpec((Cout, 1), lambda n: (0, 0)),
            ],
            out_specs=pl.BlockSpec((1, Cout, T), lambda n: (n, 0, 0)),
        ),
        compiler_params=pltpu.CompilerParams(
            dimension_semantics=("parallel",),
            vmem_limit_bytes=32 * 1024 * 1024,
        ),
    )(xa, xb, weff, bias)


# -------------------- fused FC head: fc1 (K-tiled) + ReLU + fc2 (hidden split 2x64) ----
def _fc_kernel(x_ref, w1_ref, b1_ref, w2_ref, o_ref, acc_ref):
    k = pl.program_id(1)

    @pl.when(k == 0)
    def _():
        acc_ref[...] = jnp.zeros_like(acc_ref)

    acc_ref[...] += jnp.dot(x_ref[...], w1_ref[0], preferred_element_type=jnp.float32)

    @pl.when(k == pl.num_programs(1) - 1)
    def _():
        h = jnp.maximum(acc_ref[...] + b1_ref[0], 0.0)                      # relu(fc1 half)
        o_ref[0] = jnp.dot(h, w2_ref[0], preferred_element_type=jnp.float32)  # partial fc2


def fc_head(x_bf16, w1p, b1p, w2p, b2, *, tk=8192):
    # x: (M, K) bf16; w1p: (2, K, 64) bf16 (pre-transposed offline); w2p: (2, 64, C) f32.
    M, K = x_bf16.shape
    Hh = w1p.shape[2]
    C = w2p.shape[2]
    if K % tk != 0:
        tk = K
    nk = K // tk

    partials = pl.pallas_call(
        _fc_kernel,
        out_shape=jax.ShapeDtypeStruct((2, M, C), jnp.float32),
        grid_spec=pltpu.PrefetchScalarGridSpec(
            num_scalar_prefetch=0,
            grid=(2, nk),
            in_specs=[
                pl.BlockSpec((M, tk), lambda p, k: (0, k)),
                pl.BlockSpec((1, tk, Hh), lambda p, k: (p, k, 0)),
                pl.BlockSpec((1, 1, Hh), lambda p, k: (p, 0, 0)),
                pl.BlockSpec((1, Hh, C), lambda p, k: (p, 0, 0)),
            ],
            out_specs=pl.BlockSpec((1, M, C), lambda p, k: (p, 0, 0)),
            scratch_shapes=[pltpu.VMEM((M, Hh), jnp.float32)],
        ),
        compiler_params=pltpu.CompilerParams(
            dimension_semantics=("parallel", "arbitrary"),
            vmem_limit_bytes=32 * 1024 * 1024,
        ),
    )(x_bf16, w1p, b1p, w2p)

    return partials[0] + partials[1] + b2                   # (M, C) f32, ~KB of XLA work


# -------------------- full forward --------------------
@jax.jit
def simple_cnn_forward(x_nchw, params):
    N = x_nchw.shape[0]
    h = conv3x3_relu_maxpool(x_nchw.astype(jnp.bfloat16),
                             params["conv1_w"], params["conv1_b"])   # (N, 16, 64*64) bf16
    h = h.reshape(N, 16, 64, 64)
    h = conv3x3_relu_maxpool(h, params["conv2_w"], params["conv2_b"])  # (N, 32, 32*32) bf16
    # channel-major (c, h, w) flat order == torch's x.view(-1, 32*32*32): free reshape.
    flat = h.reshape(N, 32 * 32 * 32)
    return fc_head(flat, params["fc1_w"], params["fc1_b"],
                   params["fc2_w"], params["fc2_b"], tk=8192)          # (N, classes) f32


if __name__ == "__main__":
    key = jax.random.PRNGKey(0)
    ks = jax.random.split(key, 9)

    def u(k, shape, fan_in):
        bound = 1.0 / (fan_in ** 0.5)
        return jax.random.uniform(k, shape, jnp.float32, -bound, bound)

    raw = {
        # torch layouts: conv weight (Cout, Cin, kh, kw); linear weight (out, in)
        "w1": u(ks[0], (16, 3, 3, 3), 3 * 9),
        "b1": u(ks[1], (16,), 3 * 9),
        "w2": u(ks[2], (32, 16, 3, 3), 16 * 9),
        "b2": u(ks[3], (32,), 16 * 9),
        "wfc1": u(ks[4], (128, 32 * 32 * 32), 32 * 32 * 32),
        "bfc1": u(ks[5], (128,), 32 * 32 * 32),
        "wfc2": u(ks[6], (NUM_CLASSES, 128), 128),
        "bfc2": u(ks[7], (NUM_CLASSES,), 128),
    }
    params = prepare_params(raw)   # one-time offline weight transforms (incl. fc1 transpose)

    x = jax.random.normal(ks[8], (2, 3, 128, 128), jnp.float32)
    out = simple_cnn_forward(x, params)
    jax.block_until_ready(out)
    assert out.shape == (2, NUM_CLASSES)
    assert out.dtype == jnp.float32
    print("KERNEL_OK")
</pallas_src>

<mosaic_0001>
module attributes {stable_mosaic.version = 11 : i64} {
  func.func @_conv_kernel(%arg0: i32, %arg1: memref<1x16x4160xbf16, #tpu.memory_space<vmem>>, %arg2: memref<1x16x4160xbf16, #tpu.memory_space<vmem>>, %arg3: memref<16x16x16xbf16, #tpu.memory_space<vmem>>, %arg4: memref<16x1xf32, #tpu.memory_space<vmem>>, %arg5: memref<1x16x4096xbf16, #tpu.memory_space<vmem>>) attributes {dimension_semantics = [#tpu.dimension_semantics<parallel>], iteration_bounds = array<i64: 2>, scalar_prefetch = 0 : i64, scratch_operands = 0 : i64, tpu.core_type = #tpu.core_type<tc>, window_params = [{transform_indices = @transform_0, window_bounds = array<i64: 1, 16, 4160>}, {transform_indices = @transform_1, window_bounds = array<i64: 1, 16, 4160>}, {pipeline_mode = #tpu.pipeline_mode<synchronous>, transform_indices = @transform_2, window_bounds = array<i64: 16, 16, 16>}, {pipeline_mode = #tpu.pipeline_mode<synchronous>, transform_indices = @transform_3, window_bounds = array<i64: 16, 1>}, {transform_indices = @transform_4, window_bounds = array<i64: 1, 16, 4096>}]} {
    %c0 = arith.constant 0 : index
    %c0_0 = arith.constant 0 : index
    %0 = vector.load %arg4[%c0, %c0_0] : memref<16x1xf32, #tpu.memory_space<vmem>>, vector<16x1xf32>
    %c0_1 = arith.constant 0 : index
    %c0_2 = arith.constant 0 : index
    %c0_3 = arith.constant 0 : index
    %1 = vector.load %arg1[%c0_1, %c0_2, %c0_3] : memref<1x16x4160xbf16, #tpu.memory_space<vmem>>, vector<1x16x2048xbf16>
    %2 = vector.shape_cast %1 : vector<1x16x2048xbf16> to vector<16x2048xbf16>
    %c0_4 = arith.constant 0 : index
    %c0_5 = arith.constant 0 : index
    %c0_6 = arith.constant 0 : index
    %3 = vector.load %arg3[%c0_4, %c0_5, %c0_6] : memref<16x16x16xbf16, #tpu.memory_space<vmem>>, vector<1x16x16xbf16>
    %4 = vector.shape_cast %3 : vector<1x16x16xbf16> to vector<16x16xbf16>
    %cst = arith.constant dense<0.000000e+00> : vector<16x2048xf32>
    %5 = tpu.matmul %4, %2, %cst {dimension_numbers = #tpu.dot_dimension_numbers<[1], [0], [0], [1], [0, 0, 1, 1], [], []>} : vector<16x16xbf16>, vector<16x2048xbf16>, vector<16x2048xf32> -> vector<16x2048xf32>
    %c0_7 = arith.constant 0 : index
    %c0_8 = arith.constant 0 : index
    %c0_9 = arith.constant 0 : index
    %6 = vector.load %arg2[%c0_7, %c0_8, %c0_9] : memref<1x16x4160xbf16, #tpu.memory_space<vmem>>, vector<1x16x2048xbf16>
    %7 = vector.shape_cast %6 : vector<1x16x2048xbf16> to vector<16x2048xbf16>
    %c1 = arith.constant 1 : index
    %c0_10 = arith.constant 0 : index
    %c0_11 = arith.constant 0 : index
    %8 = vector.load %arg3[%c1, %c0_10, %c0_11] : memref<16x16x16xbf16, #tpu.memory_space<vmem>>, vector<1x16x16xbf16>
    %9 = vector.shape_cast %8 : vector<1x16x16xbf16> to vector<16x16xbf16>
    %cst_12 = arith.constant dense<0.000000e+00> : vector<16x2048xf32>
    %10 = tpu.matmul %9, %7, %cst_12 {dimension_numbers = #tpu.dot_dimension_numbers<[1], [0], [0], [1], [0, 0, 1, 1], [], []>} : vector<16x16xbf16>, vector<16x2048xbf16>, vector<16x2048xf32> -> vector<16x2048xf32>
    %11 = arith.addf %5, %10 : vector<16x2048xf32>
    %c0_13 = arith.constant 0 : index
    %c0_14 = arith.constant 0 : index
    %c64 = arith.constant 64 : index
    %12 = vector.load %arg1[%c0_13, %c0_14, %c64] : memref<1x16x4160xbf16, #tpu.memory_space<vmem>>, vector<1x16x2048xbf16>
    %13 = vector.shape_cast %12 : vector<1x16x2048xbf16> to vector<16x2048xbf16>
    %c2 = arith.constant 2 : index
    %c0_15 = arith.constant 0 : index
    %c0_16 = arith.constant 0 : index
    %14 = vector.load %arg3[%c2, %c0_15, %c0_16] : memref<16x16x16xbf16, #tpu.memory_space<vmem>>, vector<1x16x16xbf16>
    %15 = vector.shape_cast %14 : vector<1x16x16xbf16> to vector<16x16xbf16>
    %cst_17 = arith.constant dense<0.000000e+00> : vector<16x2048xf32>
    %16 = tpu.matmul %15, %13, %cst_17 {dimension_numbers = #tpu.dot_dimension_numbers<[1], [0], [0], [1], [0, 0, 1, 1], [], []>} : vector<16x16xbf16>, vector<16x2048xbf16>, vector<16x2048xf32> -> vector<16x2048xf32>
    %17 = arith.addf %11, %16 : vector<16x2048xf32>
    %c0_18 = arith.constant 0 : index
    %c0_19 = arith.constant 0 : index
    %c64_20 = arith.constant 64 : index
    %18 = vector.load %arg2[%c0_18, %c0_19, %c64_20] : memref<1x16x4160xbf16, #tpu.memory_space<vmem>>, vector<1x16x2048xbf16>
    %19 = vector.shape_cast %18 : vector<1x16x2048xbf16> to vector<16x2048xbf16>
    %c3 = arith.constant 3 : index
    %c0_21 = arith.constant 0 : index
    %c0_22 = arith.constant 0 : index
    %20 = vector.load %arg3[%c3, %c0_21, %c0_22] : memref<16x16x16xbf16, #tpu.memory_space<vmem>>, vector<1x16x16xbf16>
    %21 = vector.shape_cast %20 : vector<1x16x16xbf16> to vector<16x16xbf16>
    %cst_23 = arith.constant dense<0.000000e+00> : vector<16x2048xf32>
    %22 = tpu.matmul %21, %19, %cst_23 {dimension_numbers = #tpu.dot_dimension_numbers<[1], [0], [0], [1], [0, 0, 1, 1], [], []>} : vector<16x16xbf16>, vector<16x2048xbf16>, vector<16x2048xf32> -> vector<16x2048xf32>
    %23 = arith.addf %17, %22 : vector<16x2048xf32>
    %c0_24 = arith.constant 0 : index
    %c0_25 = arith.constant 0 : index
    %c0_26 = arith.constant 0 : index
    %24 = vector.load %arg1[%c0_24, %c0_25, %c0_26] : memref<1x16x4160xbf16, #tpu.memory_space<vmem>>, vector<1x16x2048xbf16>
    %25 = vector.shape_cast %24 : vector<1x16x2048xbf16> to vector<16x2048xbf16>
    %c4 = arith.constant 4 : index
    %c0_27 = arith.constant 0 : index
    %c0_28 = arith.constant 0 : index
    %26 = vector.load %arg3[%c4, %c0_27, %c0_28] : memref<16x16x16xbf16, #tpu.memory_space<vmem>>, vector<1x16x16xbf16>
    %27 = vector.shape_cast %26 : vector<1x16x16xbf16> to vector<16x16xbf16>
    %cst_29 = arith.constant dense<0.000000e+00> : vector<16x2048xf32>
    %28 = tpu.matmul %27, %25, %cst_29 {dimension_numbers = #tpu.dot_dimension_numbers<[1], [0], [0], [1], [0, 0, 1, 1], [], []>} : vector<16x16xbf16>, vector<16x2048xbf16>, vector<16x2048xf32> -> vector<16x2048xf32>
    %c0_30 = arith.constant 0 : index
    %c0_31 = arith.constant 0 : index
    %c0_32 = arith.constant 0 : index
    %29 = vector.load %arg2[%c0_30, %c0_31, %c0_32] : memref<1x16x4160xbf16, #tpu.memory_space<vmem>>, vector<1x16x2048xbf16>
    %30 = vector.shape_cast %29 : vector<1x16x2048xbf16> to vector<16x2048xbf16>
    %c5 = arith.constant 5 : index
    %c0_33 = arith.constant 0 : index
    %c0_34 = arith.constant 0 : index
    %31 = vector.load %arg3[%c5, %c0_33, %c0_34] : memref<16x16x16xbf16, #tpu.memory_space<vmem>>, vector<1x16x16xbf16>
    %32 = vector.shape_cast %31 : vector<1x16x16xbf16> to vector<16x16xbf16>
    %cst_35 = arith.constant dense<0.000000e+00> : vector<16x2048xf32>
    %33 = tpu.matmul %32, %30, %cst_35 {dimension_numbers = #tpu.dot_dimension_numbers<[1], [0], [0], [1], [0, 0, 1, 1], [], []>} : vector<16x16xbf16>, vector<16x2048xbf16>, vector<16x2048xf32> -> vector<16x2048xf32>
    %34 = arith.addf %28, %33 : vector<16x2048xf32>
    %c0_36 = arith.constant 0 : index
    %c0_37 = arith.constant 0 : index
    %c64_38 = arith.constant 64 : index
    %35 = vector.load %arg1[%c0_36, %c0_37, %c64_38] : memref<1x16x4160xbf16, #tpu.memory_space<vmem>>, vector<1x16x2048xbf16>
    %36 = vector.shape_cast %35 : vector<1x16x2048xbf16> to vector<16x2048xbf16>
    %c6 = arith.constant 6 : index
    %c0_39 = arith.constant 0 : index
    %c0_40 = arith.constant 0 : index
    %37 = vector.load %arg3[%c6, %c0_39, %c0_40] : memref<16x16x16xbf16, #tpu.memory_space<vmem>>, vector<1x16x16xbf16>
    %38 = vector.shape_cast %37 : vector<1x16x16xbf16> to vector<16x16xbf16>
    %cst_41 = arith.constant dense<0.000000e+00> : vector<16x2048xf32>
    %39 = tpu.matmul %38, %36, %cst_41 {dimension_numbers = #tpu.dot_dimension_numbers<[1], [0], [0], [1], [0, 0, 1, 1], [], []>} : vector<16x16xbf16>, vector<16x2048xbf16>, vector<16x2048xf32> -> vector<16x2048xf32>
    %40 = arith.addf %34, %39 : vector<16x2048xf32>
    %c0_42 = arith.constant 0 : index
    %c0_43 = arith.constant 0 : index
    %c64_44 = arith.constant 64 : index
    %41 = vector.load %arg2[%c0_42, %c0_43, %c64_44] : memref<1x16x4160xbf16, #tpu.memory_space<vmem>>, vector<1x16x2048xbf16>
    %42 = vector.shape_cast %41 : vector<1x16x2048xbf16> to vector<16x2048xbf16>
    %c7 = arith.constant 7 : index
    %c0_45 = arith.constant 0 : index
    %c0_46 = arith.constant 0 : index
    %43 = vector.load %arg3[%c7, %c0_45, %c0_46] : memref<16x16x16xbf16, #tpu.memory_space<vmem>>, vector<1x16x16xbf16>
    %44 = vector.shape_cast %43 : vector<1x16x16xbf16> to vector<16x16xbf16>
    %cst_47 = arith.constant dense<0.000000e+00> : vector<16x2048xf32>
    %45 = tpu.matmul %44, %42, %cst_47 {dimension_numbers = #tpu.dot_dimension_numbers<[1], [0], [0], [1], [0, 0, 1, 1], [], []>} : vector<16x16xbf16>, vector<16x2048xbf16>, vector<16x2048xf32> -> vector<16x2048xf32>
    %46 = arith.addf %40, %45 : vector<16x2048xf32>
    %47 = arith.maximumf %23, %46 : vector<16x2048xf32>
    %c0_48 = arith.constant 0 : index
    %c0_49 = arith.constant 0 : index
    %c0_50 = arith.constant 0 : index
    %48 = vector.load %arg1[%c0_48, %c0_49, %c0_50] : memref<1x16x4160xbf16, #tpu.memory_space<vmem>>, vector<1x16x2048xbf16>
    %49 = vector.shape_cast %48 : vector<1x16x2048xbf16> to vector<16x2048xbf16>
    %c8 = arith.constant 8 : index
    %c0_51 = arith.constant 0 : index
    %c0_52 = arith.constant 0 : index
    %50 = vector.load %arg3[%c8, %c0_51, %c0_52] : memref<16x16x16xbf16, #tpu.memory_space<vmem>>, vector<1x16x16xbf16>
    %51 = vector.shape_cast %50 : vector<1x16x16xbf16> to vector<16x16xbf16>
    %cst_53 = arith.constant dense<0.000000e+00> : vector<16x2048xf32>
    %52 = tpu.matmul %51, %49, %cst_53 {dimension_numbers = #tpu.dot_dimension_numbers<[1], [0], [0], [1], [0, 0, 1, 1], [], []>} : vector<16x16xbf16>, vector<16x2048xbf16>, vector<16x2048xf32> -> vector<16x2048xf32>
    %c0_54 = arith.constant 0 : index
    %c0_55 = arith.constant 0 : index
    %c0_56 = arith.constant 0 : index
    %53 = vector.load %arg2[%c0_54, %c0_55, %c0_56] : memref<1x16x4160xbf16, #tpu.memory_space<vmem>>, vector<1x16x2048xbf16>
    %54 = vector.shape_cast %53 : vector<1x16x2048xbf16> to vector<16x2048xbf16>
    %c9 = arith.constant 9 : index
    %c0_57 = arith.constant 0 : index
    %c0_58 = arith.constant 0 : index
    %55 = vector.load %arg3[%c9, %c0_57, %c0_58] : memref<16x16x16xbf16, #tpu.memory_space<vmem>>, vector<1x16x16xbf16>
    %56 = vector.shape_cast %55 : vector<1x16x16xbf16> to vector<16x16xbf16>
    %cst_59 = arith.constant dense<0.000000e+00> : vector<16x2048xf32>
    %57 = tpu.matmul %56, %54, %cst_59 {dimension_numbers = #tpu.dot_dimension_numbers<[1], [0], [0], [1], [0, 0, 1, 1], [], []>} : vector<16x16xbf16>, vector<16x2048xbf16>, vector<16x2048xf32> -> vector<16x2048xf32>
    %58 = arith.addf %52, %57 : vector<16x2048xf32>
    %c0_60 = arith.constant 0 : index
    %c0_61 = arith.constant 0 : index
    %c64_62 = arith.constant 64 : index
    %59 = vector.load %arg1[%c0_60, %c0_61, %c64_62] : memref<1x16x4160xbf16, #tpu.memory_space<vmem>>, vector<1x16x2048xbf16>
    %60 = vector.shape_cast %59 : vector<1x16x2048xbf16> to vector<16x2048xbf16>
    %c10 = arith.constant 10 : index
    %c0_63 = arith.constant 0 : index
    %c0_64 = arith.constant 0 : index
    %61 = vector.load %arg3[%c10, %c0_63, %c0_64] : memref<16x16x16xbf16, #tpu.memory_space<vmem>>, vector<1x16x16xbf16>
    %62 = vector.shape_cast %61 : vector<1x16x16xbf16> to vector<16x16xbf16>
    %cst_65 = arith.constant dense<0.000000e+00> : vector<16x2048xf32>
    %63 = tpu.matmul %62, %60, %cst_65 {dimension_numbers = #tpu.dot_dimension_numbers<[1], [0], [0], [1], [0, 0, 1, 1], [], []>} : vector<16x16xbf16>, vector<16x2048xbf16>, vector<16x2048xf32> -> vector<16x2048xf32>
    %64 = arith.addf %58, %63 : vector<16x2048xf32>
    %c0_66 = arith.constant 0 : index
    %c0_67 = arith.constant 0 : index
    %c64_68 = arith.constant 64 : index
    %65 = vector.load %arg2[%c0_66, %c0_67, %c64_68] : memref<1x16x4160xbf16, #tpu.memory_space<vmem>>, vector<1x16x2048xbf16>
    %66 = vector.shape_cast %65 : vector<1x16x2048xbf16> to vector<16x2048xbf16>
    %c11 = arith.constant 11 : index
    %c0_69 = arith.constant 0 : index
    %c0_70 = arith.constant 0 : index
    %67 = vector.load %arg3[%c11, %c0_69, %c0_70] : memref<16x16x16xbf16, #tpu.memory_space<vmem>>, vector<1x16x16xbf16>
    %68 = vector.shape_cast %67 : vector<1x16x16xbf16> to vector<16x16xbf16>
    %cst_71 = arith.constant dense<0.000000e+00> : vector<16x2048xf32>
    %69 = tpu.matmul %68, %66, %cst_71 {dimension_numbers = #tpu.dot_dimension_numbers<[1], [0], [0], [1], [0, 0, 1, 1], [], []>} : vector<16x16xbf16>, vector<16x2048xbf16>, vector<16x2048xf32> -> vector<16x2048xf32>
    %70 = arith.addf %64, %69 : vector<16x2048xf32>
    %71 = arith.maximumf %47, %70 : vector<16x2048xf32>
    %c0_72 = arith.constant 0 : index
    %c0_73 = arith.constant 0 : index
    %c0_74 = arith.constant 0 : index
    %72 = vector.load %arg1[%c0_72, %c0_73, %c0_74] : memref<1x16x4160xbf16, #tpu.memory_space<vmem>>, vector<1x16x2048xbf16>
    %73 = vector.shape_cast %72 : vector<1x16x2048xbf16> to vector<16x2048xbf16>
    %c12 = arith.constant 12 : index
    %c0_75 = arith.constant 0 : index
    %c0_76 = arith.constant 0 : index
    %74 = vector.load %arg3[%c12, %c0_75, %c0_76] : memref<16x16x16xbf16, #tpu.memory_space<vmem>>, vector<1x16x16xbf16>
    %75 = vector.shape_cast %74 : vector<1x16x16xbf16> to vector<16x16xbf16>
    %cst_77 = arith.constant dense<0.000000e+00> : vector<16x2048xf32>
    %76 = tpu.matmul %75, %73, %cst_77 {dimension_numbers = #tpu.dot_dimension_numbers<[1], [0], [0], [1], [0, 0, 1, 1], [], []>} : vector<16x16xbf16>, vector<16x2048xbf16>, vector<16x2048xf32> -> vector<16x2048xf32>
    %c0_78 = arith.constant 0 : index
    %c0_79 = arith.constant 0 : index
    %c0_80 = arith.constant 0 : index
    %77 = vector.load %arg2[%c0_78, %c0_79, %c0_80] : memref<1x16x4160xbf16, #tpu.memory_space<vmem>>, vector<1x16x2048xbf16>
    %78 = vector.shape_cast %77 : vector<1x16x2048xbf16> to vector<16x2048xbf16>
    %c13 = arith.constant 13 : index
    %c0_81 = arith.constant 0 : index
    %c0_82 = arith.constant 0 : index
    %79 = vector.load %arg3[%c13, %c0_81, %c0_82] : memref<16x16x16xbf16, #tpu.memory_space<vmem>>, vector<1x16x16xbf16>
    %80 = vector.shape_cast %79 : vector<1x16x16xbf16> to vector<16x16xbf16>
    %cst_83 = arith.constant dense<0.000000e+00> : vector<16x2048xf32>
    %81 = tpu.matmul %80, %78, %cst_83 {dimension_numbers = #tpu.dot_dimension_numbers<[1], [0], [0], [1], [0, 0, 1, 1], [], []>} : vector<16x16xbf16>, vector<16x2048xbf16>, vector<16x2048xf32> -> vector<16x2048xf32>
    %82 = arith.addf %76, %81 : vector<16x2048xf32>
    %c0_84 = arith.constant 0 : index
    %c0_85 = arith.constant 0 : index
    %c64_86 = arith.constant 64 : index
    %83 = vector.load %arg1[%c0_84, %c0_85, %c64_86] : memref<1x16x4160xbf16, #tpu.memory_space<vmem>>, vector<1x16x2048xbf16>
    %84 = vector.shape_cast %83 : vector<1x16x2048xbf16> to vector<16x2048xbf16>
    %c14 = arith.constant 14 : index
    %c0_87 = arith.constant 0 : index
    %c0_88 = arith.constant 0 : index
    %85 = vector.load %arg3[%c14, %c0_87, %c0_88] : memref<16x16x16xbf16, #tpu.memory_space<vmem>>, vector<1x16x16xbf16>
    %86 = vector.shape_cast %85 : vector<1x16x16xbf16> to vector<16x16xbf16>
    %cst_89 = arith.constant dense<0.000000e+00> : vector<16x2048xf32>
    %87 = tpu.matmul %86, %84, %cst_89 {dimension_numbers = #tpu.dot_dimension_numbers<[1], [0], [0], [1], [0, 0, 1, 1], [], []>} : vector<16x16xbf16>, vector<16x2048xbf16>, vector<16x2048xf32> -> vector<16x2048xf32>
    %88 = arith.addf %82, %87 : vector<16x2048xf32>
    %c0_90 = arith.constant 0 : index
    %c0_91 = arith.constant 0 : index
    %c64_92 = arith.constant 64 : index
    %89 = vector.load %arg2[%c0_90, %c0_91, %c64_92] : memref<1x16x4160xbf16, #tpu.memory_space<vmem>>, vector<1x16x2048xbf16>
    %90 = vector.shape_cast %89 : vector<1x16x2048xbf16> to vector<16x2048xbf16>
    %c15 = arith.constant 15 : index
    %c0_93 = arith.constant 0 : index
    %c0_94 = arith.constant 0 : index
    %91 = vector.load %arg3[%c15, %c0_93, %c0_94] : memref<16x16x16xbf16, #tpu.memory_space<vmem>>, vector<1x16x16xbf16>
    %92 = vector.shape_cast %91 : vector<1x16x16xbf16> to vector<16x16xbf16>
    %cst_95 = arith.constant dense<0.000000e+00> : vector<16x2048xf32>
    %93 = tpu.matmul %92, %90, %cst_95 {dimension_numbers = #tpu.dot_dimension_numbers<[1], [0], [0], [1], [0, 0, 1, 1], [], []>} : vector<16x16xbf16>, vector<16x2048xbf16>, vector<16x2048xf32> -> vector<16x2048xf32>
    %94 = arith.addf %88, %93 : vector<16x2048xf32>
    %95 = arith.maximumf %71, %94 : vector<16x2048xf32>
    %96 = vector.broadcast %0 : vector<16x1xf32> to vector<16x2048xf32>
    %97 = arith.addf %95, %96 : vector<16x2048xf32>
    %cst_96 = arith.constant 0.000000e+00 : f32
    %98 = vector.broadcast %cst_96 : f32 to vector<16x2048xf32>
    %99 = arith.maximumf %97, %98 : vector<16x2048xf32>
    %100 = arith.truncf %99 : vector<16x2048xf32> to vector<16x2048xbf16>
    %c0_97 = arith.constant 0 : index
    %c0_98 = arith.constant 0 : index
    %c0_99 = arith.constant 0 : index
    %101 = vector.load %arg5[%c0_97, %c0_98, %c0_99] : memref<1x16x4096xbf16, #tpu.memory_space<vmem>>, vector<1x16x2048xbf16>
    %102 = vector.shape_cast %101 : vector<1x16x2048xbf16> to vector<16x2048xbf16>
    %103 = vector.shape_cast %100 : vector<16x2048xbf16> to vector<1x16x2048xbf16>
    tpu.vector_store %arg5[%c0_97, %c0_98, %c0_99], %103 {strides = array<i32>} : memref<1x16x4096xbf16, #tpu.memory_space<vmem>>, vector<1x16x2048xbf16>,
    %c0_100 = arith.constant 0 : index
    %c0_101 = arith.constant 0 : index
    %c2048 = arith.constant 2048 : index
    %104 = vector.load %arg1[%c0_100, %c0_101, %c2048] : memref<1x16x4160xbf16, #tpu.memory_space<vmem>>, vector<1x16x2048xbf16>
    %105 = vector.shape_cast %104 : vector<1x16x2048xbf16> to vector<16x2048xbf16>
    %c0_102 = arith.constant 0 : index
    %c0_103 = arith.constant 0 : index
    %c0_104 = arith.constant 0 : index
    %106 = vector.load %arg3[%c0_102, %c0_103, %c0_104] : memref<16x16x16xbf16, #tpu.memory_space<vmem>>, vector<1x16x16xbf16>
    %107 = vector.shape_cast %106 : vector<1x16x16xbf16> to vector<16x16xbf16>
    %cst_105 = arith.constant dense<0.000000e+00> : vector<16x2048xf32>
    %108 = tpu.matmul %107, %105, %cst_105 {dimension_numbers = #tpu.dot_dimension_numbers<[1], [0], [0], [1], [0, 0, 1, 1], [], []>} : vector<16x16xbf16>, vector<16x2048xbf16>, vector<16x2048xf32> -> vector<16x2048xf32>
    %c0_106 = arith.constant 0 : index
    %c0_107 = arith.constant 0 : index
    %c2048_108 = arith.constant 2048 : index
    %109 = vector.load %arg2[%c0_106, %c0_107, %c2048_108] : memref<1x16x4160xbf16, #tpu.memory_space<vmem>>, vector<1x16x2048xbf16>
    %110 = vector.shape_cast %109 : vector<1x16x2048xbf16> to vector<16x2048xbf16>
    %c1_109 = arith.constant 1 : index
    %c0_110 = arith.constant 0 : index
    %c0_111 = arith.constant 0 : index
    %111 = vector.load %arg3[%c1_109, %c0_110, %c0_111] : memref<16x16x16xbf16, #tpu.memory_space<vmem>>, vector<1x16x16xbf16>
    %112 = vector.shape_cast %111 : vector<1x16x16xbf16> to vector<16x16xbf16>
    %cst_112 = arith.constant dense<0.000000e+00> : vector<16x2048xf32>
    %113 = tpu.matmul %112, %110, %cst_112 {dimension_numbers = #tpu.dot_dimension_numbers<[1], [0], [0], [1], [0, 0, 1, 1], [], []>} : vector<16x16xbf16>, vector<16x2048xbf16>, vector<16x2048xf32> -> vector<16x2048xf32>
    %114 = arith.addf %108, %113 : vector<16x2048xf32>
    %c0_113 = arith.constant 0 : index
    %c0_114 = arith.constant 0 : index
    %c2112 = arith.constant 2112 : index
    %115 = vector.load %arg1[%c0_113, %c0_114, %c2112] : memref<1x16x4160xbf16, #tpu.memory_space<vmem>>, vector<1x16x2048xbf16>
    %116 = vector.shape_cast %115 : vector<1x16x2048xbf16> to vector<16x2048xbf16>
    %c2_115 = arith.constant 2 : index
    %c0_116 = arith.constant 0 : index
    %c0_117 = arith.constant 0 : index
    %117 = vector.load %arg3[%c2_115, %c0_116, %c0_117] : memref<16x16x16xbf16, #tpu.memory_space<vmem>>, vector<1x16x16xbf16>
    %118 = vector.shape_cast %117 : vector<1x16x16xbf16> to vector<16x16xbf16>
    %cst_118 = arith.constant dense<0.000000e+00> : vector<16x2048xf32>
    %119 = tpu.matmul %118, %116, %cst_118 {dimension_numbers = #tpu.dot_dimension_numbers<[1], [0], [0], [1], [0, 0, 1, 1], [], []>} : vector<16x16xbf16>, vector<16x2048xbf16>, vector<16x2048xf32> -> vector<16x2048xf32>
    %120 = arith.addf %114, %119 : vector<16x2048xf32>
    %c0_119 = arith.constant 0 : index
    %c0_120 = arith.constant 0 : index
    %c2112_121 = arith.constant 2112 : index
    %121 = vector.load %arg2[%c0_119, %c0_120, %c2112_121] : memref<1x16x4160xbf16, #tpu.memory_space<vmem>>, vector<1x16x2048xbf16>
    %122 = vector.shape_cast %121 : vector<1x16x2048xbf16> to vector<16x2048xbf16>
    %c3_122 = arith.constant 3 : index
    %c0_123 = arith.constant 0 : index
    %c0_124 = arith.constant 0 : index
    %123 = vector.load %arg3[%c3_122, %c0_123, %c0_124] : memref<16x16x16xbf16, #tpu.memory_space<vmem>>, vector<1x16x16xbf16>
    %124 = vector.shape_cast %123 : vector<1x16x16xbf16> to vector<16x16xbf16>
    %cst_125 = arith.constant dense<0.000000e+00> : vector<16x2048xf32>
    %125 = tpu.matmul %124, %122, %cst_125 {dimension_numbers = #tpu.dot_dimension_numbers<[1], [0], [0], [1], [0, 0, 1, 1], [], []>} : vector<16x16xbf16>, vector<16x2048xbf16>, vector<16x2048xf32> -> vector<16x2048xf32>
    %126 = arith.addf %120, %125 : vector<16x2048xf32>
    %c0_126 = arith.constant 0 : index
    %c0_127 = arith.constant 0 : index
    %c2048_128 = arith.constant 2048 : index
    %127 = vector.load %arg1[%c0_126, %c0_127, %c2048_128] : memref<1x16x4160xbf16, #tpu.memory_space<vmem>>, vector<1x16x2048xbf16>
    %128 = vector.shape_cast %127 : vector<1x16x2048xbf16> to vector<16x2048xbf16>
    %c4_129 = arith.constant 4 : index
    %c0_130 = arith.constant 0 : index
    %c0_131 = arith.constant 0 : index
    %129 = vector.load %arg3[%c4_129, %c0_130, %c0_131] : memref<16x16x16xbf16, #tpu.memory_space<vmem>>, vector<1x16x16xbf16>
    %130 = vector.shape_cast %129 : vector<1x16x16xbf16> to vector<16x16xbf16>
    %cst_132 = arith.constant dense<0.000000e+00> : vector<16x2048xf32>
    %131 = tpu.matmul %130, %128, %cst_132 {dimension_numbers = #tpu.dot_dimension_numbers<[1], [0], [0], [1], [0, 0, 1, 1], [], []>} : vector<16x16xbf16>, vector<16x2048xbf16>, vector<16x2048xf32> -> vector<16x2048xf32>
    %c0_133 = arith.constant 0 : index
    %c0_134 = arith.constant 0 : index
    %c2048_135 = arith.constant 2048 : index
    %132 = vector.load %arg2[%c0_133, %c0_134, %c2048_135] : memref<1x16x4160xbf16, #tpu.memory_space<vmem>>, vector<1x16x2048xbf16>
    %133 = vector.shape_cast %132 : vector<1x16x2048xbf16> to vector<16x2048xbf16>
    %c5_136 = arith.constant 5 : index
    %c0_137 = arith.constant 0 : index
    %c0_138 = arith.constant 0 : index
    %134 = vector.load %arg3[%c5_136, %c0_137, %c0_138] : memref<16x16x16xbf16, #tpu.memory_space<vmem>>, vector<1x16x16xbf16>
    %135 = vector.shape_cast %134 : vector<1x16x16xbf16> to vector<16x16xbf16>
    %cst_139 = arith.constant dense<0.000000e+00> : vector<16x2048xf32>
    %136 = tpu.matmul %135, %133, %cst_139 {dimension_numbers = #tpu.dot_dimension_numbers<[1], [0], [0], [1], [0, 0, 1, 1], [], []>} : vector<16x16xbf16>, vector<16x2048xbf16>, vector<16x2048xf32> -> vector<16x2048xf32>
    %137 = arith.addf %131, %136 : vector<16x2048xf32>
    %c0_140 = arith.constant 0 : index
    %c0_141 = arith.constant 0 : index
    %c2112_142 = arith.constant 2112 : index
    %138 = vector.load %arg1[%c0_140, %c0_141, %c2112_142] : memref<1x16x4160xbf16, #tpu.memory_space<vmem>>, vector<1x16x2048xbf16>
    %139 = vector.shape_cast %138 : vector<1x16x2048xbf16> to vector<16x2048xbf16>
    %c6_143 = arith.constant 6 : index
    %c0_144 = arith.constant 0 : index
    %c0_145 = arith.constant 0 : index
    %140 = vector.load %arg3[%c6_143, %c0_144, %c0_145] : memref<16x16x16xbf16, #tpu.memory_space<vmem>>, vector<1x16x16xbf16>
    %141 = vector.shape_cast %140 : vector<1x16x16xbf16> to vector<16x16xbf16>
    %cst_146 = arith.constant dense<0.000000e+00> : vector<16x2048xf32>
    %142 = tpu.matmul %141, %139, %cst_146 {dimension_numbers = #tpu.dot_dimension_numbers<[1], [0], [0], [1], [0, 0, 1, 1], [], []>} : vector<16x16xbf16>, vector<16x2048xbf16>, vector<16x2048xf32> -> vector<16x2048xf32>
    %143 = arith.addf %137, %142 : vector<16x2048xf32>
    %c0_147 = arith.constant 0 : index
    %c0_148 = arith.constant 0 : index
    %c2112_149 = arith.constant 2112 : index
    %144 = vector.load %arg2[%c0_147, %c0_148, %c2112_149] : memref<1x16x4160xbf16, #tpu.memory_space<vmem>>, vector<1x16x2048xbf16>
    %145 = vector.shape_cast %144 : vector<1x16x2048xbf16> to vector<16x2048xbf16>
    %c7_150 = arith.constant 7 : index
    %c0_151 = arith.constant 0 : index
    %c0_152 = arith.constant 0 : index
    %146 = vector.load %arg3[%c7_150, %c0_151, %c0_152] : memref<16x16x16xbf16, #tpu.memory_space<vmem>>, vector<1x16x16xbf16>
    %147 = vector.shape_cast %146 : vector<1x16x16xbf16> to vector<16x16xbf16>
    %cst_153 = arith.constant dense<0.000000e+00> : vector<16x2048xf32>
    %148 = tpu.matmul %147, %145, %cst_153 {dimension_numbers = #tpu.dot_dimension_numbers<[1], [0], [0], [1], [0, 0, 1, 1], [], []>} : vector<16x16xbf16>, vector<16x2048xbf16>, vector<16x2048xf32> -> vector<16x2048xf32>
    %149 = arith.addf %143, %148 : vector<16x2048xf32>
    %150 = arith.maximumf %126, %149 : vector<16x2048xf32>
    %c0_154 = arith.constant 0 : index
    %c0_155 = arith.constant 0 : index
    %c2048_156 = arith.constant 2048 : index
    %151 = vector.load %arg1[%c0_154, %c0_155, %c2048_156] : memref<1x16x4160xbf16, #tpu.memory_space<vmem>>, vector<1x16x2048xbf16>
    %152 = vector.shape_cast %151 : vector<1x16x2048xbf16> to vector<16x2048xbf16>
    %c8_157 = arith.constant 8 : index
    %c0_158 = arith.constant 0 : index
    %c0_159 = arith.constant 0 : index
    %153 = vector.load %arg3[%c8_157, %c0_158, %c0_159] : memref<16x16x16xbf16, #tpu.memory_space<vmem>>, vector<1x16x16xbf16>
    %154 = vector.shape_cast %153 : vector<1x16x16xbf16> to vector<16x16xbf16>
    %cst_160 = arith.constant dense<0.000000e+00> : vector<16x2048xf32>
    %155 = tpu.matmul %154, %152, %cst_160 {dimension_numbers = #tpu.dot_dimension_numbers<[1], [0], [0], [1], [0, 0, 1, 1], [], []>} : vector<16x16xbf16>, vector<16x2048xbf16>, vector<16x2048xf32> -> vector<16x2048xf32>
    %c0_161 = arith.constant 0 : index
    %c0_162 = arith.constant 0 : index
    %c2048_163 = arith.constant 2048 : index
    %156 = vector.load %arg2[%c0_161, %c0_162, %c2048_163] : memref<1x16x4160xbf16, #tpu.memory_space<vmem>>, vector<1x16x2048xbf16>
    %157 = vector.shape_cast %156 : vector<1x16x2048xbf16> to vector<16x2048xbf16>
    %c9_164 = arith.constant 9 : index
    %c0_165 = arith.constant 0 : index
    %c0_166 = arith.constant 0 : index
    %158 = vector.load %arg3[%c9_164, %c0_165, %c0_166] : memref<16x16x16xbf16, #tpu.memory_space<vmem>>, vector<1x16x16xbf16>
    %159 = vector.shape_cast %158 : vector<1x16x16xbf16> to vector<16x16xbf16>
    %cst_167 = arith.constant dense<0.000000e+00> : vector<16x2048xf32>
    %160 = tpu.matmul %159, %157, %cst_167 {dimension_numbers = #tpu.dot_dimension_numbers<[1], [0], [0], [1], [0, 0, 1, 1], [], []>} : vector<16x16xbf16>, vector<16x2048xbf16>, vector<16x2048xf32> -> vector<16x2048xf32>
    %161 = arith.addf %155, %160 : vector<16x2048xf32>
    %c0_168 = arith.constant 0 : index
    %c0_169 = arith.constant 0 : index
    %c2112_170 = arith.constant 2112 : index
    %162 = vector.load %arg1[%c0_168, %c0_169, %c2112_170] : memref<1x16x4160xbf16, #tpu.memory_space<vmem>>, vector<1x16x2048xbf16>
    %163 = vector.shape_cast %162 : vector<1x16x2048xbf16> to vector<16x2048xbf16>
    %c10_171 = arith.constant 10 : index
    %c0_172 = arith.constant 0 : index
    %c0_173 = arith.constant 0 : index
    %164 = vector.load %arg3[%c10_171, %c0_172, %c0_173] : memref<16x16x16xbf16, #tpu.memory_space<vmem>>, vector<1x16x16xbf16>
    %165 = vector.shape_cast %164 : vector<1x16x16xbf16> to vector<16x16xbf16>
    %cst_174 = arith.constant dense<0.000000e+00> : vector<16x2048xf32>
    %166 = tpu.matmul %165, %163, %cst_174 {dimension_numbers = #tpu.dot_dimension_numbers<[1], [0], [0], [1], [0, 0, 1, 1], [], []>} : vector<16x16xbf16>, vector<16x2048xbf16>, vector<16x2048xf32> -> vector<16x2048xf32>
    %167 = arith.addf %161, %166 : vector<16x2048xf32>
    %c0_175 = arith.constant 0 : index
    %c0_176 = arith.constant 0 : index
    %c2112_177 = arith.constant 2112 : index
    %168 = vector.load %arg2[%c0_175, %c0_176, %c2112_177] : memref<1x16x4160xbf16, #tpu.memory_space<vmem>>, vector<1x16x2048xbf16>
    %169 = vector.shape_cast %168 : vector<1x16x2048xbf16> to vector<16x2048xbf16>
    %c11_178 = arith.constant 11 : index
    %c0_179 = arith.constant 0 : index
    %c0_180 = arith.constant 0 : index
    %170 = vector.load %arg3[%c11_178, %c0_179, %c0_180] : memref<16x16x16xbf16, #tpu.memory_space<vmem>>, vector<1x16x16xbf16>
    %171 = vector.shape_cast %170 : vector<1x16x16xbf16> to vector<16x16xbf16>
    %cst_181 = arith.constant dense<0.000000e+00> : vector<16x2048xf32>
    %172 = tpu.matmul %171, %169, %cst_181 {dimension_numbers = #tpu.dot_dimension_numbers<[1], [0], [0], [1], [0, 0, 1, 1], [], []>} : vector<16x16xbf16>, vector<16x2048xbf16>, vector<16x2048xf32> -> vector<16x2048xf32>
    %173 = arith.addf %167, %172 : vector<16x2048xf32>
    %174 = arith.maximumf %150, %173 : vector<16x2048xf32>
    %c0_182 = arith.constant 0 : index
    %c0_183 = arith.constant 0 : index
    %c2048_184 = arith.constant 2048 : index
    %175 = vector.load %arg1[%c0_182, %c0_183, %c2048_184] : memref<1x16x4160xbf16, #tpu.memory_space<vmem>>, vector<1x16x2048xbf16>
    %176 = vector.shape_cast %175 : vector<1x16x2048xbf16> to vector<16x2048xbf16>
    %c12_185 = arith.constant 12 : index
    %c0_186 = arith.constant 0 : index
    %c0_187 = arith.constant 0 : index
    %177 = vector.load %arg3[%c12_185, %c0_186, %c0_187] : memref<16x16x16xbf16, #tpu.memory_space<vmem>>, vector<1x16x16xbf16>
    %178 = vector.shape_cast %177 : vector<1x16x16xbf16> to vector<16x16xbf16>
    %cst_188 = arith.constant dense<0.000000e+00> : vector<16x2048xf32>
    %179 = tpu.matmul %178, %176, %cst_188 {dimension_numbers = #tpu.dot_dimension_numbers<[1], [0], [0], [1], [0, 0, 1, 1], [], []>} : vector<16x16xbf16>, vector<16x2048xbf16>, vector<16x2048xf32> -> vector<16x2048xf32>
    %c0_189 = arith.constant 0 : index
    %c0_190 = arith.constant 0 : index
    %c2048_191 = arith.constant 2048 : index
    %180 = vector.load %arg2[%c0_189, %c0_190, %c2048_191] : memref<1x16x4160xbf16, #tpu.memory_space<vmem>>, vector<1x16x2048xbf16>
    %181 = vector.shape_cast %180 : vector<1x16x2048xbf16> to vector<16x2048xbf16>
    %c13_192 = arith.constant 13 : index
    %c0_193 = arith.constant 0 : index
    %c0_194 = arith.constant 0 : index
    %182 = vector.load %arg3[%c13_192, %c0_193, %c0_194] : memref<16x16x16xbf16, #tpu.memory_space<vmem>>, vector<1x16x16xbf16>
    %183 = vector.shape_cast %182 : vector<1x16x16xbf16> to vector<16x16xbf16>
    %cst_195 = arith.constant dense<0.000000e+00> : vector<16x2048xf32>
    %184 = tpu.matmul %183, %181, %cst_195 {dimension_numbers = #tpu.dot_dimension_numbers<[1], [0], [0], [1], [0, 0, 1, 1], [], []>} : vector<16x16xbf16>, vector<16x2048xbf16>, vector<16x2048xf32> -> vector<16x2048xf32>
    %185 = arith.addf %179, %184 : vector<16x2048xf32>
    %c0_196 = arith.constant 0 : index
    %c0_197 = arith.constant 0 : index
    %c2112_198 = arith.constant 2112 : index
    %186 = vector.load %arg1[%c0_196, %c0_197, %c2112_198] : memref<1x16x4160xbf16, #tpu.memory_space<vmem>>, vector<1x16x2048xbf16>
    %187 = vector.shape_cast %186 : vector<1x16x2048xbf16> to vector<16x2048xbf16>
    %c14_199 = arith.constant 14 : index
    %c0_200 = arith.constant 0 : index
    %c0_201 = arith.constant 0 : index
    %188 = vector.load %arg3[%c14_199, %c0_200, %c0_201] : memref<16x16x16xbf16, #tpu.memory_space<vmem>>, vector<1x16x16xbf16>
    %189 = vector.shape_cast %188 : vector<1x16x16xbf16> to vector<16x16xbf16>
    %cst_202 = arith.constant dense<0.000000e+00> : vector<16x2048xf32>
    %190 = tpu.matmul %189, %187, %cst_202 {dimension_numbers = #tpu.dot_dimension_numbers<[1], [0], [0], [1], [0, 0, 1, 1], [], []>} : vector<16x16xbf16>, vector<16x2048xbf16>, vector<16x2048xf32> -> vector<16x2048xf32>
    %191 = arith.addf %185, %190 : vector<16x2048xf32>
    %c0_203 = arith.constant 0 : index
    %c0_204 = arith.constant 0 : index
    %c2112_205 = arith.constant 2112 : index
    %192 = vector.load %arg2[%c0_203, %c0_204, %c2112_205] : memref<1x16x4160xbf16, #tpu.memory_space<vmem>>, vector<1x16x2048xbf16>
    %193 = vector.shape_cast %192 : vector<1x16x2048xbf16> to vector<16x2048xbf16>
    %c15_206 = arith.constant 15 : index
    %c0_207 = arith.constant 0 : index
    %c0_208 = arith.constant 0 : index
    %194 = vector.load %arg3[%c15_206, %c0_207, %c0_208] : memref<16x16x16xbf16, #tpu.memory_space<vmem>>, vector<1x16x16xbf16>
    %195 = vector.shape_cast %194 : vector<1x16x16xbf16> to vector<16x16xbf16>
    %cst_209 = arith.constant dense<0.000000e+00> : vector<16x2048xf32>
    %196 = tpu.matmul %195, %193, %cst_209 {dimension_numbers = #tpu.dot_dimension_numbers<[1], [0], [0], [1], [0, 0, 1, 1], [], []>} : vector<16x16xbf16>, vector<16x2048xbf16>, vector<16x2048xf32> -> vector<16x2048xf32>
    %197 = arith.addf %191, %196 : vector<16x2048xf32>
    %198 = arith.maximumf %174, %197 : vector<16x2048xf32>
    %199 = vector.broadcast %0 : vector<16x1xf32> to vector<16x2048xf32>
    %200 = arith.addf %198, %199 : vector<16x2048xf32>
    %cst_210 = arith.constant 0.000000e+00 : f32
    %201 = vector.broadcast %cst_210 : f32 to vector<16x2048xf32>
    %202 = arith.maximumf %200, %201 : vector<16x2048xf32>
    %203 = arith.truncf %202 : vector<16x2048xf32> to vector<16x2048xbf16>
    %c0_211 = arith.constant 0 : index
    %c0_212 = arith.constant 0 : index
    %c2048_213 = arith.constant 2048 : index
    %204 = vector.load %arg5[%c0_211, %c0_212, %c2048_213] : memref<1x16x4096xbf16, #tpu.memory_space<vmem>>, vector<1x16x2048xbf16>
    %205 = vector.shape_cast %204 : vector<1x16x2048xbf16> to vector<16x2048xbf16>
    %206 = vector.shape_cast %203 : vector<16x2048xbf16> to vector<1x16x2048xbf16>
    tpu.vector_store %arg5[%c0_211, %c0_212, %c2048_213], %206 {strides = array<i32>} : memref<1x16x4096xbf16, #tpu.memory_space<vmem>>, vector<1x16x2048xbf16>,
    return
  }
  func.func @transform_0(%arg0: i32) -> (i32, i32, i32) {
    %c0_i32 = arith.constant 0 : i32
    %c0_i32_0 = arith.constant 0 : i32
    %c0_i32_1 = arith.constant 0 : i32
    return %arg0, %c0_i32, %c0_i32_0 : i32, i32, i32
  }
  func.func @transform_1(%arg0: i32) -> (i32, i32, i32) {
    %c0_i32 = arith.constant 0 : i32
    %c0_i32_0 = arith.constant 0 : i32
    %c0_i32_1 = arith.constant 0 : i32
    return %arg0, %c0_i32, %c0_i32_0 : i32, i32, i32
  }
  func.func @transform_2(%arg0: i32) -> (i32, i32, i32) {
    %c0_i32 = arith.constant 0 : i32
    %c0_i32_0 = arith.constant 0 : i32
    %c0_i32_1 = arith.constant 0 : i32
    %c0_i32_2 = arith.constant 0 : i32
    return %c0_i32, %c0_i32_0, %c0_i32_1 : i32, i32, i32
  }
  func.func @transform_3(%arg0: i32) -> (i32, i32) {
    %c0_i32 = arith.constant 0 : i32
    %c0_i32_0 = arith.constant 0 : i32
    %c0_i32_1 = arith.constant 0 : i32
    return %c0_i32, %c0_i32_0 : i32, i32
  }
  func.func @transform_4(%arg0: i32) -> (i32, i32, i32) {
    %c0_i32 = arith.constant 0 : i32
    %c0_i32_0 = arith.constant 0 : i32
    %c0_i32_1 = arith.constant 0 : i32
    return %arg0, %c0_i32, %c0_i32_0 : i32, i32, i32
  }
}

module attributes {stable_mosaic.version = 11 : i64} {
  func.func @_conv_kernel(%arg0: i32, %arg1: memref<1x64x1056xbf16, #tpu.memory_space<vmem>>, %arg2: memref<1x64x1056xbf16, #tpu.memory_space<vmem>>, %arg3: memref<16x32x64xbf16, #tpu.memory_space<vmem>>, %arg4: memref<32x1xf32, #tpu.memory_space<vmem>>, %arg5: memref<1x32x1024xbf16, #tpu.memory_space<vmem>>) attributes {dimension_semantics = [#tpu.dimension_semantics<parallel>], iteration_bounds = array<i64: 2>, scalar_prefetch = 0 : i64, scratch_operands = 0 : i64, tpu.core_type = #tpu.core_type<tc>, window_params = [{transform_indices = @transform_0, window_bounds = array<i64: 1, 64, 1056>}, {transform_indices = @transform_1, window_bounds = array<i64: 1, 64, 1056>}, {pipeline_mode = #tpu.pipeline_mode<synchronous>, transform_indices = @transform_2, window_bounds = array<i64: 16, 32, 64>}, {pipeline_mode = #tpu.pipeline_mode<synchronous>, transform_indices = @transform_3, window_bounds = array<i64: 32, 1>}, {transform_indices = @transform_4, window_bounds = array<i64: 1, 32, 1024>}]} {
    %c0 = arith.constant 0 : index
    %c0_0 = arith.constant 0 : index
    %0 = vector.load %arg4[%c0, %c0_0] : memref<32x1xf32, #tpu.memory_space<vmem>>, vector<32x1xf32>
    %c0_1 = arith.constant 0 : index
    %c0_2 = arith.constant 0 : index
    %c0_3 = arith.constant 0 : index
    %1 = vector.load %arg1[%c0_1, %c0_2, %c0_3] : memref<1x64x1056xbf16, #tpu.memory_space<vmem>>, vector<1x64x1024xbf16>
    %2 = vector.shape_cast %1 : vector<1x64x1024xbf16> to vector<64x1024xbf16>
    %c0_4 = arith.constant 0 : index
    %c0_5 = arith.constant 0 : index
    %c0_6 = arith.constant 0 : index
    %3 = vector.load %arg3[%c0_4, %c0_5, %c0_6] : memref<16x32x64xbf16, #tpu.memory_space<vmem>>, vector<1x32x64xbf16>
    %4 = vector.shape_cast %3 : vector<1x32x64xbf16> to vector<32x64xbf16>
    %cst = arith.constant dense<0.000000e+00> : vector<32x1024xf32>
    %5 = tpu.matmul %4, %2, %cst {dimension_numbers = #tpu.dot_dimension_numbers<[1], [0], [0], [1], [0, 0, 1, 1], [], []>} : vector<32x64xbf16>, vector<64x1024xbf16>, vector<32x1024xf32> -> vector<32x1024xf32>
    %c0_7 = arith.constant 0 : index
    %c0_8 = arith.constant 0 : index
    %c0_9 = arith.constant 0 : index
    %6 = vector.load %arg2[%c0_7, %c0_8, %c0_9] : memref<1x64x1056xbf16, #tpu.memory_space<vmem>>, vector<1x64x1024xbf16>
    %7 = vector.shape_cast %6 : vector<1x64x1024xbf16> to vector<64x1024xbf16>
    %c1 = arith.constant 1 : index
    %c0_10 = arith.constant 0 : index
    %c0_11 = arith.constant 0 : index
    %8 = vector.load %arg3[%c1, %c0_10, %c0_11] : memref<16x32x64xbf16, #tpu.memory_space<vmem>>, vector<1x32x64xbf16>
    %9 = vector.shape_cast %8 : vector<1x32x64xbf16> to vector<32x64xbf16>
    %cst_12 = arith.constant dense<0.000000e+00> : vector<32x1024xf32>
    %10 = tpu.matmul %9, %7, %cst_12 {dimension_numbers = #tpu.dot_dimension_numbers<[1], [0], [0], [1], [0, 0, 1, 1], [], []>} : vector<32x64xbf16>, vector<64x1024xbf16>, vector<32x1024xf32> -> vector<32x1024xf32>
    %11 = arith.addf %5, %10 : vector<32x1024xf32>
    %c0_13 = arith.constant 0 : index
    %c0_14 = arith.constant 0 : index
    %c32 = arith.constant 32 : index
    %12 = vector.load %arg1[%c0_13, %c0_14, %c32] : memref<1x64x1056xbf16, #tpu.memory_space<vmem>>, vector<1x64x1024xbf16>
    %13 = vector.shape_cast %12 : vector<1x64x1024xbf16> to vector<64x1024xbf16>
    %c2 = arith.constant 2 : index
    %c0_15 = arith.constant 0 : index
    %c0_16 = arith.constant 0 : index
    %14 = vector.load %arg3[%c2, %c0_15, %c0_16] : memref<16x32x64xbf16, #tpu.memory_space<vmem>>, vector<1x32x64xbf16>
    %15 = vector.shape_cast %14 : vector<1x32x64xbf16> to vector<32x64xbf16>
    %cst_17 = arith.constant dense<0.000000e+00> : vector<32x1024xf32>
    %16 = tpu.matmul %15, %13, %cst_17 {dimension_numbers = #tpu.dot_dimension_numbers<[1], [0], [0], [1], [0, 0, 1, 1], [], []>} : vector<32x64xbf16>, vector<64x1024xbf16>, vector<32x1024xf32> -> vector<32x1024xf32>
    %17 = arith.addf %11, %16 : vector<32x1024xf32>
    %c0_18 = arith.constant 0 : index
    %c0_19 = arith.constant 0 : index
    %c32_20 = arith.constant 32 : index
    %18 = vector.load %arg2[%c0_18, %c0_19, %c32_20] : memref<1x64x1056xbf16, #tpu.memory_space<vmem>>, vector<1x64x1024xbf16>
    %19 = vector.shape_cast %18 : vector<1x64x1024xbf16> to vector<64x1024xbf16>
    %c3 = arith.constant 3 : index
    %c0_21 = arith.constant 0 : index
    %c0_22 = arith.constant 0 : index
    %20 = vector.load %arg3[%c3, %c0_21, %c0_22] : memref<16x32x64xbf16, #tpu.memory_space<vmem>>, vector<1x32x64xbf16>
    %21 = vector.shape_cast %20 : vector<1x32x64xbf16> to vector<32x64xbf16>
    %cst_23 = arith.constant dense<0.000000e+00> : vector<32x1024xf32>
    %22 = tpu.matmul %21, %19, %cst_23 {dimension_numbers = #tpu.dot_dimension_numbers<[1], [0], [0], [1], [0, 0, 1, 1], [], []>} : vector<32x64xbf16>, vector<64x1024xbf16>, vector<32x1024xf32> -> vector<32x1024xf32>
    %23 = arith.addf %17, %22 : vector<32x1024xf32>
    %c0_24 = arith.constant 0 : index
    %c0_25 = arith.constant 0 : index
    %c0_26 = arith.constant 0 : index
    %24 = vector.load %arg1[%c0_24, %c0_25, %c0_26] : memref<1x64x1056xbf16, #tpu.memory_space<vmem>>, vector<1x64x1024xbf16>
    %25 = vector.shape_cast %24 : vector<1x64x1024xbf16> to vector<64x1024xbf16>
    %c4 = arith.constant 4 : index
    %c0_27 = arith.constant 0 : index
    %c0_28 = arith.constant 0 : index
    %26 = vector.load %arg3[%c4, %c0_27, %c0_28] : memref<16x32x64xbf16, #tpu.memory_space<vmem>>, vector<1x32x64xbf16>
    %27 = vector.shape_cast %26 : vector<1x32x64xbf16> to vector<32x64xbf16>
    %cst_29 = arith.constant dense<0.000000e+00> : vector<32x1024xf32>
    %28 = tpu.matmul %27, %25, %cst_29 {dimension_numbers = #tpu.dot_dimension_numbers<[1], [0], [0], [1], [0, 0, 1, 1], [], []>} : vector<32x64xbf16>, vector<64x1024xbf16>, vector<32x1024xf32> -> vector<32x1024xf32>
    %c0_30 = arith.constant 0 : index
    %c0_31 = arith.constant 0 : index
    %c0_32 = arith.constant 0 : index
    %29 = vector.load %arg2[%c0_30, %c0_31, %c0_32] : memref<1x64x1056xbf16, #tpu.memory_space<vmem>>, vector<1x64x1024xbf16>
    %30 = vector.shape_cast %29 : vector<1x64x1024xbf16> to vector<64x1024xbf16>
    %c5 = arith.constant 5 : index
    %c0_33 = arith.constant 0 : index
    %c0_34 = arith.constant 0 : index
    %31 = vector.load %arg3[%c5, %c0_33, %c0_34] : memref<16x32x64xbf16, #tpu.memory_space<vmem>>, vector<1x32x64xbf16>
    %32 = vector.shape_cast %31 : vector<1x32x64xbf16> to vector<32x64xbf16>
    %cst_35 = arith.constant dense<0.000000e+00> : vector<32x1024xf32>
    %33 = tpu.matmul %32, %30, %cst_35 {dimension_numbers = #tpu.dot_dimension_numbers<[1], [0], [0], [1], [0, 0, 1, 1], [], []>} : vector<32x64xbf16>, vector<64x1024xbf16>, vector<32x1024xf32> -> vector<32x1024xf32>
    %34 = arith.addf %28, %33 : vector<32x1024xf32>
    %c0_36 = arith.constant 0 : index
    %c0_37 = arith.constant 0 : index
    %c32_38 = arith.constant 32 : index
    %35 = vector.load %arg1[%c0_36, %c0_37, %c32_38] : memref<1x64x1056xbf16, #tpu.memory_space<vmem>>, vector<1x64x1024xbf16>
    %36 = vector.shape_cast %35 : vector<1x64x1024xbf16> to vector<64x1024xbf16>
    %c6 = arith.constant 6 : index
    %c0_39 = arith.constant 0 : index
    %c0_40 = arith.constant 0 : index
    %37 = vector.load %arg3[%c6, %c0_39, %c0_40] : memref<16x32x64xbf16, #tpu.memory_space<vmem>>, vector<1x32x64xbf16>
    %38 = vector.shape_cast %37 : vector<1x32x64xbf16> to vector<32x64xbf16>
    %cst_41 = arith.constant dense<0.000000e+00> : vector<32x1024xf32>
    %39 = tpu.matmul %38, %36, %cst_41 {dimension_numbers = #tpu.dot_dimension_numbers<[1], [0], [0], [1], [0, 0, 1, 1], [], []>} : vector<32x64xbf16>, vector<64x1024xbf16>, vector<32x1024xf32> -> vector<32x1024xf32>
    %40 = arith.addf %34, %39 : vector<32x1024xf32>
    %c0_42 = arith.constant 0 : index
    %c0_43 = arith.constant 0 : index
    %c32_44 = arith.constant 32 : index
    %41 = vector.load %arg2[%c0_42, %c0_43, %c32_44] : memref<1x64x1056xbf16, #tpu.memory_space<vmem>>, vector<1x64x1024xbf16>
    %42 = vector.shape_cast %41 : vector<1x64x1024xbf16> to vector<64x1024xbf16>
    %c7 = arith.constant 7 : index
    %c0_45 = arith.constant 0 : index
    %c0_46 = arith.constant 0 : index
    %43 = vector.load %arg3[%c7, %c0_45, %c0_46] : memref<16x32x64xbf16, #tpu.memory_space<vmem>>, vector<1x32x64xbf16>
    %44 = vector.shape_cast %43 : vector<1x32x64xbf16> to vector<32x64xbf16>
    %cst_47 = arith.constant dense<0.000000e+00> : vector<32x1024xf32>
    %45 = tpu.matmul %44, %42, %cst_47 {dimension_numbers = #tpu.dot_dimension_numbers<[1], [0], [0], [1], [0, 0, 1, 1], [], []>} : vector<32x64xbf16>, vector<64x1024xbf16>, vector<32x1024xf32> -> vector<32x1024xf32>
    %46 = arith.addf %40, %45 : vector<32x1024xf32>
    %47 = arith.maximumf %23, %46 : vector<32x1024xf32>
    %c0_48 = arith.constant 0 : index
    %c0_49 = arith.constant 0 : index
    %c0_50 = arith.constant 0 : index
    %48 = vector.load %arg1[%c0_48, %c0_49, %c0_50] : memref<1x64x1056xbf16, #tpu.memory_space<vmem>>, vector<1x64x1024xbf16>
    %49 = vector.shape_cast %48 : vector<1x64x1024xbf16> to vector<64x1024xbf16>
    %c8 = arith.constant 8 : index
    %c0_51 = arith.constant 0 : index
    %c0_52 = arith.constant 0 : index
    %50 = vector.load %arg3[%c8, %c0_51, %c0_52] : memref<16x32x64xbf16, #tpu.memory_space<vmem>>, vector<1x32x64xbf16>
    %51 = vector.shape_cast %50 : vector<1x32x64xbf16> to vector<32x64xbf16>
    %cst_53 = arith.constant dense<0.000000e+00> : vector<32x1024xf32>
    %52 = tpu.matmul %51, %49, %cst_53 {dimension_numbers = #tpu.dot_dimension_numbers<[1], [0], [0], [1], [0, 0, 1, 1], [], []>} : vector<32x64xbf16>, vector<64x1024xbf16>, vector<32x1024xf32> -> vector<32x1024xf32>
    %c0_54 = arith.constant 0 : index
    %c0_55 = arith.constant 0 : index
    %c0_56 = arith.constant 0 : index
    %53 = vector.load %arg2[%c0_54, %c0_55, %c0_56] : memref<1x64x1056xbf16, #tpu.memory_space<vmem>>, vector<1x64x1024xbf16>
    %54 = vector.shape_cast %53 : vector<1x64x1024xbf16> to vector<64x1024xbf16>
    %c9 = arith.constant 9 : index
    %c0_57 = arith.constant 0 : index
    %c0_58 = arith.constant 0 : index
    %55 = vector.load %arg3[%c9, %c0_57, %c0_58] : memref<16x32x64xbf16, #tpu.memory_space<vmem>>, vector<1x32x64xbf16>
    %56 = vector.shape_cast %55 : vector<1x32x64xbf16> to vector<32x64xbf16>
    %cst_59 = arith.constant dense<0.000000e+00> : vector<32x1024xf32>
    %57 = tpu.matmul %56, %54, %cst_59 {dimension_numbers = #tpu.dot_dimension_numbers<[1], [0], [0], [1], [0, 0, 1, 1], [], []>} : vector<32x64xbf16>, vector<64x1024xbf16>, vector<32x1024xf32> -> vector<32x1024xf32>
    %58 = arith.addf %52, %57 : vector<32x1024xf32>
    %c0_60 = arith.constant 0 : index
    %c0_61 = arith.constant 0 : index
    %c32_62 = arith.constant 32 : index
    %59 = vector.load %arg1[%c0_60, %c0_61, %c32_62] : memref<1x64x1056xbf16, #tpu.memory_space<vmem>>, vector<1x64x1024xbf16>
    %60 = vector.shape_cast %59 : vector<1x64x1024xbf16> to vector<64x1024xbf16>
    %c10 = arith.constant 10 : index
    %c0_63 = arith.constant 0 : index
    %c0_64 = arith.constant 0 : index
    %61 = vector.load %arg3[%c10, %c0_63, %c0_64] : memref<16x32x64xbf16, #tpu.memory_space<vmem>>, vector<1x32x64xbf16>
    %62 = vector.shape_cast %61 : vector<1x32x64xbf16> to vector<32x64xbf16>
    %cst_65 = arith.constant dense<0.000000e+00> : vector<32x1024xf32>
    %63 = tpu.matmul %62, %60, %cst_65 {dimension_numbers = #tpu.dot_dimension_numbers<[1], [0], [0], [1], [0, 0, 1, 1], [], []>} : vector<32x64xbf16>, vector<64x1024xbf16>, vector<32x1024xf32> -> vector<32x1024xf32>
    %64 = arith.addf %58, %63 : vector<32x1024xf32>
    %c0_66 = arith.constant 0 : index
    %c0_67 = arith.constant 0 : index
    %c32_68 = arith.constant 32 : index
    %65 = vector.load %arg2[%c0_66, %c0_67, %c32_68] : memref<1x64x1056xbf16, #tpu.memory_space<vmem>>, vector<1x64x1024xbf16>
    %66 = vector.shape_cast %65 : vector<1x64x1024xbf16> to vector<64x1024xbf16>
    %c11 = arith.constant 11 : index
    %c0_69 = arith.constant 0 : index
    %c0_70 = arith.constant 0 : index
    %67 = vector.load %arg3[%c11, %c0_69, %c0_70] : memref<16x32x64xbf16, #tpu.memory_space<vmem>>, vector<1x32x64xbf16>
    %68 = vector.shape_cast %67 : vector<1x32x64xbf16> to vector<32x64xbf16>
    %cst_71 = arith.constant dense<0.000000e+00> : vector<32x1024xf32>
    %69 = tpu.matmul %68, %66, %cst_71 {dimension_numbers = #tpu.dot_dimension_numbers<[1], [0], [0], [1], [0, 0, 1, 1], [], []>} : vector<32x64xbf16>, vector<64x1024xbf16>, vector<32x1024xf32> -> vector<32x1024xf32>
    %70 = arith.addf %64, %69 : vector<32x1024xf32>
    %71 = arith.maximumf %47, %70 : vector<32x1024xf32>
    %c0_72 = arith.constant 0 : index
    %c0_73 = arith.constant 0 : index
    %c0_74 = arith.constant 0 : index
    %72 = vector.load %arg1[%c0_72, %c0_73, %c0_74] : memref<1x64x1056xbf16, #tpu.memory_space<vmem>>, vector<1x64x1024xbf16>
    %73 = vector.shape_cast %72 : vector<1x64x1024xbf16> to vector<64x1024xbf16>
    %c12 = arith.constant 12 : index
    %c0_75 = arith.constant 0 : index
    %c0_76 = arith.constant 0 : index
    %74 = vector.load %arg3[%c12, %c0_75, %c0_76] : memref<16x32x64xbf16, #tpu.memory_space<vmem>>, vector<1x32x64xbf16>
    %75 = vector.shape_cast %74 : vector<1x32x64xbf16> to vector<32x64xbf16>
    %cst_77 = arith.constant dense<0.000000e+00> : vector<32x1024xf32>
    %76 = tpu.matmul %75, %73, %cst_77 {dimension_numbers = #tpu.dot_dimension_numbers<[1], [0], [0], [1], [0, 0, 1, 1], [], []>} : vector<32x64xbf16>, vector<64x1024xbf16>, vector<32x1024xf32> -> vector<32x1024xf32>
    %c0_78 = arith.constant 0 : index
    %c0_79 = arith.constant 0 : index
    %c0_80 = arith.constant 0 : index
    %77 = vector.load %arg2[%c0_78, %c0_79, %c0_80] : memref<1x64x1056xbf16, #tpu.memory_space<vmem>>, vector<1x64x1024xbf16>
    %78 = vector.shape_cast %77 : vector<1x64x1024xbf16> to vector<64x1024xbf16>
    %c13 = arith.constant 13 : index
    %c0_81 = arith.constant 0 : index
    %c0_82 = arith.constant 0 : index
    %79 = vector.load %arg3[%c13, %c0_81, %c0_82] : memref<16x32x64xbf16, #tpu.memory_space<vmem>>, vector<1x32x64xbf16>
    %80 = vector.shape_cast %79 : vector<1x32x64xbf16> to vector<32x64xbf16>
    %cst_83 = arith.constant dense<0.000000e+00> : vector<32x1024xf32>
    %81 = tpu.matmul %80, %78, %cst_83 {dimension_numbers = #tpu.dot_dimension_numbers<[1], [0], [0], [1], [0, 0, 1, 1], [], []>} : vector<32x64xbf16>, vector<64x1024xbf16>, vector<32x1024xf32> -> vector<32x1024xf32>
    %82 = arith.addf %76, %81 : vector<32x1024xf32>
    %c0_84 = arith.constant 0 : index
    %c0_85 = arith.constant 0 : index
    %c32_86 = arith.constant 32 : index
    %83 = vector.load %arg1[%c0_84, %c0_85, %c32_86] : memref<1x64x1056xbf16, #tpu.memory_space<vmem>>, vector<1x64x1024xbf16>
    %84 = vector.shape_cast %83 : vector<1x64x1024xbf16> to vector<64x1024xbf16>
    %c14 = arith.constant 14 : index
    %c0_87 = arith.constant 0 : index
    %c0_88 = arith.constant 0 : index
    %85 = vector.load %arg3[%c14, %c0_87, %c0_88] : memref<16x32x64xbf16, #tpu.memory_space<vmem>>, vector<1x32x64xbf16>
    %86 = vector.shape_cast %85 : vector<1x32x64xbf16> to vector<32x64xbf16>
    %cst_89 = arith.constant dense<0.000000e+00> : vector<32x1024xf32>
    %87 = tpu.matmul %86, %84, %cst_89 {dimension_numbers = #tpu.dot_dimension_numbers<[1], [0], [0], [1], [0, 0, 1, 1], [], []>} : vector<32x64xbf16>, vector<64x1024xbf16>, vector<32x1024xf32> -> vector<32x1024xf32>
    %88 = arith.addf %82, %87 : vector<32x1024xf32>
    %c0_90 = arith.constant 0 : index
    %c0_91 = arith.constant 0 : index
    %c32_92 = arith.constant 32 : index
    %89 = vector.load %arg2[%c0_90, %c0_91, %c32_92] : memref<1x64x1056xbf16, #tpu.memory_space<vmem>>, vector<1x64x1024xbf16>
    %90 = vector.shape_cast %89 : vector<1x64x1024xbf16> to vector<64x1024xbf16>
    %c15 = arith.constant 15 : index
    %c0_93 = arith.constant 0 : index
    %c0_94 = arith.constant 0 : index
    %91 = vector.load %arg3[%c15, %c0_93, %c0_94] : memref<16x32x64xbf16, #tpu.memory_space<vmem>>, vector<1x32x64xbf16>
    %92 = vector.shape_cast %91 : vector<1x32x64xbf16> to vector<32x64xbf16>
    %cst_95 = arith.constant dense<0.000000e+00> : vector<32x1024xf32>
    %93 = tpu.matmul %92, %90, %cst_95 {dimension_numbers = #tpu.dot_dimension_numbers<[1], [0], [0], [1], [0, 0, 1, 1], [], []>} : vector<32x64xbf16>, vector<64x1024xbf16>, vector<32x1024xf32> -> vector<32x1024xf32>
    %94 = arith.addf %88, %93 : vector<32x1024xf32>
    %95 = arith.maximumf %71, %94 : vector<32x1024xf32>
    %96 = vector.broadcast %0 : vector<32x1xf32> to vector<32x1024xf32>
    %97 = arith.addf %95, %96 : vector<32x1024xf32>
    %cst_96 = arith.constant 0.000000e+00 : f32
    %98 = vector.broadcast %cst_96 : f32 to vector<32x1024xf32>
    %99 = arith.maximumf %97, %98 : vector<32x1024xf32>
    %100 = arith.truncf %99 : vector<32x1024xf32> to vector<32x1024xbf16>
    %c0_97 = arith.constant 0 : index
    %c0_98 = arith.constant 0 : index
    %c0_99 = arith.constant 0 : index
    %101 = vector.load %arg5[%c0_97, %c0_98, %c0_99] : memref<1x32x1024xbf16, #tpu.memory_space<vmem>>, vector<1x32x1024xbf16>
    %102 = vector.shape_cast %101 : vector<1x32x1024xbf16> to vector<32x1024xbf16>
    %103 = vector.shape_cast %100 : vector<32x1024xbf16> to vector<1x32x1024xbf16>
    tpu.vector_store %arg5[%c0_97, %c0_98, %c0_99], %103 {strides = array<i32>} : memref<1x32x1024xbf16, #tpu.memory_space<vmem>>, vector<1x32x1024xbf16>,
    return
  }
  func.func @transform_0(%arg0: i32) -> (i32, i32, i32) {
    %c0_i32 = arith.constant 0 : i32
    %c0_i32_0 = arith.constant 0 : i32
    %c0_i32_1 = arith.constant 0 : i32
    return %arg0, %c0_i32, %c0_i32_0 : i32, i32, i32
  }
  func.func @transform_1(%arg0: i32) -> (i32, i32, i32) {
    %c0_i32 = arith.constant 0 : i32
    %c0_i32_0 = arith.constant 0 : i32
    %c0_i32_1 = arith.constant 0 : i32
    return %arg0, %c0_i32, %c0_i32_0 : i32, i32, i32
  }
  func.func @transform_2(%arg0: i32) -> (i32, i32, i32) {
    %c0_i32 = arith.constant 0 : i32
    %c0_i32_0 = arith.constant 0 : i32
    %c0_i32_1 = arith.constant 0 : i32
    %c0_i32_2 = arith.constant 0 : i32
    return %c0_i32, %c0_i32_0, %c0_i32_1 : i32, i32, i32
  }
  func.func @transform_3(%arg0: i32) -> (i32, i32) {
    %c0_i32 = arith.constant 0 : i32
    %c0_i32_0 = arith.constant 0 : i32
    %c0_i32_1 = arith.constant 0 : i32
    return %c0_i32, %c0_i32_0 : i32, i32
  }
  func.func @transform_4(%arg0: i32) -> (i32, i32, i32) {
    %c0_i32 = arith.constant 0 : i32
    %c0_i32_0 = arith.constant 0 : i32
    %c0_i32_1 = arith.constant 0 : i32
    return %arg0, %c0_i32, %c0_i32_0 : i32, i32, i32
  }
}

module attributes {stable_mosaic.version = 11 : i64} {
  func.func @_fc_kernel(%arg0: i32, %arg1: i32, %arg2: memref<2x8192xbf16, #tpu.memory_space<vmem>>, %arg3: memref<1x8192x64xbf16, #tpu.memory_space<vmem>>, %arg4: memref<1x1x64xf32, #tpu.memory_space<vmem>>, %arg5: memref<1x64x10xf32, #tpu.memory_space<vmem>>, %arg6: memref<1x2x10xf32, #tpu.memory_space<vmem>>, %arg7: memref<2x64xf32, #tpu.memory_space<vmem>>) attributes {dimension_semantics = [#tpu.dimension_semantics<parallel>, #tpu.dimension_semantics<arbitrary>], iteration_bounds = array<i64: 2, 4>, scalar_prefetch = 0 : i64, scratch_operands = 1 : i64, tpu.core_type = #tpu.core_type<tc>, window_params = [{transform_indices = @transform_0, window_bounds = array<i64: 2, 8192>}, {transform_indices = @transform_1, window_bounds = array<i64: 1, 8192, 64>}, {transform_indices = @transform_2, window_bounds = array<i64: 1, 1, 64>}, {transform_indices = @transform_3, window_bounds = array<i64: 1, 64, 10>}, {transform_indices = @transform_4, window_bounds = array<i64: 1, 2, 10>}]} {
    %c0_i32 = arith.constant 0 : i32
    %0 = arith.cmpi eq, %arg1, %c0_i32 : i32
    %1 = arith.extui %0 : i1 to i32
    %c0_i32_0 = arith.constant 0 : i32
    %2 = arith.cmpi ne, %1, %c0_i32_0 : i32
    scf.if %2 {
      %cst_10 = arith.constant 0.000000e+00 : f32
      %13 = vector.broadcast %cst_10 : f32 to vector<2x64xf32>
      %c0_11 = arith.constant 0 : index
      %c0_12 = arith.constant 0 : index
      %14 = vector.load %arg7[%c0_11, %c0_12] : memref<2x64xf32, #tpu.memory_space<vmem>>, vector<2x64xf32>
      tpu.vector_store %arg7[%c0_11, %c0_12], %13 {strides = array<i32>} : memref<2x64xf32, #tpu.memory_space<vmem>>, vector<2x64xf32>,
    } else {
    }
    %c0 = arith.constant 0 : index
    %c0_1 = arith.constant 0 : index
    %3 = vector.load %arg7[%c0, %c0_1] : memref<2x64xf32, #tpu.memory_space<vmem>>, vector<2x64xf32>
    %c0_2 = arith.constant 0 : index
    %c0_3 = arith.constant 0 : index
    %4 = vector.load %arg2[%c0_2, %c0_3] : memref<2x8192xbf16, #tpu.memory_space<vmem>>, vector<2x8192xbf16>
    %c0_4 = arith.constant 0 : index
    %c0_5 = arith.constant 0 : index
    %c0_6 = arith.constant 0 : index
    %5 = vector.load %arg3[%c0_4, %c0_5, %c0_6] : memref<1x8192x64xbf16, #tpu.memory_space<vmem>>, vector<1x8192x64xbf16>
    %6 = vector.shape_cast %5 : vector<1x8192x64xbf16> to vector<8192x64xbf16>
    %cst = arith.constant dense<0.000000e+00> : vector<2x64xf32>
    %7 = tpu.matmul %4, %6, %cst {dimension_numbers = #tpu.dot_dimension_numbers<[1], [0], [0], [1], [0, 0, 1, 1], [], []>} : vector<2x8192xbf16>, vector<8192x64xbf16>, vector<2x64xf32> -> vector<2x64xf32>
    %8 = arith.addf %3, %7 : vector<2x64xf32>
    %c0_7 = arith.constant 0 : index
    %c0_8 = arith.constant 0 : index
    %9 = vector.load %arg7[%c0_7, %c0_8] : memref<2x64xf32, #tpu.memory_space<vmem>>, vector<2x64xf32>
    tpu.vector_store %arg7[%c0_7, %c0_8], %8 {strides = array<i32>} : memref<2x64xf32, #tpu.memory_space<vmem>>, vector<2x64xf32>,
    %c3_i32 = arith.constant 3 : i32
    %10 = arith.cmpi eq, %arg1, %c3_i32 : i32
    %11 = arith.extui %10 : i1 to i32
    %c0_i32_9 = arith.constant 0 : i32
    %12 = arith.cmpi ne, %11, %c0_i32_9 : i32
    scf.if %12 {
      %c0_10 = arith.constant 0 : index
      %c0_11 = arith.constant 0 : index
      %13 = vector.load %arg7[%c0_10, %c0_11] : memref<2x64xf32, #tpu.memory_space<vmem>>, vector<2x64xf32>
      %c0_12 = arith.constant 0 : index
      %c0_13 = arith.constant 0 : index
      %c0_14 = arith.constant 0 : index
      %14 = vector.load %arg4[%c0_12, %c0_13, %c0_14] : memref<1x1x64xf32, #tpu.memory_space<vmem>>, vector<1x1x64xf32>
      %15 = vector.shape_cast %14 : vector<1x1x64xf32> to vector<1x64xf32>
      %16 = vector.broadcast %15 : vector<1x64xf32> to vector<2x64xf32>
      %17 = arith.addf %13, %16 : vector<2x64xf32>
      %cst_15 = arith.constant 0.000000e+00 : f32
      %18 = vector.broadcast %cst_15 : f32 to vector<2x64xf32>
      %19 = arith.maximumf %17, %18 : vector<2x64xf32>
      %c0_16 = arith.constant 0 : index
      %c0_17 = arith.constant 0 : index
      %c0_18 = arith.constant 0 : index
      %20 = vector.load %arg5[%c0_16, %c0_17, %c0_18] : memref<1x64x10xf32, #tpu.memory_space<vmem>>, vector<1x64x10xf32>
      %21 = vector.shape_cast %20 : vector<1x64x10xf32> to vector<64x10xf32>
      %cst_19 = arith.constant dense<0.000000e+00> : vector<2x10xf32>
      %22 = tpu.matmul %19, %21, %cst_19 {dimension_numbers = #tpu.dot_dimension_numbers<[1], [0], [0], [1], [0, 0, 1, 1], [], []>} : vector<2x64xf32>, vector<64x10xf32>, vector<2x10xf32> -> vector<2x10xf32>
      %c0_20 = arith.constant 0 : index
      %c0_21 = arith.constant 0 : index
      %c0_22 = arith.constant 0 : index
      %23 = vector.load %arg6[%c0_20, %c0_21, %c0_22] : memref<1x2x10xf32, #tpu.memory_space<vmem>>, vector<1x2x10xf32>
      %24 = vector.shape_cast %23 : vector<1x2x10xf32> to vector<2x10xf32>
      %25 = vector.shape_cast %22 : vector<2x10xf32> to vector<1x2x10xf32>
      tpu.vector_store %arg6[%c0_20, %c0_21, %c0_22], %25 {strides = array<i32>} : memref<1x2x10xf32, #tpu.memory_space<vmem>>, vector<1x2x10xf32>,
    } else {
    }
    return
  }
  func.func @transform_0(%arg0: i32, %arg1: i32) -> (i32, i32) {
    %c0_i32 = arith.constant 0 : i32
    %c0_i32_0 = arith.constant 0 : i32
    return %c0_i32, %arg1 : i32, i32
  }
  func.func @transform_1(%arg0: i32, %arg1: i32) -> (i32, i32, i32) {
    %c0_i32 = arith.constant 0 : i32
    %c0_i32_0 = arith.constant 0 : i32
    return %arg0, %arg1, %c0_i32 : i32, i32, i32
  }
  func.func @transform_2(%arg0: i32, %arg1: i32) -> (i32, i32, i32) {
    %c0_i32 = arith.constant 0 : i32
    %c0_i32_0 = arith.constant 0 : i32
    %c0_i32_1 = arith.constant 0 : i32
    return %arg0, %c0_i32, %c0_i32_0 : i32, i32, i32
  }
  func.func @transform_3(%arg0: i32, %arg1: i32) -> (i32, i32, i32) {
    %c0_i32 = arith.constant 0 : i32
    %c0_i32_0 = arith.constant 0 : i32
    %c0_i32_1 = arith.constant 0 : i32
    return %arg0, %c0_i32, %c0_i32_0 : i32, i32, i32
  }
  func.func @transform_4(%arg0: i32, %arg1: i32) -> (i32, i32, i32) {
    %c0_i32 = arith.constant 0 : i32
    %c0_i32_0 = arith.constant 0 : i32
    %c0_i32_1 = arith.constant 0 : i32
    return %arg0, %c0_i32, %c0_i32_0 : i32, i32, i32
  }
}

</mosaic_0001>

<bundles_post_ra>
// kernel: simple_cnn_forward.3
= control target key start
LH: loop header
LB: loop body
LE: loop exit
PB: predicated region body
PF: predicated region fallthrough
CT: control target
= control target key end

     0   :  { %s15263_s15 = smov 0   ;;  %s18105_s0 = inlined_call_operand.vmem [shape: bf16[2,16,4160], index: 0, kind: input, shape index: {}]   ;;  %s18106_s1 = inlined_call_operand.vmem [shape: bf16[2,16,4160], index: 1, kind: input, shape index: {}]   ;;  %s18107_s2 = inlined_call_operand.vmem [shape: bf16[16,16,16], index: 2, kind: input, shape index: {}]   ;;  %s18108_s3 = inlined_call_operand.vmem [shape: f32[16,1], index: 3, kind: input, shape index: {}]   ;;  %s18109_s4 = inlined_call_operand.vmem [shape: bf16[2,16,4096], index: 4, kind: output, shape index: {}]  }
   0x1 LB: > { %s13695_s16 = sadd.s32 4294967295, %s15234_s15   ;;  %p13699_p0 = scmp.ge.s32.totalorder %s15234_s15, 1  ;;  %s15234_s15 = sphi %s15263_s15, %s14_s15  }
   0x2   : > { %p172_p1 = scmp.lt.s32.totalorder %s15234_s15, 3 }
   0x4   : > { %p173_p2 = pnand %p13699_p0, %p172_p1 }
   0x6   : > { %176 = sbr.rel (%p173_p2) target bundleno = 1324 (0x52c), region = 36 }
   0xd   : > { %p203_p3 = scmp.lt.s32.totalorder %s13695_s16, 1  ;;  %v18120_v0 = vmov 0   ;;  %s15237_s21 = smov 64   ;;  %v15337_v12 = vld [vmem:[%s18107_s2 + $0x8] sm:$0xff]   ;;  %vm343_vm0 = vcmask 130048   ;;  %v15083_v35 = vld [vmem:[%s18107_s2] sm:$0xff]  }
   0xe   : > { %379 = vmatprep.mubr.bf16.mxu0 %v18120_v0  ;;  %422 = vmatprep.mubr.bf16.mxu1 %v18120_v0  ;;  %vm1252_vm1 = vcmask 523264   ;;  %v15084_v44 = vld [vmem:[%s18107_s2 + $0x10] sm:$0xff]  }
   0xf   : > { %s18755_s16 = smov (!%p203_p3, %s13695_s16), 1  ;;  %15030 = vset.pattern.permute.xlu0 %v18120_v0  ;;  %15031 = vset.pattern.permute.xlu1 %v18120_v0 }
  0x10   : > { %s15019_s17 = smul.u32 264, %s18755_s16 }
  0x12   : > { %s15281_s20 = scalar_lea.vmem %s18105_s0, %s15019_s17  ;;  %s15312_s24 = scalar_lea.vmem %s18106_s1, %s15019_s17 }
  0x13   : > { %v15284_v1 = vld [vmem:[%s15281_s20 + $0xc] ss:$132 sps:$4 sm:$0xff]   ;;  %v15289_v2 = vld [vmem:[%s15281_s20 + $0x4] ss:$132 sps:$4 sm:$0xff]   ;;  %v15302_v5 = vld [vmem:[%s15281_s20 + $0x14] ss:$132 sps:$4 sm:$0xff]  }
  0x14   : > { %1224 = vrot.lane.b32.xlu1 %v15284_v1, %s15237_s21  ;;  %v15292_v3 = vld [vmem:[%s15281_s20 + $0x10] ss:$132 sps:$4 sm:$0xff]   ;;  %v15295_v4 = vld [vmem:[%s15281_s20 + $0x8] ss:$132 sps:$4 sm:$0xff]   ;;  %1220 = vrot.lane.b32.xlu0 %v15289_v2, %s15237_s21 }
  0x15   : > { %v15305_v6 = vld [vmem:[%s15281_s20] ss:$132 sps:$4 sm:$0xff]   ;;  %v15325_v9 = vld [vmem:[%s15281_s20 + $0x18] ss:$132 sps:$4 sm:$0xff]   ;;  %v15331_v11 = vld [vmem:[%s15312_s24 + $0xc] ss:$132 sps:$4 sm:$0xff]  }
  0x16   : > { %v15317_v7 = vld [vmem:[%s15281_s20 + $0x1c] ss:$132 sps:$4 sm:$0xff]   ;;  %v15320_v8 = vld [vmem:[%s15312_s24 + $0x4] ss:$132 sps:$4 sm:$0xff]   ;;  %390 = vmatprep.subr.bf16.mxu1 %v15331_v11  ;;  %v15354_v16 = vld [vmem:[%s15312_s24 + $0x14] ss:$132 sps:$4 sm:$0xff]  }
  0x17   : > { %v15328_v10 = vld [vmem:[%s15281_s20 + $0x24] ss:$132 sps:$4 sm:$0xff]   ;;  %347 = vmatprep.subr.bf16.mxu0 %v15320_v8  ;;  %v15358_v17 = vld [vmem:[%s15281_s20 + $0x2c] ss:$132 sps:$4 sm:$0xff]   ;;  %v15361_v18 = vld [vmem:[%s15312_s24 + $0x1c] ss:$132 sps:$4 sm:$0xff]  }
  0x18   : > { %1226 = vrot.lane.b32.xlu1 %v15292_v3, %s15237_s21  ;;  %1222 = vrot.lane.b32.xlu0 %v15295_v4, %s15237_s21  ;;  %v15342_v13 = vld [vmem:[%s15312_s24] ss:$132 sps:$4 sm:$0xff]   ;;  %v15345_v14 = vld [vmem:[%s15312_s24 + $0x8] ss:$132 sps:$4 sm:$0xff]  }
  0x19   : > { %v15351_v15 = vld [vmem:[%s15281_s20 + $0x20] ss:$132 sps:$4 sm:$0xff]   ;;  %348 = vmatpush1.bf16.msra.mxu0 %v15342_v13  ;;  %391 = vmatpush1.bf16.msra.mxu1 %v15345_v14  ;;  %v15367_v19 = vld [vmem:[%s15312_s24 + $0x10] ss:$132 sps:$4 sm:$0xff]   ;;  %v15371_v20 = vld [vmem:[%s15312_s24 + $0x18] ss:$132 sps:$4 sm:$0xff]  }
  0x1a   : > { %433 = vmatprep.subr.bf16.mxu0 %v15354_v16  ;;  %476 = vmatprep.subr.bf16.mxu1 %v15361_v18  ;;  %v15379_v21 = vld [vmem:[%s15281_s20 + $0x28] ss:$132 sps:$4 sm:$0xff]   ;;  %v15384_v22 = vld [vmem:[%s15281_s20 + $0x34] ss:$132 sps:$4 sm:$0xff]   ;;  %v15405_v26 = vld [vmem:[%s15281_s20 + $0x3c] ss:$132 sps:$4 sm:$0xff]  }
  0x1b   : > { %v15387_v23 = vld [vmem:[%s15312_s24 + $0x24] ss:$132 sps:$4 sm:$0xff]   ;;  %v15394_v24 = vld [vmem:[%s15312_s24 + $0x2c] ss:$132 sps:$4 sm:$0xff]   ;;  %v15417_v29 = vld [vmem:[%s15281_s20 + $0x38] ss:$132 sps:$4 sm:$0xff]  }
  0x1c   : > { %1228 = vrot.lane.b32.xlu1 %v15302_v5, %s15237_s21  ;;  %1218 = vrot.lane.b32.xlu0 %v15305_v6, %s15237_s21  ;;  %v15398_v25 = vld [vmem:[%s15281_s20 + $0x30] ss:$132 sps:$4 sm:$0xff]   ;;  %v15409_v27 = vld [vmem:[%s15312_s24 + $0x20] ss:$132 sps:$4 sm:$0xff]  }
  0x1d   : > { %13723 = vmatmul.mubr.msk.bf16.vlgmr.msra.gmra.mrb[0].mxu0 %vm343_vm0, %v15337_v12  ;;  %13724 = vmatmul.mubr.msk.bf16.vlgmr.msra.gmra.mrb[0].mxu1 %vm343_vm0, %v15337_v12  ;;  %v15412_v28 = vld [vmem:[%s15312_s24 + $0x28] ss:$132 sps:$4 sm:$0xff]   ;;  %v15420_v30 = vld [vmem:[%s15312_s24 + $0x34] ss:$132 sps:$4 sm:$0xff]   ;;  %v15427_v31 = vld [vmem:[%s15312_s24 + $0x3c] ss:$132 sps:$4 sm:$0xff]  }
  0x1e   : > { %434 = vmatpush1.bf16.msra.mxu0 %v15367_v19  ;;  %477 = vmatpush1.bf16.msra.mxu1 %v15371_v20  ;;  %v15058_v32 = vld [vmem:[%s15281_s20 + $0x40] ss:$132 sps:$4 sm:$0xff]   ;;  %v15443_v33 = vld [vmem:[%s15312_s24 + $0x30] ss:$132 sps:$4 sm:$0xff]   ;;  %v15446_v34 = vld [vmem:[%s15312_s24 + $0x38] ss:$132 sps:$4 sm:$0xff]  }
  0x1f   : > { %465 = vmatprep.mubr.bf16.mxu0 %v18120_v0  ;;  %508 = vmatprep.mubr.bf16.mxu1 %v18120_v0  ;;  %v15081_v36 = vld [vmem:[%s15312_s24 + $0x40] ss:$132 sps:$4 sm:$0xff]  }
  0x20   : > { %1232 = vrot.lane.b32.xlu1 %v15317_v7, %s15237_s21  ;;  %1230 = vrot.lane.b32.xlu0 %v15325_v9, %s15237_s21 }
  0x21   : > { %519 = vmatprep.subr.bf16.mxu0 %v15387_v23  ;;  %562 = vmatprep.subr.bf16.mxu1 %v15394_v24 }
  0x24   : > { %1236 = vrot.lane.b32.xlu1 %v15328_v10, %s15237_s21  ;;  %1234 = vrot.lane.b32.xlu0 %v15351_v15, %s15237_s21 }
  0x25   : > { %13725 = vmatmul.mubr.msk.bf16.vlgmr.msra.gmra.mrb[4].mxu0 %vm343_vm0, %v15337_v12  ;;  %13726 = vmatmul.mubr.msk.bf16.vlgmr.msra.gmra.mrb[4].mxu1 %vm343_vm0, %v15337_v12 }
  0x26   : > { %520 = vmatpush1.bf16.msra.mxu0 %v15409_v27  ;;  %563 = vmatpush1.bf16.msra.mxu1 %v15412_v28 }
  0x27   : > { %551 = vmatprep.mubr.bf16.mxu0 %v18120_v0  ;;  %594 = vmatprep.mubr.bf16.mxu1 %v18120_v0 }
  0x28   : > { %1240 = vrot.lane.b32.xlu1 %v15358_v17, %s15237_s21  ;;  %1238 = vrot.lane.b32.xlu0 %v15379_v21, %s15237_s21 }
  0x29   : > { %605 = vmatprep.subr.bf16.mxu0 %v15420_v30  ;;  %648 = vmatprep.subr.bf16.mxu1 %v15427_v31 }
  0x2c   : > { %1244 = vrot.lane.b32.xlu1 %v15384_v22, %s15237_s21  ;;  %1242 = vrot.lane.b32.xlu0 %v15398_v25, %s15237_s21 }
  0x2d   : > { %13727 = vmatmul.mubr.msk.bf16.vlgmr.msra.gmra.mrb[8].mxu0 %vm343_vm0, %v15337_v12  ;;  %13728 = vmatmul.mubr.msk.bf16.vlgmr.msra.gmra.mrb[8].mxu1 %vm343_vm0, %v15337_v12 }
  0x2e   : > { %606 = vmatpush1.bf16.msra.mxu0 %v15443_v33  ;;  %649 = vmatpush1.bf16.msra.mxu1 %v15446_v34 }
  0x2f   : > { %637 = vmatprep.mubr.bf16.mxu0 %v18120_v0  ;;  %680 = vmatprep.mubr.bf16.mxu1 %v18120_v0 }
  0x30   : > { %1248 = vrot.lane.b32.xlu1 %v15405_v26, %s15237_s21  ;;  %1246 = vrot.lane.b32.xlu0 %v15417_v29, %s15237_s21 }
  0x31   : > { %779 = vmatprep.subr.bf16.mxu0 %v15289_v2  ;;  %822 = vmatprep.subr.bf16.mxu1 %v15284_v1 }
  0x34   : > { %1761 = vrot.lane.b32.xlu1 %v15320_v8, %s15237_s21  ;;  %1250 = vrot.lane.b32.xlu0 %v15058_v32, %s15237_s21 }
  0x35   : > { %13729 = vmatmul.mubr.msk.bf16.vlgmr.msra.gmra.mrb[12].mxu0 %vm343_vm0, %v15337_v12  ;;  %13730 = vmatmul.mubr.msk.bf16.vlgmr.msra.gmra.mrb[12].mxu1 %vm343_vm0, %v15337_v12 }
  0x36   : > { %780 = vmatpush1.bf16.msra.mxu0 %v15305_v6  ;;  %823 = vmatpush1.bf16.msra.mxu1 %v15295_v4 }
  0x37   : > { %811 = vmatprep.mubr.bf16.mxu0 %v18120_v0  ;;  %854 = vmatprep.mubr.bf16.mxu1 %v18120_v0 }
  0x38   : > { %1765 = vrot.lane.b32.xlu1 %v15331_v11, %s15237_s21  ;;  %1763 = vrot.lane.b32.xlu0 %v15345_v14, %s15237_s21 }
  0x39   : > { %865 = vmatprep.subr.bf16.mxu0 %v15302_v5  ;;  %908 = vmatprep.subr.bf16.mxu1 %v15317_v7 }
  0x3c   : > { %1759 = vrot.lane.b32.xlu1 %v15342_v13, %s15237_s21  ;;  %1767 = vrot.lane.b32.xlu0 %v15367_v19, %s15237_s21 }
  0x3d   : > { %13748 = vmatmul.mubr.msk.bf16.vlgmr.msra.gmra.mrb[0].mxu0 %vm343_vm0, %v15083_v35  ;;  %13749 = vmatmul.mubr.msk.bf16.vlgmr.msra.gmra.mrb[0].mxu1 %vm343_vm0, %v15083_v35 }
  0x3e   : > { %866 = vmatpush1.bf16.msra.mxu0 %v15292_v3  ;;  %909 = vmatpush1.bf16.msra.mxu1 %v15325_v9 }
  0x3f   : > { %897 = vmatprep.mubr.bf16.mxu0 %v18120_v0  ;;  %940 = vmatprep.mubr.bf16.mxu1 %v18120_v0 }
  0x40   : > { %1771 = vrot.lane.b32.xlu1 %v15371_v20, %s15237_s21  ;;  %1769 = vrot.lane.b32.xlu0 %v15354_v16, %s15237_s21 }
  0x41   : > { %951 = vmatprep.subr.bf16.mxu0 %v15328_v10  ;;  %994 = vmatprep.subr.bf16.mxu1 %v15358_v17 }
  0x44   : > { %1775 = vrot.lane.b32.xlu1 %v15409_v27, %s15237_s21  ;;  %1773 = vrot.lane.b32.xlu0 %v15361_v18, %s15237_s21 }
  0x45   : > { %13750 = vmatmul.mubr.msk.bf16.vlgmr.msra.gmra.mrb[4].mxu0 %vm343_vm0, %v15083_v35  ;;  %13751 = vmatmul.mubr.msk.bf16.vlgmr.msra.gmra.mrb[4].mxu1 %vm343_vm0, %v15083_v35 }
  0x46   : > { %952 = vmatpush1.bf16.msra.mxu0 %v15351_v15  ;;  %995 = vmatpush1.bf16.msra.mxu1 %v15379_v21 }
  0x47   : > { %983 = vmatprep.mubr.bf16.mxu0 %v18120_v0  ;;  %1026 = vmatprep.mubr.bf16.mxu1 %v18120_v0 }
  0x48   : > { %1779 = vrot.lane.b32.xlu1 %v15412_v28, %s15237_s21  ;;  %1777 = vrot.lane.b32.xlu0 %v15387_v23, %s15237_s21 }
  0x49   : > { %1037 = vmatprep.subr.bf16.mxu0 %v15384_v22  ;;  %1080 = vmatprep.subr.bf16.mxu1 %v15405_v26 }
  0x4c   : > { %1783 = vrot.lane.b32.xlu1 %v15443_v33, %s15237_s21  ;;  %1781 = vrot.lane.b32.xlu0 %v15394_v24, %s15237_s21 }
  0x4d   : > { %13752 = vmatmul.mubr.msk.bf16.vlgmr.msra.gmra.mrb[8].mxu0 %vm343_vm0, %v15083_v35  ;;  %13753 = vmatmul.mubr.msk.bf16.vlgmr.msra.gmra.mrb[8].mxu1 %vm343_vm0, %v15083_v35 }
  0x4e   : > { %1038 = vmatpush1.bf16.msra.mxu0 %v15398_v25  ;;  %1081 = vmatpush1.bf16.msra.mxu1 %v15417_v29 }
  0x4f   : > { %1069 = vmatprep.mubr.bf16.mxu0 %v18120_v0  ;;  %1112 = vmatprep.mubr.bf16.mxu1 %v18120_v0 }
  0x50   : > { %1787 = vrot.lane.b32.xlu1 %v15446_v34, %s15237_s21  ;;  %1785 = vrot.lane.b32.xlu0 %v15420_v30, %s15237_s21 }
  0x54   : > { %1791 = vrot.lane.b32.xlu1 %v15081_v36, %s15237_s21  ;;  %1789 = vrot.lane.b32.xlu0 %v15427_v31, %s15237_s21 }
  0x55   : > { %13754 = vmatmul.mubr.msk.bf16.vlgmr.msra.gmra.mrb[12].mxu0 %vm343_vm0, %v15083_v35  ;;  %13755 = vmatmul.mubr.msk.bf16.vlgmr.msra.gmra.mrb[12].mxu1 %vm343_vm0, %v15083_v35 }
  0x56   : > { %1320 = vmatprep.mubr.bf16.mxu0 %v18120_v0  ;;  %1363 = vmatprep.mubr.bf16.mxu1 %v18120_v0 }
  0x86   : > { %v1225_v37 = vpop.permute.xlu1 %1224  ;;  %v1221_v38 = vpop.permute.xlu0 %1220 }
  0x8a   : > { %v1227_v39 = vpop.permute.xlu1 %1226  ;;  %v1223_v41 = vpop.permute.xlu0 %1222 }
  0x8b   : > { %v15533_v40 = vsel %vm1252_vm1, %v1225_v37, %v1227_v39  ;;  %v15537_v42 = vsel %vm1252_vm1, %v1221_v38, %v1223_v41  ;;  %v15540_v43 = vsel %vm1252_vm1, %v1223_v41, %v1225_v37 }
  0x8c   : > { %1331 = vmatprep.subr.bf16.mxu1 %v15533_v40  ;;  %1288 = vmatprep.subr.bf16.mxu0 %v15537_v42 }
  0x8d   : > { %1332 = vmatpush1.bf16.msra.mxu1 %v15540_v43 }
  0x8e   : > { %v1229_v45 = vpop.permute.xlu1 %1228  ;;  %v1219_v46 = vpop.permute.xlu0 %1218 }
  0x8f   : > { %v15548_v47 = vsel %vm1252_vm1, %v1219_v46, %v1221_v38  ;;  %v15558_v51 = vsel %vm1252_vm1, %v1227_v39, %v1229_v45 }
  0x90   : > { %13777 = vmatmul.mubr.msk.bf16.vlgmr.msra.gmra.mrb[0].mxu1 %vm343_vm0, %v15084_v44  ;;  %1289 = vmatpush1.bf16.msra.mxu0 %v15548_v47  ;;  %18330 = vst [vmem:[#allocation2_spill] sm:$0xff] %v15558_v51 }
  0x91   : > { %1449 = vmatprep.mubr.bf16.mxu1 %v18120_v0 }
  0x92   : > { %v1233_v48 = vpop.permute.xlu1 %1232  ;;  %v1231_v49 = vpop.permute.xlu0 %1230 }
  0x93   : > { %v15554_v50 = vsel %vm1252_vm1, %v1229_v45, %v1231_v49  ;;  %13776 = vmatmul.mubr.msk.bf16.vlgmr.msra.gmra.mrb[0].mxu0 %vm343_vm0, %v15084_v44  ;;  %v15567_v55 = vsel %vm1252_vm1, %v1231_v49, %v1233_v48 }
  0x94   : > { %1374 = vmatprep.subr.bf16.mxu0 %v15554_v50  ;;  %1406 = vmatprep.mubr.bf16.mxu0 %v18120_v0  ;;  %18331 = vst [vmem:[#allocation3_spill] sm:$0xff] %v15567_v55 }
  0x95   : > { %1375 = vmatpush1.bf16.msra.mxu0 %v15558_v51 }
  0x96   : > { %v1237_v52 = vpop.permute.xlu1 %1236  ;;  %v1235_v53 = vpop.permute.xlu0 %1234 }
  0x97   : > { %v15564_v54 = vsel %vm1252_vm1, %v1233_v48, %v1235_v53  ;;  %v15576_v59 = vsel %vm1252_vm1, %v1235_v53, %v1237_v52 }
  0x98   : > { %1417 = vmatprep.subr.bf16.mxu1 %v15564_v54  ;;  %18333 = vst [vmem:[#allocation5_spill] sm:$0xff] %v15576_v59 }
  0x99   : > { %1418 = vmatpush1.bf16.msra.mxu1 %v15567_v55 }
  0x9a   : > { %v1241_v56 = vpop.permute.xlu1 %1240  ;;  %v1239_v57 = vpop.permute.xlu0 %1238 }
  0x9b   : > { %v15572_v58 = vsel %vm1252_vm1, %v1237_v52, %v1239_v57  ;;  %13778 = vmatmul.mubr.msk.bf16.vlgmr.msra.gmra.mrb[4].mxu0 %vm343_vm0, %v15084_v44  ;;  %v15587_v63 = vsel %vm1252_vm1, %v1239_v57, %v1241_v56 }
  0x9c   : > { %18332 = vst [vmem:[#allocation4_spill] sm:$0xff] %v15572_v58  ;;  %13779 = vmatmul.mubr.msk.bf16.vlgmr.msra.gmra.mrb[4].mxu1 %vm343_vm0, %v15084_v44  ;;  %1460 = vmatprep.subr.bf16.mxu0 %v15572_v58  ;;  %18335 = vst [vmem:[#allocation7_spill] sm:$0xff] %v15587_v63 }
  0x9d   : > { %1461 = vmatpush1.bf16.msra.mxu0 %v15576_v59  ;;  %1492 = vmatprep.mubr.bf16.mxu0 %v18120_v0 }
  0x9e   : > { %v1245_v60 = vpop.permute.xlu1 %1244  ;;  %v1243_v61 = vpop.permute.xlu0 %1242  ;;  %1535 = vmatprep.mubr.bf16.mxu1 %v18120_v0 }
  0x9f   : > { %v15584_v62 = vsel %vm1252_vm1, %v1241_v56, %v1243_v61  ;;  %v15596_v36 = vsel %vm1252_vm1, %v1243_v61, %v1245_v60 }
  0xa0   : > { %18334 = vst [vmem:[#allocation6_spill] sm:$0xff] %v15584_v62  ;;  %1503 = vmatprep.subr.bf16.mxu1 %v15584_v62 }
  0xa1   : > { %1504 = vmatpush1.bf16.msra.mxu1 %v15587_v63 }
  0xa2   : > { %v1249_v12 = vpop.permute.xlu1 %1248  ;;  %v1247_v32 = vpop.permute.xlu0 %1246 }
  0xa3   : > { %v15592_v35 = vsel %vm1252_vm1, %v1245_v60, %v1247_v32  ;;  %13780 = vmatmul.mubr.msk.bf16.vlgmr.msra.gmra.mrb[8].mxu0 %vm343_vm0, %v15084_v44  ;;  %v15607_v41 = vsel %vm1252_vm1, %v1247_v32, %v1249_v12 }
  0xa4   : > { %18336 = vst [vmem:[#allocation8_spill] sm:$0xff] %v15592_v35  ;;  %13781 = vmatmul.mubr.msk.bf16.vlgmr.msra.gmra.mrb[8].mxu1 %vm343_vm0, %v15084_v44  ;;  %1546 = vmatprep.subr.bf16.mxu0 %v15592_v35 }
  0xa5   : > { %1547 = vmatpush1.bf16.msra.mxu0 %v15596_v36  ;;  %1578 = vmatprep.mubr.bf16.mxu0 %v18120_v0 }
  0xa6   : > { %v1762_v37 = vpop.permute.xlu1 %1761  ;;  %v1251_v38 = vpop.permute.xlu0 %1250  ;;  %1621 = vmatprep.mubr.bf16.mxu1 %v18120_v0 }
  0xa7   : > { %v15604_v39 = vsel %vm1252_vm1, %v1249_v12, %v1251_v38 }
  0xa8   : > { %18337 = vst [vmem:[#allocation9_spill] sm:$0xff] %v15604_v39  ;;  %1589 = vmatprep.subr.bf16.mxu1 %v15604_v39 }
  0xa9   : > { %1590 = vmatpush1.bf16.msra.mxu1 %v15607_v41 }
  0xaa   : > { %v1766_v45 = vpop.permute.xlu1 %1765  ;;  %v1764_v46 = vpop.permute.xlu0 %1763 }
  0xab   : > { %v15612_v48 = vsel %vm1252_vm1, %v1762_v37, %v1764_v46  ;;  %13782 = vmatmul.mubr.msk.bf16.vlgmr.msra.gmra.mrb[12].mxu0 %vm343_vm0, %v15084_v44  ;;  %v15630_v57 = vsel %vm1252_vm1, %v1764_v46, %v1766_v45 }
  0xac   : > { %13783 = vmatmul.mubr.msk.bf16.vlgmr.msra.gmra.mrb[12].mxu1 %vm343_vm0, %v15084_v44  ;;  %1828 = vmatprep.subr.bf16.mxu0 %v15612_v48  ;;  %v15085_v44 = vld [vmem:[%s18107_s2 + $0x18] sm:$0xff]  }
  0xad   : > { %1860 = vmatprep.mubr.bf16.mxu0 %v18120_v0  ;;  %1903 = vmatprep.mubr.bf16.mxu1 %v18120_v0 }
  0xae   : > { %v1760_v49 = vpop.permute.xlu1 %1759  ;;  %v1768_v53 = vpop.permute.xlu0 %1767 }
  0xaf   : > { %v15618_v52 = vsel %vm1252_vm1, %v1760_v49, %v1762_v37  ;;  %v15624_v56 = vsel %vm1252_vm1, %v1766_v45, %v1768_v53 }
  0xb0   : > { %1829 = vmatpush1.bf16.msra.mxu0 %v15618_v52  ;;  %18338 = vst [vmem:[#allocation10_spill] sm:$0xff] %v15624_v56  ;;  %1871 = vmatprep.subr.bf16.mxu1 %v15624_v56 }
  0xb1   : > { %1872 = vmatpush1.bf16.msra.mxu1 %v15630_v57 }
  0xb2   : > { %v1772_v60 = vpop.permute.xlu1 %1771  ;;  %v1770_v61 = vpop.permute.xlu0 %1769 }
  0xb3   : > { %v15635_v12 = vsel %vm1252_vm1, %v1768_v53, %v1770_v61  ;;  %v15638_v32 = vsel %vm1252_vm1, %v1770_v61, %v1772_v60  ;;  %13804 = vmatmul.mubr.msk.bf16.vlgmr.msra.gmra.mrb[0].mxu0 %vm343_vm0, %v15085_v44 }
  0xb4   : > { %18339 = vst [vmem:[#allocation11_spill] sm:$0xff] %v15635_v12  ;;  %13805 = vmatmul.mubr.msk.bf16.vlgmr.msra.gmra.mrb[0].mxu1 %vm343_vm0, %v15085_v44  ;;  %1914 = vmatprep.subr.bf16.mxu0 %v15638_v32 }
  0xb5   : > { %1915 = vmatpush1.bf16.msra.mxu0 %v15635_v12  ;;  %1946 = vmatprep.mubr.bf16.mxu0 %v18120_v0 }
  0xb6   : > { %v1776_v37 = vpop.permute.xlu1 %1775  ;;  %v1774_v38 = vpop.permute.xlu0 %1773  ;;  %1989 = vmatprep.mubr.bf16.mxu1 %v18120_v0 }
  0xb7   : > { %v15647_v45 = vsel %vm1252_vm1, %v1772_v60, %v1774_v38  ;;  %v15650_v46 = vsel %vm1252_vm1, %v1774_v38, %v1776_v37 }
  0xb8   : > { %18340 = vst [vmem:[#allocation12_spill] sm:$0xff] %v15647_v45  ;;  %18341 = vst [vmem:[#allocation13_spill] sm:$0xff] %v15650_v46  ;;  %1957 = vmatprep.subr.bf16.mxu1 %v15650_v46 }
  0xb9   : > { %1958 = vmatpush1.bf16.msra.mxu1 %v15647_v45 }
  0xba   : > { %v1780_v49 = vpop.permute.xlu1 %1779  ;;  %v1778_v53 = vpop.permute.xlu0 %1777 }
  0xbb   : > { %v15655_v61 = vsel %vm1252_vm1, %v1776_v37, %v1778_v53  ;;  %v15658_v12 = vsel %vm1252_vm1, %v1778_v53, %v1780_v49  ;;  %13806 = vmatmul.mubr.msk.bf16.vlgmr.msra.gmra.mrb[4].mxu0 %vm343_vm0, %v15085_v44 }
  0xbc   : > { %18342 = vst [vmem:[#allocation14_spill] sm:$0xff] %v15655_v61  ;;  %18343 = vst [vmem:[#allocation15_spill] sm:$0xff] %v15658_v12  ;;  %13807 = vmatmul.mubr.msk.bf16.vlgmr.msra.gmra.mrb[4].mxu1 %vm343_vm0, %v15085_v44  ;;  %2000 = vmatprep.subr.bf16.mxu0 %v15658_v12 }
  0xbd   : > { %2001 = vmatpush1.bf16.msra.mxu0 %v15655_v61  ;;  %2032 = vmatprep.mubr.bf16.mxu0 %v18120_v0 }
  0xbe   : > { %v1784_v60 = vpop.permute.xlu1 %1783  ;;  %v1782_v38 = vpop.permute.xlu0 %1781  ;;  %2075 = vmatprep.mubr.bf16.mxu1 %v18120_v0 }
  0xbf   : > { %v15667_v37 = vsel %vm1252_vm1, %v1780_v49, %v1782_v38  ;;  %v15670_v53 = vsel %vm1252_vm1, %v1782_v38, %v1784_v60 }
  0xc0   : > { %2043 = vmatprep.subr.bf16.mxu1 %v15670_v53 }
  0xc1   : > { %2044 = vmatpush1.bf16.msra.mxu1 %v15667_v37 }
  0xc2   : > { %v1788_v45 = vpop.permute.xlu1 %1787  ;;  %v1786_v12 = vpop.permute.xlu0 %1785 }
  0xc3   : > { %v15675_v46 = vsel %vm1252_vm1, %v1784_v60, %v1786_v12  ;;  %v15678_v61 = vsel %vm1252_vm1, %v1786_v12, %v1788_v45  ;;  %13808 = vmatmul.mubr.msk.bf16.vlgmr.msra.gmra.mrb[8].mxu0 %vm343_vm0, %v15085_v44 }
  0xc4   : > { %18344 = vst [vmem:[#allocation16_spill] sm:$0xff] %v15675_v46  ;;  %13809 = vmatmul.mubr.msk.bf16.vlgmr.msra.gmra.mrb[8].mxu1 %vm343_vm0, %v15085_v44  ;;  %2086 = vmatprep.subr.bf16.mxu0 %v15678_v61 }
  0xc5   : > { %2087 = vmatpush1.bf16.msra.mxu0 %v15675_v46  ;;  %2118 = vmatprep.mubr.bf16.mxu0 %v18120_v0 }
  0xc6   : > { %v1792_v49 = vpop.permute.xlu1 %1791  ;;  %v1790_v38 = vpop.permute.xlu0 %1789  ;;  %2161 = vmatprep.mubr.bf16.mxu1 %v18120_v0  ;;  %2218 = vmatprep.subr.bf16.mxu0 %v15320_v8 }
  0xc7   : > { %v15688_v60 = vsel %vm1252_vm1, %v1788_v45, %v1790_v38  ;;  %v15691_v12 = vsel %vm1252_vm1, %v1790_v38, %v1792_v49  ;;  %v15086_v45 = vld [vmem:[%s18107_s2 + $0x28] sm:$0xff]   ;;  %v15977_v38 = vld [vmem:[%s18107_s2 + $0x50] sm:$0xff]  }
  0xc8   : > { %18345 = vst [vmem:[#allocation17_spill] sm:$0xff] %v15688_v60  ;;  %2129 = vmatprep.subr.bf16.mxu1 %v15691_v12 }
  0xc9   : > { %2130 = vmatpush1.bf16.msra.mxu1 %v15688_v60 }
  0xca   : > { %2261 = vmatprep.subr.bf16.mxu1 %v15331_v11 }
  0xcb   : > { %13810 = vmatmul.mubr.msk.bf16.vlgmr.msra.gmra.mrb[12].mxu0 %vm343_vm0, %v15085_v44 }
  0xcc   : > { %13811 = vmatmul.mubr.msk.bf16.vlgmr.msra.gmra.mrb[12].mxu1 %vm343_vm0, %v15085_v44  ;;  %2219 = vmatpush1.bf16.msra.mxu0 %v15342_v13 }
  0xcd   : > { %2262 = vmatpush1.bf16.msra.mxu1 %v15345_v14  ;;  %2250 = vmatprep.mubr.bf16.mxu0 %v18120_v0 }
  0xce   : > { %2293 = vmatprep.mubr.bf16.mxu1 %v18120_v0  ;;  %2304 = vmatprep.subr.bf16.mxu0 %v15354_v16 }
  0xcf   : > { %2347 = vmatprep.subr.bf16.mxu1 %v15361_v18 }
  0xd3   : > { %13817 = vmatmul.mubr.msk.bf16.vlgmr.msra.gmra.mrb[16].mxu0 %vm343_vm0, %v15086_v45 }
  0xd4   : > { %13818 = vmatmul.mubr.msk.bf16.vlgmr.msra.gmra.mrb[16].mxu1 %vm343_vm0, %v15086_v45  ;;  %2305 = vmatpush1.bf16.msra.mxu0 %v15367_v19 }
  0xd5   : > { %2348 = vmatpush1.bf16.msra.mxu1 %v15371_v20  ;;  %2336 = vmatprep.mubr.bf16.mxu0 %v18120_v0 }
  0xd6   : > { %2379 = vmatprep.mubr.bf16.mxu1 %v18120_v0  ;;  %2390 = vmatprep.subr.bf16.mxu0 %v15387_v23 }
  0xd7   : > { %2433 = vmatprep.subr.bf16.mxu1 %v15394_v24 }
  0xdb   : > { %13819 = vmatmul.mubr.msk.bf16.vlgmr.msra.gmra.mrb[20].mxu0 %vm343_vm0, %v15086_v45 }
  0xdc   : > { %13820 = vmatmul.mubr.msk.bf16.vlgmr.msra.gmra.mrb[20].mxu1 %vm343_vm0, %v15086_v45  ;;  %2391 = vmatpush1.bf16.msra.mxu0 %v15409_v27 }
  0xdd   : > { %2434 = vmatpush1.bf16.msra.mxu1 %v15412_v28  ;;  %2422 = vmatprep.mubr.bf16.mxu0 %v18120_v0 }
  0xde   : > { %2465 = vmatprep.mubr.bf16.mxu1 %v18120_v0  ;;  %2476 = vmatprep.subr.bf16.mxu0 %v15420_v30 }
  0xdf   : > { %2519 = vmatprep.subr.bf16.mxu1 %v15427_v31 }
  0xe3   : > { %13821 = vmatmul.mubr.msk.bf16.vlgmr.msra.gmra.mrb[24].mxu0 %vm343_vm0, %v15086_v45 }
  0xe4   : > { %13822 = vmatmul.mubr.msk.bf16.vlgmr.msra.gmra.mrb[24].mxu1 %vm343_vm0, %v15086_v45  ;;  %2477 = vmatpush1.bf16.msra.mxu0 %v15443_v33 }
  0xe5   : > { %2520 = vmatpush1.bf16.msra.mxu1 %v15446_v34  ;;  %2508 = vmatprep.mubr.bf16.mxu0 %v18120_v0 }
  0xe6   : > { %2551 = vmatprep.mubr.bf16.mxu1 %v18120_v0  ;;  %2570 = vmatprep.subr.bf16.mxu0 %v15289_v2  ;;  %v15087_v2 = vld [vmem:[%s18107_s2 + $0x20] sm:$0xff]  }
  0xe7   : > { %2613 = vmatprep.subr.bf16.mxu1 %v15284_v1  ;;  %v15088_v1 = vld [vmem:[%s18107_s2 + $0x30] sm:$0xff]  }
  0xeb   : > { %13823 = vmatmul.mubr.msk.bf16.vlgmr.msra.gmra.mrb[28].mxu0 %vm343_vm0, %v15086_v45 }
  0xec   : > { %13824 = vmatmul.mubr.msk.bf16.vlgmr.msra.gmra.mrb[28].mxu1 %vm343_vm0, %v15086_v45  ;;  %2571 = vmatpush1.bf16.msra.mxu0 %v15305_v6  ;;  %v18348_v6 = vld [vmem:[#allocation12_spill] sm:$0xff] }
  0xed   : > { %2614 = vmatpush1.bf16.msra.mxu1 %v15295_v4  ;;  %2602 = vmatprep.mubr.bf16.mxu0 %v18120_v0  ;;  %v15089_v4 = vld [vmem:[%s18107_s2 + $0x38] sm:$0xff]   ;;  %v15983_v45 = vld [vmem:[%s15281_s20 + $0x50] ss:$132 sps:$4 sm:$0xff]  }
  0xee   : > { %2645 = vmatprep.mubr.bf16.mxu1 %v18120_v0  ;;  %2656 = vmatprep.subr.bf16.mxu0 %v15302_v5  ;;  %v18347_v5 = vld [vmem:[#allocation11_spill] sm:$0xff] }
  0xef   : > { %2699 = vmatprep.subr.bf16.mxu1 %v15317_v7  ;;  %v18349_v7 = vld [vmem:[#allocation15_spill] sm:$0xff] }
  0xf3   : > { %13826 = vmatmul.mubr.msk.bf16.vlgmr.msra.gmra.mrb[16].mxu0 %vm343_vm0, %v15087_v2 }
  0xf4   : > { %13827 = vmatmul.mubr.msk.bf16.vlgmr.msra.gmra.mrb[16].mxu1 %vm343_vm0, %v15087_v2  ;;  %2657 = vmatpush1.bf16.msra.mxu0 %v15292_v3  ;;  %v18346_v3 = vld [vmem:[#allocation13_spill] sm:$0xff] }
  0xf5   : > { %2700 = vmatpush1.bf16.msra.mxu1 %v15325_v9  ;;  %2688 = vmatprep.mubr.bf16.mxu0 %v18120_v0  ;;  %v18350_v9 = vld [vmem:[#allocation14_spill] sm:$0xff] }
  0xf6   : > { %2731 = vmatprep.mubr.bf16.mxu1 %v18120_v0  ;;  %2742 = vmatprep.subr.bf16.mxu0 %v15328_v10  ;;  %v15870_v10 = vld [vmem:[%s15281_s20 + $0x4] ss:$132 sps:$4 sm:$0xff]   ;;  %18354 = vst [vmem:[#allocation14_spill] sm:$0xff] %v15983_v45 }
  0xf7   : > { %2785 = vmatprep.subr.bf16.mxu1 %v15358_v17  ;;  %v15897_v17 = vld [vmem:[%s15281_s20 + $0x1c] ss:$132 sps:$4 sm:$0xff]  }
  0xfb   : > { %13828 = vmatmul.mubr.msk.bf16.vlgmr.msra.gmra.mrb[20].mxu0 %vm343_vm0, %v15087_v2 }
  0xfc   : > { %13829 = vmatmul.mubr.msk.bf16.vlgmr.msra.gmra.mrb[20].mxu1 %vm343_vm0, %v15087_v2  ;;  %2743 = vmatpush1.bf16.msra.mxu0 %v15351_v15  ;;  %v15890_v15 = vld [vmem:[%s15281_s20 + $0x14] ss:$132 sps:$4 sm:$0xff]  }
  0xfd   : > { %2786 = vmatpush1.bf16.msra.mxu1 %v15379_v21  ;;  %2774 = vmatprep.mubr.bf16.mxu0 %v18120_v0 }
  0xfe   : > { %2828 = vmatprep.subr.bf16.mxu0 %v15384_v22  ;;  %2817 = vmatprep.mubr.bf16.mxu1 %v18120_v0 }
  0xff   : > { %2871 = vmatprep.subr.bf16.mxu1 %v15405_v26 }
 0x103   : > { %13830 = vmatmul.mubr.msk.bf16.vlgmr.msra.gmra.mrb[24].mxu0 %vm343_vm0, %v15087_v2 }
 0x104   : > { %2829 = vmatpush1.bf16.msra.mxu0 %v15398_v25  ;;  %13831 = vmatmul.mubr.msk.bf16.vlgmr.msra.gmra.mrb[24].mxu1 %vm343_vm0, %v15087_v2 }
 0x105   : > { %2872 = vmatpush1.bf16.msra.mxu1 %v15417_v29  ;;  %2925 = vmatprep.subr.bf16.mxu0 %v15537_v42 }
 0x106   : > { %2968 = vmatprep.subr.bf16.mxu1 %v15533_v40  ;;  %2860 = vmatprep.mubr.bf16.mxu0 %v18120_v0 }
 0x107   : > { %2903 = vmatprep.mubr.bf16.mxu1 %v18120_v0 }
 0x10b   : > { %13832 = vmatmul.mubr.msk.bf16.vlgmr.msra.gmra.mrb[28].mxu0 %vm343_vm0, %v15087_v2 }
 0x10c   : > { %2926 = vmatpush1.bf16.msra.mxu0 %v15548_v47  ;;  %13833 = vmatmul.mubr.msk.bf16.vlgmr.msra.gmra.mrb[28].mxu1 %vm343_vm0, %v15087_v2 }
 0x10d   : > { %2969 = vmatpush1.bf16.msra.mxu1 %v15540_v43  ;;  %3011 = vmatprep.subr.bf16.mxu0 %v15554_v50 }
 0x10e   : > { %3054 = vmatprep.subr.bf16.mxu1 %v15564_v54  ;;  %2957 = vmatprep.mubr.bf16.mxu0 %v18120_v0 }
 0x10f   : > { %3000 = vmatprep.mubr.bf16.mxu1 %v18120_v0 }
 0x113   : > { %13837 = vmatmul.mubr.msk.bf16.vlgmr.msra.gmra.mrb[16].mxu0 %vm343_vm0, %v15088_v1 }
 0x114   : > { %3012 = vmatpush1.bf16.msra.mxu0 %v15558_v51  ;;  %13838 = vmatmul.mubr.msk.bf16.vlgmr.msra.gmra.mrb[16].mxu1 %vm343_vm0, %v15088_v1 }
 0x115   : > { %3055 = vmatpush1.bf16.msra.mxu1 %v15567_v55  ;;  %3097 = vmatprep.subr.bf16.mxu0 %v15572_v58 }
 0x116   : > { %3140 = vmatprep.subr.bf16.mxu1 %v15584_v62  ;;  %3043 = vmatprep.mubr.bf16.mxu0 %v18120_v0 }
 0x117   : > { %3086 = vmatprep.mubr.bf16.mxu1 %v18120_v0 }
 0x11b   : > { %13839 = vmatmul.mubr.msk.bf16.vlgmr.msra.gmra.mrb[20].mxu0 %vm343_vm0, %v15088_v1 }
 0x11c   : > { %3098 = vmatpush1.bf16.msra.mxu0 %v15576_v59  ;;  %13840 = vmatmul.mubr.msk.bf16.vlgmr.msra.gmra.mrb[20].mxu1 %vm343_vm0, %v15088_v1 }
 0x11d   : > { %3141 = vmatpush1.bf16.msra.mxu1 %v15587_v63  ;;  %3183 = vmatprep.subr.bf16.mxu0 %v15592_v35 }
 0x11e   : > { %3226 = vmatprep.subr.bf16.mxu1 %v15604_v39  ;;  %3129 = vmatprep.mubr.bf16.mxu0 %v18120_v0 }
 0x11f   : > { %3172 = vmatprep.mubr.bf16.mxu1 %v18120_v0 }
 0x123   : > { %13841 = vmatmul.mubr.msk.bf16.vlgmr.msra.gmra.mrb[24].mxu0 %vm343_vm0, %v15088_v1 }
 0x124   : > { %3184 = vmatpush1.bf16.msra.mxu0 %v15596_v36  ;;  %13842 = vmatmul.mubr.msk.bf16.vlgmr.msra.gmra.mrb[24].mxu1 %vm343_vm0, %v15088_v1 }
 0x125   : > { %3227 = vmatpush1.bf16.msra.mxu1 %v15607_v41  ;;  %3312 = vmatprep.subr.bf16.mxu0 %v15612_v48 }
 0x126   : > { %3355 = vmatprep.subr.bf16.mxu1 %v15624_v56  ;;  %3215 = vmatprep.mubr.bf16.mxu0 %v18120_v0 }
 0x127   : > { %3258 = vmatprep.mubr.bf16.mxu1 %v18120_v0 }
 0x12b   : > { %13843 = vmatmul.mubr.msk.bf16.vlgmr.msra.gmra.mrb[28].mxu0 %vm343_vm0, %v15088_v1 }
 0x12c   : > { %3313 = vmatpush1.bf16.msra.mxu0 %v15618_v52  ;;  %13844 = vmatmul.mubr.msk.bf16.vlgmr.msra.gmra.mrb[28].mxu1 %vm343_vm0, %v15088_v1 }
 0x12d   : > { %3356 = vmatpush1.bf16.msra.mxu1 %v15630_v57  ;;  %3398 = vmatprep.subr.bf16.mxu0 %v15638_v32 }
 0x12e   : > { %3441 = vmatprep.subr.bf16.mxu1 %v18346_v3  ;;  %3344 = vmatprep.mubr.bf16.mxu0 %v18120_v0 }
 0x12f   : > { %3387 = vmatprep.mubr.bf16.mxu1 %v18120_v0 }
 0x133   : > { %13848 = vmatmul.mubr.msk.bf16.vlgmr.msra.gmra.mrb[16].mxu0 %vm343_vm0, %v15089_v4 }
 0x134   : > { %3399 = vmatpush1.bf16.msra.mxu0 %v18347_v5  ;;  %13849 = vmatmul.mubr.msk.bf16.vlgmr.msra.gmra.mrb[16].mxu1 %vm343_vm0, %v15089_v4 }
 0x135   : > { %3442 = vmatpush1.bf16.msra.mxu1 %v18348_v6  ;;  %3484 = vmatprep.subr.bf16.mxu0 %v18349_v7 }
 0x136   : > { %3527 = vmatprep.subr.bf16.mxu1 %v15670_v53  ;;  %3430 = vmatprep.mubr.bf16.mxu0 %v18120_v0 }
 0x137   : > { %3473 = vmatprep.mubr.bf16.mxu1 %v18120_v0 }
 0x13b   : > { %13850 = vmatmul.mubr.msk.bf16.vlgmr.msra.gmra.mrb[20].mxu0 %vm343_vm0, %v15089_v4 }
 0x13c   : > { %3485 = vmatpush1.bf16.msra.mxu0 %v18350_v9  ;;  %13851 = vmatmul.mubr.msk.bf16.vlgmr.msra.gmra.mrb[20].mxu1 %vm343_vm0, %v15089_v4 }
 0x13d   : > { %3528 = vmatpush1.bf16.msra.mxu1 %v15667_v37  ;;  %3570 = vmatprep.subr.bf16.mxu0 %v15678_v61 }
 0x13e   : > { %3613 = vmatprep.subr.bf16.mxu1 %v15691_v12  ;;  %3516 = vmatprep.mubr.bf16.mxu0 %v18120_v0 }
 0x13f   : > { %3559 = vmatprep.mubr.bf16.mxu1 %v18120_v0 }
 0x143   : > { %13852 = vmatmul.mubr.msk.bf16.vlgmr.msra.gmra.mrb[24].mxu0 %vm343_vm0, %v15089_v4 }
 0x144   : > { %3571 = vmatpush1.bf16.msra.mxu0 %v15675_v46  ;;  %13853 = vmatmul.mubr.msk.bf16.vlgmr.msra.gmra.mrb[24].mxu1 %vm343_vm0, %v15089_v4 }
 0x145   : > { %3614 = vmatpush1.bf16.msra.mxu1 %v15688_v60  ;;  %3602 = vmatprep.mubr.bf16.mxu0 %v18120_v0 }
 0x146   : > { %3645 = vmatprep.mubr.bf16.mxu1 %v18120_v0  ;;  %3734 = vmatprep.subr.bf16.mxu0 %v15320_v8  ;;  %v15090_v8 = vld [vmem:[%s18107_s2 + $0x48] sm:$0xff]  }
 0x147   : > { %3777 = vmatprep.subr.bf16.mxu1 %v15331_v11  ;;  %v15874_v11 = vld [vmem:[%s15281_s20 + $0xc] ss:$132 sps:$4 sm:$0xff]  }
 0x14b   : > { %13854 = vmatmul.mubr.msk.bf16.vlgmr.msra.gmra.mrb[28].mxu0 %vm343_vm0, %v15089_v4 }
 0x14c   : > { %13855 = vmatmul.mubr.msk.bf16.vlgmr.msra.gmra.mrb[28].mxu1 %vm343_vm0, %v15089_v4  ;;  %3735 = vmatpush1.bf16.msra.mxu0 %v15342_v13  ;;  %v15880_v13 = vld [vmem:[%s15281_s20] ss:$132 sps:$4 sm:$0xff]  }
 0x14d   : > { %3778 = vmatpush1.bf16.msra.mxu1 %v15345_v14  ;;  %3766 = vmatprep.mubr.bf16.mxu0 %v18120_v0  ;;  %v15884_v14 = vld [vmem:[%s15281_s20 + $0x8] ss:$132 sps:$4 sm:$0xff]  }
 0x14e   : > { %3809 = vmatprep.mubr.bf16.mxu1 %v18120_v0  ;;  %3820 = vmatprep.subr.bf16.mxu0 %v15354_v16  ;;  %v15091_v16 = vld [vmem:[%s18107_s2 + $0x40] sm:$0xff]  }
 0x14f   : > { %3863 = vmatprep.subr.bf16.mxu1 %v15361_v18  ;;  %v15903_v18 = vld [vmem:[%s15281_s20 + $0x10] ss:$132 sps:$4 sm:$0xff]  }
 0x153   : > { %13861 = vmatmul.mubr.msk.bf16.vlgmr.msra.gmra.mrb[32].mxu0 %vm343_vm0, %v15090_v8 }
 0x154   : > { %13862 = vmatmul.mubr.msk.bf16.vlgmr.msra.gmra.mrb[32].mxu1 %vm343_vm0, %v15090_v8  ;;  %3821 = vmatpush1.bf16.msra.mxu0 %v15367_v19  ;;  %v15907_v19 = vld [vmem:[%s15281_s20 + $0x18] ss:$132 sps:$4 sm:$0xff]  }
 0x155   : > { %3864 = vmatpush1.bf16.msra.mxu1 %v15371_v20  ;;  %3852 = vmatprep.mubr.bf16.mxu0 %v18120_v0  ;;  %v15913_v20 = vld [vmem:[%s15281_s20 + $0x24] ss:$132 sps:$4 sm:$0xff]  }
 0x156   : > { %3895 = vmatprep.mubr.bf16.mxu1 %v18120_v0  ;;  %3906 = vmatprep.subr.bf16.mxu0 %v15387_v23  ;;  %v15917_v23 = vld [vmem:[%s15281_s20 + $0x2c] ss:$132 sps:$4 sm:$0xff]  }
 0x157   : > { %3949 = vmatprep.subr.bf16.mxu1 %v15394_v24  ;;  %v15923_v24 = vld [vmem:[%s15281_s20 + $0x20] ss:$132 sps:$4 sm:$0xff]  }
 0x15b   : > { %13863 = vmatmul.mubr.msk.bf16.vlgmr.msra.gmra.mrb[36].mxu0 %vm343_vm0, %v15090_v8 }
 0x15c   : > { %13864 = vmatmul.mubr.msk.bf16.vlgmr.msra.gmra.mrb[36].mxu1 %vm343_vm0, %v15090_v8  ;;  %3907 = vmatpush1.bf16.msra.mxu0 %v15409_v27 }
 0x15d   : > { %3950 = vmatpush1.bf16.msra.mxu1 %v15412_v28  ;;  %3938 = vmatprep.mubr.bf16.mxu0 %v18120_v0 }
 0x15e   : > { %3981 = vmatprep.mubr.bf16.mxu1 %v18120_v0  ;;  %3992 = vmatprep.subr.bf16.mxu0 %v15420_v30 }
 0x15f   : > { %4035 = vmatprep.subr.bf16.mxu1 %v15427_v31  ;;  %v15957_v31 = vld [vmem:[%s15281_s20 + $0x48] ss:$132 sps:$4 sm:$0xff]  }
 0x160   : > { %18351 = vst [vmem:[#allocation11_spill] sm:$0xff] %v15957_v31  ;;  %7936 = vrot.lane.b32.xlu1 %v15957_v31, %s15237_s21  ;;  %v16008_v31 = vld [vmem:[%s15281_s20 + $0x54] ss:$132 sps:$4 sm:$0xff]  }
 0x161   : > { %18358 = vst [vmem:[#allocation21_spill] sm:$0xff] %v16008_v31 }
 0x163   : > { %13865 = vmatmul.mubr.msk.bf16.vlgmr.msra.gmra.mrb[40].mxu0 %vm343_vm0, %v15090_v8 }
 0x164   : > { %13866 = vmatmul.mubr.msk.bf16.vlgmr.msra.gmra.mrb[40].mxu1 %vm343_vm0, %v15090_v8  ;;  %3993 = vmatpush1.bf16.msra.mxu0 %v15443_v33  ;;  %v15962_v33 = vld [vmem:[%s15281_s20 + $0x44] ss:$132 sps:$4 sm:$0xff]  }
 0x165   : > { %4036 = vmatpush1.bf16.msra.mxu1 %v15446_v34  ;;  %4024 = vmatprep.mubr.bf16.mxu0 %v18120_v0  ;;  %18352 = vst [vmem:[#allocation12_spill] sm:$0xff] %v15962_v33 }
 0x166   : > { %4067 = vmatprep.mubr.bf16.mxu1 %v18120_v0  ;;  %4086 = vmatprep.subr.bf16.mxu0 %v15870_v10 }
 0x167   : > { %4129 = vmatprep.subr.bf16.mxu1 %v15874_v11  ;;  %7934 = vrot.lane.b32.xlu0 %v15962_v33, %s15237_s21 }
 0x168   : > { %7940 = vrot.lane.b32.xlu1 %v15983_v45, %s15237_s21 }
 0x16b   : > { %13867 = vmatmul.mubr.msk.bf16.vlgmr.msra.gmra.mrb[44].mxu0 %vm343_vm0, %v15090_v8 }
 0x16c   : > { %13868 = vmatmul.mubr.msk.bf16.vlgmr.msra.gmra.mrb[44].mxu1 %vm343_vm0, %v15090_v8  ;;  %4087 = vmatpush1.bf16.msra.mxu0 %v15880_v13 }
 0x16d   : > { %4130 = vmatpush1.bf16.msra.mxu1 %v15884_v14  ;;  %4118 = vmatprep.mubr.bf16.mxu0 %v18120_v0 }
 0x16e   : > { %4161 = vmatprep.mubr.bf16.mxu1 %v18120_v0  ;;  %4172 = vmatprep.subr.bf16.mxu0 %v15890_v15 }
 0x16f   : > { %4215 = vmatprep.subr.bf16.mxu1 %v15897_v17  ;;  %7942 = vrot.lane.b32.xlu1 %v16008_v31, %s15237_s21  ;;  %v16049_v31 = vld [vmem:[%s15281_s20 + $0x58] ss:$132 sps:$4 sm:$0xff]  }
 0x170   : > { %18368 = vst [vmem:[#allocation30_spill] sm:$0xff] %v16049_v31 }
 0x173   : > { %13870 = vmatmul.mubr.msk.bf16.vlgmr.msra.gmra.mrb[32].mxu0 %vm343_vm0, %v15091_v16 }
 0x174   : > { %13871 = vmatmul.mubr.msk.bf16.vlgmr.msra.gmra.mrb[32].mxu1 %vm343_vm0, %v15091_v16  ;;  %4173 = vmatpush1.bf16.msra.mxu0 %v15903_v18 }
 0x175   : > { %4216 = vmatpush1.bf16.msra.mxu1 %v15907_v19  ;;  %4204 = vmatprep.mubr.bf16.mxu0 %v18120_v0 }
 0x176   : > { %4247 = vmatprep.mubr.bf16.mxu1 %v18120_v0  ;;  %4258 = vmatprep.subr.bf16.mxu0 %v15913_v20 }
 0x177   : > { %4301 = vmatprep.subr.bf16.mxu1 %v15917_v23 }
 0x17b   : > { %13872 = vmatmul.mubr.msk.bf16.vlgmr.msra.gmra.mrb[36].mxu0 %vm343_vm0, %v15091_v16 }
 0x17c   : > { %13873 = vmatmul.mubr.msk.bf16.vlgmr.msra.gmra.mrb[36].mxu1 %vm343_vm0, %v15091_v16  ;;  %4259 = vmatpush1.bf16.msra.mxu0 %v15923_v24 }
 0x17d   : > { %4302 = vmatpush1.bf16.msra.mxu1 %v15379_v21  ;;  %4290 = vmatprep.mubr.bf16.mxu0 %v18120_v0 }
 0x17e   : > { %4344 = vmatprep.subr.bf16.mxu0 %v15384_v22  ;;  %4333 = vmatprep.mubr.bf16.mxu1 %v18120_v0 }
 0x17f   : > { %4387 = vmatprep.subr.bf16.mxu1 %v15405_v26 }
 0x183   : > { %13874 = vmatmul.mubr.msk.bf16.vlgmr.msra.gmra.mrb[40].mxu0 %vm343_vm0, %v15091_v16 }
 0x184   : > { %4345 = vmatpush1.bf16.msra.mxu0 %v15398_v25  ;;  %13875 = vmatmul.mubr.msk.bf16.vlgmr.msra.gmra.mrb[40].mxu1 %vm343_vm0, %v15091_v16 }
 0x185   : > { %4388 = vmatpush1.bf16.msra.mxu1 %v15417_v29  ;;  %4441 = vmatprep.subr.bf16.mxu0 %v15537_v42 }
 0x186   : > { %4484 = vmatprep.subr.bf16.mxu1 %v15533_v40  ;;  %v15937_v21 = vpop.f32.mrb[0].mxu0  ;;  %4376 = vmatprep.mubr.bf16.mxu0 %v18120_v0 }
 0x187   : > { %v15940_v22 = vpop.f32.mrb[1].mxu0  ;;  %v15942_v26 = vpop.f32.mrb[0].mxu1  ;;  %4419 = vmatprep.mubr.bf16.mxu1 %v18120_v0 }
 0x188   : > { %v15945_v25 = vpop.f32.mrb[2].mxu0  ;;  %v15947_v27 = vpop.f32.mrb[1].mxu1 }
 0x189   : > { %v15949_v28 = vpop.f32.mrb[3].mxu0  ;;  %v15951_v29 = vpop.f32.mrb[2].mxu1 }
 0x18a   : > { %v15953_v30 = vpop.f32.mrb[3].mxu1 }
 0x18b   : > { %13876 = vmatmul.mubr.msk.bf16.vlgmr.msra.gmra.mrb[44].mxu0 %vm343_vm0, %v15091_v16 }
 0x18c   : > { %4442 = vmatpush1.bf16.msra.mxu0 %v15548_v47  ;;  %13877 = vmatmul.mubr.msk.bf16.vlgmr.msra.gmra.mrb[44].mxu1 %vm343_vm0, %v15091_v16 }
 0x18d   : > { %4485 = vmatpush1.bf16.msra.mxu1 %v15540_v43  ;;  %4527 = vmatprep.subr.bf16.mxu0 %v15554_v50 }
 0x18e   : > { %4570 = vmatprep.subr.bf16.mxu1 %v15564_v54  ;;  %v15967_v34 = vpop.f32.mrb[4].mxu0  ;;  %4473 = vmatprep.mubr.bf16.mxu0 %v18120_v0 }
 0x18f   : > { %v15970_v44 = vpop.f32.mrb[5].mxu0  ;;  %v15972_v49 = vpop.f32.mrb[4].mxu1  ;;  %4516 = vmatprep.mubr.bf16.mxu1 %v18120_v0  ;;  %v16002_v0 = vld [vmem:[%s15281_s20 + $0x4c] ss:$132 sps:$4 sm:$0xff]  }
 0x190   : > { %18353 = vst [vmem:[#allocation15_spill] sm:$0xff] %v15972_v49  ;;  %v15985_v2 = vpop.f32.mrb[6].mxu0  ;;  %v15987_v1 = vpop.f32.mrb[5].mxu1  ;;  %18357 = vst [vmem:[#allocation20_spill] sm:$0xff] %v16002_v0  ;;  %7938 = vrot.lane.b32.xlu0 %v16002_v0, %s15237_s21  ;;  %v16043_v0 = vld [vmem:[%s15281_s20 + $0x5c] ss:$132 sps:$4 sm:$0xff]  }
 0x191   : > { %v15991_v4 = vpop.f32.mrb[7].mxu0  ;;  %v15993_v8 = vpop.f32.mrb[6].mxu1  ;;  %18367 = vst [vmem:[#allocation29_spill] sm:$0xff] %v16043_v0  ;;  %7946 = vrot.lane.b32.xlu1 %v16043_v0, %s15237_s21  ;;  %v16084_v0 = vld [vmem:[%s15281_s20 + $0x60] ss:$132 sps:$4 sm:$0xff]  }
 0x192   : > { %18355 = vst [vmem:[#allocation18_spill] sm:$0xff] %v15993_v8  ;;  %v15995_v16 = vpop.f32.mrb[7].mxu1  ;;  %18376 = vst [vmem:[#allocation38_spill] sm:$0xff] %v16084_v0 }
 0x193   : > { %18356 = vst [vmem:[#allocation19_spill] sm:$0xff] %v15995_v16  ;;  %13881 = vmatmul.mubr.msk.bf16.vlgmr.msra.gmra.mrb[32].mxu0 %vm343_vm0, %v15977_v38  ;;  %v18360_v16 = vmov 0  }
 0x194   : > { %4528 = vmatpush1.bf16.msra.mxu0 %v15558_v51  ;;  %13882 = vmatmul.mubr.msk.bf16.vlgmr.msra.gmra.mrb[32].mxu1 %vm343_vm0, %v15977_v38 }
 0x195   : > { %4571 = vmatpush1.bf16.msra.mxu1 %v15567_v55  ;;  %4613 = vmatprep.subr.bf16.mxu0 %v15572_v58  ;;  %v16024_v55 = vld [vmem:[%s15281_s20 + $0x40] ss:$132 sps:$4 sm:$0xff]  }
 0x196   : > { %4656 = vmatprep.subr.bf16.mxu1 %v15584_v62  ;;  %v16013_v33 = vpop.f32.mrb[8].mxu0  ;;  %4559 = vmatprep.mubr.bf16.mxu0 %v18360_v16  ;;  %18363 = vst [vmem:[#allocation25_spill] sm:$0xff] %v16024_v55 }
 0x197   : > { %18359 = vst [vmem:[#allocation22_spill] sm:$0xff] %v16013_v33  ;;  %v16016_v45 = vpop.f32.mrb[9].mxu0  ;;  %v16018_v51 = vpop.f32.mrb[8].mxu1  ;;  %4602 = vmatprep.mubr.bf16.mxu1 %v18360_v16  ;;  %7932 = vrot.lane.b32.xlu0 %v16024_v55, %s15237_s21 }
 0x198   : > { %18361 = vst [vmem:[#allocation23_spill] sm:$0xff] %v16016_v45  ;;  %18362 = vst [vmem:[#allocation24_spill] sm:$0xff] %v16018_v51  ;;  %v16026_v58 = vpop.f32.mrb[10].mxu0  ;;  %v16028_v62 = vpop.f32.mrb[9].mxu1 }
 0x199   : > { %v16032_v33 = vpop.f32.mrb[11].mxu0  ;;  %v16034_v45 = vpop.f32.mrb[10].mxu1 }
 0x19a   : > { %18364 = vst [vmem:[#allocation26_spill] sm:$0xff] %v16032_v33  ;;  %18365 = vst [vmem:[#allocation27_spill] sm:$0xff] %v16034_v45  ;;  %v16036_v8 = vpop.f32.mrb[11].mxu1 }
 0x19b   : > { %18366 = vst [vmem:[#allocation28_spill] sm:$0xff] %v16036_v8  ;;  %13883 = vmatmul.mubr.msk.bf16.vlgmr.msra.gmra.mrb[36].mxu0 %vm343_vm0, %v15977_v38  ;;  %7944 = vrot.lane.b32.xlu0 %v16049_v31, %s15237_s21  ;;  %v16090_v31 = vld [vmem:[%s15281_s20 + $0x6c] ss:$132 sps:$4 sm:$0xff]  }
 0x19c   : > { %4614 = vmatpush1.bf16.msra.mxu0 %v15576_v59  ;;  %13884 = vmatmul.mubr.msk.bf16.vlgmr.msra.gmra.mrb[36].mxu1 %vm343_vm0, %v15977_v38  ;;  %18377 = vst [vmem:[#allocation39_spill] sm:$0xff] %v16090_v31 }
 0x19d   : > { %4657 = vmatpush1.bf16.msra.mxu1 %v15587_v63  ;;  %4699 = vmatprep.subr.bf16.mxu0 %v15592_v35  ;;  %v16065_v63 = vld [vmem:[%s15281_s20 + $0x64] ss:$132 sps:$4 sm:$0xff]  }
 0x19e   : > { %4742 = vmatprep.subr.bf16.mxu1 %v15604_v39  ;;  %v16054_v8 = vpop.f32.mrb[12].mxu0  ;;  %4645 = vmatprep.mubr.bf16.mxu0 %v18360_v16  ;;  %18372 = vst [vmem:[#allocation34_spill] sm:$0xff] %v16065_v63 }
 0x19f   : > { %18369 = vst [vmem:[#allocation31_spill] sm:$0xff] %v16054_v8  ;;  %v16057_v55 = vpop.f32.mrb[13].mxu0  ;;  %v16059_v59 = vpop.f32.mrb[12].mxu1  ;;  %4688 = vmatprep.mubr.bf16.mxu1 %v18360_v16  ;;  %7950 = vrot.lane.b32.xlu1 %v16065_v63, %s15237_s21  ;;  %v16100_v63 = vld [vmem:[%s15281_s20 + $0x68] ss:$132 sps:$4 sm:$0xff]  }
 0x1a0   : > { %18370 = vst [vmem:[#allocation32_spill] sm:$0xff] %v16057_v55  ;;  %18371 = vst [vmem:[#allocation33_spill] sm:$0xff] %v16059_v59  ;;  %v16067_v35 = vpop.f32.mrb[14].mxu0  ;;  %v16069_v39 = vpop.f32.mrb[13].mxu1  ;;  %7948 = vrot.lane.b32.xlu0 %v16084_v0, %s15237_s21  ;;  %v16115_v0 = vld [vmem:[%s15281_s20 + $0x70] ss:$132 sps:$4 sm:$0xff]  }
 0x1a1   : > { %v16073_v8 = vpop.f32.mrb[15].mxu0  ;;  %v16075_v55 = vpop.f32.mrb[14].mxu1  ;;  %18378 = vst [vmem:[#allocation40_spill] sm:$0xff] %v16100_v63  ;;  %18380 = vst [vmem:[#allocation42_spill] sm:$0xff] %v16115_v0 }
 0x1a2   : > { %18373 = vst [vmem:[#allocation35_spill] sm:$0xff] %v16073_v8  ;;  %18374 = vst [vmem:[#allocation36_spill] sm:$0xff] %v16075_v55  ;;  %v16077_v59 = vpop.f32.mrb[15].mxu1 }
 0x1a3   : > { %18375 = vst [vmem:[#allocation37_spill] sm:$0xff] %v16077_v59  ;;  %13885 = vmatmul.mubr.msk.bf16.vlgmr.msra.gmra.mrb[40].mxu0 %vm343_vm0, %v15977_v38  ;;  %7954 = vrot.lane.b32.xlu1 %v16090_v31, %s15237_s21  ;;  %v16136_v31 = vld [vmem:[%s15281_s20 + $0x78] ss:$132 sps:$4 sm:$0xff]  }
 0x1a4   : > { %4700 = vmatpush1.bf16.msra.mxu0 %v15596_v36  ;;  %13886 = vmatmul.mubr.msk.bf16.vlgmr.msra.gmra.mrb[40].mxu1 %vm343_vm0, %v15977_v38  ;;  %18382 = vst [vmem:[#allocation44_spill] sm:$0xff] %v16136_v31 }
 0x1a5   : > { %4743 = vmatpush1.bf16.msra.mxu1 %v15607_v41  ;;  %4828 = vmatprep.subr.bf16.mxu0 %v15612_v48 }
 0x1a6   : > { %4871 = vmatprep.subr.bf16.mxu1 %v15624_v56  ;;  %4731 = vmatprep.mubr.bf16.mxu0 %v18360_v16  ;;  %v16109_v56 = vld [vmem:[%s15281_s20 + $0x74] ss:$132 sps:$4 sm:$0xff]  }
 0x1a7   : > { %4774 = vmatprep.mubr.bf16.mxu1 %v18360_v16  ;;  %7952 = vrot.lane.b32.xlu0 %v16100_v63, %s15237_s21  ;;  %18379 = vst [vmem:[#allocation41_spill] sm:$0xff] %v16109_v56  ;;  %v15093_v63 = vld [vmem:[%s18107_s2 + $0x58] sm:$0xff]  }
 0x1a8   : > { %7958 = vrot.lane.b32.xlu1 %v16109_v56, %s15237_s21  ;;  %v16161_v56 = vld [vmem:[%s15312_s24 + $0x48] ss:$132 sps:$4 sm:$0xff]  }
 0x1a9   : > { %18385 = vst [vmem:[#allocation47_spill] sm:$0xff] %v16161_v56 }
 0x1ab   : > { %13887 = vmatmul.mubr.msk.bf16.vlgmr.msra.gmra.mrb[44].mxu0 %vm343_vm0, %v15977_v38  ;;  %7956 = vrot.lane.b32.xlu0 %v16115_v0, %s15237_s21  ;;  %v15123_v0 = vld [vmem:[%s15281_s20 + $0x80] ss:$132 sps:$4 sm:$0xff]  }
 0x1ac   : > { %4829 = vmatpush1.bf16.msra.mxu0 %v15618_v52  ;;  %13888 = vmatmul.mubr.msk.bf16.vlgmr.msra.gmra.mrb[44].mxu1 %vm343_vm0, %v15977_v38  ;;  %v16128_v38 = vld [vmem:[%s15281_s20 + $0x7c] ss:$132 sps:$4 sm:$0xff]  }
 0x1ad   : > { %4872 = vmatpush1.bf16.msra.mxu1 %v15630_v57  ;;  %4914 = vmatprep.subr.bf16.mxu0 %v15638_v32  ;;  %18381 = vst [vmem:[#allocation43_spill] sm:$0xff] %v16128_v38 }
 0x1ae   : > { %4957 = vmatprep.subr.bf16.mxu1 %v18346_v3  ;;  %4860 = vmatprep.mubr.bf16.mxu0 %v18360_v16  ;;  %v16141_v3 = vld [vmem:[%s15312_s24 + $0x44] ss:$132 sps:$4 sm:$0xff]  }
 0x1af   : > { %4903 = vmatprep.mubr.bf16.mxu1 %v18360_v16  ;;  %7962 = vrot.lane.b32.xlu1 %v16128_v38, %s15237_s21  ;;  %18383 = vst [vmem:[#allocation45_spill] sm:$0xff] %v16141_v3  ;;  %v16156_v38 = vld [vmem:[%s15312_s24 + $0x4c] ss:$132 sps:$4 sm:$0xff]  }
 0x1b0   : > { %7960 = vrot.lane.b32.xlu0 %v16136_v31, %s15237_s21  ;;  %18384 = vst [vmem:[#allocation46_spill] sm:$0xff] %v16156_v38  ;;  %v16179_v31 = vld [vmem:[%s15312_s24 + $0x50] ss:$132 sps:$4 sm:$0xff]  }
 0x1b1   : > { %18387 = vst [vmem:[#allocation49_spill] sm:$0xff] %v16179_v31 }
 0x1b3   : > { %13892 = vmatmul.mubr.msk.bf16.vlgmr.msra.gmra.mrb[32].mxu0 %vm343_vm0, %v15093_v63  ;;  %8473 = vrot.lane.b32.xlu1 %v16141_v3, %s15237_s21  ;;  %v16194_v3 = vld [vmem:[%s15312_s24 + $0x54] ss:$132 sps:$4 sm:$0xff]  }
 0x1b4   : > { %4915 = vmatpush1.bf16.msra.mxu0 %v18347_v5  ;;  %13893 = vmatmul.mubr.msk.bf16.vlgmr.msra.gmra.mrb[32].mxu1 %vm343_vm0, %v15093_v63  ;;  %18389 = vst [vmem:[#allocation51_spill] sm:$0xff] %v16194_v3 }
 0x1b5   : > { %4958 = vmatpush1.bf16.msra.mxu1 %v18348_v6  ;;  %5000 = vmatprep.subr.bf16.mxu0 %v18349_v7 }
 0x1b6   : > { %5043 = vmatprep.subr.bf16.mxu1 %v15670_v53  ;;  %4946 = vmatprep.mubr.bf16.mxu0 %v18360_v16 }
 0x1b7   : > { %4989 = vmatprep.mubr.bf16.mxu1 %v18360_v16  ;;  %7964 = vrot.lane.b32.xlu0 %v15123_v0, %s15237_s21  ;;  %v16171_v0 = vld [vmem:[%s15312_s24 + $0x40] ss:$132 sps:$4 sm:$0xff]  }
 0x1b8   : > { %8477 = vrot.lane.b32.xlu1 %v16156_v38, %s15237_s21  ;;  %18386 = vst [vmem:[#allocation48_spill] sm:$0xff] %v16171_v0  ;;  %v16184_v38 = vld [vmem:[%s15312_s24 + $0x58] ss:$132 sps:$4 sm:$0xff]  }
 0x1b9   : > { %18388 = vst [vmem:[#allocation50_spill] sm:$0xff] %v16184_v38 }
 0x1bb   : > { %13894 = vmatmul.mubr.msk.bf16.vlgmr.msra.gmra.mrb[36].mxu0 %vm343_vm0, %v15093_v63  ;;  %8475 = vrot.lane.b32.xlu0 %v16161_v56, %s15237_s21  ;;  %v15175_v56 = vld [vmem:[%s15312_s24 + $0x4] ss:$132 sps:$4 sm:$0xff]  }
 0x1bc   : > { %5001 = vmatpush1.bf16.msra.mxu0 %v18350_v9  ;;  %13895 = vmatmul.mubr.msk.bf16.vlgmr.msra.gmra.mrb[36].mxu1 %vm343_vm0, %v15093_v63 }
 0x1bd   : > { %5044 = vmatpush1.bf16.msra.mxu1 %v15667_v37  ;;  %5086 = vmatprep.subr.bf16.mxu0 %v15678_v61 }
 0x1be   : > { %5129 = vmatprep.subr.bf16.mxu1 %v15691_v12  ;;  %5032 = vmatprep.mubr.bf16.mxu0 %v18360_v16 }
 0x1bf   : > { %5075 = vmatprep.mubr.bf16.mxu1 %v18360_v16  ;;  %8471 = vrot.lane.b32.xlu1 %v16171_v0, %s15237_s21  ;;  %v15176_v0 = vld [vmem:[%s15312_s24 + $0xc] ss:$132 sps:$4 sm:$0xff]  }
 0x1c0   : > { %8479 = vrot.lane.b32.xlu0 %v16179_v31, %s15237_s21  ;;  %v15178_v31 = vld [vmem:[%s15312_s24 + $0x8] ss:$132 sps:$4 sm:$0xff]  }
 0x1c3   : > { %13896 = vmatmul.mubr.msk.bf16.vlgmr.msra.gmra.mrb[40].mxu0 %vm343_vm0, %v15093_v63  ;;  %8483 = vrot.lane.b32.xlu1 %v16184_v38, %s15237_s21  ;;  %v15179_v38 = vld [vmem:[%s15312_s24 + $0x14] ss:$132 sps:$4 sm:$0xff]  }
 0x1c4   : > { %5087 = vmatpush1.bf16.msra.mxu0 %v15675_v46  ;;  %13897 = vmatmul.mubr.msk.bf16.vlgmr.msra.gmra.mrb[40].mxu1 %vm343_vm0, %v15093_v63  ;;  %v15146_v46 = vld [vmem:[%s15312_s24 + $0x80] ss:$132 sps:$4 sm:$0xff]  }
 0x1c5   : > { %5130 = vmatpush1.bf16.msra.mxu1 %v15688_v60  ;;  %5118 = vmatprep.mubr.bf16.mxu0 %v18360_v16  ;;  %v16202_v60 = vld [vmem:[%s15312_s24 + $0x60] ss:$132 sps:$4 sm:$0xff]  }
 0x1c6   : > { %5161 = vmatprep.mubr.bf16.mxu1 %v18360_v16  ;;  %5250 = vmatprep.subr.bf16.mxu0 %v15175_v56  ;;  %18390 = vst [vmem:[#allocation52_spill] sm:$0xff] %v16202_v60  ;;  %v15177_v56 = vld [vmem:[%s15312_s24] ss:$132 sps:$4 sm:$0xff]  }
 0x1c7   : > { %5293 = vmatprep.subr.bf16.mxu1 %v15176_v0  ;;  %8481 = vrot.lane.b32.xlu0 %v16194_v3, %s15237_s21  ;;  %v16207_v0 = vld [vmem:[%s15312_s24 + $0x5c] ss:$132 sps:$4 sm:$0xff]  }
 0x1c8   : > { %18391 = vst [vmem:[#allocation53_spill] sm:$0xff] %v16207_v0  ;;  %v15180_v3 = vld [vmem:[%s15312_s24 + $0x1c] ss:$132 sps:$4 sm:$0xff]   ;;  %8487 = vrot.lane.b32.xlu1 %v16202_v60, %s15237_s21 }
 0x1c9   : > { %v15182_v60 = vld [vmem:[%s15312_s24 + $0x18] ss:$132 sps:$4 sm:$0xff]  }
 0x1cb   : > { %13898 = vmatmul.mubr.msk.bf16.vlgmr.msra.gmra.mrb[44].mxu0 %vm343_vm0, %v15093_v63  ;;  %8485 = vrot.lane.b32.xlu0 %v16207_v0, %s15237_s21  ;;  %v15183_v0 = vld [vmem:[%s15312_s24 + $0x24] ss:$132 sps:$4 sm:$0xff]  }
 0x1cc   : > { %13899 = vmatmul.mubr.msk.bf16.vlgmr.msra.gmra.mrb[44].mxu1 %vm343_vm0, %v15093_v63  ;;  %5251 = vmatpush1.bf16.msra.mxu0 %v15177_v56  ;;  %v15094_v63 = vld [vmem:[%s18107_s2 + $0x68] sm:$0xff]   ;;  %v16233_v56 = vld [vmem:[%s15312_s24 + $0x70] ss:$132 sps:$4 sm:$0xff]  }
 0x1cd   : > { %5294 = vmatpush1.bf16.msra.mxu1 %v15178_v31  ;;  %5282 = vmatprep.mubr.bf16.mxu0 %v18360_v16  ;;  %v16220_v31 = vld [vmem:[%s15312_s24 + $0x68] ss:$132 sps:$4 sm:$0xff]   ;;  %18394 = vst [vmem:[#allocation56_spill] sm:$0xff] %v16233_v56 }
 0x1ce   : > { %5325 = vmatprep.mubr.bf16.mxu1 %v18360_v16  ;;  %5336 = vmatprep.subr.bf16.mxu0 %v15179_v38  ;;  %18392 = vst [vmem:[#allocation54_spill] sm:$0xff] %v16220_v31  ;;  %v16228_v38 = vld [vmem:[%s15312_s24 + $0x64] ss:$132 sps:$4 sm:$0xff]  }
 0x1cf   : > { %5379 = vmatprep.subr.bf16.mxu1 %v15180_v3  ;;  %8491 = vrot.lane.b32.xlu1 %v16220_v31, %s15237_s21  ;;  %18393 = vst [vmem:[#allocation55_spill] sm:$0xff] %v16228_v38  ;;  %v15181_v3 = vld [vmem:[%s15312_s24 + $0x10] ss:$132 sps:$4 sm:$0xff]  }
 0x1d0   : > { %v15184_v31 = vld [vmem:[%s15312_s24 + $0x2c] ss:$132 sps:$4 sm:$0xff]   ;;  %8489 = vrot.lane.b32.xlu0 %v16228_v38, %s15237_s21 }
 0x1d1   : > { %v15186_v38 = vld [vmem:[%s15312_s24 + $0x28] ss:$132 sps:$4 sm:$0xff]  }
 0x1d3   : > { %13905 = vmatmul.mubr.msk.bf16.vlgmr.msra.gmra.mrb[48].mxu0 %vm343_vm0, %v15094_v63  ;;  %8495 = vrot.lane.b32.xlu1 %v16233_v56, %s15237_s21  ;;  %v15187_v56 = vld [vmem:[%s15312_s24 + $0x34] ss:$132 sps:$4 sm:$0xff]  }
 0x1d4   : > { %13906 = vmatmul.mubr.msk.bf16.vlgmr.msra.gmra.mrb[48].mxu1 %vm343_vm0, %v15094_v63  ;;  %5337 = vmatpush1.bf16.msra.mxu0 %v15181_v3  ;;  %v16243_v3 = vld [vmem:[%s15312_s24 + $0x6c] ss:$132 sps:$4 sm:$0xff]  }
 0x1d5   : > { %5380 = vmatpush1.bf16.msra.mxu1 %v15182_v60  ;;  %5368 = vmatprep.mubr.bf16.mxu0 %v18360_v16  ;;  %18395 = vst [vmem:[#allocation57_spill] sm:$0xff] %v16243_v3  ;;  %v16251_v60 = vld [vmem:[%s15312_s24 + $0x78] ss:$132 sps:$4 sm:$0xff]  }
 0x1d6   : > { %5411 = vmatprep.mubr.bf16.mxu1 %v18360_v16  ;;  %5422 = vmatprep.subr.bf16.mxu0 %v15183_v0  ;;  %18396 = vst [vmem:[#allocation58_spill] sm:$0xff] %v16251_v60  ;;  %v15185_v0 = vld [vmem:[%s15312_s24 + $0x20] ss:$132 sps:$4 sm:$0xff]  }
 0x1d7   : > { %5465 = vmatprep.subr.bf16.mxu1 %v15184_v31  ;;  %8493 = vrot.lane.b32.xlu0 %v16243_v3, %s15237_s21  ;;  %v16256_v31 = vld [vmem:[%s15312_s24 + $0x74] ss:$132 sps:$4 sm:$0xff]   ;;  %v15188_v3 = vld [vmem:[%s15312_s24 + $0x3c] ss:$132 sps:$4 sm:$0xff]  }
 0x1d8   : > { %18397 = vst [vmem:[#allocation59_spill] sm:$0xff] %v16256_v31  ;;  %8499 = vrot.lane.b32.xlu1 %v16251_v60, %s15237_s21 }
 0x1db   : > { %13907 = vmatmul.mubr.msk.bf16.vlgmr.msra.gmra.mrb[52].mxu0 %vm343_vm0, %v15094_v63  ;;  %8497 = vrot.lane.b32.xlu0 %v16256_v31, %s15237_s21 }
 0x1dc   : > { %13908 = vmatmul.mubr.msk.bf16.vlgmr.msra.gmra.mrb[52].mxu1 %vm343_vm0, %v15094_v63  ;;  %5423 = vmatpush1.bf16.msra.mxu0 %v15185_v0  ;;  %v15189_v0 = vld [vmem:[%s15312_s24 + $0x30] ss:$132 sps:$4 sm:$0xff]  }
 0x1dd   : > { %5466 = vmatpush1.bf16.msra.mxu1 %v15186_v38  ;;  %5454 = vmatprep.mubr.bf16.mxu0 %v18360_v16  ;;  %v16271_v38 = vld [vmem:[%s15312_s24 + $0x7c] ss:$132 sps:$4 sm:$0xff]  }
 0x1de   : > { %5497 = vmatprep.mubr.bf16.mxu1 %v18360_v16  ;;  %5508 = vmatprep.subr.bf16.mxu0 %v15187_v56  ;;  %18398 = vst [vmem:[#allocation60_spill] sm:$0xff] %v16271_v38  ;;  %v15190_v56 = vld [vmem:[%s15312_s24 + $0x38] ss:$132 sps:$4 sm:$0xff]  }
 0x1df   : > { %5551 = vmatprep.subr.bf16.mxu1 %v15188_v3  ;;  %8503 = vrot.lane.b32.xlu1 %v15146_v46, %s15237_s21  ;;  %v15095_v46 = vld [vmem:[%s18107_s2 + $0x60] sm:$0xff]   ;;  %v220_v3 = vld [vmem:[%s18108_s3 + $0x8] sm:$0xff] }
 0x1e0   : > { %8501 = vrot.lane.b32.xlu0 %v16271_v38, %s15237_s21 }
 0x1e3   : > { %13909 = vmatmul.mubr.msk.bf16.vlgmr.msra.gmra.mrb[56].mxu0 %vm343_vm0, %v15094_v63  ;;  %6759 = vperm.xlu1 %15031, %v220_v3   ;;  %v18409_v3 = vld [vmem:[#allocation6_spill] sm:$0xff] }
 0x1e4   : > { %13910 = vmatmul.mubr.msk.bf16.vlgmr.msra.gmra.mrb[56].mxu1 %vm343_vm0, %v15094_v63  ;;  %5509 = vmatpush1.bf16.msra.mxu0 %v15189_v0 }
 0x1e5   : > { %5552 = vmatpush1.bf16.msra.mxu1 %v15190_v56  ;;  %5540 = vmatprep.mubr.bf16.mxu0 %v18360_v16 }
 0x1e6   : > { %5583 = vmatprep.mubr.bf16.mxu1 %v18360_v16  ;;  %5602 = vmatprep.subr.bf16.mxu0 %v15870_v10  ;;  %v15191_v10 = vld [vmem:[%s15281_s20 + $0x28] ss:$132 sps:$4 sm:$0xff]  }
 0x1e7   : > { %5645 = vmatprep.subr.bf16.mxu1 %v15874_v11  ;;  %v15192_v11 = vld [vmem:[%s15281_s20 + $0x34] ss:$132 sps:$4 sm:$0xff]  }
 0x1eb   : > { %13911 = vmatmul.mubr.msk.bf16.vlgmr.msra.gmra.mrb[60].mxu0 %vm343_vm0, %v15094_v63 }
 0x1ec   : > { %13912 = vmatmul.mubr.msk.bf16.vlgmr.msra.gmra.mrb[60].mxu1 %vm343_vm0, %v15094_v63  ;;  %5603 = vmatpush1.bf16.msra.mxu0 %v15880_v13  ;;  %v15193_v13 = vld [vmem:[%s15281_s20 + $0x3c] ss:$132 sps:$4 sm:$0xff]   ;;  %v18407_v63 = vld [vmem:[#allocation3_spill] sm:$0xff] }
 0x1ed   : > { %5646 = vmatpush1.bf16.msra.mxu1 %v15884_v14  ;;  %5634 = vmatprep.mubr.bf16.mxu0 %v18360_v16  ;;  %v15194_v14 = vld [vmem:[%s15281_s20 + $0x30] ss:$132 sps:$4 sm:$0xff]  }
 0x1ee   : > { %5677 = vmatprep.mubr.bf16.mxu1 %v18360_v16  ;;  %5688 = vmatprep.subr.bf16.mxu0 %v15890_v15  ;;  %v15195_v15 = vld [vmem:[%s15281_s20 + $0x38] ss:$132 sps:$4 sm:$0xff]  }
 0x1ef   : > { %5731 = vmatprep.subr.bf16.mxu1 %v15897_v17 }
 0x1f3   : > { %13914 = vmatmul.mubr.msk.bf16.vlgmr.msra.gmra.mrb[48].mxu0 %vm343_vm0, %v15095_v46 }
 0x1f4   : > { %13915 = vmatmul.mubr.msk.bf16.vlgmr.msra.gmra.mrb[48].mxu1 %vm343_vm0, %v15095_v46  ;;  %5689 = vmatpush1.bf16.msra.mxu0 %v15903_v18 }
 0x1f5   : > { %5732 = vmatpush1.bf16.msra.mxu1 %v15907_v19  ;;  %5720 = vmatprep.mubr.bf16.mxu0 %v18360_v16 }
 0x1f6   : > { %5763 = vmatprep.mubr.bf16.mxu1 %v18360_v16  ;;  %5774 = vmatprep.subr.bf16.mxu0 %v15913_v20 }
 0x1f7   : > { %5817 = vmatprep.subr.bf16.mxu1 %v15917_v23 }
 0x1fb   : > { %13916 = vmatmul.mubr.msk.bf16.vlgmr.msra.gmra.mrb[52].mxu0 %vm343_vm0, %v15095_v46 }
 0x1fc   : > { %13917 = vmatmul.mubr.msk.bf16.vlgmr.msra.gmra.mrb[52].mxu1 %vm343_vm0, %v15095_v46  ;;  %5775 = vmatpush1.bf16.msra.mxu0 %v15923_v24 }
 0x1fd   : > { %5818 = vmatpush1.bf16.msra.mxu1 %v15191_v10  ;;  %5806 = vmatprep.mubr.bf16.mxu0 %v18360_v16  ;;  %v219_v10 = vld [vmem:[%s18108_s3] sm:$0xff] }
 0x1fe   : > { %5860 = vmatprep.subr.bf16.mxu0 %v15192_v11  ;;  %5849 = vmatprep.mubr.bf16.mxu1 %v18360_v16  ;;  %v18406_v11 = vld [vmem:[#allocation2_spill] sm:$0xff] }
 0x1ff   : > { %5903 = vmatprep.subr.bf16.mxu1 %v15193_v13  ;;  %6754 = vperm.xlu0 %15030, %v219_v10   ;;  %v16373_v13 = vld [vmem:[%s18107_s2 + $0x70] sm:$0xff]  }
 0x203   : > { %13918 = vmatmul.mubr.msk.bf16.vlgmr.msra.gmra.mrb[56].mxu0 %vm343_vm0, %v15095_v46 }
 0x204   : > { %5861 = vmatpush1.bf16.msra.mxu0 %v15194_v14  ;;  %13919 = vmatmul.mubr.msk.bf16.vlgmr.msra.gmra.mrb[56].mxu1 %vm343_vm0, %v15095_v46 }
 0x205   : > { %5904 = vmatpush1.bf16.msra.mxu1 %v15195_v15  ;;  %5957 = vmatprep.subr.bf16.mxu0 %v15537_v42 }
 0x206   : > { %6000 = vmatprep.subr.bf16.mxu1 %v15533_v40  ;;  %v16315_v17 = vpop.f32.mrb[16].mxu0  ;;  %5892 = vmatprep.mubr.bf16.mxu0 %v18360_v16 }
 0x207   : > { %v16320_v19 = vpop.f32.mrb[17].mxu0  ;;  %v16322_v20 = vpop.f32.mrb[16].mxu1  ;;  %5935 = vmatprep.mubr.bf16.mxu1 %v18360_v16 }
 0x208   : > { %v16329_v40 = vpop.f32.mrb[18].mxu0  ;;  %v16331_v24 = vpop.f32.mrb[17].mxu1 }
 0x209   : > { %v16337_v0 = vpop.f32.mrb[19].mxu0  ;;  %v16339_v56 = vpop.f32.mrb[18].mxu1 }
 0x20a   : > { %v16348_v14 = vpop.f32.mrb[19].mxu1 }
 0x20b   : > { %13920 = vmatmul.mubr.msk.bf16.vlgmr.msra.gmra.mrb[60].mxu0 %vm343_vm0, %v15095_v46 }
 0x20c   : > { %5958 = vmatpush1.bf16.msra.mxu0 %v15548_v47  ;;  %13921 = vmatmul.mubr.msk.bf16.vlgmr.msra.gmra.mrb[60].mxu1 %vm343_vm0, %v15095_v46 }
 0x20d   : > { %6001 = vmatpush1.bf16.msra.mxu1 %v15540_v43  ;;  %6043 = vmatprep.subr.bf16.mxu0 %v15554_v50 }
 0x20e   : > { %6086 = vmatprep.subr.bf16.mxu1 %v15564_v54  ;;  %v16361_v10 = vpop.f32.mrb[20].mxu0  ;;  %5989 = vmatprep.mubr.bf16.mxu0 %v18360_v16 }
 0x20f   : > { %v16366_v47 = vpop.f32.mrb[21].mxu0  ;;  %v16368_v46 = vpop.f32.mrb[20].mxu1  ;;  %6032 = vmatprep.mubr.bf16.mxu1 %v18360_v16 }
 0x210   : > { %18399 = vst [vmem:[#allocation61_spill] sm:$0xff] %v16368_v46  ;;  %v16380_v54 = vpop.f32.mrb[22].mxu0  ;;  %v16382_v15 = vpop.f32.mrb[21].mxu1 }
 0x211   : > { %18400 = vst [vmem:[#allocation62_spill] sm:$0xff] %v16382_v15  ;;  %v16388_v42 = vpop.f32.mrb[23].mxu0  ;;  %v16390_v23 = vpop.f32.mrb[22].mxu1  ;;  %v18408_v15 = vld [vmem:[#allocation4_spill] sm:$0xff] }
 0x212   : > { %18401 = vst [vmem:[#allocation63_spill] sm:$0xff] %v16388_v42  ;;  %18402 = vst [vmem:[#allocation64_spill] sm:$0xff] %v16390_v23  ;;  %v16396_v18 = vpop.f32.mrb[23].mxu1  ;;  %v18420_v42 = vld [vmem:[#allocation5_spill] sm:$0xff] }
 0x213   : > { %18404 = vst [vmem:[#allocation65_spill] sm:$0xff] %v16396_v18  ;;  %13925 = vmatmul.mubr.msk.bf16.vlgmr.msra.gmra.mrb[48].mxu0 %vm343_vm0, %v16373_v13  ;;  %v18421_v18 = vld [vmem:[#allocation7_spill] sm:$0xff] }
 0x214   : > { %6044 = vmatpush1.bf16.msra.mxu0 %v18406_v11  ;;  %13926 = vmatmul.mubr.msk.bf16.vlgmr.msra.gmra.mrb[48].mxu1 %vm343_vm0, %v16373_v13  ;;  %v18414_v11 = vld [vmem:[#allocation23_spill] sm:$0xff] }
 0x215   : > { %6087 = vmatpush1.bf16.msra.mxu1 %v18407_v63  ;;  %6129 = vmatprep.subr.bf16.mxu0 %v18408_v15  ;;  %v18423_v63 = vld [vmem:[#allocation9_spill] sm:$0xff] }
 0x216   : > { %6172 = vmatprep.subr.bf16.mxu1 %v18409_v3  ;;  %v16408_v50 = vpop.f32.mrb[24].mxu0  ;;  %6075 = vmatprep.mubr.bf16.mxu0 %v18360_v16 }
 0x217   : > { %18410 = vst [vmem:[#allocation2_spill] sm:$0xff] %v16408_v50  ;;  %v16413_v46 = vpop.f32.mrb[25].mxu0  ;;  %v16415_v23 = vpop.f32.mrb[24].mxu1  ;;  %6118 = vmatprep.mubr.bf16.mxu1 %v18360_v16 }
 0x218   : > { %18412 = vst [vmem:[#allocation3_spill] sm:$0xff] %v16413_v46  ;;  %18413 = vst [vmem:[#allocation4_spill] sm:$0xff] %v16415_v23  ;;  %v16422_v3 = vpop.f32.mrb[26].mxu0  ;;  %v16424_v43 = vpop.f32.mrb[25].mxu1 }
 0x219   : > { %18415 = vst [vmem:[#allocation6_spill] sm:$0xff] %v16424_v43  ;;  %v16430_v50 = vpop.f32.mrb[27].mxu0  ;;  %v16432_v49 = vpop.f32.mrb[26].mxu1  ;;  %v18422_v43 = vld [vmem:[#allocation8_spill] sm:$0xff] }
 0x21a   : > { %18416 = vst [vmem:[#allocation23_spill] sm:$0xff] %v16430_v50  ;;  %18417 = vst [vmem:[#allocation66_spill] sm:$0xff] %v16432_v49  ;;  %v16438_v23 = vpop.f32.mrb[27].mxu1 }
 0x21b   : > { %18418 = vst [vmem:[#allocation67_spill] sm:$0xff] %v16438_v23  ;;  %13927 = vmatmul.mubr.msk.bf16.vlgmr.msra.gmra.mrb[52].mxu0 %vm343_vm0, %v16373_v13 }
 0x21c   : > { %6130 = vmatpush1.bf16.msra.mxu0 %v18420_v42  ;;  %13928 = vmatmul.mubr.msk.bf16.vlgmr.msra.gmra.mrb[52].mxu1 %vm343_vm0, %v16373_v13  ;;  %v18427_v42 = vld [vmem:[#allocation32_spill] sm:$0xff] }
 0x21d   : > { %6173 = vmatpush1.bf16.msra.mxu1 %v18421_v18  ;;  %6215 = vmatprep.subr.bf16.mxu0 %v18422_v43  ;;  %v18433_v18 = vld [vmem:[#allocation10_spill] sm:$0xff] }
 0x21e   : > { %6258 = vmatprep.subr.bf16.mxu1 %v18423_v63  ;;  %v16450_v15 = vpop.f32.mrb[28].mxu0  ;;  %6161 = vmatprep.mubr.bf16.mxu0 %v18360_v16  ;;  %v18448_v43 = vld [vmem:[#allocation54_spill] sm:$0xff] }
 0x21f   : > { %18424 = vst [vmem:[#allocation5_spill] sm:$0xff] %v16450_v15  ;;  %v16455_v51 = vpop.f32.mrb[29].mxu0  ;;  %v16457_v49 = vpop.f32.mrb[28].mxu1  ;;  %6204 = vmatprep.mubr.bf16.mxu1 %v18360_v16 }
 0x220   : > { %18426 = vst [vmem:[#allocation7_spill] sm:$0xff] %v16457_v49  ;;  %v16464_v63 = vpop.f32.mrb[30].mxu0  ;;  %v16466_v50 = vpop.f32.mrb[29].mxu1 }
 0x221   : > { %18429 = vst [vmem:[#allocation8_spill] sm:$0xff] %v16466_v50  ;;  %v16472_v15 = vpop.f32.mrb[31].mxu0  ;;  %v16474_v46 = vpop.f32.mrb[30].mxu1 }
 0x222   : > { %18430 = vst [vmem:[#allocation9_spill] sm:$0xff] %v16472_v15  ;;  %18431 = vst [vmem:[#allocation32_spill] sm:$0xff] %v16474_v46  ;;  %v16480_v49 = vpop.f32.mrb[31].mxu1  ;;  %v18471_v46 = vmax.f32 %v15937_v21, %v16315_v17  ;;  %v18475_v17 = vmax.f32 %v15947_v27, %v16331_v24 }
 0x223   : > { %18432 = vst [vmem:[#allocation68_spill] sm:$0xff] %v16480_v49  ;;  %13929 = vmatmul.mubr.msk.bf16.vlgmr.msra.gmra.mrb[56].mxu0 %vm343_vm0, %v16373_v13 }
 0x224   : > { %6216 = vmatpush1.bf16.msra.mxu0 %v15596_v36  ;;  %13930 = vmatmul.mubr.msk.bf16.vlgmr.msra.gmra.mrb[56].mxu1 %vm343_vm0, %v16373_v13  ;;  %v18434_v36 = vld [vmem:[#allocation13_spill] sm:$0xff] }
 0x225   : > { %6259 = vmatpush1.bf16.msra.mxu1 %v15607_v41  ;;  %6344 = vmatprep.subr.bf16.mxu0 %v15612_v48  ;;  %v15127_v41 = vld [vmem:[%s18107_s2 + $0x78] sm:$0xff]   ;;  %v18435_v48 = vld [vmem:[#allocation16_spill] sm:$0xff] }
 0x226   : > { %6387 = vmatprep.subr.bf16.mxu1 %v18433_v18  ;;  %6247 = vmatprep.mubr.bf16.mxu0 %v18360_v16 }
 0x227   : > { %6290 = vmatprep.mubr.bf16.mxu1 %v18360_v16 }
 0x22b   : > { %13931 = vmatmul.mubr.msk.bf16.vlgmr.msra.gmra.mrb[60].mxu0 %vm343_vm0, %v16373_v13 }
 0x22c   : > { %6345 = vmatpush1.bf16.msra.mxu0 %v15618_v52  ;;  %13932 = vmatmul.mubr.msk.bf16.vlgmr.msra.gmra.mrb[60].mxu1 %vm343_vm0, %v16373_v13  ;;  %v18436_v52 = vld [vmem:[#allocation17_spill] sm:$0xff]  ;;  %v18444_v13 = vld [vmem:[#allocation50_spill] sm:$0xff] }
 0x22d   : > { %6388 = vmatpush1.bf16.msra.mxu1 %v15630_v57  ;;  %6430 = vmatprep.subr.bf16.mxu0 %v15638_v32  ;;  %v18437_v57 = vld [vmem:[#allocation45_spill] sm:$0xff]  ;;  %v18438_v32 = vld [vmem:[#allocation46_spill] sm:$0xff] }
 0x22e   : > { %6473 = vmatprep.subr.bf16.mxu1 %v18434_v36  ;;  %6376 = vmatprep.mubr.bf16.mxu0 %v18360_v16  ;;  %v18445_v36 = vld [vmem:[#allocation55_spill] sm:$0xff] }
 0x22f   : > { %6419 = vmatprep.mubr.bf16.mxu1 %v18360_v16 }
 0x233   : > { %13936 = vmatmul.mubr.msk.bf16.vlgmr.msra.gmra.mrb[48].mxu0 %vm343_vm0, %v15127_v41 }
 0x234   : > { %6431 = vmatpush1.bf16.msra.mxu0 %v18347_v5  ;;  %13937 = vmatmul.mubr.msk.bf16.vlgmr.msra.gmra.mrb[48].mxu1 %vm343_vm0, %v15127_v41  ;;  %v18442_v5 = vld [vmem:[#allocation53_spill] sm:$0xff] }
 0x235   : > { %6474 = vmatpush1.bf16.msra.mxu1 %v18348_v6  ;;  %6516 = vmatprep.subr.bf16.mxu0 %v18349_v7  ;;  %v16542_v6 = vpop.permute.xlu1 %7936  ;;  %v16544_v7 = vpop.permute.xlu0 %7934 }
 0x236   : > { %6559 = vmatprep.subr.bf16.mxu1 %v15670_v53  ;;  %6462 = vmatprep.mubr.bf16.mxu0 %v18360_v16  ;;  %v18441_v53 = vld [vmem:[#allocation51_spill] sm:$0xff]  ;;  %v16632_v49 = vsel %vm1252_vm1, %v16544_v7, %v16542_v6 }
 0x237   : > { %6505 = vmatprep.mubr.bf16.mxu1 %v18360_v16  ;;  %18465 = vst [vmem:[#allocation13_spill] sm:$0xff] %v16632_v49 }
 0x239   : > { %v16551_v18 = vpop.permute.xlu1 %7940 }
 0x23b   : > { %13938 = vmatmul.mubr.msk.bf16.vlgmr.msra.gmra.mrb[52].mxu0 %vm343_vm0, %v15127_v41 }
 0x23c   : > { %6517 = vmatpush1.bf16.msra.mxu0 %v18350_v9  ;;  %13939 = vmatmul.mubr.msk.bf16.vlgmr.msra.gmra.mrb[52].mxu1 %vm343_vm0, %v15127_v41  ;;  %v18443_v9 = vld [vmem:[#allocation49_spill] sm:$0xff] }
 0x23d   : > { %6560 = vmatpush1.bf16.msra.mxu1 %v15667_v37  ;;  %6602 = vmatprep.subr.bf16.mxu0 %v15678_v61  ;;  %v18439_v61 = vld [vmem:[#allocation48_spill] sm:$0xff]  ;;  %v18440_v37 = vld [vmem:[#allocation47_spill] sm:$0xff] }
 0x23e   : > { %6645 = vmatprep.subr.bf16.mxu1 %v15691_v12  ;;  %6548 = vmatprep.mubr.bf16.mxu0 %v18360_v16  ;;  %v15148_v12 = vld [vmem:[%s18107_s2 + $0x8] sm:$0xff]  }
 0x23f   : > { %6591 = vmatprep.mubr.bf16.mxu1 %v18360_v16 }
 0x243   : > { %13940 = vmatmul.mubr.msk.bf16.vlgmr.msra.gmra.mrb[56].mxu0 %vm343_vm0, %v15127_v41 }
 0x244   : > { %6603 = vmatpush1.bf16.msra.mxu0 %v18435_v48  ;;  %13941 = vmatmul.mubr.msk.bf16.vlgmr.msra.gmra.mrb[56].mxu1 %vm343_vm0, %v15127_v41  ;;  %v16556_v48 = vpop.permute.xlu0 %7938 }
 0x245   : > { %6646 = vmatpush1.bf16.msra.mxu1 %v18436_v52  ;;  %6634 = vmatprep.mubr.bf16.mxu0 %v18360_v16  ;;  %v16559_v52 = vpop.permute.xlu1 %7942 }
 0x246   : > { %6677 = vmatprep.mubr.bf16.mxu1 %v18360_v16  ;;  %7062 = vmatprep.subr.bf16.mxu0 %v18437_v57  ;;  %v18447_v57 = vld [vmem:[#allocation52_spill] sm:$0xff] }
 0x247   : > { %7105 = vmatprep.subr.bf16.mxu1 %v18438_v32 }
 0x248   : > { %v16567_v45 = vpop.permute.xlu0 %7932 }
 0x249   : > { %v16570_v23 = vpop.permute.xlu1 %7946  ;;  %v16694_v27 = vsel %vm1252_vm1, %v16567_v45, %v16544_v7 }
 0x24b   : > { %13942 = vmatmul.mubr.msk.bf16.vlgmr.msra.gmra.mrb[60].mxu0 %vm343_vm0, %v15127_v41 }
 0x24c   : > { %13943 = vmatmul.mubr.msk.bf16.vlgmr.msra.gmra.mrb[60].mxu1 %vm343_vm0, %v15127_v41  ;;  %7063 = vmatpush1.bf16.msra.mxu0 %v18439_v61  ;;  %v18446_v41 = vld [vmem:[#allocation57_spill] sm:$0xff]  ;;  %v16572_v33 = vpop.permute.xlu0 %7944  ;;  %v18461_v61 = vld [vmem:[#allocation40_spill] sm:$0xff] }
 0x24d   : > { %7106 = vmatpush1.bf16.msra.mxu1 %v18440_v37  ;;  %7094 = vmatprep.mubr.bf16.mxu0 %v18360_v16 }
 0x24e   : > { %7137 = vmatprep.mubr.bf16.mxu1 %v18360_v16  ;;  %7148 = vmatprep.subr.bf16.mxu0 %v18441_v53  ;;  %v18459_v53 = vld [vmem:[#allocation39_spill] sm:$0xff] }
 0x24f   : > { %7191 = vmatprep.subr.bf16.mxu1 %v18442_v5  ;;  %v18457_v5 = vld [vmem:[#allocation30_spill] sm:$0xff] }
 0x253   : > { %13979 = vmatmul.mubr.msk.bf16.vlgmr.msra.gmra.mrb[64].mxu0 %vm343_vm0, %v15148_v12 }
 0x254   : > { %13980 = vmatmul.mubr.msk.bf16.vlgmr.msra.gmra.mrb[64].mxu1 %vm343_vm0, %v15148_v12  ;;  %7149 = vmatpush1.bf16.msra.mxu0 %v18443_v9  ;;  %v18455_v9 = vld [vmem:[#allocation29_spill] sm:$0xff] }
 0x255   : > { %7192 = vmatpush1.bf16.msra.mxu1 %v18444_v13  ;;  %7180 = vmatprep.mubr.bf16.mxu0 %v18360_v16  ;;  %v15149_v13 = vld [vmem:[%s18107_s2] sm:$0xff]  }
 0x256   : > { %7223 = vmatprep.mubr.bf16.mxu1 %v18360_v16  ;;  %7234 = vmatprep.subr.bf16.mxu0 %v18445_v36  ;;  %v18452_v36 = vld [vmem:[#allocation25_spill] sm:$0xff] }
 0x257   : > { %7277 = vmatprep.subr.bf16.mxu1 %v18446_v41  ;;  %v16584_v41 = vpop.permute.xlu0 %7948 }
 0x258   : > { %v16712_v45 = vsel %vm1252_vm1, %v16570_v23, %v16584_v41 }
 0x25b   : > { %13981 = vmatmul.mubr.msk.bf16.vlgmr.msra.gmra.mrb[68].mxu0 %vm343_vm0, %v15148_v12 }
 0x25c   : > { %13982 = vmatmul.mubr.msk.bf16.vlgmr.msra.gmra.mrb[68].mxu1 %vm343_vm0, %v15148_v12  ;;  %7235 = vmatpush1.bf16.msra.mxu0 %v18447_v57  ;;  %v18449_v57 = vld [vmem:[#allocation56_spill] sm:$0xff] }
 0x25d   : > { %7278 = vmatpush1.bf16.msra.mxu1 %v18448_v43  ;;  %7266 = vmatprep.mubr.bf16.mxu0 %v18360_v16  ;;  %v18451_v43 = vld [vmem:[#allocation20_spill] sm:$0xff] }
 0x25e   : > { %7309 = vmatprep.mubr.bf16.mxu1 %v18360_v16  ;;  %7320 = vmatprep.subr.bf16.mxu0 %v16256_v31  ;;  %v18450_v31 = vld [vmem:[#allocation12_spill] sm:$0xff]  ;;  %18479 = vst [vmem:[#allocation20_spill] sm:$0xff] %v16694_v27 }
 0x25f   : > { %7363 = vmatprep.subr.bf16.mxu1 %v16271_v38  ;;  %v16582_v38 = vpop.permute.xlu1 %7950 }
 0x263   : > { %13983 = vmatmul.mubr.msk.bf16.vlgmr.msra.gmra.mrb[72].mxu0 %vm343_vm0, %v15148_v12 }
 0x264   : > { %13984 = vmatmul.mubr.msk.bf16.vlgmr.msra.gmra.mrb[72].mxu1 %vm343_vm0, %v15148_v12  ;;  %7321 = vmatpush1.bf16.msra.mxu0 %v18449_v57  ;;  %v18453_v57 = vld [vmem:[#allocation11_spill] sm:$0xff] }
 0x265   : > { %7364 = vmatpush1.bf16.msra.mxu1 %v16251_v60  ;;  %7352 = vmatprep.mubr.bf16.mxu0 %v18360_v16  ;;  %v16591_v60 = vpop.permute.xlu1 %7954  ;;  %18482 = vst [vmem:[#allocation11_spill] sm:$0xff] %v16712_v45 }
 0x266   : > { %7395 = vmatprep.mubr.bf16.mxu1 %v18360_v16  ;;  %7494 = vmatprep.subr.bf16.mxu0 %v18450_v31  ;;  %v18454_v31 = vld [vmem:[#allocation21_spill] sm:$0xff] }
 0x267   : > { %7537 = vmatprep.subr.bf16.mxu1 %v18451_v43  ;;  %v16595_v43 = vpop.permute.xlu0 %7952 }
 0x26b   : > { %13985 = vmatmul.mubr.msk.bf16.vlgmr.msra.gmra.mrb[76].mxu0 %vm343_vm0, %v15148_v12 }
 0x26c   : > { %13986 = vmatmul.mubr.msk.bf16.vlgmr.msra.gmra.mrb[76].mxu1 %vm343_vm0, %v15148_v12  ;;  %7495 = vmatpush1.bf16.msra.mxu0 %v18452_v36  ;;  %v16602_v12 = vpop.permute.xlu1 %7958  ;;  %v18456_v36 = vld [vmem:[#allocation14_spill] sm:$0xff] }
 0x26d   : > { %7538 = vmatpush1.bf16.msra.mxu1 %v18453_v57  ;;  %7526 = vmatprep.mubr.bf16.mxu0 %v18360_v16  ;;  %v16606_v57 = vpop.permute.xlu0 %7956 }
 0x26e   : > { %7569 = vmatprep.mubr.bf16.mxu1 %v18360_v16  ;;  %7580 = vmatprep.subr.bf16.mxu0 %v18454_v31  ;;  %v18458_v31 = vld [vmem:[#allocation34_spill] sm:$0xff] }
 0x26f   : > { %7623 = vmatprep.subr.bf16.mxu1 %v18455_v9 }
 0x270   : > { %v16613_v9 = vpop.permute.xlu1 %7962 }
 0x271   : > { %v16615_v37 = vpop.permute.xlu0 %7960 }
 0x273   : > { %14004 = vmatmul.mubr.msk.bf16.vlgmr.msra.gmra.mrb[64].mxu0 %vm343_vm0, %v15149_v13 }
 0x274   : > { %14005 = vmatmul.mubr.msk.bf16.vlgmr.msra.gmra.mrb[64].mxu1 %vm343_vm0, %v15149_v13  ;;  %7581 = vmatpush1.bf16.msra.mxu0 %v18456_v36  ;;  %v18460_v36 = vld [vmem:[#allocation38_spill] sm:$0xff] }
 0x275   : > { %7624 = vmatpush1.bf16.msra.mxu1 %v18457_v5  ;;  %7612 = vmatprep.mubr.bf16.mxu0 %v18360_v16  ;;  %v18462_v5 = vld [vmem:[#allocation41_spill] sm:$0xff]  ;;  %v16627_v32 = vpop.permute.xlu0 %7964 }
 0x276   : > { %7655 = vmatprep.mubr.bf16.mxu1 %v18360_v16  ;;  %7666 = vmatprep.subr.bf16.mxu0 %v18458_v31  ;;  %v18463_v31 = vld [vmem:[#allocation43_spill] sm:$0xff] }
 0x277   : > { %7709 = vmatprep.subr.bf16.mxu1 %v18459_v53  ;;  %v16625_v53 = vpop.permute.xlu1 %8473 }
 0x278   : > { %18464 = vst [vmem:[#allocation10_spill] sm:$0xff] %v16625_v53 }
 0x279   : > { %v16648_v53 = vpop.permute.xlu0 %8475 }
 0x27a   : > { %18470 = vst [vmem:[#allocation45_spill] sm:$0xff] %v16648_v53 }
 0x27b   : > { %14006 = vmatmul.mubr.msk.bf16.vlgmr.msra.gmra.mrb[68].mxu0 %vm343_vm0, %v15149_v13 }
 0x27c   : > { %14007 = vmatmul.mubr.msk.bf16.vlgmr.msra.gmra.mrb[68].mxu1 %vm343_vm0, %v15149_v13  ;;  %7667 = vmatpush1.bf16.msra.mxu0 %v18460_v36  ;;  %v18467_v36 = vld [vmem:[#allocation42_spill] sm:$0xff] }
 0x27d   : > { %7710 = vmatpush1.bf16.msra.mxu1 %v18461_v61  ;;  %7698 = vmatprep.mubr.bf16.mxu0 %v18360_v16  ;;  %v16638_v61 = vsel %vm1252_vm1, %v16556_v48, %v16551_v18 }
 0x27e   : > { %7741 = vmatprep.mubr.bf16.mxu1 %v18360_v16  ;;  %7752 = vmatprep.subr.bf16.mxu0 %v18462_v5  ;;  %18466 = vst [vmem:[#allocation16_spill] sm:$0xff] %v16638_v61  ;;  %v18468_v5 = vld [vmem:[#allocation44_spill] sm:$0xff] }
 0x27f   : > { %7795 = vmatprep.subr.bf16.mxu1 %v18463_v31  ;;  %v16644_v31 = vpop.permute.xlu1 %8477 }
 0x280   : > { %18469 = vst [vmem:[#allocation17_spill] sm:$0xff] %v16644_v31  ;;  %v18473_v31 = vmax.f32 %v15942_v26, %v16322_v20  ;;  %v18477_v20 = vmax.f32 %v15951_v29, %v16339_v56  ;;  %v16705_v29 = vsel %vm1252_vm1, %v16542_v6, %v16556_v48  ;;  %v16720_v56 = vpop.permute.xlu0 %8479  ;;  %v18484_v48 = vmax.f32 %v15970_v44, %v16366_v47 }
 0x281   : > { %18481 = vst [vmem:[#allocation25_spill] sm:$0xff] %v16705_v29 }
 0x283   : > { %14008 = vmatmul.mubr.msk.bf16.vlgmr.msra.gmra.mrb[72].mxu0 %vm343_vm0, %v15149_v13 }
 0x284   : > { %14009 = vmatmul.mubr.msk.bf16.vlgmr.msra.gmra.mrb[72].mxu1 %vm343_vm0, %v15149_v13  ;;  %7753 = vmatpush1.bf16.msra.mxu0 %v18467_v36 }
 0x285   : > { %7796 = vmatpush1.bf16.msra.mxu1 %v18468_v5  ;;  %8001 = vmatprep.subr.bf16.mxu0 %v16632_v49  ;;  %v18472_v5 = vmax.f32 %v15940_v22, %v16320_v19 }
 0x286   : > { %v4862_v59 = vpop.f32.mrb[32].mxu0  ;;  %7784 = vmatprep.mubr.bf16.mxu0 %v18360_v16  ;;  %7827 = vmatprep.mubr.bf16.mxu1 %v18360_v16 }
 0x287   : > { %v16653_v55 = vmax.f32 %v18471_v46, %v4862_v59  ;;  %v4864_v15 = vpop.f32.mrb[33].mxu0  ;;  %v4905_v36 = vpop.f32.mrb[32].mxu1  ;;  %8044 = vmatprep.subr.bf16.mxu1 %v16638_v61  ;;  %v18474_v59 = vmax.f32 %v15945_v25, %v16329_v40  ;;  %v16689_v40 = vsel %vm1252_vm1, %v16559_v52, %v16572_v33 }
 0x288   : > { %v16659_v49 = vmax.f32 %v18472_v5, %v4864_v15  ;;  %v16664_v8 = vmax.f32 %v18473_v31, %v4905_v36  ;;  %v4866_v53 = vpop.f32.mrb[34].mxu0  ;;  %v4907_v50 = vpop.f32.mrb[33].mxu1  ;;  %v18476_v15 = vmax.f32 %v15949_v28, %v16337_v0  ;;  %18478 = vst [vmem:[#allocation12_spill] sm:$0xff] %v16689_v40  ;;  %v18480_v28 = vmax.f32 %v15953_v30, %v16348_v14  ;;  %v18485_v36 = vld [vmem:[#allocation15_spill] sm:$0xff]  ;;  %v18486_v5 = vld [vmem:[#allocation61_spill] sm:$0xff] }
 0x289   : > { %v16669_v21 = vmax.f32 %v18474_v59, %v4866_v53  ;;  %v16674_v46 = vmax.f32 %v18475_v17, %v4907_v50  ;;  %v4868_v22 = vpop.f32.mrb[35].mxu0  ;;  %v4909_v19 = vpop.f32.mrb[34].mxu1  ;;  %v18483_v14 = vmax.f32 %v15967_v34, %v16361_v10  ;;  %v18487_v59 = vmax.f32 %v18485_v36, %v18486_v5 }
 0x28a   : > { %v16679_v26 = vmax.f32 %v18476_v15, %v4868_v22  ;;  %v16684_v31 = vmax.f32 %v18477_v20, %v4909_v19  ;;  %v4911_v25 = vpop.f32.mrb[35].mxu1  ;;  %v16716_v30 = vpop.permute.xlu1 %8471  ;;  %v18488_v22 = vmax.f32 %v15985_v2, %v16380_v54  ;;  %v18489_v15 = vld [vmem:[#allocation62_spill] sm:$0xff]  ;;  %v18495_v54 = vld [vmem:[#allocation64_spill] sm:$0xff]  ;;  %v16771_v36 = vsel %vm1252_vm1, %v16582_v38, %v16595_v43 }
 0x28b   : > { %v16699_v24 = vmax.f32 %v18480_v28, %v4911_v25  ;;  %14010 = vmatmul.mubr.msk.bf16.vlgmr.msra.gmra.mrb[76].mxu0 %vm343_vm0, %v15149_v13  ;;  %v18490_v20 = vmax.f32 %v15987_v1, %v18489_v15  ;;  %v16756_v28 = vsel %vm1252_vm1, %v16572_v33, %v16570_v23  ;;  %v18494_v2 = vld [vmem:[#allocation18_spill] sm:$0xff]  ;;  %18497 = vst [vmem:[#allocation29_spill] sm:$0xff] %v16771_v36  ;;  %v18499_v23 = vld [vmem:[#allocation19_spill] sm:$0xff] }
 0x28c   : > { %8002 = vmatpush1.bf16.msra.mxu0 %v16694_v27  ;;  %14011 = vmatmul.mubr.msk.bf16.vlgmr.msra.gmra.mrb[76].mxu1 %vm343_vm0, %v15149_v13  ;;  %v16730_v13 = vld [vmem:[%s18107_s2 + $0x10] sm:$0xff]   ;;  %18491 = vst [vmem:[#allocation21_spill] sm:$0xff] %v16756_v28  ;;  %v16776_v33 = vsel %vm1252_vm1, %v16551_v18, %v16559_v52  ;;  %v18503_v15 = vld [vmem:[#allocation2_spill] sm:$0xff] }
 0x28d   : > { %8045 = vmatpush1.bf16.msra.mxu1 %v16705_v29  ;;  %8087 = vmatprep.subr.bf16.mxu0 %v16689_v40  ;;  %18498 = vst [vmem:[#allocation14_spill] sm:$0xff] %v16776_v33 }
 0x28e   : > { %v4948_v0 = vpop.f32.mrb[36].mxu0  ;;  %8033 = vmatprep.mubr.bf16.mxu0 %v18360_v16  ;;  %8076 = vmatprep.mubr.bf16.mxu1 %v18360_v16  ;;  %v16795_v18 = vpop.permute.xlu1 %8483 }
 0x28f   : > { %v16725_v50 = vmax.f32 %v18483_v14, %v4948_v0  ;;  %v4950_v6 = vpop.f32.mrb[37].mxu0  ;;  %v4991_v7 = vpop.f32.mrb[36].mxu1  ;;  %8130 = vmatprep.subr.bf16.mxu1 %v16712_v45  ;;  %v18492_v0 = vld [vmem:[#allocation63_spill] sm:$0xff] }
 0x290   : > { %v16736_v53 = vmax.f32 %v18484_v48, %v4950_v6  ;;  %v16741_v34 = vmax.f32 %v18487_v59, %v4991_v7  ;;  %v4952_v10 = vpop.f32.mrb[38].mxu0  ;;  %v4993_v17 = vpop.f32.mrb[37].mxu1  ;;  %v18493_v14 = vmax.f32 %v15991_v4, %v18492_v0  ;;  %v18496_v7 = vmax.f32 %v18494_v2, %v18495_v54  ;;  %v18500_v4 = vld [vmem:[#allocation65_spill] sm:$0xff] }
 0x291   : > { %v16746_v19 = vmax.f32 %v18488_v22, %v4952_v10  ;;  %v16751_v25 = vmax.f32 %v18490_v20, %v4993_v17  ;;  %v4954_v44 = vpop.f32.mrb[39].mxu0  ;;  %v4995_v47 = vpop.f32.mrb[38].mxu1  ;;  %v18501_v5 = vmax.f32 %v18499_v23, %v18500_v4  ;;  %v16791_v10 = vsel %vm1252_vm1, %v16591_v60, %v16606_v57  ;;  %v18502_v22 = vld [vmem:[#allocation22_spill] sm:$0xff] }
 0x292   : > { %v16761_v6 = vmax.f32 %v18493_v14, %v4954_v44  ;;  %v16766_v48 = vmax.f32 %v18496_v7, %v4995_v47  ;;  %v4997_v1 = vpop.f32.mrb[39].mxu1  ;;  %v16799_v17 = vpop.permute.xlu0 %8481  ;;  %v18504_v20 = vmax.f32 %v18502_v22, %v18503_v15  ;;  %v18506_v14 = vld [vmem:[#allocation3_spill] sm:$0xff]  ;;  %v18508_v7 = vld [vmem:[#allocation24_spill] sm:$0xff]  ;;  %v18512_v15 = vld [vmem:[#allocation6_spill] sm:$0xff] }
 0x293   : > { %v16781_v59 = vmax.f32 %v18501_v5, %v4997_v1  ;;  %14032 = vmatmul.mubr.msk.bf16.vlgmr.msra.gmra.mrb[64].mxu0 %vm343_vm0, %v16730_v13  ;;  %v18507_v2 = vmax.f32 %v18414_v11, %v18506_v14  ;;  %v18509_v1 = vld [vmem:[#allocation4_spill] sm:$0xff]  ;;  %v16830_v14 = vsel %vm1252_vm1, %v16595_v43, %v16591_v60  ;;  %v16850_v60 = vsel %vm1252_vm1, %v16584_v41, %v16582_v38  ;;  %v16869_v38 = vpop.permute.xlu1 %8487 }
 0x294   : > { %8088 = vmatpush1.bf16.msra.mxu0 %v16776_v33  ;;  %14033 = vmatmul.mubr.msk.bf16.vlgmr.msra.gmra.mrb[64].mxu1 %vm343_vm0, %v16730_v13  ;;  %v18510_v23 = vmax.f32 %v18508_v7, %v18509_v1  ;;  %18514 = vst [vmem:[#allocation34_spill] sm:$0xff] %v16830_v14  ;;  %18522 = vst [vmem:[#allocation38_spill] sm:$0xff] %v16850_v60  ;;  %v18523_v43 = vld [vmem:[#allocation28_spill] sm:$0xff] }
 0x295   : > { %8131 = vmatpush1.bf16.msra.mxu1 %v16756_v28  ;;  %8173 = vmatprep.subr.bf16.mxu0 %v16771_v36 }
 0x296   : > { %v5034_v52 = vpop.f32.mrb[40].mxu0  ;;  %8119 = vmatprep.mubr.bf16.mxu0 %v18360_v16  ;;  %8162 = vmatprep.mubr.bf16.mxu1 %v18360_v16 }
 0x297   : > { %v16804_v44 = vmax.f32 %v18504_v20, %v5034_v52  ;;  %v5036_v47 = vpop.f32.mrb[41].mxu0  ;;  %v5077_v0 = vpop.f32.mrb[40].mxu1  ;;  %8216 = vmatprep.subr.bf16.mxu1 %v16791_v10  ;;  %v18511_v52 = vmax.f32 %v16026_v58, %v16422_v3  ;;  %v18513_v20 = vmax.f32 %v16028_v62, %v18512_v15  ;;  %v18518_v58 = vld [vmem:[#allocation27_spill] sm:$0xff]  ;;  %v18519_v3 = vld [vmem:[#allocation66_spill] sm:$0xff] }
 0x298   : > { %v16810_v54 = vmax.f32 %v18507_v2, %v5036_v47  ;;  %v16815_v4 = vmax.f32 %v18510_v23, %v5077_v0  ;;  %v5038_v5 = vpop.f32.mrb[42].mxu0  ;;  %v5079_v36 = vpop.f32.mrb[41].mxu1  ;;  %v18515_v0 = vld [vmem:[#allocation26_spill] sm:$0xff]  ;;  %v18516_v2 = vld [vmem:[#allocation23_spill] sm:$0xff]  ;;  %v18520_v23 = vmax.f32 %v18518_v58, %v18519_v3 }
 0x299   : > { %18505 = vst [vmem:[#allocation30_spill] sm:$0xff] %v16804_v44  ;;  %v16820_v22 = vmax.f32 %v18511_v52, %v5038_v5  ;;  %v16825_v44 = vmax.f32 %v18513_v20, %v5079_v36  ;;  %v5040_v11 = vpop.f32.mrb[43].mxu0  ;;  %v5081_v47 = vpop.f32.mrb[42].mxu1  ;;  %v18517_v7 = vmax.f32 %v18515_v0, %v18516_v2  ;;  %v16845_v36 = vsel %vm1252_vm1, %v16602_v12, %v16615_v37  ;;  %v18524_v52 = vld [vmem:[#allocation67_spill] sm:$0xff]  ;;  %v18527_v2 = vld [vmem:[#allocation5_spill] sm:$0xff] }
 0x29a   : > { %v16840_v5 = vmax.f32 %v18520_v23, %v5081_v47  ;;  %v5083_v62 = vpop.f32.mrb[43].mxu1  ;;  %18521 = vst [vmem:[#allocation39_spill] sm:$0xff] %v16845_v36  ;;  %v18525_v15 = vmax.f32 %v18523_v43, %v18524_v52  ;;  %v8486_v47 = vpop.permute.xlu0 %8485  ;;  %v18526_v0 = vld [vmem:[#allocation31_spill] sm:$0xff]  ;;  %v18530_v23 = vmax.f32 %v18427_v42, %v16455_v51  ;;  %v18531_v43 = vld [vmem:[#allocation33_spill] sm:$0xff] }
 0x29b   : > { %v16835_v1 = vmax.f32 %v18517_v7, %v5040_v11  ;;  %14034 = vmatmul.mubr.msk.bf16.vlgmr.msra.gmra.mrb[68].mxu0 %vm343_vm0, %v16730_v13  ;;  %v16865_v11 = vsel %vm1252_vm1, %v16613_v9, %v16627_v32  ;;  %v18528_v7 = vmax.f32 %v18526_v0, %v18527_v2  ;;  %v18532_v52 = vld [vmem:[#allocation7_spill] sm:$0xff]  ;;  %v18535_v2 = vld [vmem:[#allocation8_spill] sm:$0xff] }
 0x29c   : > { %v16855_v20 = vmax.f32 %v18525_v15, %v5083_v62  ;;  %8174 = vmatpush1.bf16.msra.mxu0 %v16850_v60  ;;  %14035 = vmatmul.mubr.msk.bf16.vlgmr.msra.gmra.mrb[68].mxu1 %vm343_vm0, %v16730_v13  ;;  %v18533_v15 = vmax.f32 %v18531_v43, %v18532_v52 }
 0x29d   : > { %8217 = vmatpush1.bf16.msra.mxu1 %v16830_v14  ;;  %8259 = vmatprep.subr.bf16.mxu0 %v16845_v36 }
 0x29e   : > { %v5120_v41 = vpop.f32.mrb[44].mxu0  ;;  %8205 = vmatprep.mubr.bf16.mxu0 %v18360_v16  ;;  %8248 = vmatprep.mubr.bf16.mxu1 %v18360_v16 }
 0x29f   : > { %v16876_v58 = vmax.f32 %v18528_v7, %v5120_v41  ;;  %v5122_v3 = vpop.f32.mrb[45].mxu0  ;;  %v5163_v32 = vpop.f32.mrb[44].mxu1  ;;  %8302 = vmatprep.subr.bf16.mxu1 %v16865_v11  ;;  %v18534_v41 = vmax.f32 %v16067_v35, %v16464_v63  ;;  %v18536_v7 = vmax.f32 %v16069_v39, %v18535_v2  ;;  %v18540_v35 = vld [vmem:[#allocation36_spill] sm:$0xff] }
 0x2a0   : > { %v16882_v62 = vmax.f32 %v18530_v23, %v5122_v3  ;;  %v16887_v36 = vmax.f32 %v18533_v15, %v5163_v32  ;;  %v5124_v14 = vpop.f32.mrb[46].mxu0  ;;  %v5165_v60 = vpop.f32.mrb[45].mxu1  ;;  %v16902_v3 = vsel %vm1252_vm1, %v16615_v37, %v16613_v9  ;;  %v18537_v32 = vld [vmem:[#allocation35_spill] sm:$0xff]  ;;  %v18538_v23 = vld [vmem:[#allocation9_spill] sm:$0xff]  ;;  %v18541_v63 = vld [vmem:[#allocation32_spill] sm:$0xff]  ;;  %v16922_v37 = vsel %vm1252_vm1, %v16606_v57, %v16602_v12 }
 0x2a1   : > { %18529 = vst [vmem:[#allocation40_spill] sm:$0xff] %v16876_v58  ;;  %v16892_v0 = vmax.f32 %v18534_v41, %v5124_v14  ;;  %v16897_v58 = vmax.f32 %v18536_v7, %v5165_v60  ;;  %v5126_v51 = vpop.f32.mrb[47].mxu0  ;;  %v5167_v42 = vpop.f32.mrb[46].mxu1  ;;  %v18539_v43 = vmax.f32 %v18537_v32, %v18538_v23  ;;  %v18542_v14 = vmax.f32 %v18540_v35, %v18541_v63  ;;  %v18543_v60 = vld [vmem:[#allocation45_spill] sm:$0xff]  ;;  %v18544_v41 = vld [vmem:[#allocation10_spill] sm:$0xff]  ;;  %v18546_v7 = vld [vmem:[#allocation68_spill] sm:$0xff] }
 0x2a2   : > { %v5169_v39 = vpop.f32.mrb[47].mxu1  ;;  %v16917_v2 = vsel %vm1252_vm1, %v18544_v41, %v18543_v60  ;;  %v18545_v9 = vld [vmem:[#allocation37_spill] sm:$0xff]  ;;  %v8492_v12 = vpop.permute.xlu1 %8491  ;;  %v16952_v35 = vsel %vm1252_vm1, %v16716_v30, %v18544_v41  ;;  %v16959_v63 = vsel %vm1252_vm1, %v16799_v17, %v16795_v18  ;;  %v16983_v41 = vsel %vm1252_vm1, %v16720_v56, %v16799_v17 }
 0x2a3   : > { %v16907_v52 = vmax.f32 %v18539_v43, %v5126_v51  ;;  %v16912_v15 = vmax.f32 %v18542_v14, %v5167_v42  ;;  %v18547_v51 = vmax.f32 %v18545_v9, %v18546_v7  ;;  %14036 = vmatmul.mubr.msk.bf16.vlgmr.msra.gmra.mrb[72].mxu0 %vm343_vm0, %v16730_v13  ;;  %v18548_v42 = vld [vmem:[#allocation17_spill] sm:$0xff]  ;;  %v8490_v57 = vpop.permute.xlu0 %8489  ;;  %v16966_v14 = vsel %vm1252_vm1, %v8486_v47, %v16869_v38 }
 0x2a4   : > { %8260 = vmatpush1.bf16.msra.mxu0 %v16922_v37  ;;  %14037 = vmatmul.mubr.msk.bf16.vlgmr.msra.gmra.mrb[72].mxu1 %vm343_vm0, %v16730_v13  ;;  %v16937_v23 = vsel %vm1252_vm1, %v18548_v42, %v16720_v56  ;;  %v16947_v43 = vsel %vm1252_vm1, %v18543_v60, %v18548_v42  ;;  %v15151_v60 = vld [vmem:[%s18107_s2 + $0x18] sm:$0xff]   ;;  %18551 = vst [vmem:[#allocation42_spill] sm:$0xff] %v16983_v41 }
 0x2a5   : > { %v16927_v32 = vmax.f32 %v18547_v51, %v5169_v39  ;;  %18549 = vst [vmem:[#allocation41_spill] sm:$0xff] %v16937_v23  ;;  %8303 = vmatpush1.bf16.msra.mxu1 %v16902_v3  ;;  %8540 = vmatprep.subr.bf16.mxu0 %v16917_v2  ;;  %v16987_v9 = vsel %vm1252_vm1, %v8490_v57, %v8492_v12 }
 0x2a6   : > { %8291 = vmatprep.mubr.bf16.mxu0 %v18360_v16  ;;  %8334 = vmatprep.mubr.bf16.mxu1 %v18360_v16  ;;  %v8496_v30 = vpop.permute.xlu1 %8495  ;;  %18552 = vst [vmem:[#allocation44_spill] sm:$0xff] %v16987_v9 }
 0x2a7   : > { %8583 = vmatprep.subr.bf16.mxu1 %v16937_v23  ;;  %v8494_v39 = vpop.permute.xlu0 %8493 }
 0x2a8   : > { %v16992_v42 = vsel %vm1252_vm1, %v8494_v39, %v8496_v30  ;;  %v17000_v17 = vsel %vm1252_vm1, %v8492_v12, %v8494_v39  ;;  %v18561_v39 = vld [vmem:[#allocation46_spill] sm:$0xff] }
 0x2a9   : > { %18553 = vst [vmem:[#allocation15_spill] sm:$0xff] %v16992_v42  ;;  %18554 = vst [vmem:[#allocation61_spill] sm:$0xff] %v17000_v17 }
 0x2aa   : > { %v8500_v7 = vpop.permute.xlu1 %8499 }
 0x2ab   : > { %14038 = vmatmul.mubr.msk.bf16.vlgmr.msra.gmra.mrb[76].mxu0 %vm343_vm0, %v16730_v13  ;;  %v8498_v51 = vpop.permute.xlu0 %8497 }
 0x2ac   : > { %8541 = vmatpush1.bf16.msra.mxu0 %v16952_v35  ;;  %14039 = vmatmul.mubr.msk.bf16.vlgmr.msra.gmra.mrb[76].mxu1 %vm343_vm0, %v16730_v13  ;;  %v16978_v13 = vsel %vm1252_vm1, %v16795_v18, %v8486_v47  ;;  %v17004_v47 = vsel %vm1252_vm1, %v16869_v38, %v8490_v57  ;;  %v17024_v12 = vsel %vm1252_vm1, %v8496_v30, %v8498_v51  ;;  %v17033_v57 = vld [vmem:[%s15312_s24 + $0x44] ss:$132 sps:$4 sm:$0xff]   ;;  %v18562_v30 = vld [vmem:[#allocation48_spill] sm:$0xff] }
 0x2ad   : > { %8584 = vmatpush1.bf16.msra.mxu1 %v16947_v43  ;;  %8572 = vmatprep.mubr.bf16.mxu0 %v18360_v16  ;;  %18550 = vst [vmem:[#allocation43_spill] sm:$0xff] %v16978_v13  ;;  %18555 = vst [vmem:[#allocation62_spill] sm:$0xff] %v17004_v47 }
 0x2ae   : > { %8626 = vmatprep.subr.bf16.mxu0 %v16959_v63  ;;  %8615 = vmatprep.mubr.bf16.mxu1 %v18360_v16  ;;  %v8504_v56 = vpop.permute.xlu1 %8503  ;;  %18559 = vst [vmem:[#allocation19_spill] sm:$0xff] %v17024_v12  ;;  %18560 = vst [vmem:[#allocation65_spill] sm:$0xff] %v17033_v57 }
 0x2af   : > { %8669 = vmatprep.subr.bf16.mxu1 %v16966_v14  ;;  %v8502_v18 = vpop.permute.xlu0 %8501 }
 0x2b0   : > { %v17021_v38 = vsel %vm1252_vm1, %v8500_v7, %v8502_v18 }
 0x2b1   : > { %18558 = vst [vmem:[#allocation64_spill] sm:$0xff] %v17021_v38 }
 0x2b3   : > { %14060 = vmatmul.mubr.msk.bf16.vlgmr.msra.gmra.mrb[64].mxu0 %vm343_vm0, %v15151_v60 }
 0x2b4   : > { %8627 = vmatpush1.bf16.msra.mxu0 %v16983_v41  ;;  %14061 = vmatmul.mubr.msk.bf16.vlgmr.msra.gmra.mrb[64].mxu1 %vm343_vm0, %v15151_v60 }
 0x2b5   : > { %8670 = vmatpush1.bf16.msra.mxu1 %v16978_v13  ;;  %8658 = vmatprep.mubr.bf16.mxu0 %v18360_v16  ;;  %v17008_v13 = vsel %vm1252_vm1, %v8498_v51, %v8500_v7  ;;  %v18563_v7 = vld [vmem:[#allocation47_spill] sm:$0xff] }
 0x2b6   : > { %8712 = vmatprep.subr.bf16.mxu0 %v16987_v9  ;;  %8701 = vmatprep.mubr.bf16.mxu1 %v18360_v16  ;;  %18556 = vst [vmem:[#allocation63_spill] sm:$0xff] %v17008_v13  ;;  %v18564_v51 = vld [vmem:[#allocation51_spill] sm:$0xff] }
 0x2b7   : > { %8755 = vmatprep.subr.bf16.mxu1 %v16992_v42  ;;  %v17013_v42 = vsel %vm1252_vm1, %v8502_v18, %v8504_v56  ;;  %v15152_v56 = vld [vmem:[%s18107_s2 + $0x28] sm:$0xff]   ;;  %v18565_v18 = vld [vmem:[#allocation53_spill] sm:$0xff] }
 0x2b8   : > { %18557 = vst [vmem:[#allocation18_spill] sm:$0xff] %v17013_v42 }
 0x2bb   : > { %14062 = vmatmul.mubr.msk.bf16.vlgmr.msra.gmra.mrb[68].mxu0 %vm343_vm0, %v15151_v60 }
 0x2bc   : > { %8713 = vmatpush1.bf16.msra.mxu0 %v17004_v47  ;;  %14063 = vmatmul.mubr.msk.bf16.vlgmr.msra.gmra.mrb[68].mxu1 %vm343_vm0, %v15151_v60 }
 0x2bd   : > { %8756 = vmatpush1.bf16.msra.mxu1 %v17000_v17  ;;  %8744 = vmatprep.mubr.bf16.mxu0 %v18360_v16 }
 0x2be   : > { %8798 = vmatprep.subr.bf16.mxu0 %v17008_v13  ;;  %8787 = vmatprep.mubr.bf16.mxu1 %v18360_v16 }
 0x2bf   : > { %8841 = vmatprep.subr.bf16.mxu1 %v17013_v42 }
 0x2c3   : > { %14064 = vmatmul.mubr.msk.bf16.vlgmr.msra.gmra.mrb[72].mxu0 %vm343_vm0, %v15151_v60 }
 0x2c4   : > { %8799 = vmatpush1.bf16.msra.mxu0 %v17024_v12  ;;  %14065 = vmatmul.mubr.msk.bf16.vlgmr.msra.gmra.mrb[72].mxu1 %vm343_vm0, %v15151_v60 }
 0x2c5   : > { %8842 = vmatpush1.bf16.msra.mxu1 %v17021_v38  ;;  %8830 = vmatprep.mubr.bf16.mxu0 %v18360_v16 }
 0x2c6   : > { %8873 = vmatprep.mubr.bf16.mxu1 %v18360_v16  ;;  %8928 = vmatprep.subr.bf16.mxu0 %v17033_v57 }
 0x2c7   : > { %8971 = vmatprep.subr.bf16.mxu1 %v18561_v39  ;;  %v18567_v39 = vld [vmem:[#allocation50_spill] sm:$0xff] }
 0x2cb   : > { %14066 = vmatmul.mubr.msk.bf16.vlgmr.msra.gmra.mrb[76].mxu0 %vm343_vm0, %v15151_v60 }
 0x2cc   : > { %14067 = vmatmul.mubr.msk.bf16.vlgmr.msra.gmra.mrb[76].mxu1 %vm343_vm0, %v15151_v60  ;;  %8929 = vmatpush1.bf16.msra.mxu0 %v18562_v30  ;;  %v18566_v60 = vld [vmem:[#allocation49_spill] sm:$0xff]  ;;  %v18568_v30 = vld [vmem:[#allocation55_spill] sm:$0xff] }
 0x2cd   : > { %8972 = vmatpush1.bf16.msra.mxu1 %v18563_v7  ;;  %8960 = vmatprep.mubr.bf16.mxu0 %v18360_v16  ;;  %v18569_v7 = vld [vmem:[#allocation57_spill] sm:$0xff] }
 0x2ce   : > { %9003 = vmatprep.mubr.bf16.mxu1 %v18360_v16  ;;  %9014 = vmatprep.subr.bf16.mxu0 %v18564_v51  ;;  %v18570_v51 = vld [vmem:[#allocation52_spill] sm:$0xff] }
 0x2cf   : > { %9057 = vmatprep.subr.bf16.mxu1 %v18565_v18  ;;  %v18571_v18 = vld [vmem:[#allocation54_spill] sm:$0xff] }
 0x2d3   : > { %14073 = vmatmul.mubr.msk.bf16.vlgmr.msra.gmra.mrb[80].mxu0 %vm343_vm0, %v15152_v56 }
 0x2d4   : > { %14074 = vmatmul.mubr.msk.bf16.vlgmr.msra.gmra.mrb[80].mxu1 %vm343_vm0, %v15152_v56  ;;  %9015 = vmatpush1.bf16.msra.mxu0 %v18566_v60  ;;  %v18572_v60 = vld [vmem:[#allocation59_spill] sm:$0xff] }
 0x2d5   : > { %9058 = vmatpush1.bf16.msra.mxu1 %v18567_v39  ;;  %9046 = vmatprep.mubr.bf16.mxu0 %v18360_v16  ;;  %v18573_v39 = vld [vmem:[#allocation60_spill] sm:$0xff] }
 0x2d6   : > { %9089 = vmatprep.mubr.bf16.mxu1 %v18360_v16  ;;  %9100 = vmatprep.subr.bf16.mxu0 %v18568_v30  ;;  %v18574_v30 = vld [vmem:[#allocation56_spill] sm:$0xff] }
 0x2d7   : > { %9143 = vmatprep.subr.bf16.mxu1 %v18569_v7  ;;  %v18575_v7 = vld [vmem:[#allocation58_spill] sm:$0xff] }
 0x2db   : > { %14075 = vmatmul.mubr.msk.bf16.vlgmr.msra.gmra.mrb[84].mxu0 %vm343_vm0, %v15152_v56 }
 0x2dc   : > { %14076 = vmatmul.mubr.msk.bf16.vlgmr.msra.gmra.mrb[84].mxu1 %vm343_vm0, %v15152_v56  ;;  %9101 = vmatpush1.bf16.msra.mxu0 %v18570_v51  ;;  %v17071_v51 = vld [vmem:[%s15281_s20 + $0x44] ss:$132 sps:$4 sm:$0xff]  }
 0x2dd   : > { %9144 = vmatpush1.bf16.msra.mxu1 %v18571_v18  ;;  %9132 = vmatprep.mubr.bf16.mxu0 %v18360_v16  ;;  %18576 = vst [vmem:[#allocation22_spill] sm:$0xff] %v17071_v51  ;;  %v17075_v18 = vld [vmem:[%s15281_s20 + $0x4c] ss:$132 sps:$4 sm:$0xff]  }
 0x2de   : > { %9175 = vmatprep.mubr.bf16.mxu1 %v18360_v16  ;;  %9186 = vmatprep.subr.bf16.mxu0 %v18572_v60  ;;  %18577 = vst [vmem:[#allocation2_spill] sm:$0xff] %v17075_v18  ;;  %v17081_v60 = vld [vmem:[%s15281_s20 + $0x40] ss:$132 sps:$4 sm:$0xff]  }
 0x2df   : > { %9229 = vmatprep.subr.bf16.mxu1 %v18573_v39  ;;  %18578 = vst [vmem:[#allocation3_spill] sm:$0xff] %v17081_v60  ;;  %v17085_v39 = vld [vmem:[%s15281_s20 + $0x48] ss:$132 sps:$4 sm:$0xff]  }
 0x2e0   : > { %18579 = vst [vmem:[#allocation24_spill] sm:$0xff] %v17085_v39 }
 0x2e3   : > { %14077 = vmatmul.mubr.msk.bf16.vlgmr.msra.gmra.mrb[88].mxu0 %vm343_vm0, %v15152_v56 }
 0x2e4   : > { %14078 = vmatmul.mubr.msk.bf16.vlgmr.msra.gmra.mrb[88].mxu1 %vm343_vm0, %v15152_v56  ;;  %9187 = vmatpush1.bf16.msra.mxu0 %v18574_v30  ;;  %v17091_v30 = vld [vmem:[%s15281_s20 + $0x54] ss:$132 sps:$4 sm:$0xff]  }
 0x2e5   : > { %9230 = vmatpush1.bf16.msra.mxu1 %v18575_v7  ;;  %9218 = vmatprep.mubr.bf16.mxu0 %v18360_v16  ;;  %18580 = vst [vmem:[#allocation4_spill] sm:$0xff] %v17091_v30  ;;  %v17100_v7 = vld [vmem:[%s15281_s20 + $0x5c] ss:$132 sps:$4 sm:$0xff]  }
 0x2e6   : > { %9261 = vmatprep.mubr.bf16.mxu1 %v18360_v16  ;;  %9280 = vmatprep.subr.bf16.mxu0 %v17071_v51  ;;  %18581 = vst [vmem:[#allocation6_spill] sm:$0xff] %v17100_v7  ;;  %v17163_v51 = vpop.permute.xlu1 %6759 }
 0x2e7   : > { %9323 = vmatprep.subr.bf16.mxu1 %v17075_v18  ;;  %v17160_v18 = vpop.permute.xlu0 %6754  ;;  %18594 = vst [vmem:[#allocation35_spill] sm:$0xff] %v17163_v51 }
 0x2e8   : > { %18593 = vst [vmem:[#allocation8_spill] sm:$0xff] %v17160_v18 }
 0x2eb   : > { %14079 = vmatmul.mubr.msk.bf16.vlgmr.msra.gmra.mrb[92].mxu0 %vm343_vm0, %v15152_v56 }
 0x2ec   : > { %14080 = vmatmul.mubr.msk.bf16.vlgmr.msra.gmra.mrb[92].mxu1 %vm343_vm0, %v15152_v56  ;;  %9281 = vmatpush1.bf16.msra.mxu0 %v17081_v60  ;;  %v17097_v56 = vld [vmem:[%s18107_s2 + $0x20] sm:$0xff]   ;;  %v17122_v60 = vld [vmem:[%s15281_s20 + $0x6c] ss:$132 sps:$4 sm:$0xff]  }
 0x2ed   : > { %9324 = vmatpush1.bf16.msra.mxu1 %v17085_v39  ;;  %9312 = vmatprep.mubr.bf16.mxu0 %v18360_v16  ;;  %v17108_v39 = vld [vmem:[%s15281_s20 + $0x50] ss:$132 sps:$4 sm:$0xff]   ;;  %18585 = vst [vmem:[#allocation66_spill] sm:$0xff] %v17122_v60 }
 0x2ee   : > { %9355 = vmatprep.mubr.bf16.mxu1 %v18360_v16  ;;  %9366 = vmatprep.subr.bf16.mxu0 %v17091_v30  ;;  %18582 = vst [vmem:[#allocation26_spill] sm:$0xff] %v17108_v39  ;;  %v17112_v30 = vld [vmem:[%s15281_s20 + $0x58] ss:$132 sps:$4 sm:$0xff]  }
 0x2ef   : > { %9409 = vmatprep.subr.bf16.mxu1 %v17100_v7  ;;  %18583 = vst [vmem:[#allocation23_spill] sm:$0xff] %v17112_v30  ;;  %v17118_v7 = vld [vmem:[%s15281_s20 + $0x64] ss:$132 sps:$4 sm:$0xff]  }
 0x2f0   : > { %18584 = vst [vmem:[#allocation27_spill] sm:$0xff] %v17118_v7 }
 0x2f3   : > { %14082 = vmatmul.mubr.msk.bf16.vlgmr.msra.gmra.mrb[80].mxu0 %vm343_vm0, %v17097_v56 }
 0x2f4   : > { %14083 = vmatmul.mubr.msk.bf16.vlgmr.msra.gmra.mrb[80].mxu1 %vm343_vm0, %v17097_v56  ;;  %9367 = vmatpush1.bf16.msra.mxu0 %v17108_v39  ;;  %v17134_v39 = vld [vmem:[%s15281_s20 + $0x68] ss:$132 sps:$4 sm:$0xff]  }
 0x2f5   : > { %9410 = vmatpush1.bf16.msra.mxu1 %v17112_v30  ;;  %9398 = vmatprep.mubr.bf16.mxu0 %v18360_v16  ;;  %v17130_v30 = vld [vmem:[%s15281_s20 + $0x60] ss:$132 sps:$4 sm:$0xff]   ;;  %18587 = vst [vmem:[#allocation67_spill] sm:$0xff] %v17134_v39 }
 0x2f6   : > { %9441 = vmatprep.mubr.bf16.mxu1 %v18360_v16  ;;  %9452 = vmatprep.subr.bf16.mxu0 %v17118_v7  ;;  %18586 = vst [vmem:[#allocation28_spill] sm:$0xff] %v17130_v30  ;;  %v17139_v7 = vld [vmem:[%s15281_s20 + $0x74] ss:$132 sps:$4 sm:$0xff]  }
 0x2f7   : > { %9495 = vmatprep.subr.bf16.mxu1 %v17122_v60  ;;  %18588 = vst [vmem:[#allocation31_spill] sm:$0xff] %v17139_v7  ;;  %v17144_v60 = vld [vmem:[%s15281_s20 + $0x7c] ss:$132 sps:$4 sm:$0xff]  }
 0x2f8   : > { %18589 = vst [vmem:[#allocation5_spill] sm:$0xff] %v17144_v60 }
 0x2fb   : > { %14084 = vmatmul.mubr.msk.bf16.vlgmr.msra.gmra.mrb[84].mxu0 %vm343_vm0, %v17097_v56 }
 0x2fc   : > { %14085 = vmatmul.mubr.msk.bf16.vlgmr.msra.gmra.mrb[84].mxu1 %vm343_vm0, %v17097_v56  ;;  %9453 = vmatpush1.bf16.msra.mxu0 %v17130_v30  ;;  %v17150_v30 = vld [vmem:[%s15281_s20 + $0x70] ss:$132 sps:$4 sm:$0xff]  }
 0x2fd   : > { %9496 = vmatpush1.bf16.msra.mxu1 %v17134_v39  ;;  %9484 = vmatprep.mubr.bf16.mxu0 %v18360_v16  ;;  %18590 = vst [vmem:[#allocation33_spill] sm:$0xff] %v17150_v30  ;;  %v17156_v39 = vld [vmem:[%s15281_s20 + $0x78] ss:$132 sps:$4 sm:$0xff]   ;;  %s14218_s20 = sshll.u32 %s18755_s16, 8 }
 0x2fe   : > { %9538 = vmatprep.subr.bf16.mxu0 %v17139_v7  ;;  %9527 = vmatprep.mubr.bf16.mxu1 %v18360_v16  ;;  %18591 = vst [vmem:[#allocation7_spill] sm:$0xff] %v17156_v39  ;;  %v18592_v7 = vld [vmem:[#allocation13_spill] sm:$0xff]  ;;  %s17191_s5 = scalar_lea.vmem %s18109_s4, %s14218_s20 }
 0x2ff   : > { %9581 = vmatprep.subr.bf16.mxu1 %v17144_v60 }
 0x303   : > { %14086 = vmatmul.mubr.msk.bf16.vlgmr.msra.gmra.mrb[88].mxu0 %vm343_vm0, %v17097_v56 }
 0x304   : > { %9539 = vmatpush1.bf16.msra.mxu0 %v17150_v30  ;;  %14087 = vmatmul.mubr.msk.bf16.vlgmr.msra.gmra.mrb[88].mxu1 %vm343_vm0, %v17097_v56 }
 0x305   : > { %9582 = vmatpush1.bf16.msra.mxu1 %v17156_v39  ;;  %9634 = vmatprep.subr.bf16.mxu0 %v18592_v7 }
 0x306   : > { %9677 = vmatprep.subr.bf16.mxu1 %v16638_v61  ;;  %v6378_v60 = vpop.f32.mrb[48].mxu0  ;;  %9570 = vmatprep.mubr.bf16.mxu0 %v18360_v16 }
 0x307   : > { %v6720_v30 = vmax.f32 %v16653_v55, %v6378_v60  ;;  %v6380_v57 = vpop.f32.mrb[49].mxu0  ;;  %v6421_v38 = vpop.f32.mrb[48].mxu1  ;;  %9613 = vmatprep.mubr.bf16.mxu1 %v18360_v16 }
 0x308   : > { %v6721_v39 = vmax.f32 %v16659_v49, %v6380_v57  ;;  %v6722_v7 = vmax.f32 %v16664_v8, %v6421_v38  ;;  %v6382_v12 = vpop.f32.mrb[50].mxu0  ;;  %v6423_v42 = vpop.f32.mrb[49].mxu1 }
 0x309   : > { %v6762_v61 = vadd.f32 %v17160_v18, %v6720_v30  ;;  %v6736_v13 = vmax.f32 %v16669_v21, %v6382_v12  ;;  %v6723_v17 = vmax.f32 %v16674_v46, %v6423_v42  ;;  %v6384_v47 = vpop.f32.mrb[51].mxu0  ;;  %v6425_v9 = vpop.f32.mrb[50].mxu1 }
 0x30a   : > { %v6763_v55 = vadd.f32 %v17160_v18, %v6721_v39  ;;  %v6764_v60 = vadd.f32 %v17160_v18, %v6722_v7  ;;  %v6737_v41 = vmax.f32 %v16679_v26, %v6384_v47  ;;  %v6738_v49 = vmax.f32 %v16684_v31, %v6425_v9  ;;  %v6427_v8 = vpop.f32.mrb[51].mxu1 }
 0x30b   : > { %v6794_v38 = vmax.f32 %v6762_v61, 0.0  ;;  %v6765_v57 = vadd.f32 %v17160_v18, %v6723_v17  ;;  %v6778_v30 = vadd.f32 %v17163_v51, %v6736_v13  ;;  %v6739_v21 = vmax.f32 %v16699_v24, %v6427_v8  ;;  %14088 = vmatmul.mubr.msk.bf16.vlgmr.msra.gmra.mrb[92].mxu0 %vm343_vm0, %v17097_v56 }
 0x30c   : > { %v6795_v46 = vmax.f32 %v6763_v55, 0.0  ;;  %v6796_v42 = vmax.f32 %v6764_v60, 0.0  ;;  %v6779_v12 = vadd.f32 %v17163_v51, %v6737_v41  ;;  %v6780_v39 = vadd.f32 %v17163_v51, %v6738_v49  ;;  %9635 = vmatpush1.bf16.msra.mxu0 %v16694_v27  ;;  %14089 = vmatmul.mubr.msk.bf16.vlgmr.msra.gmra.mrb[92].mxu1 %vm343_vm0, %v17097_v56  ;;  %v17202_v60 = vld [vmem:[%s18107_s2 + $0x30] sm:$0xff]  }
 0x30d   : > { %v6797_v61 = vmax.f32 %v6765_v57, 0.0  ;;  %v6810_v26 = vmax.f32 %v6778_v30, 0.0  ;;  %v6781_v31 = vadd.f32 %v17163_v51, %v6739_v21  ;;  %9678 = vmatpush1.bf16.msra.mxu1 %v16705_v29  ;;  %9720 = vmatprep.subr.bf16.mxu0 %v16689_v40 }
 0x30e   : > { %v14219_v24 = vpack.c.bf16 %v6795_v46, %v6794_v38  ;;  %v6811_v13 = vmax.f32 %v6779_v12, 0.0  ;;  %v6812_v41 = vmax.f32 %v6780_v39, 0.0  ;;  %9763 = vmatprep.subr.bf16.mxu1 %v16712_v45  ;;  %v6464_v9 = vpop.f32.mrb[52].mxu0  ;;  %9666 = vmatprep.mubr.bf16.mxu0 %v18360_v16 }
 0x30f   : > { %v14220_v17 = vpack.c.bf16 %v6797_v61, %v6796_v42  ;;  %v6813_v47 = vmax.f32 %v6781_v31, 0.0  ;;  %v6724_v56 = vmax.f32 %v16725_v50, %v6464_v9  ;;  %v6466_v7 = vpop.f32.mrb[53].mxu0  ;;  %v6507_v55 = vpop.f32.mrb[52].mxu1  ;;  %9709 = vmatprep.mubr.bf16.mxu1 %v18360_v16 }
 0x310   : > { %6922 = vst [vmem:[%s17191_s5] sm:$0xff] %v14219_v24  ;;  %v14227_v49 = vpack.c.bf16 %v6811_v13, %v6810_v26  ;;  %v6725_v8 = vmax.f32 %v16736_v53, %v6466_v7  ;;  %v6726_v38 = vmax.f32 %v16741_v34, %v6507_v55  ;;  %v6468_v57 = vpop.f32.mrb[54].mxu0  ;;  %v6509_v30 = vpop.f32.mrb[53].mxu1 }
 0x311   : > { %6923 = vst [vmem:[%s17191_s5 + $0x8] sm:$0xff] %v14220_v17  ;;  %v14228_v50 = vpack.c.bf16 %v6813_v47, %v6812_v41  ;;  %v6766_v21 = vadd.f32 %v17160_v18, %v6724_v56  ;;  %v6740_v46 = vmax.f32 %v16746_v19, %v6468_v57  ;;  %v6727_v42 = vmax.f32 %v16751_v25, %v6509_v30  ;;  %v6470_v12 = vpop.f32.mrb[55].mxu0  ;;  %v6511_v39 = vpop.f32.mrb[54].mxu1  ;;  %v18596_v30 = vld [vmem:[#allocation30_spill] sm:$0xff] }
 0x312   : > { %6930 = vst [vmem:[%s17191_s5 + $0x80] sm:$0xff] %v14227_v49  ;;  %v6767_v61 = vadd.f32 %v17160_v18, %v6725_v8  ;;  %v6768_v53 = vadd.f32 %v17160_v18, %v6726_v38  ;;  %v6741_v34 = vmax.f32 %v16761_v6, %v6470_v12  ;;  %v6742_v26 = vmax.f32 %v16766_v48, %v6511_v39  ;;  %v6513_v31 = vpop.f32.mrb[55].mxu1 }
 0x313   : > { %6931 = vst [vmem:[%s17191_s5 + $0x88] sm:$0xff] %v14228_v50  ;;  %v6798_v24 = vmax.f32 %v6766_v21, 0.0  ;;  %v6782_v13 = vadd.f32 %v17163_v51, %v6740_v46  ;;  %v6769_v19 = vadd.f32 %v17160_v18, %v6727_v42  ;;  %v6743_v25 = vmax.f32 %v16781_v59, %v6513_v31  ;;  %14093 = vmatmul.mubr.msk.bf16.vlgmr.msra.gmra.mrb[80].mxu0 %vm343_vm0, %v17202_v60  ;;  %v18595_v59 = vld [vmem:[#allocation29_spill] sm:$0xff] }
 0x314   : > { %v6799_v41 = vmax.f32 %v6767_v61, 0.0  ;;  %v6800_v9 = vmax.f32 %v6768_v53, 0.0  ;;  %v6783_v17 = vadd.f32 %v17163_v51, %v6741_v34  ;;  %v6784_v6 = vadd.f32 %v17163_v51, %v6742_v26  ;;  %9721 = vmatpush1.bf16.msra.mxu0 %v16776_v33  ;;  %14094 = vmatmul.mubr.msk.bf16.vlgmr.msra.gmra.mrb[80].mxu1 %vm343_vm0, %v17202_v60 }
 0x315   : > { %v6814_v48 = vmax.f32 %v6782_v13, 0.0  ;;  %v6801_v47 = vmax.f32 %v6769_v19, 0.0  ;;  %v6785_v56 = vadd.f32 %v17163_v51, %v6743_v25  ;;  %9764 = vmatpush1.bf16.msra.mxu1 %v16756_v28  ;;  %9806 = vmatprep.subr.bf16.mxu0 %v18595_v59 }
 0x316   : > { %v14221_v7 = vpack.c.bf16 %v6799_v41, %v6798_v24  ;;  %v6815_v55 = vmax.f32 %v6783_v17, 0.0  ;;  %v6816_v49 = vmax.f32 %v6784_v6, 0.0  ;;  %9849 = vmatprep.subr.bf16.mxu1 %v16791_v10  ;;  %v6550_v8 = vpop.f32.mrb[56].mxu0  ;;  %9752 = vmatprep.mubr.bf16.mxu0 %v18360_v16 }
 0x317   : > { %v14222_v38 = vpack.c.bf16 %v6801_v47, %v6800_v9  ;;  %v6817_v57 = vmax.f32 %v6785_v56, 0.0  ;;  %v6728_v50 = vmax.f32 %v18596_v30, %v6550_v8  ;;  %v6552_v21 = vpop.f32.mrb[57].mxu0  ;;  %v6593_v46 = vpop.f32.mrb[56].mxu1  ;;  %9795 = vmatprep.mubr.bf16.mxu1 %v18360_v16  ;;  %v18599_v8 = vld [vmem:[#allocation39_spill] sm:$0xff] }
 0x318   : > { %6924 = vst [vmem:[%s17191_s5 + $0x10] sm:$0xff] %v14221_v7  ;;  %v14229_v42 = vpack.c.bf16 %v6815_v55, %v6814_v48  ;;  %v6729_v12 = vmax.f32 %v16810_v54, %v6552_v21  ;;  %v6730_v39 = vmax.f32 %v16815_v4, %v6593_v46  ;;  %v6554_v61 = vpop.f32.mrb[58].mxu0  ;;  %v6595_v53 = vpop.f32.mrb[57].mxu1  ;;  %v18597_v7 = vld [vmem:[#allocation38_spill] sm:$0xff] }
 0x319   : > { %6925 = vst [vmem:[%s17191_s5 + $0x18] sm:$0xff] %v14222_v38  ;;  %v14230_v34 = vpack.c.bf16 %v6817_v57, %v6816_v49  ;;  %v6770_v26 = vadd.f32 %v17160_v18, %v6728_v50  ;;  %v6744_v31 = vmax.f32 %v16820_v22, %v6554_v61  ;;  %v6731_v24 = vmax.f32 %v16825_v44, %v6595_v53  ;;  %v6556_v13 = vpop.f32.mrb[59].mxu0  ;;  %v6597_v19 = vpop.f32.mrb[58].mxu1 }
 0x31a   : > { %6932 = vst [vmem:[%s17191_s5 + $0x90] sm:$0xff] %v14229_v42  ;;  %v6771_v25 = vadd.f32 %v17160_v18, %v6729_v12  ;;  %v6772_v54 = vadd.f32 %v17160_v18, %v6730_v39  ;;  %v6745_v4 = vmax.f32 %v16835_v1, %v6556_v13  ;;  %v6746_v41 = vmax.f32 %v16840_v5, %v6597_v19  ;;  %v6599_v9 = vpop.f32.mrb[59].mxu1  ;;  %v18600_v42 = vld [vmem:[#allocation40_spill] sm:$0xff] }
 0x31b   : > { %6933 = vst [vmem:[%s17191_s5 + $0x98] sm:$0xff] %v14230_v34  ;;  %v6802_v17 = vmax.f32 %v6770_v26, 0.0  ;;  %v6786_v6 = vadd.f32 %v17163_v51, %v6744_v31  ;;  %v6773_v22 = vadd.f32 %v17160_v18, %v6731_v24  ;;  %v6747_v44 = vmax.f32 %v16855_v20, %v6599_v9  ;;  %14095 = vmatmul.mubr.msk.bf16.vlgmr.msra.gmra.mrb[84].mxu0 %vm343_vm0, %v17202_v60  ;;  %v18598_v20 = vld [vmem:[#allocation34_spill] sm:$0xff] }
 0x31c   : > { %v6803_v48 = vmax.f32 %v6771_v25, 0.0  ;;  %v6804_v47 = vmax.f32 %v6772_v54, 0.0  ;;  %v6787_v56 = vadd.f32 %v17163_v51, %v6745_v4  ;;  %v6788_v1 = vadd.f32 %v17163_v51, %v6746_v41  ;;  %9807 = vmatpush1.bf16.msra.mxu0 %v18597_v7  ;;  %14096 = vmatmul.mubr.msk.bf16.vlgmr.msra.gmra.mrb[84].mxu1 %vm343_vm0, %v17202_v60 }
 0x31d   : > { %v6818_v5 = vmax.f32 %v6786_v6, 0.0  ;;  %v6805_v55 = vmax.f32 %v6773_v22, 0.0  ;;  %v6789_v49 = vadd.f32 %v17163_v51, %v6747_v44  ;;  %9850 = vmatpush1.bf16.msra.mxu1 %v18598_v20  ;;  %9892 = vmatprep.subr.bf16.mxu0 %v18599_v8 }
 0x31e   : > { %v14223_v38 = vpack.c.bf16 %v6803_v48, %v6802_v17  ;;  %v6819_v57 = vmax.f32 %v6787_v56, 0.0  ;;  %v6820_v30 = vmax.f32 %v6788_v1, 0.0  ;;  %9935 = vmatprep.subr.bf16.mxu1 %v16865_v11  ;;  %v6636_v50 = vpop.f32.mrb[60].mxu0  ;;  %9838 = vmatprep.mubr.bf16.mxu0 %v18360_v16 }
 0x31f   : > { %v14224_v21 = vpack.c.bf16 %v6805_v55, %v6804_v47  ;;  %v6821_v46 = vmax.f32 %v6789_v49, 0.0  ;;  %v6732_v12 = vmax.f32 %v18600_v42, %v6636_v50  ;;  %v6638_v39 = vpop.f32.mrb[61].mxu0  ;;  %v6679_v61 = vpop.f32.mrb[60].mxu1  ;;  %9881 = vmatprep.mubr.bf16.mxu1 %v18360_v16  ;;  %v18603_v42 = vld [vmem:[#allocation44_spill] sm:$0xff] }
 0x320   : > { %6926 = vst [vmem:[%s17191_s5 + $0x20] sm:$0xff] %v14223_v38  ;;  %v14231_v53 = vpack.c.bf16 %v6819_v57, %v6818_v5  ;;  %v6733_v34 = vmax.f32 %v16882_v62, %v6638_v39  ;;  %v6734_v26 = vmax.f32 %v16887_v36, %v6679_v61  ;;  %v6640_v31 = vpop.f32.mrb[62].mxu0  ;;  %v6681_v24 = vpop.f32.mrb[61].mxu1  ;;  %v18605_v39 = vld [vmem:[#allocation62_spill] sm:$0xff]  ;;  %v18606_v61 = vld [vmem:[#allocation61_spill] sm:$0xff] }
 0x321   : > { %6927 = vst [vmem:[%s17191_s5 + $0x28] sm:$0xff] %v14224_v21  ;;  %v14232_v13 = vpack.c.bf16 %v6821_v46, %v6820_v30  ;;  %v6774_v19 = vadd.f32 %v17160_v18, %v6732_v12  ;;  %v6748_v25 = vmax.f32 %v16892_v0, %v6640_v31  ;;  %v6735_v54 = vmax.f32 %v16897_v58, %v6681_v24  ;;  %v6642_v4 = vpop.f32.mrb[63].mxu0  ;;  %v6683_v41 = vpop.f32.mrb[62].mxu1  ;;  %v15155_v21 = vld [vmem:[%s18107_s2 + $0x38] sm:$0xff]   ;;  %v18601_v46 = vld [vmem:[#allocation42_spill] sm:$0xff]  ;;  %v18604_v12 = vld [vmem:[#allocation15_spill] sm:$0xff] }
 0x322   : > { %6934 = vst [vmem:[%s17191_s5 + $0xa0] sm:$0xff] %v14231_v53  ;;  %v6775_v9 = vadd.f32 %v17160_v18, %v6733_v34  ;;  %v6776_v62 = vadd.f32 %v17160_v18, %v6734_v26  ;;  %v6749_v36 = vmax.f32 %v16907_v52, %v6642_v4  ;;  %v6750_v17 = vmax.f32 %v16912_v15, %v6683_v41  ;;  %v6685_v6 = vpop.f32.mrb[63].mxu1  ;;  %v18607_v53 = vld [vmem:[#allocation63_spill] sm:$0xff]  ;;  %v18608_v34 = vld [vmem:[#allocation18_spill] sm:$0xff]  ;;  %v18610_v31 = vld [vmem:[#allocation64_spill] sm:$0xff] }
 0x323   : > { %6935 = vst [vmem:[%s17191_s5 + $0xa8] sm:$0xff] %v14232_v13  ;;  %v6806_v22 = vmax.f32 %v6774_v19, 0.0  ;;  %v6790_v44 = vadd.f32 %v17163_v51, %v6748_v25  ;;  %v6777_v0 = vadd.f32 %v17160_v18, %v6735_v54  ;;  %v6751_v58 = vmax.f32 %v16927_v32, %v6685_v6  ;;  %14097 = vmatmul.mubr.msk.bf16.vlgmr.msra.gmra.mrb[88].mxu0 %vm343_vm0, %v17202_v60  ;;  %v18609_v26 = vld [vmem:[#allocation19_spill] sm:$0xff]  ;;  %v18611_v24 = vld [vmem:[#allocation65_spill] sm:$0xff]  ;;  %v17341_v19 = vld [vmem:[%s15312_s24 + $0x40] ss:$132 sps:$4 sm:$0xff]  }
 0x324   : > { %v6807_v48 = vmax.f32 %v6775_v9, 0.0  ;;  %v6808_v47 = vmax.f32 %v6776_v62, 0.0  ;;  %v6791_v56 = vadd.f32 %v17163_v51, %v6749_v36  ;;  %v6792_v52 = vadd.f32 %v17163_v51, %v6750_v17  ;;  %9893 = vmatpush1.bf16.msra.mxu0 %v16922_v37  ;;  %14098 = vmatmul.mubr.msk.bf16.vlgmr.msra.gmra.mrb[88].mxu1 %vm343_vm0, %v17202_v60  ;;  %v17335_v13 = vld [vmem:[%s15312_s24 + $0x4c] ss:$132 sps:$4 sm:$0xff]   ;;  %v17351_v54 = vld [vmem:[%s15312_s24 + $0x54] ss:$132 sps:$4 sm:$0xff]  }
 0x325   : > { %v6822_v15 = vmax.f32 %v6790_v44, 0.0  ;;  %v6809_v1 = vmax.f32 %v6777_v0, 0.0  ;;  %v6793_v32 = vadd.f32 %v17163_v51, %v6751_v58  ;;  %9936 = vmatpush1.bf16.msra.mxu1 %v16902_v3  ;;  %10020 = vmatprep.subr.bf16.mxu0 %v16917_v2  ;;  %v17345_v25 = vld [vmem:[%s15312_s24 + $0x48] ss:$132 sps:$4 sm:$0xff]   ;;  %v17358_v41 = vld [vmem:[%s15312_s24 + $0x5c] ss:$132 sps:$4 sm:$0xff]  }
 0x326   : > { %v14225_v5 = vpack.c.bf16 %v6807_v48, %v6806_v22  ;;  %v6823_v55 = vmax.f32 %v6791_v56, 0.0  ;;  %v6824_v49 = vmax.f32 %v6792_v52, 0.0  ;;  %10063 = vmatprep.subr.bf16.mxu1 %v16937_v23  ;;  %9924 = vmatprep.mubr.bf16.mxu0 %v18360_v16  ;;  %v15156_v4 = vld [vmem:[%s18107_s2 + $0x48] sm:$0xff]   ;;  %v17364_v9 = vld [vmem:[%s15312_s24 + $0x50] ss:$132 sps:$4 sm:$0xff]   ;;  %v18613_v56 = vld [vmem:[#allocation2_spill] sm:$0xff] }
 0x327   : > { %v14226_v38 = vpack.c.bf16 %v6809_v1, %v6808_v47  ;;  %v6825_v57 = vmax.f32 %v6793_v32, 0.0  ;;  %9967 = vmatprep.mubr.bf16.mxu1 %v18360_v16  ;;  %v17368_v62 = vld [vmem:[%s15312_s24 + $0x58] ss:$132 sps:$4 sm:$0xff]   ;;  %v17374_v36 = vld [vmem:[%s15312_s24 + $0x64] ss:$132 sps:$4 sm:$0xff]   ;;  %v18616_v1 = vld [vmem:[#allocation4_spill] sm:$0xff] }
 0x328   : > { %6928 = vst [vmem:[%s17191_s5 + $0x30] sm:$0xff] %v14225_v5  ;;  %v14233_v30 = vpack.c.bf16 %v6823_v55, %v6822_v15  ;;  %v17378_v17 = vld [vmem:[%s15312_s24 + $0x6c] ss:$132 sps:$4 sm:$0xff]   ;;  %v17384_v6 = vld [vmem:[%s15312_s24 + $0x60] ss:$132 sps:$4 sm:$0xff]   ;;  %v18626_v51 = vld [vmem:[#allocation33_spill] sm:$0xff] }
 0x329   : > { %6929 = vst [vmem:[%s17191_s5 + $0x38] sm:$0xff] %v14226_v38  ;;  %v14234_v50 = vpack.c.bf16 %v6825_v57, %v6824_v49  ;;  %v17388_v22 = vld [vmem:[%s15312_s24 + $0x68] ss:$132 sps:$4 sm:$0xff]   ;;  %v17394_v44 = vld [vmem:[%s15312_s24 + $0x74] ss:$132 sps:$4 sm:$0xff]   ;;  %v18612_v47 = vld [vmem:[#allocation22_spill] sm:$0xff] }
 0x32a   : > { %6936 = vst [vmem:[%s17191_s5 + $0xb0] sm:$0xff] %v14233_v30  ;;  %v17398_v0 = vld [vmem:[%s15312_s24 + $0x7c] ss:$132 sps:$4 sm:$0xff]   ;;  %v17404_v58 = vld [vmem:[%s15312_s24 + $0x70] ss:$132 sps:$4 sm:$0xff]   ;;  %v18614_v52 = vld [vmem:[#allocation3_spill] sm:$0xff] }
 0x32b   : > { %6937 = vst [vmem:[%s17191_s5 + $0xb8] sm:$0xff] %v14234_v50  ;;  %14099 = vmatmul.mubr.msk.bf16.vlgmr.msra.gmra.mrb[92].mxu0 %vm343_vm0, %v17202_v60  ;;  %v17408_v48 = vld [vmem:[%s15312_s24 + $0x78] ss:$132 sps:$4 sm:$0xff]   ;;  %v18615_v15 = vld [vmem:[#allocation24_spill] sm:$0xff]  ;;  %v15157_v32 = vld [vmem:[%s18107_s2 + $0x40] sm:$0xff]  }
 0x32c   : > { %10021 = vmatpush1.bf16.msra.mxu0 %v16952_v35  ;;  %14100 = vmatmul.mubr.msk.bf16.vlgmr.msra.gmra.mrb[92].mxu1 %vm343_vm0, %v17202_v60  ;;  %v18602_v60 = vld [vmem:[#allocation43_spill] sm:$0xff]  ;;  %v18617_v5 = vld [vmem:[#allocation6_spill] sm:$0xff]  ;;  %v18622_v30 = vld [vmem:[#allocation28_spill] sm:$0xff] }
 0x32d   : > { %10064 = vmatpush1.bf16.msra.mxu1 %v16947_v43  ;;  %10106 = vmatprep.subr.bf16.mxu0 %v16959_v63  ;;  %v18618_v55 = vld [vmem:[#allocation26_spill] sm:$0xff]  ;;  %v18619_v49 = vld [vmem:[#allocation23_spill] sm:$0xff] }
 0x32e   : > { %10149 = vmatprep.subr.bf16.mxu1 %v16966_v14  ;;  %10052 = vmatprep.mubr.bf16.mxu0 %v18360_v16  ;;  %v18620_v38 = vld [vmem:[#allocation27_spill] sm:$0xff]  ;;  %v18621_v57 = vld [vmem:[#allocation66_spill] sm:$0xff] }
 0x32f   : > { %10095 = vmatprep.mubr.bf16.mxu1 %v18360_v16  ;;  %v18623_v50 = vld [vmem:[#allocation67_spill] sm:$0xff] }
 0x330   : > { %v18627_v18 = vld [vmem:[#allocation7_spill] sm:$0xff] }
 0x333   : > { %14104 = vmatmul.mubr.msk.bf16.vlgmr.msra.gmra.mrb[80].mxu0 %vm343_vm0, %v15155_v21 }
 0x334   : > { %10107 = vmatpush1.bf16.msra.mxu0 %v18601_v46  ;;  %14105 = vmatmul.mubr.msk.bf16.vlgmr.msra.gmra.mrb[80].mxu1 %vm343_vm0, %v15155_v21 }
 0x335   : > { %10150 = vmatpush1.bf16.msra.mxu1 %v18602_v60  ;;  %10192 = vmatprep.subr.bf16.mxu0 %v18603_v42 }
 0x336   : > { %10235 = vmatprep.subr.bf16.mxu1 %v18604_v12  ;;  %10138 = vmatprep.mubr.bf16.mxu0 %v18360_v16 }
 0x337   : > { %10181 = vmatprep.mubr.bf16.mxu1 %v18360_v16 }
 0x33b   : > { %14106 = vmatmul.mubr.msk.bf16.vlgmr.msra.gmra.mrb[84].mxu0 %vm343_vm0, %v15155_v21 }
 0x33c   : > { %10193 = vmatpush1.bf16.msra.mxu0 %v18605_v39  ;;  %14107 = vmatmul.mubr.msk.bf16.vlgmr.msra.gmra.mrb[84].mxu1 %vm343_vm0, %v15155_v21 }
 0x33d   : > { %10236 = vmatpush1.bf16.msra.mxu1 %v18606_v61  ;;  %10278 = vmatprep.subr.bf16.mxu0 %v18607_v53 }
 0x33e   : > { %10321 = vmatprep.subr.bf16.mxu1 %v18608_v34  ;;  %10224 = vmatprep.mubr.bf16.mxu0 %v18360_v16 }
 0x33f   : > { %10267 = vmatprep.mubr.bf16.mxu1 %v18360_v16 }
 0x343   : > { %14108 = vmatmul.mubr.msk.bf16.vlgmr.msra.gmra.mrb[88].mxu0 %vm343_vm0, %v15155_v21 }
 0x344   : > { %10279 = vmatpush1.bf16.msra.mxu0 %v18609_v26  ;;  %14109 = vmatmul.mubr.msk.bf16.vlgmr.msra.gmra.mrb[88].mxu1 %vm343_vm0, %v15155_v21 }
 0x345   : > { %10322 = vmatpush1.bf16.msra.mxu1 %v18610_v31  ;;  %10310 = vmatprep.mubr.bf16.mxu0 %v18360_v16 }
 0x346   : > { %10353 = vmatprep.mubr.bf16.mxu1 %v18360_v16  ;;  %10440 = vmatprep.subr.bf16.mxu0 %v18611_v24 }
 0x347   : > { %10483 = vmatprep.subr.bf16.mxu1 %v17335_v13 }
 0x34b   : > { %14110 = vmatmul.mubr.msk.bf16.vlgmr.msra.gmra.mrb[92].mxu0 %vm343_vm0, %v15155_v21 }
 0x34c   : > { %14111 = vmatmul.mubr.msk.bf16.vlgmr.msra.gmra.mrb[92].mxu1 %vm343_vm0, %v15155_v21  ;;  %10441 = vmatpush1.bf16.msra.mxu0 %v17341_v19  ;;  %v18624_v21 = vld [vmem:[#allocation31_spill] sm:$0xff] }
 0x34d   : > { %10484 = vmatpush1.bf16.msra.mxu1 %v17345_v25  ;;  %10472 = vmatprep.mubr.bf16.mxu0 %v18360_v16 }
 0x34e   : > { %10515 = vmatprep.mubr.bf16.mxu1 %v18360_v16  ;;  %10526 = vmatprep.subr.bf16.mxu0 %v17351_v54 }
 0x34f   : > { %10569 = vmatprep.subr.bf16.mxu1 %v17358_v41 }
 0x353   : > { %14117 = vmatmul.mubr.msk.bf16.vlgmr.msra.gmra.mrb[96].mxu0 %vm343_vm0, %v15156_v4 }
 0x354   : > { %14118 = vmatmul.mubr.msk.bf16.vlgmr.msra.gmra.mrb[96].mxu1 %vm343_vm0, %v15156_v4  ;;  %10527 = vmatpush1.bf16.msra.mxu0 %v17364_v9 }
 0x355   : > { %10570 = vmatpush1.bf16.msra.mxu1 %v17368_v62  ;;  %10558 = vmatprep.mubr.bf16.mxu0 %v18360_v16 }
 0x356   : > { %10601 = vmatprep.mubr.bf16.mxu1 %v18360_v16  ;;  %10612 = vmatprep.subr.bf16.mxu0 %v17374_v36 }
 0x357   : > { %10655 = vmatprep.subr.bf16.mxu1 %v17378_v17 }
 0x35b   : > { %14119 = vmatmul.mubr.msk.bf16.vlgmr.msra.gmra.mrb[100].mxu0 %vm343_vm0, %v15156_v4 }
 0x35c   : > { %14120 = vmatmul.mubr.msk.bf16.vlgmr.msra.gmra.mrb[100].mxu1 %vm343_vm0, %v15156_v4  ;;  %10613 = vmatpush1.bf16.msra.mxu0 %v17384_v6 }
 0x35d   : > { %10656 = vmatpush1.bf16.msra.mxu1 %v17388_v22  ;;  %10644 = vmatprep.mubr.bf16.mxu0 %v18360_v16 }
 0x35e   : > { %10687 = vmatprep.mubr.bf16.mxu1 %v18360_v16  ;;  %10698 = vmatprep.subr.bf16.mxu0 %v17394_v44 }
 0x35f   : > { %10741 = vmatprep.subr.bf16.mxu1 %v17398_v0 }
 0x363   : > { %14121 = vmatmul.mubr.msk.bf16.vlgmr.msra.gmra.mrb[104].mxu0 %vm343_vm0, %v15156_v4 }
 0x364   : > { %14122 = vmatmul.mubr.msk.bf16.vlgmr.msra.gmra.mrb[104].mxu1 %vm343_vm0, %v15156_v4  ;;  %10699 = vmatpush1.bf16.msra.mxu0 %v17404_v58 }
 0x365   : > { %10742 = vmatpush1.bf16.msra.mxu1 %v17408_v48  ;;  %10730 = vmatprep.mubr.bf16.mxu0 %v18360_v16 }
 0x366   : > { %10773 = vmatprep.mubr.bf16.mxu1 %v18360_v16  ;;  %10792 = vmatprep.subr.bf16.mxu0 %v18612_v47 }
 0x367   : > { %10835 = vmatprep.subr.bf16.mxu1 %v18613_v56 }
 0x36b   : > { %14123 = vmatmul.mubr.msk.bf16.vlgmr.msra.gmra.mrb[108].mxu0 %vm343_vm0, %v15156_v4 }
 0x36c   : > { %14124 = vmatmul.mubr.msk.bf16.vlgmr.msra.gmra.mrb[108].mxu1 %vm343_vm0, %v15156_v4  ;;  %10793 = vmatpush1.bf16.msra.mxu0 %v18614_v52  ;;  %v18625_v4 = vld [vmem:[#allocation5_spill] sm:$0xff] }
 0x36d   : > { %10836 = vmatpush1.bf16.msra.mxu1 %v18615_v15  ;;  %10824 = vmatprep.mubr.bf16.mxu0 %v18360_v16 }
 0x36e   : > { %10867 = vmatprep.mubr.bf16.mxu1 %v18360_v16  ;;  %10878 = vmatprep.subr.bf16.mxu0 %v18616_v1 }
 0x36f   : > { %10921 = vmatprep.subr.bf16.mxu1 %v18617_v5 }
 0x373   : > { %14126 = vmatmul.mubr.msk.bf16.vlgmr.msra.gmra.mrb[96].mxu0 %vm343_vm0, %v15157_v32 }
 0x374   : > { %14127 = vmatmul.mubr.msk.bf16.vlgmr.msra.gmra.mrb[96].mxu1 %vm343_vm0, %v15157_v32  ;;  %10879 = vmatpush1.bf16.msra.mxu0 %v18618_v55 }
 0x375   : > { %10922 = vmatpush1.bf16.msra.mxu1 %v18619_v49  ;;  %10910 = vmatprep.mubr.bf16.mxu0 %v18360_v16 }
 0x376   : > { %10953 = vmatprep.mubr.bf16.mxu1 %v18360_v16  ;;  %10964 = vmatprep.subr.bf16.mxu0 %v18620_v38 }
 0x377   : > { %11007 = vmatprep.subr.bf16.mxu1 %v18621_v57  ;;  %v18628_v57 = vld [vmem:[#allocation13_spill] sm:$0xff] }
 0x37b   : > { %14128 = vmatmul.mubr.msk.bf16.vlgmr.msra.gmra.mrb[100].mxu0 %vm343_vm0, %v15157_v32 }
 0x37c   : > { %14129 = vmatmul.mubr.msk.bf16.vlgmr.msra.gmra.mrb[100].mxu1 %vm343_vm0, %v15157_v32  ;;  %10965 = vmatpush1.bf16.msra.mxu0 %v18622_v30  ;;  %v18629_v30 = vld [vmem:[#allocation16_spill] sm:$0xff] }
 0x37d   : > { %11008 = vmatpush1.bf16.msra.mxu1 %v18623_v50  ;;  %10996 = vmatprep.mubr.bf16.mxu0 %v18360_v16 }
 0x37e   : > { %11050 = vmatprep.subr.bf16.mxu0 %v18624_v21  ;;  %11039 = vmatprep.mubr.bf16.mxu1 %v18360_v16 }
 0x37f   : > { %11093 = vmatprep.subr.bf16.mxu1 %v18625_v4 }
 0x383   : > { %14130 = vmatmul.mubr.msk.bf16.vlgmr.msra.gmra.mrb[104].mxu0 %vm343_vm0, %v15157_v32 }
 0x384   : > { %11051 = vmatpush1.bf16.msra.mxu0 %v18626_v51  ;;  %14131 = vmatmul.mubr.msk.bf16.vlgmr.msra.gmra.mrb[104].mxu1 %vm343_vm0, %v15157_v32 }
 0x385   : > { %11094 = vmatpush1.bf16.msra.mxu1 %v18627_v18  ;;  %11146 = vmatprep.subr.bf16.mxu0 %v18628_v57 }
 0x386   : > { %11189 = vmatprep.subr.bf16.mxu1 %v18629_v30  ;;  %v17448_v50 = vpop.f32.mrb[64].mxu0  ;;  %11082 = vmatprep.mubr.bf16.mxu0 %v18360_v16 }
 0x387   : > { %v17451_v21 = vpop.f32.mrb[65].mxu0  ;;  %v17453_v38 = vpop.f32.mrb[64].mxu1  ;;  %11125 = vmatprep.mubr.bf16.mxu1 %v18360_v16 }
 0x388   : > { %v17456_v4 = vpop.f32.mrb[66].mxu0  ;;  %v17458_v51 = vpop.f32.mrb[65].mxu1 }
 0x389   : > { %18630 = vst [vmem:[#allocation9_spill] sm:$0xff] %v17456_v4  ;;  %v17460_v49 = vpop.f32.mrb[67].mxu0  ;;  %v17462_v18 = vpop.f32.mrb[66].mxu1 }
 0x38a   : > { %18631 = vst [vmem:[#allocation36_spill] sm:$0xff] %v17460_v49  ;;  %18632 = vst [vmem:[#allocation32_spill] sm:$0xff] %v17462_v18  ;;  %v17464_v57 = vpop.f32.mrb[67].mxu1 }
 0x38b   : > { %14132 = vmatmul.mubr.msk.bf16.vlgmr.msra.gmra.mrb[108].mxu0 %vm343_vm0, %v15157_v32 }
 0x38c   : > { %11147 = vmatpush1.bf16.msra.mxu0 %v16694_v27  ;;  %14133 = vmatmul.mubr.msk.bf16.vlgmr.msra.gmra.mrb[108].mxu1 %vm343_vm0, %v15157_v32  ;;  %v15158_v27 = vld [vmem:[%s18107_s2 + $0x50] sm:$0xff]  }
 0x38d   : > { %11190 = vmatpush1.bf16.msra.mxu1 %v16705_v29  ;;  %11232 = vmatprep.subr.bf16.mxu0 %v16689_v40 }
 0x38e   : > { %11275 = vmatprep.subr.bf16.mxu1 %v16712_v45  ;;  %v17472_v4 = vpop.f32.mrb[68].mxu0  ;;  %11178 = vmatprep.mubr.bf16.mxu0 %v18360_v16 }
 0x38f   : > { %18633 = vst [vmem:[#allocation45_spill] sm:$0xff] %v17472_v4  ;;  %v17475_v49 = vpop.f32.mrb[69].mxu0  ;;  %v17477_v18 = vpop.f32.mrb[68].mxu1  ;;  %11221 = vmatprep.mubr.bf16.mxu1 %v18360_v16 }
 0x390   : > { %18634 = vst [vmem:[#allocation10_spill] sm:$0xff] %v17475_v49  ;;  %18635 = vst [vmem:[#allocation37_spill] sm:$0xff] %v17477_v18  ;;  %v17483_v32 = vpop.f32.mrb[70].mxu0  ;;  %v17485_v29 = vpop.f32.mrb[69].mxu1 }
 0x391   : > { %18636 = vst [vmem:[#allocation68_spill] sm:$0xff] %v17483_v32  ;;  %18637 = vst [vmem:[#allocation17_spill] sm:$0xff] %v17485_v29  ;;  %v17487_v40 = vpop.f32.mrb[71].mxu0  ;;  %v17489_v45 = vpop.f32.mrb[70].mxu1 }
 0x392   : > { %18638 = vst [vmem:[#allocation46_spill] sm:$0xff] %v17487_v40  ;;  %18639 = vst [vmem:[#allocation48_spill] sm:$0xff] %v17489_v45  ;;  %v17491_v4 = vpop.f32.mrb[71].mxu1 }
 0x393   : > { %18640 = vst [vmem:[#allocation47_spill] sm:$0xff] %v17491_v4  ;;  %14137 = vmatmul.mubr.msk.bf16.vlgmr.msra.gmra.mrb[96].mxu0 %vm343_vm0, %v15158_v27 }
 0x394   : > { %11233 = vmatpush1.bf16.msra.mxu0 %v16776_v33  ;;  %14138 = vmatmul.mubr.msk.bf16.vlgmr.msra.gmra.mrb[96].mxu1 %vm343_vm0, %v15158_v27 }
 0x395   : > { %11276 = vmatpush1.bf16.msra.mxu1 %v16756_v28  ;;  %11318 = vmatprep.subr.bf16.mxu0 %v18595_v59 }
 0x396   : > { %11361 = vmatprep.subr.bf16.mxu1 %v16791_v10  ;;  %v17499_v32 = vpop.f32.mrb[72].mxu0  ;;  %11264 = vmatprep.mubr.bf16.mxu0 %v18360_v16 }
 0x397   : > { %18641 = vst [vmem:[#allocation51_spill] sm:$0xff] %v17499_v32  ;;  %v17502_v40 = vpop.f32.mrb[73].mxu0  ;;  %v17504_v45 = vpop.f32.mrb[72].mxu1  ;;  %11307 = vmatprep.mubr.bf16.mxu1 %v18360_v16 }
 0x398   : > { %18642 = vst [vmem:[#allocation53_spill] sm:$0xff] %v17502_v40  ;;  %18643 = vst [vmem:[#allocation49_spill] sm:$0xff] %v17504_v45  ;;  %v17507_v4 = vpop.f32.mrb[74].mxu0  ;;  %v17509_v33 = vpop.f32.mrb[73].mxu1 }
 0x399   : > { %18644 = vst [vmem:[#allocation50_spill] sm:$0xff] %v17507_v4  ;;  %18645 = vst [vmem:[#allocation55_spill] sm:$0xff] %v17509_v33  ;;  %v17511_v29 = vpop.f32.mrb[75].mxu0  ;;  %v17513_v28 = vpop.f32.mrb[74].mxu1 }
 0x39a   : > { %18646 = vst [vmem:[#allocation57_spill] sm:$0xff] %v17511_v29  ;;  %18647 = vst [vmem:[#allocation52_spill] sm:$0xff] %v17513_v28  ;;  %v17515_v59 = vpop.f32.mrb[75].mxu1 }
 0x39b   : > { %18648 = vst [vmem:[#allocation54_spill] sm:$0xff] %v17515_v59  ;;  %14139 = vmatmul.mubr.msk.bf16.vlgmr.msra.gmra.mrb[100].mxu0 %vm343_vm0, %v15158_v27 }
 0x39c   : > { %11319 = vmatpush1.bf16.msra.mxu0 %v18597_v7  ;;  %14140 = vmatmul.mubr.msk.bf16.vlgmr.msra.gmra.mrb[100].mxu1 %vm343_vm0, %v15158_v27 }
 0x39d   : > { %11362 = vmatpush1.bf16.msra.mxu1 %v18598_v20  ;;  %11404 = vmatprep.subr.bf16.mxu0 %v18599_v8 }
 0x39e   : > { %11447 = vmatprep.subr.bf16.mxu1 %v16865_v11  ;;  %v17523_v4 = vpop.f32.mrb[76].mxu0  ;;  %11350 = vmatprep.mubr.bf16.mxu0 %v18360_v16 }
 0x39f   : > { %18649 = vst [vmem:[#allocation59_spill] sm:$0xff] %v17523_v4  ;;  %v17526_v29 = vpop.f32.mrb[77].mxu0  ;;  %v17528_v28 = vpop.f32.mrb[76].mxu1  ;;  %11393 = vmatprep.mubr.bf16.mxu1 %v18360_v16 }
 0x3a0   : > { %18650 = vst [vmem:[#allocation60_spill] sm:$0xff] %v17528_v28  ;;  %v17531_v59 = vpop.f32.mrb[78].mxu0  ;;  %v17533_v7 = vpop.f32.mrb[77].mxu1  ;;  %v18688_v18 = vld [vmem:[#allocation50_spill] sm:$0xff]  ;;  %v18689_v49 = vld [vmem:[#allocation55_spill] sm:$0xff] }
 0x3a1   : > { %v17535_v33 = vpop.f32.mrb[79].mxu0  ;;  %v17537_v20 = vpop.f32.mrb[78].mxu1 }
 0x3a2   : > { %v17539_v8 = vpop.f32.mrb[79].mxu1 }
 0x3a3   : > { %14141 = vmatmul.mubr.msk.bf16.vlgmr.msra.gmra.mrb[104].mxu0 %vm343_vm0, %v15158_v27 }
 0x3a4   : > { %11405 = vmatpush1.bf16.msra.mxu0 %v16922_v37  ;;  %14142 = vmatmul.mubr.msk.bf16.vlgmr.msra.gmra.mrb[104].mxu1 %vm343_vm0, %v15158_v27 }
 0x3a5   : > { %11448 = vmatpush1.bf16.msra.mxu1 %v16902_v3  ;;  %11532 = vmatprep.subr.bf16.mxu0 %v16917_v2 }
 0x3a6   : > { %11575 = vmatprep.subr.bf16.mxu1 %v16937_v23  ;;  %11436 = vmatprep.mubr.bf16.mxu0 %v18360_v16  ;;  %v15159_v23 = vld [vmem:[%s18107_s2 + $0x58] sm:$0xff]  }
 0x3a7   : > { %11479 = vmatprep.mubr.bf16.mxu1 %v18360_v16 }
 0x3ab   : > { %14143 = vmatmul.mubr.msk.bf16.vlgmr.msra.gmra.mrb[108].mxu0 %vm343_vm0, %v15158_v27 }
 0x3ac   : > { %11533 = vmatpush1.bf16.msra.mxu0 %v16952_v35  ;;  %14144 = vmatmul.mubr.msk.bf16.vlgmr.msra.gmra.mrb[108].mxu1 %vm343_vm0, %v15158_v27  ;;  %v15160_v27 = vld [vmem:[%s18107_s2 + $0x68] sm:$0xff]  }
 0x3ad   : > { %11576 = vmatpush1.bf16.msra.mxu1 %v16947_v43  ;;  %11618 = vmatprep.subr.bf16.mxu0 %v16959_v63 }
 0x3ae   : > { %11661 = vmatprep.subr.bf16.mxu1 %v16966_v14  ;;  %11564 = vmatprep.mubr.bf16.mxu0 %v18360_v16 }
 0x3af   : > { %11607 = vmatprep.mubr.bf16.mxu1 %v18360_v16 }
 0x3b3   : > { %14148 = vmatmul.mubr.msk.bf16.vlgmr.msra.gmra.mrb[96].mxu0 %vm343_vm0, %v15159_v23 }
 0x3b4   : > { %11619 = vmatpush1.bf16.msra.mxu0 %v18601_v46  ;;  %14149 = vmatmul.mubr.msk.bf16.vlgmr.msra.gmra.mrb[96].mxu1 %vm343_vm0, %v15159_v23 }
 0x3b5   : > { %11662 = vmatpush1.bf16.msra.mxu1 %v18602_v60  ;;  %11704 = vmatprep.subr.bf16.mxu0 %v18603_v42 }
 0x3b6   : > { %11747 = vmatprep.subr.bf16.mxu1 %v18604_v12  ;;  %11650 = vmatprep.mubr.bf16.mxu0 %v18360_v16 }
 0x3b7   : > { %11693 = vmatprep.mubr.bf16.mxu1 %v18360_v16 }
 0x3bb   : > { %14150 = vmatmul.mubr.msk.bf16.vlgmr.msra.gmra.mrb[100].mxu0 %vm343_vm0, %v15159_v23 }
 0x3bc   : > { %11705 = vmatpush1.bf16.msra.mxu0 %v18605_v39  ;;  %14151 = vmatmul.mubr.msk.bf16.vlgmr.msra.gmra.mrb[100].mxu1 %vm343_vm0, %v15159_v23 }
 0x3bd   : > { %11748 = vmatpush1.bf16.msra.mxu1 %v18606_v61  ;;  %11790 = vmatprep.subr.bf16.mxu0 %v18607_v53 }
 0x3be   : > { %11833 = vmatprep.subr.bf16.mxu1 %v18608_v34  ;;  %11736 = vmatprep.mubr.bf16.mxu0 %v18360_v16 }
 0x3bf   : > { %11779 = vmatprep.mubr.bf16.mxu1 %v18360_v16 }
 0x3c3   : > { %14152 = vmatmul.mubr.msk.bf16.vlgmr.msra.gmra.mrb[104].mxu0 %vm343_vm0, %v15159_v23 }
 0x3c4   : > { %11791 = vmatpush1.bf16.msra.mxu0 %v18609_v26  ;;  %14153 = vmatmul.mubr.msk.bf16.vlgmr.msra.gmra.mrb[104].mxu1 %vm343_vm0, %v15159_v23 }
 0x3c5   : > { %11834 = vmatpush1.bf16.msra.mxu1 %v18610_v31  ;;  %11822 = vmatprep.mubr.bf16.mxu0 %v18360_v16 }
 0x3c6   : > { %11865 = vmatprep.mubr.bf16.mxu1 %v18360_v16  ;;  %11952 = vmatprep.subr.bf16.mxu0 %v18611_v24  ;;  %v18651_v24 = vld [vmem:[#allocation23_spill] sm:$0xff] }
 0x3c7   : > { %11995 = vmatprep.subr.bf16.mxu1 %v17335_v13  ;;  %v18652_v13 = vld [vmem:[#allocation27_spill] sm:$0xff] }
 0x3cb   : > { %14154 = vmatmul.mubr.msk.bf16.vlgmr.msra.gmra.mrb[108].mxu0 %vm343_vm0, %v15159_v23 }
 0x3cc   : > { %14155 = vmatmul.mubr.msk.bf16.vlgmr.msra.gmra.mrb[108].mxu1 %vm343_vm0, %v15159_v23  ;;  %11953 = vmatpush1.bf16.msra.mxu0 %v17341_v19  ;;  %v15161_v23 = vld [vmem:[%s18107_s2 + $0x60] sm:$0xff]  }
 0x3cd   : > { %11996 = vmatpush1.bf16.msra.mxu1 %v17345_v25  ;;  %11984 = vmatprep.mubr.bf16.mxu0 %v18360_v16  ;;  %v18653_v19 = vld [vmem:[#allocation66_spill] sm:$0xff]  ;;  %v18654_v25 = vld [vmem:[#allocation28_spill] sm:$0xff] }
 0x3ce   : > { %12027 = vmatprep.mubr.bf16.mxu1 %v18360_v16  ;;  %12038 = vmatprep.subr.bf16.mxu0 %v17351_v54  ;;  %v18655_v54 = vld [vmem:[#allocation67_spill] sm:$0xff] }
 0x3cf   : > { %12081 = vmatprep.subr.bf16.mxu1 %v17358_v41  ;;  %v18656_v41 = vld [vmem:[#allocation31_spill] sm:$0xff] }
 0x3d3   : > { %14161 = vmatmul.mubr.msk.bf16.vlgmr.msra.gmra.mrb[112].mxu0 %vm343_vm0, %v15160_v27 }
 0x3d4   : > { %14162 = vmatmul.mubr.msk.bf16.vlgmr.msra.gmra.mrb[112].mxu1 %vm343_vm0, %v15160_v27  ;;  %12039 = vmatpush1.bf16.msra.mxu0 %v17364_v9  ;;  %v18657_v9 = vld [vmem:[#allocation5_spill] sm:$0xff] }
 0x3d5   : > { %12082 = vmatpush1.bf16.msra.mxu1 %v17368_v62  ;;  %12070 = vmatprep.mubr.bf16.mxu0 %v18360_v16  ;;  %v18658_v62 = vld [vmem:[#allocation33_spill] sm:$0xff] }
 0x3d6   : > { %12113 = vmatprep.mubr.bf16.mxu1 %v18360_v16  ;;  %12124 = vmatprep.subr.bf16.mxu0 %v17374_v36  ;;  %v18659_v36 = vld [vmem:[#allocation7_spill] sm:$0xff] }
 0x3d7   : > { %12167 = vmatprep.subr.bf16.mxu1 %v17378_v17  ;;  %v18660_v17 = vld [vmem:[#allocation13_spill] sm:$0xff] }
 0x3db   : > { %14163 = vmatmul.mubr.msk.bf16.vlgmr.msra.gmra.mrb[116].mxu0 %vm343_vm0, %v15160_v27 }
 0x3dc   : > { %14164 = vmatmul.mubr.msk.bf16.vlgmr.msra.gmra.mrb[116].mxu1 %vm343_vm0, %v15160_v27  ;;  %12125 = vmatpush1.bf16.msra.mxu0 %v17384_v6 }
 0x3dd   : > { %12168 = vmatpush1.bf16.msra.mxu1 %v17388_v22  ;;  %12156 = vmatprep.mubr.bf16.mxu0 %v18360_v16 }
 0x3de   : > { %12199 = vmatprep.mubr.bf16.mxu1 %v18360_v16  ;;  %12210 = vmatprep.subr.bf16.mxu0 %v17394_v44 }
 0x3df   : > { %12253 = vmatprep.subr.bf16.mxu1 %v17398_v0 }
 0x3e3   : > { %14165 = vmatmul.mubr.msk.bf16.vlgmr.msra.gmra.mrb[120].mxu0 %vm343_vm0, %v15160_v27 }
 0x3e4   : > { %14166 = vmatmul.mubr.msk.bf16.vlgmr.msra.gmra.mrb[120].mxu1 %vm343_vm0, %v15160_v27  ;;  %12211 = vmatpush1.bf16.msra.mxu0 %v17404_v58 }
 0x3e5   : > { %12254 = vmatpush1.bf16.msra.mxu1 %v17408_v48  ;;  %12242 = vmatprep.mubr.bf16.mxu0 %v18360_v16  ;;  %v18682_v48 = vld [vmem:[#allocation21_spill] sm:$0xff] }
 0x3e6   : > { %12285 = vmatprep.mubr.bf16.mxu1 %v18360_v16  ;;  %12304 = vmatprep.subr.bf16.mxu0 %v18612_v47 }
 0x3e7   : > { %12347 = vmatprep.subr.bf16.mxu1 %v18613_v56 }
 0x3eb   : > { %14167 = vmatmul.mubr.msk.bf16.vlgmr.msra.gmra.mrb[124].mxu0 %vm343_vm0, %v15160_v27 }
 0x3ec   : > { %14168 = vmatmul.mubr.msk.bf16.vlgmr.msra.gmra.mrb[124].mxu1 %vm343_vm0, %v15160_v27  ;;  %12305 = vmatpush1.bf16.msra.mxu0 %v18614_v52  ;;  %v18661_v52 = vld [vmem:[#allocation9_spill] sm:$0xff] }
 0x3ed   : > { %12348 = vmatpush1.bf16.msra.mxu1 %v18615_v15  ;;  %12336 = vmatprep.mubr.bf16.mxu0 %v18360_v16  ;;  %v18674_v15 = vld [vmem:[#allocation17_spill] sm:$0xff] }
 0x3ee   : > { %12379 = vmatprep.mubr.bf16.mxu1 %v18360_v16  ;;  %12390 = vmatprep.subr.bf16.mxu0 %v18616_v1  ;;  %v18681_v1 = vld [vmem:[#allocation14_spill] sm:$0xff] }
 0x3ef   : > { %12433 = vmatprep.subr.bf16.mxu1 %v18617_v5 }
 0x3f3   : > { %14170 = vmatmul.mubr.msk.bf16.vlgmr.msra.gmra.mrb[112].mxu0 %vm343_vm0, %v15161_v23 }
 0x3f4   : > { %14171 = vmatmul.mubr.msk.bf16.vlgmr.msra.gmra.mrb[112].mxu1 %vm343_vm0, %v15161_v23  ;;  %12391 = vmatpush1.bf16.msra.mxu0 %v18618_v55 }
 0x3f5   : > { %12434 = vmatpush1.bf16.msra.mxu1 %v18651_v24  ;;  %12422 = vmatprep.mubr.bf16.mxu0 %v18360_v16  ;;  %v18663_v24 = vld [vmem:[#allocation32_spill] sm:$0xff] }
 0x3f6   : > { %12465 = vmatprep.mubr.bf16.mxu1 %v18360_v16  ;;  %12476 = vmatprep.subr.bf16.mxu0 %v18652_v13  ;;  %v18673_v13 = vld [vmem:[#allocation68_spill] sm:$0xff] }
 0x3f7   : > { %12519 = vmatprep.subr.bf16.mxu1 %v18653_v19 }
 0x3fb   : > { %14172 = vmatmul.mubr.msk.bf16.vlgmr.msra.gmra.mrb[116].mxu0 %vm343_vm0, %v15161_v23 }
 0x3fc   : > { %14173 = vmatmul.mubr.msk.bf16.vlgmr.msra.gmra.mrb[116].mxu1 %vm343_vm0, %v15161_v23  ;;  %12477 = vmatpush1.bf16.msra.mxu0 %v18654_v25 }
 0x3fd   : > { %12520 = vmatpush1.bf16.msra.mxu1 %v18655_v54  ;;  %12508 = vmatprep.mubr.bf16.mxu0 %v18360_v16  ;;  %v18664_v54 = vld [vmem:[#allocation20_spill] sm:$0xff] }
 0x3fe   : > { %12562 = vmatprep.subr.bf16.mxu0 %v18656_v41  ;;  %12551 = vmatprep.mubr.bf16.mxu1 %v18360_v16  ;;  %v18665_v41 = vld [vmem:[#allocation25_spill] sm:$0xff] }
 0x3ff   : > { %12605 = vmatprep.subr.bf16.mxu1 %v18657_v9  ;;  %v18666_v9 = vld [vmem:[#allocation12_spill] sm:$0xff] }
 0x403   : > { %14174 = vmatmul.mubr.msk.bf16.vlgmr.msra.gmra.mrb[120].mxu0 %vm343_vm0, %v15161_v23 }
 0x404   : > { %12563 = vmatpush1.bf16.msra.mxu0 %v18658_v62  ;;  %14175 = vmatmul.mubr.msk.bf16.vlgmr.msra.gmra.mrb[120].mxu1 %vm343_vm0, %v15161_v23  ;;  %v18667_v62 = vld [vmem:[#allocation11_spill] sm:$0xff] }
 0x405   : > { %12606 = vmatpush1.bf16.msra.mxu1 %v18659_v36  ;;  %12658 = vmatprep.subr.bf16.mxu0 %v18660_v17  ;;  %v18669_v17 = vld [vmem:[#allocation45_spill] sm:$0xff] }
 0x406   : > { %12701 = vmatprep.subr.bf16.mxu1 %v18629_v30  ;;  %v17652_v6 = vpop.f32.mrb[80].mxu0  ;;  %12594 = vmatprep.mubr.bf16.mxu0 %v18360_v16  ;;  %v18662_v30 = vld [vmem:[#allocation36_spill] sm:$0xff] }
 0x407   : > { %v17657_v44 = vpop.f32.mrb[81].mxu0  ;;  %v17659_v0 = vpop.f32.mrb[80].mxu1  ;;  %12637 = vmatprep.mubr.bf16.mxu1 %v18360_v16 }
 0x408   : > { %v17666_v47 = vpop.f32.mrb[82].mxu0  ;;  %v17668_v56 = vpop.f32.mrb[81].mxu1 }
 0x409   : > { %v17674_v5 = vpop.f32.mrb[83].mxu0  ;;  %v17676_v55 = vpop.f32.mrb[82].mxu1 }
 0x40a   : > { %v17682_v19 = vpop.f32.mrb[83].mxu1 }
 0x40b   : > { %14176 = vmatmul.mubr.msk.bf16.vlgmr.msra.gmra.mrb[124].mxu0 %vm343_vm0, %v15161_v23 }
 0x40c   : > { %12659 = vmatpush1.bf16.msra.mxu0 %v18664_v54  ;;  %14177 = vmatmul.mubr.msk.bf16.vlgmr.msra.gmra.mrb[124].mxu1 %vm343_vm0, %v15161_v23  ;;  %v17704_v23 = vld [vmem:[%s18107_s2 + $0x70] sm:$0xff]  }
 0x40d   : > { %12702 = vmatpush1.bf16.msra.mxu1 %v18665_v41  ;;  %12744 = vmatprep.subr.bf16.mxu0 %v18666_v9 }
 0x40e   : > { %12787 = vmatprep.subr.bf16.mxu1 %v18667_v62  ;;  %v17692_v36 = vpop.f32.mrb[84].mxu0  ;;  %12690 = vmatprep.mubr.bf16.mxu0 %v18360_v16 }
 0x40f   : > { %18668 = vst [vmem:[#allocation56_spill] sm:$0xff] %v17692_v36  ;;  %v17697_v25 = vpop.f32.mrb[85].mxu0  ;;  %v17699_v27 = vpop.f32.mrb[84].mxu1  ;;  %12733 = vmatprep.mubr.bf16.mxu1 %v18360_v16  ;;  %v18677_v36 = vld [vmem:[#allocation46_spill] sm:$0xff] }
 0x410   : > { %18670 = vst [vmem:[#allocation58_spill] sm:$0xff] %v17697_v25  ;;  %18671 = vst [vmem:[#allocation30_spill] sm:$0xff] %v17699_v27  ;;  %v17711_v9 = vpop.f32.mrb[86].mxu0  ;;  %v17713_v62 = vpop.f32.mrb[85].mxu1 }
 0x411   : > { %18672 = vst [vmem:[#allocation40_spill] sm:$0xff] %v17713_v62  ;;  %v17719_v58 = vpop.f32.mrb[87].mxu0  ;;  %v17721_v22 = vpop.f32.mrb[86].mxu1  ;;  %v18683_v62 = vld [vmem:[#allocation29_spill] sm:$0xff] }
 0x412   : > { %18675 = vst [vmem:[#allocation42_spill] sm:$0xff] %v17719_v58  ;;  %18676 = vst [vmem:[#allocation43_spill] sm:$0xff] %v17721_v22  ;;  %v17727_v27 = vpop.f32.mrb[87].mxu1  ;;  %v18690_v58 = vld [vmem:[#allocation57_spill] sm:$0xff]  ;;  %v18694_v22 = vld [vmem:[#allocation38_spill] sm:$0xff] }
 0x413   : > { %18679 = vst [vmem:[#allocation44_spill] sm:$0xff] %v17727_v27  ;;  %14181 = vmatmul.mubr.msk.bf16.vlgmr.msra.gmra.mrb[112].mxu0 %vm343_vm0, %v17704_v23 }
 0x414   : > { %12745 = vmatpush1.bf16.msra.mxu0 %v18681_v1  ;;  %14182 = vmatmul.mubr.msk.bf16.vlgmr.msra.gmra.mrb[112].mxu1 %vm343_vm0, %v17704_v23 }
 0x415   : > { %12788 = vmatpush1.bf16.msra.mxu1 %v18682_v48  ;;  %12830 = vmatprep.subr.bf16.mxu0 %v18683_v62 }
 0x416   : > { %12873 = vmatprep.subr.bf16.mxu1 %v16791_v10  ;;  %v17739_v41 = vpop.f32.mrb[88].mxu0  ;;  %12776 = vmatprep.mubr.bf16.mxu0 %v18360_v16 }
 0x417   : > { %18684 = vst [vmem:[#allocation15_spill] sm:$0xff] %v17739_v41  ;;  %v17744_v54 = vpop.f32.mrb[89].mxu0  ;;  %v17746_v27 = vpop.f32.mrb[88].mxu1  ;;  %12819 = vmatprep.mubr.bf16.mxu1 %v18360_v16  ;;  %v18695_v41 = vld [vmem:[#allocation34_spill] sm:$0xff] }
 0x418   : > { %18685 = vst [vmem:[#allocation62_spill] sm:$0xff] %v17744_v54  ;;  %18686 = vst [vmem:[#allocation61_spill] sm:$0xff] %v17746_v27  ;;  %v17753_v10 = vpop.f32.mrb[90].mxu0  ;;  %v17755_v62 = vpop.f32.mrb[89].mxu1  ;;  %v18691_v54 = vld [vmem:[#allocation52_spill] sm:$0xff] }
 0x419   : > { %18687 = vst [vmem:[#allocation63_spill] sm:$0xff] %v17755_v62  ;;  %v17761_v32 = vpop.f32.mrb[91].mxu0  ;;  %v17763_v25 = vpop.f32.mrb[90].mxu1  ;;  %v18696_v62 = vld [vmem:[#allocation39_spill] sm:$0xff] }
 0x41a   : > { %v17769_v27 = vpop.f32.mrb[91].mxu1 }
 0x41b   : > { %18692 = vst [vmem:[#allocation18_spill] sm:$0xff] %v17769_v27  ;;  %14183 = vmatmul.mubr.msk.bf16.vlgmr.msra.gmra.mrb[116].mxu0 %vm343_vm0, %v17704_v23 }
 0x41c   : > { %12831 = vmatpush1.bf16.msra.mxu0 %v18694_v22  ;;  %14184 = vmatmul.mubr.msk.bf16.vlgmr.msra.gmra.mrb[116].mxu1 %vm343_vm0, %v17704_v23  ;;  %v18699_v22 = vld [vmem:[#allocation41_spill] sm:$0xff] }
 0x41d   : > { %12874 = vmatpush1.bf16.msra.mxu1 %v18695_v41  ;;  %12916 = vmatprep.subr.bf16.mxu0 %v18696_v62 }
 0x41e   : > { %12959 = vmatprep.subr.bf16.mxu1 %v16865_v11  ;;  %v17781_v1 = vpop.f32.mrb[92].mxu0  ;;  %12862 = vmatprep.mubr.bf16.mxu0 %v18360_v16 }
 0x41f   : > { %18697 = vst [vmem:[#allocation19_spill] sm:$0xff] %v17781_v1  ;;  %v17786_v48 = vpop.f32.mrb[93].mxu0  ;;  %v17788_v27 = vpop.f32.mrb[92].mxu1  ;;  %12905 = vmatprep.mubr.bf16.mxu1 %v18360_v16 }
 0x420   : > { %18698 = vst [vmem:[#allocation64_spill] sm:$0xff] %v17788_v27  ;;  %v17795_v11 = vpop.f32.mrb[94].mxu0  ;;  %v17797_v62 = vpop.f32.mrb[93].mxu1 }
 0x421   : > { %v10424_v45 = vmax.f32 %v17531_v59, %v17795_v11  ;;  %v10411_v40 = vmax.f32 %v17533_v7, %v17797_v62  ;;  %v17803_v1 = vpop.f32.mrb[95].mxu0  ;;  %v17805_v4 = vpop.f32.mrb[94].mxu1 }
 0x422   : > { %v10426_v41 = vmax.f32 %v17537_v20, %v17805_v4  ;;  %v17811_v27 = vpop.f32.mrb[95].mxu1  ;;  %v18752_v20 = vld [vmem:[#allocation8_spill] sm:$0xff] }
 0x423   : > { %v10427_v28 = vmax.f32 %v17539_v8, %v17811_v27  ;;  %14185 = vmatmul.mubr.msk.bf16.vlgmr.msra.gmra.mrb[120].mxu0 %vm343_vm0, %v17704_v23 }
 0x424   : > { %12917 = vmatpush1.bf16.msra.mxu0 %v16922_v37  ;;  %14186 = vmatmul.mubr.msk.bf16.vlgmr.msra.gmra.mrb[120].mxu1 %vm343_vm0, %v17704_v23  ;;  %v18700_v37 = vmax.f32 %v17448_v50, %v17652_v6  ;;  %v18705_v50 = vmax.f32 %v18662_v30, %v17674_v5 }
 0x425   : > { %12960 = vmatpush1.bf16.msra.mxu1 %v16902_v3  ;;  %13044 = vmatprep.subr.bf16.mxu0 %v16917_v2  ;;  %v15163_v3 = vld [vmem:[%s18107_s2 + $0x78] sm:$0xff]  }
 0x426   : > { %13087 = vmatprep.subr.bf16.mxu1 %v18699_v22  ;;  %12948 = vmatprep.mubr.bf16.mxu0 %v18360_v16  ;;  %v18710_v22 = vld [vmem:[#allocation10_spill] sm:$0xff] }
 0x427   : > { %12991 = vmatprep.mubr.bf16.mxu1 %v18360_v16 }
 0x42b   : > { %14187 = vmatmul.mubr.msk.bf16.vlgmr.msra.gmra.mrb[124].mxu0 %vm343_vm0, %v17704_v23 }
 0x42c   : > { %13045 = vmatpush1.bf16.msra.mxu0 %v16952_v35  ;;  %14188 = vmatmul.mubr.msk.bf16.vlgmr.msra.gmra.mrb[124].mxu1 %vm343_vm0, %v17704_v23 }
 0x42d   : > { %13088 = vmatpush1.bf16.msra.mxu1 %v16947_v43  ;;  %13130 = vmatprep.subr.bf16.mxu0 %v16959_v63 }
 0x42e   : > { %13173 = vmatprep.subr.bf16.mxu1 %v16966_v14  ;;  %13076 = vmatprep.mubr.bf16.mxu0 %v18360_v16  ;;  %v18701_v14 = vmax.f32 %v17451_v21, %v17657_v44  ;;  %v18706_v21 = vmax.f32 %v18663_v24, %v17676_v55  ;;  %v18713_v24 = vld [vmem:[#allocation37_spill] sm:$0xff] }
 0x42f   : > { %13119 = vmatprep.mubr.bf16.mxu1 %v18360_v16 }
 0x433   : > { %14192 = vmatmul.mubr.msk.bf16.vlgmr.msra.gmra.mrb[112].mxu0 %vm343_vm0, %v15163_v3 }
 0x434   : > { %13131 = vmatpush1.bf16.msra.mxu0 %v18601_v46  ;;  %14193 = vmatmul.mubr.msk.bf16.vlgmr.msra.gmra.mrb[112].mxu1 %vm343_vm0, %v15163_v3 }
 0x435   : > { %13174 = vmatpush1.bf16.msra.mxu1 %v18602_v60  ;;  %13216 = vmatprep.subr.bf16.mxu0 %v18603_v42 }
 0x436   : > { %13259 = vmatprep.subr.bf16.mxu1 %v18604_v12  ;;  %13162 = vmatprep.mubr.bf16.mxu0 %v18360_v16 }
 0x437   : > { %13205 = vmatprep.mubr.bf16.mxu1 %v18360_v16 }
 0x43b   : > { %14194 = vmatmul.mubr.msk.bf16.vlgmr.msra.gmra.mrb[116].mxu0 %vm343_vm0, %v15163_v3 }
 0x43c   : > { %13217 = vmatpush1.bf16.msra.mxu0 %v18605_v39  ;;  %14195 = vmatmul.mubr.msk.bf16.vlgmr.msra.gmra.mrb[116].mxu1 %vm343_vm0, %v15163_v3  ;;  %v18703_v39 = vmax.f32 %v18661_v52, %v17666_v47 }
 0x43d   : > { %13260 = vmatpush1.bf16.msra.mxu1 %v18606_v61  ;;  %13302 = vmatprep.subr.bf16.mxu0 %v18607_v53  ;;  %v18704_v53 = vmax.f32 %v17458_v51, %v17668_v56  ;;  %v18708_v56 = vld [vmem:[#allocation56_spill] sm:$0xff] }
 0x43e   : > { %13345 = vmatprep.subr.bf16.mxu1 %v18608_v34  ;;  %13248 = vmatprep.mubr.bf16.mxu0 %v18360_v16  ;;  %v18709_v52 = vmax.f32 %v18669_v17, %v18708_v56  ;;  %v18725_v56 = vld [vmem:[#allocation44_spill] sm:$0xff] }
 0x43f   : > { %13291 = vmatprep.mubr.bf16.mxu1 %v18360_v16 }
 0x443   : > { %14196 = vmatmul.mubr.msk.bf16.vlgmr.msra.gmra.mrb[120].mxu0 %vm343_vm0, %v15163_v3 }
 0x444   : > { %13303 = vmatpush1.bf16.msra.mxu0 %v18609_v26  ;;  %14197 = vmatmul.mubr.msk.bf16.vlgmr.msra.gmra.mrb[120].mxu1 %vm343_vm0, %v15163_v3 }
 0x445   : > { %13346 = vmatpush1.bf16.msra.mxu1 %v18610_v31  ;;  %13334 = vmatprep.mubr.bf16.mxu0 %v18360_v16 }
 0x446   : > { %13377 = vmatprep.mubr.bf16.mxu1 %v18360_v16  ;;  %v18702_v16 = vmax.f32 %v17453_v38, %v17659_v0  ;;  %v18707_v0 = vmax.f32 %v17464_v57, %v17682_v19 }
 0x44b   : > { %14198 = vmatmul.mubr.msk.bf16.vlgmr.msra.gmra.mrb[124].mxu0 %vm343_vm0, %v15163_v3 }
 0x44c   : > { %14199 = vmatmul.mubr.msk.bf16.vlgmr.msra.gmra.mrb[124].mxu1 %vm343_vm0, %v15163_v3  ;;  %v18711_v3 = vld [vmem:[#allocation58_spill] sm:$0xff] }
 0x486   : > { %v11566_v2 = vpop.f32.mrb[96].mxu0 }
 0x487   : > { %v17865_v43 = vmax.f32 %v18700_v37, %v11566_v2  ;;  %v11568_v35 = vpop.f32.mrb[97].mxu0  ;;  %v11609_v63 = vpop.f32.mrb[96].mxu1  ;;  %v18712_v2 = vmax.f32 %v18710_v22, %v18711_v3  ;;  %v18714_v37 = vld [vmem:[#allocation30_spill] sm:$0xff]  ;;  %v18728_v22 = vld [vmem:[#allocation15_spill] sm:$0xff] }
 0x488   : > { %v17870_v46 = vmax.f32 %v18701_v14, %v11568_v35  ;;  %v17875_v60 = vmax.f32 %v18702_v16, %v11609_v63  ;;  %v11570_v42 = vpop.f32.mrb[98].mxu0  ;;  %v11611_v12 = vpop.f32.mrb[97].mxu1  ;;  %v18715_v35 = vmax.f32 %v18713_v24, %v18714_v37  ;;  %v18716_v14 = vmax.f32 %v18673_v13, %v17711_v9  ;;  %v18717_v16 = vld [vmem:[#allocation40_spill] sm:$0xff]  ;;  %v18724_v9 = vld [vmem:[#allocation47_spill] sm:$0xff]  ;;  %v18730_v37 = vld [vmem:[#allocation53_spill] sm:$0xff] }
 0x489   : > { %v17880_v61 = vmax.f32 %v18703_v39, %v11570_v42  ;;  %v17885_v34 = vmax.f32 %v18704_v53, %v11611_v12  ;;  %v11572_v26 = vpop.f32.mrb[99].mxu0  ;;  %v11613_v31 = vpop.f32.mrb[98].mxu1  ;;  %v18718_v42 = vmax.f32 %v18674_v15, %v18717_v16  ;;  %v18734_v16 = vld [vmem:[#allocation61_spill] sm:$0xff] }
 0x48a   : > { %v17890_v38 = vmax.f32 %v18705_v50, %v11572_v26  ;;  %v17895_v6 = vmax.f32 %v18706_v21, %v11613_v31  ;;  %v11615_v44 = vpop.f32.mrb[99].mxu1  ;;  %v18719_v26 = vld [vmem:[#allocation42_spill] sm:$0xff]  ;;  %v18721_v21 = vld [vmem:[#allocation48_spill] sm:$0xff] }
 0x48b   : > { %v17900_v47 = vmax.f32 %v18707_v0, %v11615_v44  ;;  %v18720_v31 = vmax.f32 %v18677_v36, %v18719_v26  ;;  %v18722_v44 = vld [vmem:[#allocation43_spill] sm:$0xff] }
 0x48c   : > { %v18723_v0 = vmax.f32 %v18721_v21, %v18722_v44  ;;  %v18737_v44 = vld [vmem:[#allocation63_spill] sm:$0xff] }
 0x48e   : > { %v11652_v51 = vpop.f32.mrb[100].mxu0 }
 0x48f   : > { %v17905_v23 = vmax.f32 %v18709_v52, %v11652_v51  ;;  %v11654_v5 = vpop.f32.mrb[101].mxu0  ;;  %v11695_v30 = vpop.f32.mrb[100].mxu1  ;;  %v18726_v52 = vmax.f32 %v18724_v9, %v18725_v56 }
 0x490   : > { %v17910_v55 = vmax.f32 %v18712_v2, %v11654_v5  ;;  %v17915_v63 = vmax.f32 %v18715_v35, %v11695_v30  ;;  %v11656_v57 = vpop.f32.mrb[102].mxu0  ;;  %v11697_v19 = vpop.f32.mrb[101].mxu1  ;;  %v18727_v30 = vld [vmem:[#allocation51_spill] sm:$0xff]  ;;  %v18731_v35 = vld [vmem:[#allocation62_spill] sm:$0xff] }
 0x491   : > { %v17920_v17 = vmax.f32 %v18716_v14, %v11656_v57  ;;  %v17925_v12 = vmax.f32 %v18718_v42, %v11697_v19  ;;  %v11658_v39 = vpop.f32.mrb[103].mxu0  ;;  %v11699_v53 = vpop.f32.mrb[102].mxu1  ;;  %v18729_v3 = vmax.f32 %v18727_v30, %v18728_v22  ;;  %v18732_v57 = vmax.f32 %v18730_v37, %v18731_v35  ;;  %v18733_v14 = vld [vmem:[#allocation49_spill] sm:$0xff]  ;;  %v18744_v37 = vld [vmem:[#allocation59_spill] sm:$0xff] }
 0x492   : > { %v17930_v50 = vmax.f32 %v18720_v31, %v11658_v39  ;;  %v17935_v51 = vmax.f32 %v18723_v0, %v11699_v53  ;;  %v11701_v13 = vpop.f32.mrb[103].mxu1  ;;  %v18735_v42 = vmax.f32 %v18733_v14, %v18734_v16  ;;  %v18736_v31 = vmax.f32 %v18688_v18, %v17753_v10  ;;  %v18741_v10 = vld [vmem:[#allocation54_spill] sm:$0xff]  ;;  %v18745_v35 = vld [vmem:[#allocation19_spill] sm:$0xff] }
 0x493   : > { %v17940_v5 = vmax.f32 %v18726_v52, %v11701_v13  ;;  %v18738_v0 = vmax.f32 %v18689_v49, %v18737_v44  ;;  %v18739_v52 = vmax.f32 %v18690_v58, %v17761_v32  ;;  %v18740_v30 = vmax.f32 %v18691_v54, %v17763_v25  ;;  %v18748_v54 = vld [vmem:[#allocation60_spill] sm:$0xff] }
 0x494   : > { %v18747_v16 = vmax.f32 %v17526_v29, %v17786_v48 }
 0x496   : > { %v11738_v15 = vpop.f32.mrb[104].mxu0 }
 0x497   : > { %v17945_v2 = vmax.f32 %v18729_v3, %v11738_v15  ;;  %v11740_v36 = vpop.f32.mrb[105].mxu0  ;;  %v11781_v24 = vpop.f32.mrb[104].mxu1  ;;  %v18742_v3 = vld [vmem:[#allocation18_spill] sm:$0xff] }
 0x498   : > { %v17950_v19 = vmax.f32 %v18732_v57, %v11740_v36  ;;  %v17955_v39 = vmax.f32 %v18735_v42, %v11781_v24  ;;  %v11742_v53 = vpop.f32.mrb[106].mxu0  ;;  %v11783_v26 = vpop.f32.mrb[105].mxu1  ;;  %v18743_v36 = vmax.f32 %v18741_v10, %v18742_v3  ;;  %v18746_v57 = vmax.f32 %v18744_v37, %v18745_v35  ;;  %v18749_v42 = vld [vmem:[#allocation64_spill] sm:$0xff]  ;;  %v18753_v37 = vld [vmem:[#allocation35_spill] sm:$0xff] }
 0x499   : > { %v17960_v21 = vmax.f32 %v18736_v31, %v11742_v53  ;;  %v17965_v13 = vmax.f32 %v18738_v0, %v11783_v26  ;;  %v11744_v9 = vpop.f32.mrb[107].mxu0  ;;  %v11785_v56 = vpop.f32.mrb[106].mxu1  ;;  %v18750_v53 = vmax.f32 %v18748_v54, %v18749_v42 }
 0x49a   : > { %v17970_v15 = vmax.f32 %v18739_v52, %v11744_v9  ;;  %v17975_v22 = vmax.f32 %v18740_v30, %v11785_v56  ;;  %v11787_v18 = vpop.f32.mrb[107].mxu1  ;;  %v18751_v56 = vmax.f32 %v17535_v33, %v17803_v1 }
 0x49b   : > { %v17980_v24 = vmax.f32 %v18743_v36, %v11787_v18 }
 0x49e   : > { %v11824_v49 = vpop.f32.mrb[108].mxu0 }
 0x49f   : > { %v17985_v14 = vmax.f32 %v18746_v57, %v11824_v49  ;;  %v11826_v32 = vpop.f32.mrb[109].mxu0  ;;  %v11867_v58 = vpop.f32.mrb[108].mxu1 }
 0x4a0   : > { %v17990_v25 = vmax.f32 %v18747_v16, %v11826_v32  ;;  %v17995_v26 = vmax.f32 %v18750_v53, %v11867_v58  ;;  %v11828_v31 = vpop.f32.mrb[110].mxu0  ;;  %v11869_v44 = vpop.f32.mrb[109].mxu1 }
 0x4a1   : > { %v18000_v0 = vmax.f32 %v10424_v45, %v11828_v31  ;;  %v18005_v9 = vmax.f32 %v10411_v40, %v11869_v44  ;;  %v11830_v29 = vpop.f32.mrb[111].mxu0  ;;  %v11871_v48 = vpop.f32.mrb[110].mxu1 }
 0x4a2   : > { %v18010_v52 = vmax.f32 %v18751_v56, %v11830_v29  ;;  %v18015_v30 = vmax.f32 %v10426_v41, %v11871_v48  ;;  %v11873_v59 = vpop.f32.mrb[111].mxu1 }
 0x4a3   : > { %v18020_v45 = vmax.f32 %v10427_v28, %v11873_v59 }
 0x506   : > { %v13078_v40 = vpop.f32.mrb[112].mxu0 }
 0x507   : > { %v13420_v7 = vmax.f32 %v17865_v43, %v13078_v40  ;;  %v13080_v11 = vpop.f32.mrb[113].mxu0  ;;  %v13121_v62 = vpop.f32.mrb[112].mxu1 }
 0x508   : > { %v13421_v33 = vmax.f32 %v17870_v46, %v13080_v11  ;;  %v13422_v1 = vmax.f32 %v17875_v60, %v13121_v62  ;;  %v13082_v18 = vpop.f32.mrb[114].mxu0  ;;  %v13123_v10 = vpop.f32.mrb[113].mxu1 }
 0x509   : > { %v13452_v4 = vadd.f32 %v13420_v7, %v18752_v20  ;;  %v13436_v41 = vmax.f32 %v17880_v61, %v13082_v18  ;;  %v13423_v3 = vmax.f32 %v17885_v34, %v13123_v10  ;;  %v13084_v8 = vpop.f32.mrb[115].mxu0  ;;  %v13125_v28 = vpop.f32.mrb[114].mxu1 }
 0x50a   : > { %v13453_v27 = vadd.f32 %v13421_v33, %v18752_v20  ;;  %v13454_v43 = vadd.f32 %v13422_v1, %v18752_v20  ;;  %v13437_v36 = vmax.f32 %v17890_v38, %v13084_v8  ;;  %v13438_v46 = vmax.f32 %v17895_v6, %v13125_v28  ;;  %v13127_v49 = vpop.f32.mrb[115].mxu1 }
 0x50b   : > { %v13484_v60 = vmax.f32 %v13452_v4, 0.0  ;;  %v13468_v35 = vadd.f32 %v13436_v41, %v18753_v37  ;;  %v13455_v57 = vadd.f32 %v13423_v3, %v18752_v20  ;;  %v13439_v61 = vmax.f32 %v17900_v47, %v13127_v49 }
 0x50c   : > { %v13485_v32 = vmax.f32 %v13453_v27, 0.0  ;;  %v13486_v34 = vmax.f32 %v13454_v43, 0.0  ;;  %v13469_v58 = vadd.f32 %v13437_v36, %v18753_v37  ;;  %v13470_v16 = vadd.f32 %v13438_v46, %v18753_v37 }
 0x50d   : > { %v13500_v54 = vmax.f32 %v13468_v35, 0.0  ;;  %v13487_v42 = vmax.f32 %v13455_v57, 0.0  ;;  %v13471_v38 = vadd.f32 %v13439_v61, %v18753_v37 }
 0x50e   : > { %v14235_v6 = vpack.c.bf16 %v13485_v32, %v13484_v60  ;;  %v13501_v53 = vmax.f32 %v13469_v58, 0.0  ;;  %v13502_v31 = vmax.f32 %v13470_v16, 0.0  ;;  %v13164_v44 = vpop.f32.mrb[116].mxu0 }
 0x50f   : > { %v14236_v29 = vpack.c.bf16 %v13487_v42, %v13486_v34  ;;  %v13503_v48 = vmax.f32 %v13471_v38, 0.0  ;;  %v13424_v47 = vmax.f32 %v17905_v23, %v13164_v44  ;;  %v13166_v56 = vpop.f32.mrb[117].mxu0  ;;  %v13207_v59 = vpop.f32.mrb[116].mxu1 }
 0x510   : > { %13612 = vst [vmem:[%s17191_s5 + $0x40] sm:$0xff] %v14235_v6  ;;  %v14243_v40 = vpack.c.bf16 %v13501_v53, %v13500_v54  ;;  %v13425_v7 = vmax.f32 %v17910_v55, %v13166_v56  ;;  %v13426_v11 = vmax.f32 %v17915_v63, %v13207_v59  ;;  %v13168_v62 = vpop.f32.mrb[118].mxu0  ;;  %v13209_v33 = vpop.f32.mrb[117].mxu1 }
 0x511   : > { %13613 = vst [vmem:[%s17191_s5 + $0x48] sm:$0xff] %v14236_v29  ;;  %v14244_v1 = vpack.c.bf16 %v13503_v48, %v13502_v31  ;;  %v13456_v18 = vadd.f32 %v13424_v47, %v18752_v20  ;;  %v13440_v10 = vmax.f32 %v17920_v17, %v13168_v62  ;;  %v13427_v23 = vmax.f32 %v17925_v12, %v13209_v33  ;;  %v13170_v4 = vpop.f32.mrb[119].mxu0  ;;  %v13211_v41 = vpop.f32.mrb[118].mxu1 }
 0x512   : > { %13620 = vst [vmem:[%s17191_s5 + $0xc0] sm:$0xff] %v14243_v40  ;;  %v13457_v3 = vadd.f32 %v13425_v7, %v18752_v20  ;;  %v13458_v55 = vadd.f32 %v13426_v11, %v18752_v20  ;;  %v13441_v63 = vmax.f32 %v17930_v50, %v13170_v4  ;;  %v13442_v8 = vmax.f32 %v17935_v51, %v13211_v41  ;;  %v13213_v28 = vpop.f32.mrb[119].mxu1 }
 0x513   : > { %13621 = vst [vmem:[%s17191_s5 + $0xc8] sm:$0xff] %v14244_v1  ;;  %v13488_v27 = vmax.f32 %v13456_v18, 0.0  ;;  %v13472_v43 = vadd.f32 %v13440_v10, %v18753_v37  ;;  %v13459_v17 = vadd.f32 %v13427_v23, %v18752_v20  ;;  %v13443_v12 = vmax.f32 %v17940_v5, %v13213_v28 }
 0x514   : > { %v13489_v36 = vmax.f32 %v13457_v3, 0.0  ;;  %v13490_v46 = vmax.f32 %v13458_v55, 0.0  ;;  %v13473_v49 = vadd.f32 %v13441_v63, %v18753_v37  ;;  %v13474_v60 = vadd.f32 %v13442_v8, %v18753_v37 }
 0x515   : > { %v13504_v35 = vmax.f32 %v13472_v43, 0.0  ;;  %v13491_v50 = vmax.f32 %v13459_v17, 0.0  ;;  %v13475_v51 = vadd.f32 %v13443_v12, %v18753_v37 }
 0x516   : > { %v14237_v57 = vpack.c.bf16 %v13489_v36, %v13488_v27  ;;  %v13505_v61 = vmax.f32 %v13473_v49, 0.0  ;;  %v13506_v32 = vmax.f32 %v13474_v60, 0.0  ;;  %v13250_v34 = vpop.f32.mrb[120].mxu0 }
 0x517   : > { %v14238_v58 = vpack.c.bf16 %v13491_v50, %v13490_v46  ;;  %v13507_v16 = vmax.f32 %v13475_v51, 0.0  ;;  %v13428_v5 = vmax.f32 %v17945_v2, %v13250_v34  ;;  %v13252_v54 = vpop.f32.mrb[121].mxu0  ;;  %v13293_v42 = vpop.f32.mrb[120].mxu1 }
 0x518   : > { %13614 = vst [vmem:[%s17191_s5 + $0x50] sm:$0xff] %v14237_v57  ;;  %v14245_v38 = vpack.c.bf16 %v13505_v61, %v13504_v35  ;;  %v13429_v6 = vmax.f32 %v17950_v19, %v13252_v54  ;;  %v13430_v53 = vmax.f32 %v17955_v39, %v13293_v42  ;;  %v13254_v31 = vpop.f32.mrb[122].mxu0  ;;  %v13295_v44 = vpop.f32.mrb[121].mxu1 }
 0x519   : > { %13615 = vst [vmem:[%s17191_s5 + $0x58] sm:$0xff] %v14238_v58  ;;  %v14246_v29 = vpack.c.bf16 %v13507_v16, %v13506_v32  ;;  %v13460_v48 = vadd.f32 %v13428_v5, %v18752_v20  ;;  %v13444_v47 = vmax.f32 %v17960_v21, %v13254_v31  ;;  %v13431_v2 = vmax.f32 %v17965_v13, %v13295_v44  ;;  %v13256_v56 = vpop.f32.mrb[123].mxu0  ;;  %v13297_v59 = vpop.f32.mrb[122].mxu1 }
 0x51a   : > { %13622 = vst [vmem:[%s17191_s5 + $0xd0] sm:$0xff] %v14245_v38  ;;  %v13461_v40 = vadd.f32 %v13429_v6, %v18752_v20  ;;  %v13462_v19 = vadd.f32 %v13430_v53, %v18752_v20  ;;  %v13445_v39 = vmax.f32 %v17970_v15, %v13256_v56  ;;  %v13446_v7 = vmax.f32 %v17975_v22, %v13297_v59  ;;  %v13299_v11 = vpop.f32.mrb[123].mxu1 }
 0x51b   : > { %13623 = vst [vmem:[%s17191_s5 + $0xd8] sm:$0xff] %v14246_v29  ;;  %v13492_v62 = vmax.f32 %v13460_v48, 0.0  ;;  %v13476_v33 = vadd.f32 %v13444_v47, %v18753_v37  ;;  %v13463_v21 = vadd.f32 %v13431_v2, %v18752_v20  ;;  %v13447_v13 = vmax.f32 %v17980_v24, %v13299_v11 }
 0x51c   : > { %v13493_v1 = vmax.f32 %v13461_v40, 0.0  ;;  %v13494_v18 = vmax.f32 %v13462_v19, 0.0  ;;  %v13477_v10 = vadd.f32 %v13445_v39, %v18753_v37  ;;  %v13478_v23 = vadd.f32 %v13446_v7, %v18753_v37 }
 0x51d   : > { %v13508_v4 = vmax.f32 %v13476_v33, 0.0  ;;  %v13495_v15 = vmax.f32 %v13463_v21, 0.0  ;;  %v13479_v22 = vadd.f32 %v13447_v13, %v18753_v37 }
 0x51e   : > { %v14239_v41 = vpack.c.bf16 %v13493_v1, %v13492_v62  ;;  %v13509_v3 = vmax.f32 %v13477_v10, 0.0  ;;  %v13510_v55 = vmax.f32 %v13478_v23, 0.0  ;;  %v13336_v63 = vpop.f32.mrb[124].mxu0 }
 0x51f   : > { %v14240_v8 = vpack.c.bf16 %v13495_v15, %v13494_v18  ;;  %v13511_v28 = vmax.f32 %v13479_v22, 0.0  ;;  %v13432_v24 = vmax.f32 %v17985_v14, %v13336_v63  ;;  %v13338_v27 = vpop.f32.mrb[125].mxu0  ;;  %v13379_v43 = vpop.f32.mrb[124].mxu1 }
 0x520   : > { %13616 = vst [vmem:[%s17191_s5 + $0x60] sm:$0xff] %v14239_v41  ;;  %v14247_v17 = vpack.c.bf16 %v13509_v3, %v13508_v4  ;;  %v13433_v12 = vmax.f32 %v17990_v25, %v13338_v27  ;;  %v13434_v36 = vmax.f32 %v17995_v26, %v13379_v43  ;;  %v13340_v46 = vpop.f32.mrb[126].mxu0  ;;  %v13381_v49 = vpop.f32.mrb[125].mxu1 }
 0x521   : > { %13617 = vst [vmem:[%s17191_s5 + $0x68] sm:$0xff] %v14240_v8  ;;  %v14248_v60 = vpack.c.bf16 %v13511_v28, %v13510_v55  ;;  %v13464_v35 = vadd.f32 %v13432_v24, %v18752_v20  ;;  %v13448_v50 = vmax.f32 %v18000_v0, %v13340_v46  ;;  %v13435_v14 = vmax.f32 %v18005_v9, %v13381_v49  ;;  %v13342_v51 = vpop.f32.mrb[127].mxu0  ;;  %v13383_v57 = vpop.f32.mrb[126].mxu1 }
 0x522   : > { %13624 = vst [vmem:[%s17191_s5 + $0xe0] sm:$0xff] %v14247_v17  ;;  %v13465_v61 = vadd.f32 %v13433_v12, %v18752_v20  ;;  %v13466_v25 = vadd.f32 %v13434_v36, %v18752_v20  ;;  %v13449_v26 = vmax.f32 %v18010_v52, %v13342_v51  ;;  %v13450_v32 = vmax.f32 %v18015_v30, %v13383_v57  ;;  %v13385_v34 = vpop.f32.mrb[127].mxu1 }
 0x523   : > { %13625 = vst [vmem:[%s17191_s5 + $0xe8] sm:$0xff] %v14248_v60  ;;  %v13496_v58 = vmax.f32 %v13464_v35, 0.0  ;;  %v13480_v16 = vadd.f32 %v13448_v50, %v18753_v37  ;;  %v13467_v0 = vadd.f32 %v13435_v14, %v18752_v20  ;;  %v13451_v9 = vmax.f32 %v18020_v45, %v13385_v34 }
 0x524   : > { %v13497_v5 = vmax.f32 %v13465_v61, 0.0  ;;  %v13498_v54 = vmax.f32 %v13466_v25, 0.0  ;;  %v13481_v42 = vadd.f32 %v13449_v26, %v18753_v37  ;;  %v13482_v52 = vadd.f32 %v13450_v32, %v18753_v37 }
 0x525   : > { %v13512_v30 = vmax.f32 %v13480_v16, 0.0  ;;  %v13499_v38 = vmax.f32 %v13467_v0, 0.0  ;;  %v13483_v6 = vadd.f32 %v13451_v9, %v18753_v37 }
 0x526   : > { %v14241_v53 = vpack.c.bf16 %v13497_v5, %v13496_v58  ;;  %v13513_v31 = vmax.f32 %v13481_v42, 0.0  ;;  %v13514_v44 = vmax.f32 %v13482_v52, 0.0 }
 0x527   : > { %v14242_v29 = vpack.c.bf16 %v13499_v38, %v13498_v54  ;;  %v13515_v20 = vmax.f32 %v13483_v6, 0.0 }
 0x528   : > { %13618 = vst [vmem:[%s17191_s5 + $0x70] sm:$0xff] %v14241_v53  ;;  %v14249_v48 = vpack.c.bf16 %v13513_v31, %v13512_v30 }
 0x529   : > { %13619 = vst [vmem:[%s17191_s5 + $0x78] sm:$0xff] %v14242_v29  ;;  %v14250_v45 = vpack.c.bf16 %v13515_v20, %v13514_v44 }
 0x52a   : > { %13626 = vst [vmem:[%s17191_s5 + $0xf0] sm:$0xff] %v14249_v48 }
 0x52b   : > { %13627 = vst [vmem:[%s17191_s5 + $0xf8] sm:$0xff] %v14250_v45 }
 0x52c PF: > { %s14_s15 = sadd.s32 1, %s15234_s15  }
 0x52d   : > { %p11_p4 = scmp.ge.s32.totalorder %s14_s15, 4  }
 0x52f   :  { %13 = sbr.rel (!%p11_p4) target bundleno = 1 (0x1), region = 84 }

// kernel: simple_cnn_forward.4
= control target key start
LH: loop header
LB: loop body
LE: loop exit
PB: predicated region body
PF: predicated region fallthrough
CT: control target
= control target key end

     0   :  { %s6631_s15 = smov 0   ;;  %s8745_s0 = inlined_call_operand.vmem [shape: bf16[2,64,1056], index: 0, kind: input, shape index: {}]   ;;  %s8746_s1 = inlined_call_operand.vmem [shape: bf16[2,64,1056], index: 1, kind: input, shape index: {}]   ;;  %s8747_s2 = inlined_call_operand.vmem [shape: bf16[16,32,64], index: 2, kind: input, shape index: {}]   ;;  %s8748_s3 = inlined_call_operand.vmem [shape: f32[32,1], index: 3, kind: input, shape index: {}]   ;;  %s8749_s4 = inlined_call_operand.vmem [shape: bf16[2,32,1024], index: 4, kind: output, shape index: {}]  }
   0x1 LB: > { %s5599_s16 = sadd.s32 4294967295, %s6602_s15   ;;  %p5603_p0 = scmp.ge.s32.totalorder %s6602_s15, 1  ;;  %s6602_s15 = sphi %s6631_s15, %s14_s15  }
   0x2   : > { %p172_p1 = scmp.lt.s32.totalorder %s6602_s15, 3 }
   0x4   : > { %p173_p2 = pnand %p5603_p0, %p172_p1 }
   0x6   : > { %176 = sbr.rel (%p173_p2) target bundleno = 897 (0x381), region = 36 }
   0xd   : > { %p203_p3 = scmp.lt.s32.totalorder %s5599_s16, 1  ;;  %v8752_v0 = vmov 0   ;;  %s6605_s21 = smov 96   ;;  %v6798_v33 = vld [vmem:[%s8747_s2 + $0x10] sm:$0xff]   ;;  %vm466_vm0 = vcmask 523264   ;;  %v6487_v51 = vld [vmem:[%s8747_s2 + $0x18] sm:$0xff]  }
   0xe   : > { %558 = vmatprep.mubr.bf16.mxu1 %v8752_v0  ;;  %505 = vmatprep.mubr.bf16.mxu0 %v8752_v0  ;;  %vm1348_vm1 = vcmask 785408  }
   0xf   : > { %s9310_s16 = smov (!%p203_p3, %s5599_s16), 1  ;;  %6394 = vset.pattern.permute.xlu0 %v8752_v0  ;;  %6395 = vset.pattern.permute.xlu1 %v8752_v0 }
  0x10   : > { %s6383_s17 = smul.u32 288, %s9310_s16  ;;  %s5982_s27 = sshll.u32 %s9310_s16, 7 }
  0x11   : > { %s8666_s16 = scalar_lea.vmem %s8749_s4, %s5982_s27 }
  0x12   : > { %s6649_s20 = scalar_lea.vmem %s8745_s0, %s6383_s17  ;;  %s6700_s24 = scalar_lea.vmem %s8746_s1, %s6383_s17 }
  0x13   : > { %v6652_v1 = vld [vmem:[%s6649_s20 + $0xc] ss:$36 sps:$4 sm:$0xff]   ;;  %v6657_v2 = vld [vmem:[%s6649_s20 + $0x4] ss:$36 sps:$4 sm:$0xff]   ;;  %v6680_v7 = vld [vmem:[%s6649_s20 + $0x54] ss:$36 sps:$4 sm:$0xff]  }
  0x14   : > { %1282 = vrot.lane.b32.xlu1 %v6652_v1, %s6605_s21  ;;  %v6660_v3 = vld [vmem:[%s6649_s20 + $0x10] ss:$36 sps:$4 sm:$0xff]   ;;  %v6663_v4 = vld [vmem:[%s6649_s20 + $0x8] ss:$36 sps:$4 sm:$0xff]   ;;  %1278 = vrot.lane.b32.xlu0 %v6657_v2, %s6605_s21 }
  0x15   : > { %v6670_v5 = vld [vmem:[%s6649_s20 + $0x4c] ss:$36 sps:$4 sm:$0xff]   ;;  %v6673_v6 = vld [vmem:[%s6649_s20] ss:$36 sps:$4 sm:$0xff]   ;;  %v6695_v10 = vld [vmem:[%s6649_s20 + $0x58] ss:$36 sps:$4 sm:$0xff]  }
  0x16   : > { %v6685_v8 = vld [vmem:[%s6649_s20 + $0x50] ss:$36 sps:$4 sm:$0xff]   ;;  %v6690_v9 = vld [vmem:[%s6649_s20 + $0x48] ss:$36 sps:$4 sm:$0xff]   ;;  %v6705_v11 = vld [vmem:[%s6649_s20 + $0x98] ss:$36 sps:$4 sm:$0xff]  }
  0x17   : > { %v6708_v12 = vld [vmem:[%s6649_s20 + $0x94] ss:$36 sps:$4 sm:$0xff]   ;;  %v6713_v13 = vld [vmem:[%s6700_s24 + $0xc] ss:$36 sps:$4 sm:$0xff]   ;;  %v6716_v14 = vld [vmem:[%s6649_s20 + $0xa0] ss:$36 sps:$4 sm:$0xff]  }
  0x18   : > { %1284 = vrot.lane.b32.xlu1 %v6660_v3, %s6605_s21  ;;  %1280 = vrot.lane.b32.xlu0 %v6663_v4, %s6605_s21  ;;  %v6721_v15 = vld [vmem:[%s6649_s20 + $0x9c] ss:$36 sps:$4 sm:$0xff]   ;;  %v6725_v16 = vld [vmem:[%s6700_s24 + $0x8] ss:$36 sps:$4 sm:$0xff]  }
  0x19   : > { %526 = vmatprep.subr.bf16.mxu1 %v6713_v13  ;;  %v6728_v17 = vld [vmem:[%s6700_s24 + $0x4] ss:$36 sps:$4 sm:$0xff]   ;;  %v6737_v19 = vld [vmem:[%s6700_s24 + $0x54] ss:$36 sps:$4 sm:$0xff]   ;;  %v6740_v20 = vld [vmem:[%s6649_s20 + $0xdc] ss:$36 sps:$4 sm:$0xff]  }
  0x1a   : > { %v6731_v18 = vld [vmem:[%s6700_s24] ss:$36 sps:$4 sm:$0xff]   ;;  %527 = vmatpush1.bf16.msra.mxu1 %v6725_v16  ;;  %473 = vmatprep.subr.bf16.mxu0 %v6728_v17  ;;  %v6746_v21 = vld [vmem:[%s6649_s20 + $0x90] ss:$36 sps:$4 sm:$0xff]   ;;  %v6757_v24 = vld [vmem:[%s6700_s24 + $0x48] ss:$36 sps:$4 sm:$0xff]  }
  0x1b   : > { %474 = vmatpush1.bf16.msra.mxu0 %v6731_v18  ;;  %v6750_v22 = vld [vmem:[%s6700_s24 + $0x50] ss:$36 sps:$4 sm:$0xff]   ;;  %528 = vmatprep.subr.bf16.mxu1 %v6737_v19  ;;  %v6763_v25 = vld [vmem:[%s6700_s24 + $0x9c] ss:$36 sps:$4 sm:$0xff]   ;;  %v6766_v26 = vld [vmem:[%s6649_s20 + $0xe4] ss:$36 sps:$4 sm:$0xff]  }
  0x1c   : > { %1296 = vrot.lane.b32.xlu1 %v6670_v5, %s6605_s21  ;;  %1276 = vrot.lane.b32.xlu0 %v6673_v6, %s6605_s21  ;;  %v6754_v23 = vld [vmem:[%s6700_s24 + $0x4c] ss:$36 sps:$4 sm:$0xff]   ;;  %v6772_v27 = vld [vmem:[%s6649_s20 + $0xe0] ss:$36 sps:$4 sm:$0xff]  }
  0x1d   : > { %475 = vmatprep.subr.bf16.mxu0 %v6754_v23  ;;  %v6776_v28 = vld [vmem:[%s6700_s24 + $0x98] ss:$36 sps:$4 sm:$0xff]   ;;  %v6783_v30 = vld [vmem:[%s6700_s24 + $0x90] ss:$36 sps:$4 sm:$0xff]   ;;  %v6789_v31 = vld [vmem:[%s6700_s24 + $0xe4] ss:$36 sps:$4 sm:$0xff]  }
  0x1e   : > { %529 = vmatpush1.bf16.msra.mxu1 %v6750_v22  ;;  %v6780_v29 = vld [vmem:[%s6700_s24 + $0x94] ss:$36 sps:$4 sm:$0xff]   ;;  %v6803_v34 = vld [vmem:[%s6649_s20 + $0xe8] ss:$36 sps:$4 sm:$0xff]   ;;  %v6807_v35 = vld [vmem:[%s6700_s24 + $0xe0] ss:$36 sps:$4 sm:$0xff]  }
  0x1f   : > { %476 = vmatpush1.bf16.msra.mxu0 %v6757_v24  ;;  %530 = vmatprep.subr.bf16.mxu1 %v6763_v25  ;;  %v6792_v32 = vld [vmem:[%s6649_s20 + $0xd8] ss:$36 sps:$4 sm:$0xff]   ;;  %v6839_v43 = vld [vmem:[%s6700_s24 + $0x10] ss:$36 sps:$4 sm:$0xff]   ;;  %v6845_v44 = vld [vmem:[%s6700_s24 + $0x64] ss:$36 sps:$4 sm:$0xff]  }
  0x20   : > { %1300 = vrot.lane.b32.xlu1 %v6680_v7, %s6605_s21  ;;  %1298 = vrot.lane.b32.xlu0 %v6685_v8, %s6605_s21  ;;  %v6811_v36 = vld [vmem:[%s6700_s24 + $0xdc] ss:$36 sps:$4 sm:$0xff]   ;;  %v6832_v41 = vld [vmem:[%s6649_s20 + $0x14] ss:$36 sps:$4 sm:$0xff]  }
  0x21   : > { %477 = vmatprep.subr.bf16.mxu0 %v6780_v29  ;;  %v6814_v37 = vld [vmem:[%s6700_s24 + $0xd8] ss:$36 sps:$4 sm:$0xff]   ;;  %v6848_v45 = vld [vmem:[%s6700_s24 + $0x60] ss:$36 sps:$4 sm:$0xff]   ;;  %v6867_v49 = vld [vmem:[%s6700_s24 + $0xac] ss:$36 sps:$4 sm:$0xff]  }
  0x22   : > { %531 = vmatpush1.bf16.msra.mxu1 %v6776_v28  ;;  %v6819_v38 = vld [vmem:[%s6649_s20 + $0x18] ss:$36 sps:$4 sm:$0xff]   ;;  %v6431_v47 = vld [vmem:[%s6649_s20 + $0x20] ss:$36 sps:$4 sm:$0xff]   ;;  %v6884_v53 = vld [vmem:[%s6700_s24 + $0xa8] ss:$36 sps:$4 sm:$0xff]  }
  0x23   : > { %478 = vmatpush1.bf16.msra.mxu0 %v6783_v30  ;;  %532 = vmatprep.subr.bf16.mxu1 %v6789_v31  ;;  %v6823_v39 = vld [vmem:[%s6700_s24 + $0x1c] ss:$36 sps:$4 sm:$0xff]   ;;  %v6836_v42 = vld [vmem:[%s6700_s24 + $0x14] ss:$36 sps:$4 sm:$0xff]   ;;  %v6889_v54 = vld [vmem:[%s6700_s24 + $0xa4] ss:$36 sps:$4 sm:$0xff]  }
  0x24   : > { %1294 = vrot.lane.b32.xlu1 %v6690_v9, %s6605_s21  ;;  %1302 = vrot.lane.b32.xlu0 %v6695_v10, %s6605_s21  ;;  %v6827_v40 = vld [vmem:[%s6700_s24 + $0x18] ss:$36 sps:$4 sm:$0xff]   ;;  %v6880_v52 = vld [vmem:[%s6649_s20 + $0x60] ss:$36 sps:$4 sm:$0xff]  }
  0x25   : > { %479 = vmatprep.subr.bf16.mxu0 %v6811_v36  ;;  %v6854_v46 = vld [vmem:[%s6700_s24 + $0x5c] ss:$36 sps:$4 sm:$0xff]   ;;  %v6900_v57 = vld [vmem:[%s6700_s24 + $0xf4] ss:$36 sps:$4 sm:$0xff]   ;;  %v6905_v58 = vld [vmem:[%s6700_s24 + $0xec] ss:$36 sps:$4 sm:$0xff]  }
  0x26   : > { %533 = vmatpush1.bf16.msra.mxu1 %v6807_v35  ;;  %v6864_v48 = vld [vmem:[%s6700_s24 + $0x58] ss:$36 sps:$4 sm:$0xff]   ;;  %v6897_v56 = vld [vmem:[%s6700_s24 + $0xa0] ss:$36 sps:$4 sm:$0xff]   ;;  %8940 = vst [vmem:[#allocation2_spill] sm:$0xff] %v6900_v57 }
  0x27   : > { %480 = vmatpush1.bf16.msra.mxu0 %v6814_v37  ;;  %632 = vmatprep.subr.bf16.mxu1 %v6823_v39  ;;  %v6870_v50 = vld [vmem:[%s6649_s20 + $0x1c] ss:$36 sps:$4 sm:$0xff]   ;;  %v6911_v59 = vld [vmem:[%s6700_s24 + $0xf0] ss:$36 sps:$4 sm:$0xff]   ;;  %v6436_v60 = vld [vmem:[%s6649_s20 + $0x68] ss:$36 sps:$4 sm:$0xff]  }
  0x28   : > { %1316 = vrot.lane.b32.xlu1 %v6705_v11, %s6605_s21  ;;  %1314 = vrot.lane.b32.xlu0 %v6708_v12, %s6605_s21  ;;  %v6893_v55 = vld [vmem:[%s6649_s20 + $0x5c] ss:$36 sps:$4 sm:$0xff]   ;;  %v6919_v61 = vld [vmem:[%s6649_s20 + $0x64] ss:$36 sps:$4 sm:$0xff]  }
  0x29   : > { %5648 = vmatmul.mubr.msk.bf16.vlgmr.msra.gmra.mrb[0].mxu1 %vm466_vm0, %v6798_v33  ;;  %579 = vmatprep.subr.bf16.mxu0 %v6836_v42  ;;  %v6923_v62 = vld [vmem:[%s6700_s24 + $0xe8] ss:$36 sps:$4 sm:$0xff]  }
  0x2a   : > { %633 = vmatpush1.bf16.msra.mxu1 %v6827_v40  ;;  %5646 = vmatmul.mubr.msk.bf16.vlgmr.msra.gmra.mrb[0].mxu0 %vm466_vm0, %v6798_v33  ;;  %v6930_v63 = vld [vmem:[%s6649_s20 + $0xa8] ss:$36 sps:$4 sm:$0xff]  }
  0x2b   : > { %580 = vmatpush1.bf16.msra.mxu0 %v6839_v43  ;;  %634 = vmatprep.subr.bf16.mxu1 %v6845_v44 }
  0x2c   : > { %1320 = vrot.lane.b32.xlu1 %v6716_v14, %s6605_s21  ;;  %1318 = vrot.lane.b32.xlu0 %v6721_v15, %s6605_s21 }
  0x2d   : > { %581 = vmatprep.subr.bf16.mxu0 %v6854_v46  ;;  %568 = vmatprep.mubr.bf16.mxu1 %v8752_v0 }
  0x2e   : > { %635 = vmatpush1.bf16.msra.mxu1 %v6848_v45  ;;  %515 = vmatprep.mubr.bf16.mxu0 %v8752_v0 }
  0x2f   : > { %636 = vmatprep.subr.bf16.mxu1 %v6867_v49  ;;  %582 = vmatpush1.bf16.msra.mxu0 %v6864_v48 }
  0x30   : > { %1332 = vrot.lane.b32.xlu1 %v6740_v20, %s6605_s21  ;;  %1312 = vrot.lane.b32.xlu0 %v6746_v21, %s6605_s21 }
  0x31   : > { %5649 = vmatmul.mubr.msk.bf16.gmra.mrb[4].mxu1 %vm466_vm0, %v6487_v51  ;;  %583 = vmatprep.subr.bf16.mxu0 %v6889_v54 }
  0x32   : > { %637 = vmatpush1.bf16.msra.mxu1 %v6884_v53  ;;  %5647 = vmatmul.mubr.msk.bf16.gmra.mrb[4].mxu0 %vm466_vm0, %v6487_v51 }
  0x33   : > { %584 = vmatpush1.bf16.msra.mxu0 %v6897_v56  ;;  %638 = vmatprep.subr.bf16.mxu1 %v6900_v57  ;;  %v6449_v57 = vld [vmem:[%s6649_s20 + $0xb0] ss:$36 sps:$4 sm:$0xff]  }
  0x34   : > { %1336 = vrot.lane.b32.xlu1 %v6766_v26, %s6605_s21  ;;  %1334 = vrot.lane.b32.xlu0 %v6772_v27, %s6605_s21 }
  0x35   : > { %585 = vmatprep.subr.bf16.mxu0 %v6905_v58  ;;  %664 = vmatprep.mubr.bf16.mxu1 %v8752_v0 }
  0x36   : > { %639 = vmatpush1.bf16.msra.mxu1 %v6911_v59  ;;  %611 = vmatprep.mubr.bf16.mxu0 %v8752_v0 }
  0x37   : > { %914 = vmatprep.subr.bf16.mxu1 %v6652_v1  ;;  %586 = vmatpush1.bf16.msra.mxu0 %v6923_v62  ;;  %v6954_v1 = vld [vmem:[%s6649_s20 + $0xac] ss:$36 sps:$4 sm:$0xff]  }
  0x38   : > { %1330 = vrot.lane.b32.xlu1 %v6792_v32, %s6605_s21  ;;  %1338 = vrot.lane.b32.xlu0 %v6803_v34, %s6605_s21 }
  0x39   : > { %5652 = vmatmul.mubr.msk.bf16.vlgmr.msra.gmra.mrb[8].mxu1 %vm466_vm0, %v6798_v33  ;;  %861 = vmatprep.subr.bf16.mxu0 %v6657_v2  ;;  %v6968_v2 = vld [vmem:[%s6649_s20 + $0xec] ss:$36 sps:$4 sm:$0xff]  }
  0x3a   : > { %915 = vmatpush1.bf16.msra.mxu1 %v6663_v4  ;;  %5650 = vmatmul.mubr.msk.bf16.vlgmr.msra.gmra.mrb[8].mxu0 %vm466_vm0, %v6798_v33  ;;  %v6961_v4 = vld [vmem:[%s6649_s20 + $0xf0] ss:$36 sps:$4 sm:$0xff]  }
  0x3b   : > { %862 = vmatpush1.bf16.msra.mxu0 %v6673_v6  ;;  %916 = vmatprep.subr.bf16.mxu1 %v6680_v7  ;;  %v6498_v6 = vld [vmem:[%s8747_s2] sm:$0xff]   ;;  %v6990_v7 = vld [vmem:[%s6649_s20 + $0xf4] ss:$36 sps:$4 sm:$0xff]  }
  0x3c   : > { %1288 = vrot.lane.b32.xlu1 %v6819_v38, %s6605_s21  ;;  %1286 = vrot.lane.b32.xlu0 %v6832_v41, %s6605_s21 }
  0x3d   : > { %863 = vmatprep.subr.bf16.mxu0 %v6670_v5  ;;  %674 = vmatprep.mubr.bf16.mxu1 %v8752_v0  ;;  %v6466_v5 = vld [vmem:[%s6649_s20 + $0xf8] ss:$36 sps:$4 sm:$0xff]  }
  0x3e   : > { %917 = vmatpush1.bf16.msra.mxu1 %v6685_v8  ;;  %621 = vmatprep.mubr.bf16.mxu0 %v8752_v0  ;;  %v6499_v8 = vld [vmem:[%s8747_s2 + $0x8] sm:$0xff]  }
  0x3f   : > { %918 = vmatprep.subr.bf16.mxu1 %v6721_v15  ;;  %864 = vmatpush1.bf16.msra.mxu0 %v6690_v9 }
  0x40   : > { %1292 = vrot.lane.b32.xlu1 %v6431_v47, %s6605_s21  ;;  %1290 = vrot.lane.b32.xlu0 %v6870_v50, %s6605_s21  ;;  %v6937_v47 = vld [vmem:[%s6649_s20 + $0xa4] ss:$36 sps:$4 sm:$0xff]  }
  0x41   : > { %5653 = vmatmul.mubr.msk.bf16.gmra.mrb[12].mxu1 %vm466_vm0, %v6487_v51  ;;  %865 = vmatprep.subr.bf16.mxu0 %v6708_v12 }
  0x42   : > { %919 = vmatpush1.bf16.msra.mxu1 %v6705_v11  ;;  %5651 = vmatmul.mubr.msk.bf16.gmra.mrb[12].mxu0 %vm466_vm0, %v6487_v51 }
  0x43   : > { %866 = vmatpush1.bf16.msra.mxu0 %v6746_v21  ;;  %920 = vmatprep.subr.bf16.mxu1 %v6766_v26 }
  0x44   : > { %1306 = vrot.lane.b32.xlu1 %v6880_v52, %s6605_s21  ;;  %1304 = vrot.lane.b32.xlu0 %v6893_v55, %s6605_s21 }
  0x45   : > { %867 = vmatprep.subr.bf16.mxu0 %v6740_v20  ;;  %946 = vmatprep.mubr.bf16.mxu1 %v8752_v0 }
  0x46   : > { %921 = vmatpush1.bf16.msra.mxu1 %v6772_v27  ;;  %893 = vmatprep.mubr.bf16.mxu0 %v8752_v0 }
  0x47   : > { %1020 = vmatprep.subr.bf16.mxu1 %v6870_v50  ;;  %868 = vmatpush1.bf16.msra.mxu0 %v6792_v32  ;;  %v6503_v32 = vld [vmem:[%s6700_s24 + $0xf8] ss:$36 sps:$4 sm:$0xff]   ;;  %v8941_v50 = vld [vmem:[#allocation2_spill] sm:$0xff] }
  0x48   : > { %1310 = vrot.lane.b32.xlu1 %v6436_v60, %s6605_s21  ;;  %1308 = vrot.lane.b32.xlu0 %v6919_v61, %s6605_s21 }
  0x49   : > { %5690 = vmatmul.mubr.msk.bf16.vlgmr.msra.gmra.mrb[0].mxu1 %vm466_vm0, %v6498_v6  ;;  %967 = vmatprep.subr.bf16.mxu0 %v6832_v41 }
  0x4a   : > { %1021 = vmatpush1.bf16.msra.mxu1 %v6819_v38  ;;  %5688 = vmatmul.mubr.msk.bf16.vlgmr.msra.gmra.mrb[0].mxu0 %vm466_vm0, %v6498_v6 }
  0x4b   : > { %968 = vmatpush1.bf16.msra.mxu0 %v6660_v3  ;;  %1022 = vmatprep.subr.bf16.mxu1 %v6919_v61  ;;  %v6500_v3 = vld [vmem:[%s6700_s24 + $0x20] ss:$36 sps:$4 sm:$0xff]  }
  0x4c   : > { %1324 = vrot.lane.b32.xlu1 %v6930_v63, %s6605_s21  ;;  %1322 = vrot.lane.b32.xlu0 %v6937_v47, %s6605_s21 }
  0x4d   : > { %969 = vmatprep.subr.bf16.mxu0 %v6893_v55  ;;  %956 = vmatprep.mubr.bf16.mxu1 %v8752_v0 }
  0x4e   : > { %1023 = vmatpush1.bf16.msra.mxu1 %v6880_v52  ;;  %903 = vmatprep.mubr.bf16.mxu0 %v8752_v0 }
  0x4f   : > { %1024 = vmatprep.subr.bf16.mxu1 %v6954_v1  ;;  %970 = vmatpush1.bf16.msra.mxu0 %v6695_v10 }
  0x50   : > { %1328 = vrot.lane.b32.xlu1 %v6449_v57, %s6605_s21  ;;  %1326 = vrot.lane.b32.xlu0 %v6954_v1, %s6605_s21 }
  0x51   : > { %5691 = vmatmul.mubr.msk.bf16.gmra.mrb[4].mxu1 %vm466_vm0, %v6499_v8  ;;  %971 = vmatprep.subr.bf16.mxu0 %v6937_v47 }
  0x52   : > { %1025 = vmatpush1.bf16.msra.mxu1 %v6930_v63  ;;  %5689 = vmatmul.mubr.msk.bf16.gmra.mrb[4].mxu0 %vm466_vm0, %v6499_v8 }
  0x53   : > { %1026 = vmatprep.subr.bf16.mxu1 %v6990_v7  ;;  %972 = vmatpush1.bf16.msra.mxu0 %v6716_v14  ;;  %v6501_v14 = vld [vmem:[%s6700_s24 + $0x68] ss:$36 sps:$4 sm:$0xff]  }
  0x54   : > { %1342 = vrot.lane.b32.xlu1 %v6961_v4, %s6605_s21  ;;  %1340 = vrot.lane.b32.xlu0 %v6968_v2, %s6605_s21 }
  0x55   : > { %973 = vmatprep.subr.bf16.mxu0 %v6968_v2  ;;  %1052 = vmatprep.mubr.bf16.mxu1 %v8752_v0 }
  0x56   : > { %1027 = vmatpush1.bf16.msra.mxu1 %v6961_v4  ;;  %999 = vmatprep.mubr.bf16.mxu0 %v8752_v0 }
  0x57   : > { %974 = vmatpush1.bf16.msra.mxu0 %v6803_v34 }
  0x58   : > { %1346 = vrot.lane.b32.xlu1 %v6466_v5, %s6605_s21  ;;  %1344 = vrot.lane.b32.xlu0 %v6990_v7, %s6605_s21 }
  0x59   : > { %5694 = vmatmul.mubr.msk.bf16.vlgmr.msra.gmra.mrb[8].mxu1 %vm466_vm0, %v6498_v6 }
  0x5a   : > { %1062 = vmatprep.mubr.bf16.mxu1 %v8752_v0  ;;  %5692 = vmatmul.mubr.msk.bf16.vlgmr.msra.gmra.mrb[8].mxu0 %vm466_vm0, %v6498_v6 }
  0x5b   : > { %1009 = vmatprep.mubr.bf16.mxu0 %v8752_v0 }
  0x5c   : > { %1870 = vrot.lane.b32.xlu1 %v6725_v16, %s6605_s21  ;;  %1868 = vrot.lane.b32.xlu0 %v6728_v17, %s6605_s21 }
  0x60   : > { %1874 = vrot.lane.b32.xlu1 %v6839_v43, %s6605_s21  ;;  %1872 = vrot.lane.b32.xlu0 %v6713_v13, %s6605_s21 }
  0x61   : > { %5695 = vmatmul.mubr.msk.bf16.gmra.mrb[12].mxu1 %vm466_vm0, %v6499_v8 }
  0x62   : > { %1504 = vmatprep.mubr.bf16.mxu1 %v8752_v0  ;;  %5693 = vmatmul.mubr.msk.bf16.gmra.mrb[12].mxu0 %vm466_vm0, %v6499_v8 }
  0x63   : > { %1451 = vmatprep.mubr.bf16.mxu0 %v8752_v0 }
  0x64   : > { %1886 = vrot.lane.b32.xlu1 %v6754_v23, %s6605_s21  ;;  %1866 = vrot.lane.b32.xlu0 %v6731_v18, %s6605_s21 }
  0x68   : > { %1890 = vrot.lane.b32.xlu1 %v6737_v19, %s6605_s21  ;;  %1888 = vrot.lane.b32.xlu0 %v6750_v22, %s6605_s21  ;;  %v6502_v22 = vld [vmem:[%s6700_s24 + $0xb0] ss:$36 sps:$4 sm:$0xff]  }
  0x6c   : > { %1884 = vrot.lane.b32.xlu1 %v6757_v24, %s6605_s21  ;;  %1892 = vrot.lane.b32.xlu0 %v6864_v48, %s6605_s21 }
  0x70   : > { %1906 = vrot.lane.b32.xlu1 %v6776_v28, %s6605_s21  ;;  %1904 = vrot.lane.b32.xlu0 %v6780_v29, %s6605_s21 }
  0x74   : > { %1910 = vrot.lane.b32.xlu1 %v6897_v56, %s6605_s21  ;;  %1908 = vrot.lane.b32.xlu0 %v6763_v25, %s6605_s21 }
  0x78   : > { %1922 = vrot.lane.b32.xlu1 %v6811_v36, %s6605_s21  ;;  %1902 = vrot.lane.b32.xlu0 %v6783_v30, %s6605_s21 }
  0x7c   : > { %1926 = vrot.lane.b32.xlu1 %v6789_v31, %s6605_s21  ;;  %1924 = vrot.lane.b32.xlu0 %v6807_v35, %s6605_s21 }
  0x80   : > { %1920 = vrot.lane.b32.xlu1 %v6814_v37, %s6605_s21  ;;  %1928 = vrot.lane.b32.xlu0 %v6923_v62, %s6605_s21 }
  0x84   : > { %1878 = vrot.lane.b32.xlu1 %v6827_v40, %s6605_s21  ;;  %1876 = vrot.lane.b32.xlu0 %v6836_v42, %s6605_s21 }
  0x86   : > { %v1283_v9 = vpop.permute.xlu1 %1282  ;;  %v1279_v10 = vpop.permute.xlu0 %1278 }
  0x88   : > { %1882 = vrot.lane.b32.xlu1 %v6500_v3, %s6605_s21  ;;  %1880 = vrot.lane.b32.xlu0 %v6823_v39, %s6605_s21 }
  0x8a   : > { %v7082_v11 = vpop.permute.xlu1 %1284  ;;  %v1281_v13 = vpop.permute.xlu0 %1280 }
  0x8b   : > { %v7086_v12 = vsel %vm1348_vm1, %v1283_v9, %v7082_v11  ;;  %v7093_v15 = vsel %vm1348_vm1, %v1279_v10, %v1281_v13  ;;  %v7096_v16 = vsel %vm1348_vm1, %v1281_v13, %v1283_v9  ;;  %v7167_v9 = vld [vmem:[%s8747_s2 + $0x20] sm:$0xff]  }
  0x8c   : > { %1896 = vrot.lane.b32.xlu1 %v6848_v45, %s6605_s21  ;;  %1472 = vmatprep.subr.bf16.mxu1 %v7086_v12 }
  0x8d   : > { %1894 = vrot.lane.b32.xlu0 %v6854_v46, %s6605_s21  ;;  %1419 = vmatprep.subr.bf16.mxu0 %v7093_v15 }
  0x8e   : > { %v1297_v17 = vpop.permute.xlu1 %1296  ;;  %1473 = vmatpush1.bf16.msra.mxu1 %v7096_v16  ;;  %v1277_v18 = vpop.permute.xlu0 %1276 }
  0x8f   : > { %v7104_v19 = vsel %vm1348_vm1, %v1277_v18, %v1279_v10 }
  0x90   : > { %1900 = vrot.lane.b32.xlu1 %v6501_v14, %s6605_s21  ;;  %1420 = vmatpush1.bf16.msra.mxu0 %v7104_v19 }
  0x91   : > { %1898 = vrot.lane.b32.xlu0 %v6845_v44, %s6605_s21 }
  0x92   : > { %v1301_v20 = vpop.permute.xlu1 %1300  ;;  %v1299_v21 = vpop.permute.xlu0 %1298 }
  0x93   : > { %v7113_v23 = vsel %vm1348_vm1, %v1297_v17, %v1299_v21  ;;  %v7127_v28 = vsel %vm1348_vm1, %v1299_v21, %v1301_v20 }
  0x94   : > { %1914 = vrot.lane.b32.xlu1 %v6884_v53, %s6605_s21  ;;  %1421 = vmatprep.subr.bf16.mxu0 %v7113_v23 }
  0x95   : > { %1912 = vrot.lane.b32.xlu0 %v6889_v54, %s6605_s21 }
  0x96   : > { %v1295_v24 = vpop.permute.xlu1 %1294  ;;  %v1303_v26 = vpop.permute.xlu0 %1302 }
  0x97   : > { %v7119_v25 = vsel %vm1348_vm1, %v1295_v24, %v1297_v17  ;;  %v7124_v27 = vsel %vm1348_vm1, %v1301_v20, %v1303_v26 }
  0x98   : > { %1918 = vrot.lane.b32.xlu1 %v6502_v22, %s6605_s21  ;;  %1422 = vmatpush1.bf16.msra.mxu0 %v7119_v25 }
  0x99   : > { %1916 = vrot.lane.b32.xlu0 %v6867_v49, %s6605_s21  ;;  %1474 = vmatprep.subr.bf16.mxu1 %v7124_v27 }
  0x9a   : > { %v1317_v30 = vpop.permute.xlu1 %1316  ;;  %1475 = vmatpush1.bf16.msra.mxu1 %v7127_v28  ;;  %v1315_v31 = vpop.permute.xlu0 %1314 }
  0x9b   : > { %v7137_v33 = vsel %vm1348_vm1, %v1315_v31, %v1317_v30 }
  0x9c   : > { %1932 = vrot.lane.b32.xlu1 %v6911_v59, %s6605_s21  ;;  %1423 = vmatprep.subr.bf16.mxu0 %v7137_v33 }
  0x9d   : > { %1930 = vrot.lane.b32.xlu0 %v6905_v58, %s6605_s21 }
  0x9e   : > { %v1321_v34 = vpop.permute.xlu1 %1320  ;;  %v1319_v35 = vpop.permute.xlu0 %1318 }
  0x9f   : > { %v7144_v38 = vsel %vm1348_vm1, %v1317_v30, %v1319_v35  ;;  %v7147_v41 = vsel %vm1348_vm1, %v1319_v35, %v1321_v34 }
  0xa0   : > { %1936 = vrot.lane.b32.xlu1 %v6503_v32, %s6605_s21  ;;  %1476 = vmatprep.subr.bf16.mxu1 %v7147_v41 }
  0xa1   : > { %1934 = vrot.lane.b32.xlu0 %v8941_v50, %s6605_s21  ;;  %1477 = vmatpush1.bf16.msra.mxu1 %v7144_v38 }
  0xa2   : > { %v1333_v51 = vpop.permute.xlu1 %1332  ;;  %v1313_v52 = vpop.permute.xlu0 %1312 }
  0xa3   : > { %v7154_v57 = vsel %vm1348_vm1, %v1313_v52, %v1315_v31  ;;  %v7202_v31 = vld [vmem:[%s8747_s2 + $0x28] sm:$0xff]  }
  0xa4   : > { %1424 = vmatpush1.bf16.msra.mxu0 %v7154_v57 }
  0xa6   : > { %v1337_v60 = vpop.permute.xlu1 %1336  ;;  %v1335_v5 = vpop.permute.xlu0 %1334 }
  0xa7   : > { %v7158_v6 = vsel %vm1348_vm1, %v1333_v51, %v1335_v5  ;;  %v7174_v14 = vsel %vm1348_vm1, %v1335_v5, %v1337_v60 }
  0xa8   : > { %1425 = vmatprep.subr.bf16.mxu0 %v7158_v6  ;;  %8942 = vst [vmem:[#allocation2_spill] sm:$0xff] %v7174_v14 }
  0xaa   : > { %v1331_v8 = vpop.permute.xlu1 %1330  ;;  %v1339_v10 = vpop.permute.xlu0 %1338 }
  0xab   : > { %v7162_v3 = vsel %vm1348_vm1, %v1331_v8, %v1333_v51  ;;  %v7171_v13 = vsel %vm1348_vm1, %v1337_v60, %v1339_v10 }
  0xac   : > { %1426 = vmatpush1.bf16.msra.mxu0 %v7162_v3  ;;  %1478 = vmatprep.subr.bf16.mxu1 %v7171_v13 }
  0xad   : > { %1479 = vmatpush1.bf16.msra.mxu1 %v7174_v14 }
  0xae   : > { %v1289_v17 = vpop.permute.xlu1 %1288  ;;  %v1287_v18 = vpop.permute.xlu0 %1286 }
  0xaf   : > { %5738 = vmatmul.mubr.msk.bf16.vlgmr.msra.gmra.mrb[0].mxu0 %vm466_vm0, %v7167_v9  ;;  %v7183_v20 = vsel %vm1348_vm1, %v7082_v11, %v1287_v18  ;;  %v7186_v21 = vsel %vm1348_vm1, %v1287_v18, %v1289_v17 }
  0xb0   : > { %1461 = vmatprep.mubr.bf16.mxu0 %v8752_v0  ;;  %8943 = vst [vmem:[#allocation3_spill] sm:$0xff] %v7183_v20  ;;  %1525 = vmatprep.subr.bf16.mxu0 %v7186_v21 }
  0xb1   : > { %5740 = vmatmul.mubr.msk.bf16.vlgmr.msra.gmra.mrb[0].mxu1 %vm466_vm0, %v7167_v9  ;;  %1526 = vmatpush1.bf16.msra.mxu0 %v7183_v20 }
  0xb2   : > { %v1293_v22 = vpop.permute.xlu1 %1292  ;;  %1514 = vmatprep.mubr.bf16.mxu1 %v8752_v0  ;;  %v1291_v24 = vpop.permute.xlu0 %1290 }
  0xb3   : > { %v7194_v30 = vsel %vm1348_vm1, %v1289_v17, %v1291_v24  ;;  %v7197_v11 = vsel %vm1348_vm1, %v1291_v24, %v1293_v22 }
  0xb4   : > { %8944 = vst [vmem:[#allocation4_spill] sm:$0xff] %v7194_v30  ;;  %8945 = vst [vmem:[#allocation5_spill] sm:$0xff] %v7197_v11  ;;  %1578 = vmatprep.subr.bf16.mxu1 %v7197_v11 }
  0xb5   : > { %1579 = vmatpush1.bf16.msra.mxu1 %v7194_v30 }
  0xb6   : > { %v1307_v32 = vpop.permute.xlu1 %1306  ;;  %v1305_v35 = vpop.permute.xlu0 %1304 }
  0xb7   : > { %5739 = vmatmul.mubr.msk.bf16.gmra.mrb[4].mxu0 %vm466_vm0, %v7202_v31  ;;  %v7210_v51 = vsel %vm1348_vm1, %v1303_v26, %v1305_v35  ;;  %v7213_v52 = vsel %vm1348_vm1, %v1305_v35, %v1307_v32 }
  0xb8   : > { %1557 = vmatprep.mubr.bf16.mxu0 %v8752_v0  ;;  %8946 = vst [vmem:[#allocation6_spill] sm:$0xff] %v7210_v51  ;;  %8947 = vst [vmem:[#allocation7_spill] sm:$0xff] %v7213_v52  ;;  %1527 = vmatprep.subr.bf16.mxu0 %v7213_v52 }
  0xb9   : > { %5741 = vmatmul.mubr.msk.bf16.gmra.mrb[4].mxu1 %vm466_vm0, %v7202_v31  ;;  %1528 = vmatpush1.bf16.msra.mxu0 %v7210_v51 }
  0xba   : > { %v1311_v60 = vpop.permute.xlu1 %1310  ;;  %1610 = vmatprep.mubr.bf16.mxu1 %v8752_v0  ;;  %v1309_v5 = vpop.permute.xlu0 %1308 }
  0xbb   : > { %v7221_v8 = vsel %vm1348_vm1, %v1307_v32, %v1309_v5  ;;  %v7224_v26 = vsel %vm1348_vm1, %v1309_v5, %v1311_v60 }
  0xbc   : > { %8948 = vst [vmem:[#allocation8_spill] sm:$0xff] %v7221_v8  ;;  %8949 = vst [vmem:[#allocation9_spill] sm:$0xff] %v7224_v26  ;;  %1580 = vmatprep.subr.bf16.mxu1 %v7224_v26 }
  0xbd   : > { %1581 = vmatpush1.bf16.msra.mxu1 %v7221_v8 }
  0xbe   : > { %v1325_v17 = vpop.permute.xlu1 %1324  ;;  %v1323_v18 = vpop.permute.xlu0 %1322 }
  0xbf   : > { %v7229_v22 = vsel %vm1348_vm1, %v1321_v34, %v1323_v18  ;;  %v7232_v24 = vsel %vm1348_vm1, %v1323_v18, %v1325_v17 }
  0xc0   : > { %8950 = vst [vmem:[#allocation10_spill] sm:$0xff] %v7229_v22  ;;  %8951 = vst [vmem:[#allocation11_spill] sm:$0xff] %v7232_v24  ;;  %1529 = vmatprep.subr.bf16.mxu0 %v7232_v24 }
  0xc1   : > { %1530 = vmatpush1.bf16.msra.mxu0 %v7229_v22 }
  0xc2   : > { %v1329_v35 = vpop.permute.xlu1 %1328  ;;  %v1327_v32 = vpop.permute.xlu0 %1326 }
  0xc3   : > { %v7237_v60 = vsel %vm1348_vm1, %v1325_v17, %v1327_v32  ;;  %v7240_v5 = vsel %vm1348_vm1, %v1327_v32, %v1329_v35 }
  0xc4   : > { %8952 = vst [vmem:[#allocation12_spill] sm:$0xff] %v7237_v60  ;;  %8953 = vst [vmem:[#allocation13_spill] sm:$0xff] %v7240_v5  ;;  %1582 = vmatprep.subr.bf16.mxu1 %v7240_v5 }
  0xc5   : > { %1583 = vmatpush1.bf16.msra.mxu1 %v7237_v60 }
  0xc6   : > { %v1343_v0 = vpop.permute.xlu1 %1342  ;;  %v1341_v34 = vpop.permute.xlu0 %1340 }
  0xc7   : > { %v7245_v18 = vsel %vm1348_vm1, %v1339_v10, %v1341_v34  ;;  %v7248_v8 = vsel %vm1348_vm1, %v1341_v34, %v1343_v0  ;;  %v8958_v10 = vmov 0  }
  0xc8   : > { %8954 = vst [vmem:[#allocation14_spill] sm:$0xff] %v7245_v18  ;;  %8955 = vst [vmem:[#allocation15_spill] sm:$0xff] %v7248_v8  ;;  %1531 = vmatprep.subr.bf16.mxu0 %v7248_v8 }
  0xc9   : > { %1532 = vmatpush1.bf16.msra.mxu0 %v7245_v18 }
  0xca   : > { %v1347_v22 = vpop.permute.xlu1 %1346  ;;  %v1345_v17 = vpop.permute.xlu0 %1344 }
  0xcb   : > { %v7253_v35 = vsel %vm1348_vm1, %v1343_v0, %v1345_v17  ;;  %v7256_v32 = vsel %vm1348_vm1, %v1345_v17, %v1347_v22 }
  0xcc   : > { %8956 = vst [vmem:[#allocation16_spill] sm:$0xff] %v7253_v35  ;;  %8957 = vst [vmem:[#allocation17_spill] sm:$0xff] %v7256_v32  ;;  %1584 = vmatprep.subr.bf16.mxu1 %v7256_v32  ;;  %5742 = vmatmul.mubr.msk.bf16.vlgmr.msra.gmra.mrb[8].mxu0 %vm466_vm0, %v7167_v9 }
  0xcd   : > { %1585 = vmatpush1.bf16.msra.mxu1 %v7253_v35  ;;  %1567 = vmatprep.mubr.bf16.mxu0 %v8958_v10 }
  0xce   : > { %v1871_v60 = vpop.permute.xlu1 %1870  ;;  %v1869_v34 = vpop.permute.xlu0 %1868 }
  0xcf   : > { %v7264_v18 = vsel %vm1348_vm1, %v1869_v34, %v1871_v60 }
  0xd0   : > { %8959 = vst [vmem:[#allocation18_spill] sm:$0xff] %v7264_v18  ;;  %2008 = vmatprep.subr.bf16.mxu0 %v7264_v18  ;;  %5744 = vmatmul.mubr.msk.bf16.vlgmr.msra.gmra.mrb[8].mxu1 %vm466_vm0, %v7167_v9 }
  0xd1   : > { %1620 = vmatprep.mubr.bf16.mxu1 %v8958_v10 }
  0xd2   : > { %v1875_v0 = vpop.permute.xlu1 %1874  ;;  %v1873_v22 = vpop.permute.xlu0 %1872 }
  0xd3   : > { %v7271_v17 = vsel %vm1348_vm1, %v1871_v60, %v1873_v22  ;;  %v7274_v35 = vsel %vm1348_vm1, %v1873_v22, %v1875_v0 }
  0xd4   : > { %8960 = vst [vmem:[#allocation19_spill] sm:$0xff] %v7271_v17  ;;  %8961 = vst [vmem:[#allocation20_spill] sm:$0xff] %v7274_v35  ;;  %2061 = vmatprep.subr.bf16.mxu1 %v7274_v35  ;;  %5743 = vmatmul.mubr.msk.bf16.gmra.mrb[12].mxu0 %vm466_vm0, %v7202_v31 }
  0xd5   : > { %2062 = vmatpush1.bf16.msra.mxu1 %v7271_v17  ;;  %2040 = vmatprep.mubr.bf16.mxu0 %v8958_v10 }
  0xd6   : > { %v1887_v32 = vpop.permute.xlu1 %1886  ;;  %v1867_v9 = vpop.permute.xlu0 %1866 }
  0xd7   : > { %v7282_v18 = vsel %vm1348_vm1, %v1867_v9, %v1869_v34 }
  0xd8   : > { %8962 = vst [vmem:[#allocation21_spill] sm:$0xff] %v7282_v18  ;;  %2009 = vmatpush1.bf16.msra.mxu0 %v7282_v18  ;;  %5745 = vmatmul.mubr.msk.bf16.gmra.mrb[12].mxu1 %vm466_vm0, %v7202_v31 }
  0xd9   : > { %2093 = vmatprep.mubr.bf16.mxu1 %v8958_v10 }
  0xda   : > { %v1891_v60 = vpop.permute.xlu1 %1890  ;;  %v1889_v22 = vpop.permute.xlu0 %1888 }
  0xdb   : > { %v7289_v35 = vsel %vm1348_vm1, %v1887_v32, %v1889_v22  ;;  %v7300_v31 = vsel %vm1348_vm1, %v1889_v22, %v1891_v60 }
  0xdc   : > { %8963 = vst [vmem:[#allocation22_spill] sm:$0xff] %v7289_v35  ;;  %2010 = vmatprep.subr.bf16.mxu0 %v7289_v35  ;;  %8966 = vst [vmem:[#allocation25_spill] sm:$0xff] %v7300_v31 }
  0xde   : > { %v1885_v17 = vpop.permute.xlu1 %1884  ;;  %v1893_v34 = vpop.permute.xlu0 %1892 }
  0xdf   : > { %v7293_v5 = vsel %vm1348_vm1, %v1885_v17, %v1887_v32  ;;  %v7297_v9 = vsel %vm1348_vm1, %v1891_v60, %v1893_v34 }
  0xe0   : > { %8964 = vst [vmem:[#allocation23_spill] sm:$0xff] %v7293_v5  ;;  %2011 = vmatpush1.bf16.msra.mxu0 %v7293_v5  ;;  %8965 = vst [vmem:[#allocation24_spill] sm:$0xff] %v7297_v9  ;;  %2063 = vmatprep.subr.bf16.mxu1 %v7297_v9 }
  0xe1   : > { %2064 = vmatpush1.bf16.msra.mxu1 %v7300_v31 }
  0xe2   : > { %v1907_v18 = vpop.permute.xlu1 %1906  ;;  %v1905_v8 = vpop.permute.xlu0 %1904 }
  0xe3   : > { %v7305_v35 = vsel %vm1348_vm1, %v1905_v8, %v1907_v18 }
  0xe4   : > { %8967 = vst [vmem:[#allocation26_spill] sm:$0xff] %v7305_v35  ;;  %2012 = vmatprep.subr.bf16.mxu0 %v7305_v35 }
  0xe6   : > { %v1911_v32 = vpop.permute.xlu1 %1910  ;;  %v1909_v17 = vpop.permute.xlu0 %1908 }
  0xe7   : > { %v7309_v5 = vsel %vm1348_vm1, %v1907_v18, %v1909_v17  ;;  %v7312_v26 = vsel %vm1348_vm1, %v1909_v17, %v1911_v32 }
  0xe8   : > { %8968 = vst [vmem:[#allocation27_spill] sm:$0xff] %v7309_v5  ;;  %8969 = vst [vmem:[#allocation28_spill] sm:$0xff] %v7312_v26  ;;  %2065 = vmatprep.subr.bf16.mxu1 %v7312_v26 }
  0xe9   : > { %2066 = vmatpush1.bf16.msra.mxu1 %v7309_v5  ;;  %v7330_v5 = vld [vmem:[%s8747_s2 + $0x30] sm:$0xff]  }
  0xea   : > { %v1923_v60 = vpop.permute.xlu1 %1922  ;;  %v1903_v22 = vpop.permute.xlu0 %1902 }
  0xeb   : > { %v7317_v31 = vsel %vm1348_vm1, %v1903_v22, %v1905_v8 }
  0xec   : > { %8970 = vst [vmem:[#allocation29_spill] sm:$0xff] %v7317_v31  ;;  %2013 = vmatpush1.bf16.msra.mxu0 %v7317_v31 }
  0xee   : > { %v1927_v9 = vpop.permute.xlu1 %1926  ;;  %v1925_v35 = vpop.permute.xlu0 %1924 }
  0xef   : > { %v7321_v24 = vsel %vm1348_vm1, %v1923_v60, %v1925_v35  ;;  %v7337_v26 = vsel %vm1348_vm1, %v1925_v35, %v1927_v9 }
  0xf0   : > { %8971 = vst [vmem:[#allocation30_spill] sm:$0xff] %v7321_v24  ;;  %2014 = vmatprep.subr.bf16.mxu0 %v7321_v24  ;;  %8974 = vst [vmem:[#allocation33_spill] sm:$0xff] %v7337_v26 }
  0xf2   : > { %v1921_v18 = vpop.permute.xlu1 %1920  ;;  %v1929_v8 = vpop.permute.xlu0 %1928 }
  0xf3   : > { %v7325_v17 = vsel %vm1348_vm1, %v1921_v18, %v1923_v60  ;;  %v7334_v22 = vsel %vm1348_vm1, %v1927_v9, %v1929_v8  ;;  %v7357_v9 = vld [vmem:[%s8747_s2 + $0x38] sm:$0xff]  }
  0xf4   : > { %8972 = vst [vmem:[#allocation31_spill] sm:$0xff] %v7325_v17  ;;  %2015 = vmatpush1.bf16.msra.mxu0 %v7325_v17  ;;  %8973 = vst [vmem:[#allocation32_spill] sm:$0xff] %v7334_v22  ;;  %2067 = vmatprep.subr.bf16.mxu1 %v7334_v22 }
  0xf5   : > { %2068 = vmatpush1.bf16.msra.mxu1 %v7337_v26 }
  0xf6   : > { %v1879_v24 = vpop.permute.xlu1 %1878  ;;  %v1877_v60 = vpop.permute.xlu0 %1876 }
  0xf7   : > { %5788 = vmatmul.mubr.msk.bf16.vlgmr.msra.gmra.mrb[0].mxu0 %vm466_vm0, %v7330_v5  ;;  %v7345_v18 = vsel %vm1348_vm1, %v1875_v0, %v1877_v60  ;;  %v7348_v17 = vsel %vm1348_vm1, %v1877_v60, %v1879_v24 }
  0xf8   : > { %2050 = vmatprep.mubr.bf16.mxu0 %v8958_v10  ;;  %8975 = vst [vmem:[#allocation34_spill] sm:$0xff] %v7345_v18  ;;  %8976 = vst [vmem:[#allocation35_spill] sm:$0xff] %v7348_v17  ;;  %5790 = vmatmul.mubr.msk.bf16.vlgmr.msra.gmra.mrb[0].mxu1 %vm466_vm0, %v7330_v5 }
  0xf9   : > { %2114 = vmatprep.subr.bf16.mxu0 %v7348_v17  ;;  %2103 = vmatprep.mubr.bf16.mxu1 %v8958_v10 }
  0xfa   : > { %v1883_v35 = vpop.permute.xlu1 %1882  ;;  %2115 = vmatpush1.bf16.msra.mxu0 %v7345_v18  ;;  %v1881_v0 = vpop.permute.xlu0 %1880 }
  0xfb   : > { %v7361_v26 = vsel %vm1348_vm1, %v1879_v24, %v1881_v0  ;;  %v7364_v60 = vsel %vm1348_vm1, %v1881_v0, %v1883_v35 }
  0xfc   : > { %8977 = vst [vmem:[#allocation36_spill] sm:$0xff] %v7361_v26  ;;  %8978 = vst [vmem:[#allocation37_spill] sm:$0xff] %v7364_v60  ;;  %2167 = vmatprep.subr.bf16.mxu1 %v7364_v60 }
  0xfd   : > { %2168 = vmatpush1.bf16.msra.mxu1 %v7361_v26 }
  0xfe   : > { %v1897_v17 = vpop.permute.xlu1 %1896 }
  0xff   : > { %5789 = vmatmul.mubr.msk.bf16.gmra.mrb[4].mxu0 %vm466_vm0, %v7357_v9  ;;  %v1895_v18 = vpop.permute.xlu0 %1894 }
 0x100   : > { %2146 = vmatprep.mubr.bf16.mxu0 %v8958_v10  ;;  %v7372_v22 = vsel %vm1348_vm1, %v1893_v34, %v1895_v18  ;;  %v7375_v24 = vsel %vm1348_vm1, %v1895_v18, %v1897_v17  ;;  %5791 = vmatmul.mubr.msk.bf16.gmra.mrb[4].mxu1 %vm466_vm0, %v7357_v9 }
 0x101   : > { %8979 = vst [vmem:[#allocation38_spill] sm:$0xff] %v7372_v22  ;;  %8980 = vst [vmem:[#allocation39_spill] sm:$0xff] %v7375_v24  ;;  %2116 = vmatprep.subr.bf16.mxu0 %v7375_v24  ;;  %2199 = vmatprep.mubr.bf16.mxu1 %v8958_v10 }
 0x102   : > { %v1901_v35 = vpop.permute.xlu1 %1900  ;;  %2117 = vmatpush1.bf16.msra.mxu0 %v7372_v22 }
 0x103   : > { %v1899_v0 = vpop.permute.xlu0 %1898 }
 0x104   : > { %v7383_v26 = vsel %vm1348_vm1, %v1897_v17, %v1899_v0  ;;  %v7386_v34 = vsel %vm1348_vm1, %v1899_v0, %v1901_v35 }
 0x105   : > { %8981 = vst [vmem:[#allocation40_spill] sm:$0xff] %v7383_v26  ;;  %8982 = vst [vmem:[#allocation41_spill] sm:$0xff] %v7386_v34  ;;  %2169 = vmatprep.subr.bf16.mxu1 %v7386_v34 }
 0x106   : > { %v1915_v18 = vpop.permute.xlu1 %1914  ;;  %2170 = vmatpush1.bf16.msra.mxu1 %v7383_v26 }
 0x107   : > { %v1913_v60 = vpop.permute.xlu0 %1912 }
 0x108   : > { %v7391_v24 = vsel %vm1348_vm1, %v1911_v32, %v1913_v60  ;;  %v7394_v22 = vsel %vm1348_vm1, %v1913_v60, %v1915_v18 }
 0x109   : > { %8983 = vst [vmem:[#allocation42_spill] sm:$0xff] %v7391_v24  ;;  %8984 = vst [vmem:[#allocation43_spill] sm:$0xff] %v7394_v22  ;;  %2118 = vmatprep.subr.bf16.mxu0 %v7394_v22 }
 0x10a   : > { %v1919_v17 = vpop.permute.xlu1 %1918  ;;  %2119 = vmatpush1.bf16.msra.mxu0 %v7391_v24 }
 0x10b   : > { %v1917_v35 = vpop.permute.xlu0 %1916 }
 0x10c   : > { %v7399_v0 = vsel %vm1348_vm1, %v1915_v18, %v1917_v35  ;;  %v7402_v34 = vsel %vm1348_vm1, %v1917_v35, %v1919_v17  ;;  %v7415_v35 = vld [vmem:[%s6700_s24 + $0x4] ss:$36 sps:$4 sm:$0xff]  }
 0x10d   : > { %8985 = vst [vmem:[#allocation44_spill] sm:$0xff] %v7399_v0  ;;  %8986 = vst [vmem:[#allocation45_spill] sm:$0xff] %v7402_v34  ;;  %2171 = vmatprep.subr.bf16.mxu1 %v7402_v34 }
 0x10e   : > { %v1933_v32 = vpop.permute.xlu1 %1932  ;;  %2172 = vmatpush1.bf16.msra.mxu1 %v7399_v0  ;;  %8987 = vst [vmem:[#allocation46_spill] sm:$0xff] %v7415_v35 }
 0x10f   : > { %v1931_v60 = vpop.permute.xlu0 %1930 }
 0x110   : > { %v7407_v26 = vsel %vm1348_vm1, %v1929_v8, %v1931_v60  ;;  %v7410_v24 = vsel %vm1348_vm1, %v1931_v60, %v1933_v32  ;;  %v7429_v60 = vld [vmem:[%s6700_s24] ss:$36 sps:$4 sm:$0xff]  }
 0x111   : > { %2120 = vmatprep.subr.bf16.mxu0 %v7410_v24 }
 0x112   : > { %v1937_v18 = vpop.permute.xlu1 %1936  ;;  %2121 = vmatpush1.bf16.msra.mxu0 %v7407_v26 }
 0x113   : > { %v1935_v17 = vpop.permute.xlu0 %1934  ;;  %2278 = vmatprep.subr.bf16.mxu0 %v7415_v35  ;;  %v7433_v35 = vld [vmem:[%s6700_s24 + $0x4c] ss:$36 sps:$4 sm:$0xff]  }
 0x114   : > { %v7419_v0 = vsel %vm1348_vm1, %v1933_v32, %v1935_v17  ;;  %v7422_v8 = vsel %vm1348_vm1, %v1935_v17, %v1937_v18  ;;  %8990 = vst [vmem:[#allocation49_spill] sm:$0xff] %v7433_v35  ;;  %v7437_v32 = vld [vmem:[%s6700_s24 + $0xc] ss:$36 sps:$4 sm:$0xff]  }
 0x115   : > { %8988 = vst [vmem:[#allocation47_spill] sm:$0xff] %v7419_v0  ;;  %8989 = vst [vmem:[#allocation48_spill] sm:$0xff] %v7422_v8  ;;  %5792 = vmatmul.mubr.msk.bf16.vlgmr.msra.gmra.mrb[8].mxu0 %vm466_vm0, %v7330_v5  ;;  %2173 = vmatprep.subr.bf16.mxu1 %v7422_v8  ;;  %v7444_v18 = vld [vmem:[%s6700_s24 + $0x48] ss:$36 sps:$4 sm:$0xff]  }
 0x116   : > { %2174 = vmatpush1.bf16.msra.mxu1 %v7419_v0  ;;  %2279 = vmatpush1.bf16.msra.mxu0 %v7429_v60  ;;  %8991 = vst [vmem:[#allocation50_spill] sm:$0xff] %v7437_v32  ;;  %8992 = vst [vmem:[#allocation51_spill] sm:$0xff] %v7444_v18  ;;  %v7448_v17 = vld [vmem:[%s6700_s24 + $0x8] ss:$36 sps:$4 sm:$0xff]  }
 0x117   : > { %2280 = vmatprep.subr.bf16.mxu0 %v7433_v35  ;;  %2331 = vmatprep.subr.bf16.mxu1 %v7437_v32  ;;  %v7453_v35 = vld [vmem:[%s6700_s24 + $0x54] ss:$36 sps:$4 sm:$0xff]  }
 0x118   : > { %2156 = vmatprep.mubr.bf16.mxu0 %v8958_v10  ;;  %8993 = vst [vmem:[#allocation52_spill] sm:$0xff] %v7453_v35 }
 0x119   : > { %5794 = vmatmul.mubr.msk.bf16.vlgmr.msra.gmra.mrb[8].mxu1 %vm466_vm0, %v7330_v5  ;;  %v7460_v5 = vld [vmem:[%s6700_s24 + $0x90] ss:$36 sps:$4 sm:$0xff]  }
 0x11a   : > { %2281 = vmatpush1.bf16.msra.mxu0 %v7444_v18  ;;  %2332 = vmatpush1.bf16.msra.mxu1 %v7448_v17  ;;  %8994 = vst [vmem:[#allocation53_spill] sm:$0xff] %v7460_v5  ;;  %v7464_v18 = vld [vmem:[%s6700_s24 + $0x50] ss:$36 sps:$4 sm:$0xff]  }
 0x11b   : > { %2282 = vmatprep.subr.bf16.mxu0 %v6780_v29  ;;  %2333 = vmatprep.subr.bf16.mxu1 %v7453_v35  ;;  %v7469_v29 = vld [vmem:[%s6700_s24 + $0x9c] ss:$36 sps:$4 sm:$0xff]  }
 0x11c   : > { %2209 = vmatprep.mubr.bf16.mxu1 %v8958_v10  ;;  %v7480_v35 = vld [vmem:[%s6700_s24 + $0x98] ss:$36 sps:$4 sm:$0xff]  }
 0x11d   : > { %5793 = vmatmul.mubr.msk.bf16.gmra.mrb[12].mxu0 %vm466_vm0, %v7357_v9  ;;  %8995 = vst [vmem:[#allocation54_spill] sm:$0xff] %v7480_v35 }
 0x11e   : > { %2283 = vmatpush1.bf16.msra.mxu0 %v7460_v5  ;;  %2334 = vmatpush1.bf16.msra.mxu1 %v7464_v18  ;;  %v6508_v5 = vld [vmem:[%s8747_s2 + $0x50] sm:$0xff]  }
 0x11f   : > { %2284 = vmatprep.subr.bf16.mxu0 %v6811_v36  ;;  %2335 = vmatprep.subr.bf16.mxu1 %v7469_v29  ;;  %v7484_v36 = vld [vmem:[%s6700_s24 + $0xe4] ss:$36 sps:$4 sm:$0xff]  }
 0x120   : > { %2310 = vmatprep.mubr.bf16.mxu0 %v8958_v10  ;;  %8996 = vst [vmem:[#allocation55_spill] sm:$0xff] %v7484_v36 }
 0x121   : > { %5795 = vmatmul.mubr.msk.bf16.gmra.mrb[12].mxu1 %vm466_vm0, %v7357_v9  ;;  %v7491_v9 = vld [vmem:[%s6700_s24 + $0xe0] ss:$36 sps:$4 sm:$0xff]  }
 0x122   : > { %2285 = vmatpush1.bf16.msra.mxu0 %v6814_v37  ;;  %2336 = vmatpush1.bf16.msra.mxu1 %v7480_v35  ;;  %8997 = vst [vmem:[#allocation56_spill] sm:$0xff] %v7491_v9  ;;  %v6509_v37 = vld [vmem:[%s8747_s2 + $0x58] sm:$0xff]  }
 0x123   : > { %2337 = vmatprep.subr.bf16.mxu1 %v7484_v36  ;;  %2384 = vmatprep.subr.bf16.mxu0 %v6836_v42  ;;  %v7529_v42 = vld [vmem:[%s6649_s20 + $0x4c] ss:$36 sps:$4 sm:$0xff]  }
 0x124   : > { %2363 = vmatprep.mubr.bf16.mxu1 %v8958_v10 }
 0x125   : > { %5806 = vmatmul.mubr.msk.bf16.vlgmr.msra.gmra.mrb[16].mxu0 %vm466_vm0, %v6508_v5 }
 0x126   : > { %2338 = vmatpush1.bf16.msra.mxu1 %v7491_v9  ;;  %2385 = vmatpush1.bf16.msra.mxu0 %v6839_v43  ;;  %v7533_v43 = vld [vmem:[%s6649_s20 + $0xc] ss:$36 sps:$4 sm:$0xff]  }
 0x127   : > { %2386 = vmatprep.subr.bf16.mxu0 %v6854_v46  ;;  %2437 = vmatprep.subr.bf16.mxu1 %v6823_v39  ;;  %v7518_v39 = vld [vmem:[%s6649_s20 + $0x4] ss:$36 sps:$4 sm:$0xff]   ;;  %v7547_v46 = vld [vmem:[%s6649_s20 + $0x94] ss:$36 sps:$4 sm:$0xff]  }
 0x128   : > { %2320 = vmatprep.mubr.bf16.mxu0 %v8958_v10  ;;  %8998 = vst [vmem:[#allocation57_spill] sm:$0xff] %v7547_v46 }
 0x129   : > { %5808 = vmatmul.mubr.msk.bf16.vlgmr.msra.gmra.mrb[16].mxu1 %vm466_vm0, %v6508_v5 }
 0x12a   : > { %2387 = vmatpush1.bf16.msra.mxu0 %v6864_v48  ;;  %2438 = vmatpush1.bf16.msra.mxu1 %v6827_v40  ;;  %v7525_v40 = vld [vmem:[%s6649_s20] ss:$36 sps:$4 sm:$0xff]   ;;  %v7551_v48 = vld [vmem:[%s6649_s20 + $0x54] ss:$36 sps:$4 sm:$0xff]  }
 0x12b   : > { %2388 = vmatprep.subr.bf16.mxu0 %v6889_v54  ;;  %2439 = vmatprep.subr.bf16.mxu1 %v6845_v44  ;;  %v7539_v44 = vld [vmem:[%s6649_s20 + $0x48] ss:$36 sps:$4 sm:$0xff]   ;;  %8999 = vst [vmem:[#allocation58_spill] sm:$0xff] %v7551_v48  ;;  %v7565_v54 = vld [vmem:[%s6649_s20 + $0xdc] ss:$36 sps:$4 sm:$0xff]  }
 0x12c   : > { %2373 = vmatprep.mubr.bf16.mxu1 %v8958_v10  ;;  %9001 = vst [vmem:[#allocation60_spill] sm:$0xff] %v7565_v54 }
 0x12d   : > { %5807 = vmatmul.mubr.msk.bf16.gmra.mrb[20].mxu0 %vm466_vm0, %v6509_v37 }
 0x12e   : > { %2389 = vmatpush1.bf16.msra.mxu0 %v6897_v56  ;;  %2440 = vmatpush1.bf16.msra.mxu1 %v6848_v45  ;;  %v7543_v45 = vld [vmem:[%s6649_s20 + $0x8] ss:$36 sps:$4 sm:$0xff]   ;;  %v7569_v56 = vld [vmem:[%s6649_s20 + $0x9c] ss:$36 sps:$4 sm:$0xff]  }
 0x12f   : > { %2390 = vmatprep.subr.bf16.mxu0 %v6905_v58  ;;  %2441 = vmatprep.subr.bf16.mxu1 %v6867_v49  ;;  %v7557_v49 = vld [vmem:[%s6649_s20 + $0x90] ss:$36 sps:$4 sm:$0xff]   ;;  %9002 = vst [vmem:[#allocation61_spill] sm:$0xff] %v7569_v56  ;;  %v6510_v58 = vld [vmem:[%s8747_s2 + $0x40] sm:$0xff]  }
 0x130   : > { %2416 = vmatprep.mubr.bf16.mxu0 %v8958_v10  ;;  %9000 = vst [vmem:[#allocation59_spill] sm:$0xff] %v7557_v49 }
 0x131   : > { %5809 = vmatmul.mubr.msk.bf16.gmra.mrb[20].mxu1 %vm466_vm0, %v6509_v37 }
 0x132   : > { %2391 = vmatpush1.bf16.msra.mxu0 %v6923_v62  ;;  %2442 = vmatpush1.bf16.msra.mxu1 %v6884_v53  ;;  %v7561_v53 = vld [vmem:[%s6649_s20 + $0x50] ss:$36 sps:$4 sm:$0xff]   ;;  %v7582_v62 = vld [vmem:[%s6649_s20 + $0x98] ss:$36 sps:$4 sm:$0xff]  }
 0x133   : > { %2443 = vmatprep.subr.bf16.mxu1 %v8941_v50  ;;  %2506 = vmatprep.subr.bf16.mxu0 %v7518_v39  ;;  %9004 = vst [vmem:[#allocation63_spill] sm:$0xff] %v7582_v62  ;;  %v7586_v50 = vld [vmem:[%s6649_s20 + $0xe4] ss:$36 sps:$4 sm:$0xff]  }
 0x134   : > { %2469 = vmatprep.mubr.bf16.mxu1 %v8958_v10  ;;  %9005 = vst [vmem:[#allocation64_spill] sm:$0xff] %v7586_v50 }
 0x135   : > { %5810 = vmatmul.mubr.msk.bf16.vlgmr.msra.gmra.mrb[24].mxu0 %vm466_vm0, %v6508_v5 }
 0x136   : > { %2444 = vmatpush1.bf16.msra.mxu1 %v6911_v59  ;;  %2507 = vmatpush1.bf16.msra.mxu0 %v7525_v40  ;;  %v7578_v59 = vld [vmem:[%s6649_s20 + $0xd8] ss:$36 sps:$4 sm:$0xff]  }
 0x137   : > { %2508 = vmatprep.subr.bf16.mxu0 %v7529_v42  ;;  %2559 = vmatprep.subr.bf16.mxu1 %v7533_v43  ;;  %9003 = vst [vmem:[#allocation62_spill] sm:$0xff] %v7578_v59 }
 0x138   : > { %2426 = vmatprep.mubr.bf16.mxu0 %v8958_v10 }
 0x139   : > { %5812 = vmatmul.mubr.msk.bf16.vlgmr.msra.gmra.mrb[24].mxu1 %vm466_vm0, %v6508_v5  ;;  %v7590_v5 = vld [vmem:[%s6649_s20 + $0x14] ss:$36 sps:$4 sm:$0xff]  }
 0x13a   : > { %2509 = vmatpush1.bf16.msra.mxu0 %v7539_v44  ;;  %2560 = vmatpush1.bf16.msra.mxu1 %v7543_v45  ;;  %9006 = vst [vmem:[#allocation65_spill] sm:$0xff] %v7590_v5 }
 0x13b   : > { %2510 = vmatprep.subr.bf16.mxu0 %v7547_v46  ;;  %2561 = vmatprep.subr.bf16.mxu1 %v7551_v48 }
 0x13c   : > { %2479 = vmatprep.mubr.bf16.mxu1 %v8958_v10 }
 0x13d   : > { %5811 = vmatmul.mubr.msk.bf16.gmra.mrb[28].mxu0 %vm466_vm0, %v6509_v37 }
 0x13e   : > { %2511 = vmatpush1.bf16.msra.mxu0 %v7557_v49  ;;  %2562 = vmatpush1.bf16.msra.mxu1 %v7561_v53 }
 0x13f   : > { %2512 = vmatprep.subr.bf16.mxu0 %v7565_v54  ;;  %2563 = vmatprep.subr.bf16.mxu1 %v7569_v56 }
 0x140   : > { %2538 = vmatprep.mubr.bf16.mxu0 %v8958_v10 }
 0x141   : > { %5813 = vmatmul.mubr.msk.bf16.gmra.mrb[28].mxu1 %vm466_vm0, %v6509_v37  ;;  %v7596_v37 = vld [vmem:[%s6649_s20 + $0xe0] ss:$36 sps:$4 sm:$0xff]  }
 0x142   : > { %2513 = vmatpush1.bf16.msra.mxu0 %v7578_v59  ;;  %2564 = vmatpush1.bf16.msra.mxu1 %v7582_v62  ;;  %9007 = vst [vmem:[#allocation66_spill] sm:$0xff] %v7596_v37  ;;  %v7600_v59 = vld [vmem:[%s6649_s20 + $0x10] ss:$36 sps:$4 sm:$0xff]  }
 0x143   : > { %2565 = vmatprep.subr.bf16.mxu1 %v7586_v50  ;;  %2612 = vmatprep.subr.bf16.mxu0 %v7590_v5  ;;  %9008 = vst [vmem:[#allocation67_spill] sm:$0xff] %v7600_v59  ;;  %v7605_v50 = vld [vmem:[%s6649_s20 + $0x1c] ss:$36 sps:$4 sm:$0xff]  }
 0x144   : > { %2591 = vmatprep.mubr.bf16.mxu1 %v8958_v10  ;;  %9009 = vst [vmem:[#allocation68_spill] sm:$0xff] %v7605_v50  ;;  %v7614_v5 = vld [vmem:[%s6649_s20 + $0x58] ss:$36 sps:$4 sm:$0xff]  }
 0x145   : > { %5816 = vmatmul.mubr.msk.bf16.vlgmr.msra.gmra.mrb[16].mxu0 %vm466_vm0, %v6510_v58 }
 0x146   : > { %2566 = vmatpush1.bf16.msra.mxu1 %v7596_v37  ;;  %2613 = vmatpush1.bf16.msra.mxu0 %v7600_v59  ;;  %v6511_v37 = vld [vmem:[%s8747_s2 + $0x48] sm:$0xff]   ;;  %v7618_v59 = vld [vmem:[%s6649_s20 + $0x18] ss:$36 sps:$4 sm:$0xff]  }
 0x147   : > { %2614 = vmatprep.subr.bf16.mxu0 %v6893_v55  ;;  %2665 = vmatprep.subr.bf16.mxu1 %v7605_v50  ;;  %9010 = vst [vmem:[#allocation69_spill] sm:$0xff] %v7618_v59  ;;  %v7626_v55 = vld [vmem:[%s6649_s20 + $0xa0] ss:$36 sps:$4 sm:$0xff]  }
 0x148   : > { %2548 = vmatprep.mubr.bf16.mxu0 %v8958_v10  ;;  %v7630_v50 = vld [vmem:[%s6649_s20 + $0x60] ss:$36 sps:$4 sm:$0xff]  }
 0x149   : > { %5818 = vmatmul.mubr.msk.bf16.vlgmr.msra.gmra.mrb[16].mxu1 %vm466_vm0, %v6510_v58  ;;  %9011 = vst [vmem:[#allocation70_spill] sm:$0xff] %v7630_v50 }
 0x14a   : > { %2615 = vmatpush1.bf16.msra.mxu0 %v7614_v5  ;;  %2666 = vmatpush1.bf16.msra.mxu1 %v7618_v59 }
 0x14b   : > { %2616 = vmatprep.subr.bf16.mxu0 %v6937_v47  ;;  %2667 = vmatprep.subr.bf16.mxu1 %v6919_v61  ;;  %v7638_v61 = vld [vmem:[%s6649_s20 + $0xe8] ss:$36 sps:$4 sm:$0xff]  }
 0x14c   : > { %2601 = vmatprep.mubr.bf16.mxu1 %v8958_v10  ;;  %v6513_v47 = vld [vmem:[%s8747_s2 + $0x68] sm:$0xff]  }
 0x14d   : > { %5817 = vmatmul.mubr.msk.bf16.gmra.mrb[20].mxu0 %vm466_vm0, %v6511_v37 }
 0x14e   : > { %2617 = vmatpush1.bf16.msra.mxu0 %v7626_v55  ;;  %2668 = vmatpush1.bf16.msra.mxu1 %v7630_v50 }
 0x14f   : > { %2618 = vmatprep.subr.bf16.mxu0 %v6968_v2  ;;  %2669 = vmatprep.subr.bf16.mxu1 %v6954_v1  ;;  %v9012_v1 = vld [vmem:[#allocation11_spill] sm:$0xff]  ;;  %v9014_v2 = vld [vmem:[#allocation10_spill] sm:$0xff] }
 0x150   : > { %2644 = vmatprep.mubr.bf16.mxu0 %v8958_v10 }
 0x151   : > { %5819 = vmatmul.mubr.msk.bf16.gmra.mrb[20].mxu1 %vm466_vm0, %v6511_v37 }
 0x152   : > { %2619 = vmatpush1.bf16.msra.mxu0 %v7638_v61  ;;  %2670 = vmatpush1.bf16.msra.mxu1 %v6930_v63  ;;  %v6512_v63 = vld [vmem:[%s8747_s2 + $0x60] sm:$0xff]  }
 0x153   : > { %2739 = vmatprep.subr.bf16.mxu0 %v7093_v15  ;;  %2671 = vmatprep.subr.bf16.mxu1 %v6990_v7  ;;  %v9015_v7 = vld [vmem:[#allocation8_spill] sm:$0xff] }
 0x154   : > { %2697 = vmatprep.mubr.bf16.mxu1 %v8958_v10 }
 0x155   : > { %5820 = vmatmul.mubr.msk.bf16.vlgmr.msra.gmra.mrb[24].mxu0 %vm466_vm0, %v6510_v58 }
 0x156   : > { %2672 = vmatpush1.bf16.msra.mxu1 %v6961_v4  ;;  %2740 = vmatpush1.bf16.msra.mxu0 %v7104_v19  ;;  %v9013_v4 = vld [vmem:[#allocation9_spill] sm:$0xff] }
 0x157   : > { %2741 = vmatprep.subr.bf16.mxu0 %v7113_v23  ;;  %2792 = vmatprep.subr.bf16.mxu1 %v7086_v12 }
 0x158   : > { %2654 = vmatprep.mubr.bf16.mxu0 %v8958_v10 }
 0x159   : > { %5822 = vmatmul.mubr.msk.bf16.vlgmr.msra.gmra.mrb[24].mxu1 %vm466_vm0, %v6510_v58  ;;  %v9016_v58 = vld [vmem:[#allocation15_spill] sm:$0xff] }
 0x15a   : > { %2742 = vmatpush1.bf16.msra.mxu0 %v7119_v25  ;;  %2793 = vmatpush1.bf16.msra.mxu1 %v7096_v16 }
 0x15b   : > { %2743 = vmatprep.subr.bf16.mxu0 %v7137_v33  ;;  %2794 = vmatprep.subr.bf16.mxu1 %v7124_v27 }
 0x15c   : > { %2707 = vmatprep.mubr.bf16.mxu1 %v8958_v10 }
 0x15d   : > { %5821 = vmatmul.mubr.msk.bf16.gmra.mrb[28].mxu0 %vm466_vm0, %v6511_v37 }
 0x15e   : > { %2744 = vmatpush1.bf16.msra.mxu0 %v7154_v57  ;;  %2795 = vmatpush1.bf16.msra.mxu1 %v7127_v28 }
 0x15f   : > { %2745 = vmatprep.subr.bf16.mxu0 %v7158_v6  ;;  %2796 = vmatprep.subr.bf16.mxu1 %v7147_v41 }
 0x160   : > { %2771 = vmatprep.mubr.bf16.mxu0 %v8958_v10 }
 0x161   : > { %5823 = vmatmul.mubr.msk.bf16.gmra.mrb[28].mxu1 %vm466_vm0, %v6511_v37  ;;  %v9017_v37 = vld [vmem:[#allocation13_spill] sm:$0xff] }
 0x162   : > { %2746 = vmatpush1.bf16.msra.mxu0 %v7162_v3  ;;  %2797 = vmatpush1.bf16.msra.mxu1 %v7144_v38 }
 0x163   : > { %2798 = vmatprep.subr.bf16.mxu1 %v7171_v13  ;;  %2845 = vmatprep.subr.bf16.mxu0 %v7186_v21 }
 0x164   : > { %2824 = vmatprep.mubr.bf16.mxu1 %v8958_v10 }
 0x165   : > { %5830 = vmatmul.mubr.msk.bf16.vlgmr.msra.gmra.mrb[16].mxu0 %vm466_vm0, %v6512_v63 }
 0x166   : > { %2799 = vmatpush1.bf16.msra.mxu1 %v7174_v14  ;;  %2846 = vmatpush1.bf16.msra.mxu0 %v7183_v20 }
 0x167   : > { %2847 = vmatprep.subr.bf16.mxu0 %v7213_v52  ;;  %2898 = vmatprep.subr.bf16.mxu1 %v7197_v11 }
 0x168   : > { %2781 = vmatprep.mubr.bf16.mxu0 %v8958_v10 }
 0x169   : > { %5832 = vmatmul.mubr.msk.bf16.vlgmr.msra.gmra.mrb[16].mxu1 %vm466_vm0, %v6512_v63 }
 0x16a   : > { %2848 = vmatpush1.bf16.msra.mxu0 %v7210_v51  ;;  %2899 = vmatpush1.bf16.msra.mxu1 %v7194_v30  ;;  %v9018_v30 = vld [vmem:[#allocation14_spill] sm:$0xff] }
 0x16b   : > { %2849 = vmatprep.subr.bf16.mxu0 %v9012_v1  ;;  %2900 = vmatprep.subr.bf16.mxu1 %v9013_v4  ;;  %v9019_v1 = vld [vmem:[#allocation12_spill] sm:$0xff]  ;;  %v9020_v4 = vld [vmem:[#allocation17_spill] sm:$0xff]  ;;  %v9021_v51 = vld [vmem:[#allocation18_spill] sm:$0xff] }
 0x16c   : > { %2834 = vmatprep.mubr.bf16.mxu1 %v8958_v10 }
 0x16d   : > { %5831 = vmatmul.mubr.msk.bf16.gmra.mrb[20].mxu0 %vm466_vm0, %v6513_v47 }
 0x16e   : > { %2850 = vmatpush1.bf16.msra.mxu0 %v9014_v2  ;;  %2901 = vmatpush1.bf16.msra.mxu1 %v9015_v7  ;;  %v9022_v7 = vld [vmem:[#allocation16_spill] sm:$0xff] }
 0x16f   : > { %2851 = vmatprep.subr.bf16.mxu0 %v9016_v58  ;;  %2902 = vmatprep.subr.bf16.mxu1 %v9017_v37  ;;  %v9023_v58 = vld [vmem:[#allocation21_spill] sm:$0xff]  ;;  %v9024_v37 = vld [vmem:[#allocation22_spill] sm:$0xff]  ;;  %v9025_v2 = vld [vmem:[#allocation20_spill] sm:$0xff] }
 0x170   : > { %2877 = vmatprep.mubr.bf16.mxu0 %v8958_v10 }
 0x171   : > { %5833 = vmatmul.mubr.msk.bf16.gmra.mrb[20].mxu1 %vm466_vm0, %v6513_v47 }
 0x172   : > { %2852 = vmatpush1.bf16.msra.mxu0 %v9018_v30  ;;  %2903 = vmatpush1.bf16.msra.mxu1 %v9019_v1  ;;  %v9026_v1 = vld [vmem:[#allocation23_spill] sm:$0xff]  ;;  %v9029_v30 = vld [vmem:[#allocation24_spill] sm:$0xff] }
 0x173   : > { %2904 = vmatprep.subr.bf16.mxu1 %v9020_v4  ;;  %3004 = vmatprep.subr.bf16.mxu0 %v9021_v51  ;;  %v9027_v4 = vld [vmem:[#allocation19_spill] sm:$0xff]  ;;  %v9028_v51 = vld [vmem:[#allocation26_spill] sm:$0xff] }
 0x174   : > { %2930 = vmatprep.mubr.bf16.mxu1 %v8958_v10 }
 0x175   : > { %5834 = vmatmul.mubr.msk.bf16.vlgmr.msra.gmra.mrb[24].mxu0 %vm466_vm0, %v6512_v63 }
 0x176   : > { %2905 = vmatpush1.bf16.msra.mxu1 %v9022_v7  ;;  %3005 = vmatpush1.bf16.msra.mxu0 %v9023_v58  ;;  %v9032_v58 = vld [vmem:[#allocation28_spill] sm:$0xff] }
 0x177   : > { %3006 = vmatprep.subr.bf16.mxu0 %v9024_v37  ;;  %3057 = vmatprep.subr.bf16.mxu1 %v9025_v2  ;;  %v9030_v37 = vld [vmem:[#allocation25_spill] sm:$0xff]  ;;  %v9031_v2 = vld [vmem:[#allocation30_spill] sm:$0xff] }
 0x178   : > { %2887 = vmatprep.mubr.bf16.mxu0 %v8958_v10 }
 0x179   : > { %5836 = vmatmul.mubr.msk.bf16.vlgmr.msra.gmra.mrb[24].mxu1 %vm466_vm0, %v6512_v63  ;;  %v6514_v63 = vld [vmem:[%s8747_s2 + $0x70] sm:$0xff]  }
 0x17a   : > { %3007 = vmatpush1.bf16.msra.mxu0 %v9026_v1  ;;  %3058 = vmatpush1.bf16.msra.mxu1 %v9027_v4  ;;  %v9035_v4 = vld [vmem:[#allocation32_spill] sm:$0xff] }
 0x17b   : > { %3008 = vmatprep.subr.bf16.mxu0 %v9028_v51  ;;  %3059 = vmatprep.subr.bf16.mxu1 %v9029_v30  ;;  %v9033_v30 = vld [vmem:[#allocation31_spill] sm:$0xff] }
 0x17c   : > { %2940 = vmatprep.mubr.bf16.mxu1 %v8958_v10  ;;  %v9034_v51 = vld [vmem:[#allocation27_spill] sm:$0xff] }
 0x17d   : > { %5835 = vmatmul.mubr.msk.bf16.gmra.mrb[28].mxu0 %vm466_vm0, %v6513_v47 }
 0x17e   : > { %3009 = vmatpush1.bf16.msra.mxu0 %v7317_v31  ;;  %3060 = vmatpush1.bf16.msra.mxu1 %v9030_v37  ;;  %v9036_v31 = vld [vmem:[#allocation35_spill] sm:$0xff]  ;;  %v9040_v37 = vld [vmem:[#allocation37_spill] sm:$0xff] }
 0x17f   : > { %3010 = vmatprep.subr.bf16.mxu0 %v9031_v2  ;;  %3061 = vmatprep.subr.bf16.mxu1 %v9032_v58  ;;  %v9037_v58 = vld [vmem:[#allocation33_spill] sm:$0xff]  ;;  %v9038_v2 = vld [vmem:[#allocation34_spill] sm:$0xff] }
 0x180   : > { %3036 = vmatprep.mubr.bf16.mxu0 %v8958_v10 }
 0x181   : > { %5837 = vmatmul.mubr.msk.bf16.gmra.mrb[28].mxu1 %vm466_vm0, %v6513_v47  ;;  %v9039_v47 = vld [vmem:[#allocation39_spill] sm:$0xff] }
 0x182   : > { %3011 = vmatpush1.bf16.msra.mxu0 %v9033_v30  ;;  %3062 = vmatpush1.bf16.msra.mxu1 %v9034_v51  ;;  %v9042_v51 = vld [vmem:[#allocation36_spill] sm:$0xff] }
 0x183   : > { %3063 = vmatprep.subr.bf16.mxu1 %v9035_v4  ;;  %3110 = vmatprep.subr.bf16.mxu0 %v9036_v31  ;;  %v6515_v31 = vld [vmem:[%s8747_s2 + $0x78] sm:$0xff]   ;;  %v9041_v4 = vld [vmem:[#allocation38_spill] sm:$0xff] }
 0x184   : > { %3089 = vmatprep.mubr.bf16.mxu1 %v8958_v10 }
 0x185   : > { %5844 = vmatmul.mubr.msk.bf16.vlgmr.msra.gmra.mrb[16].mxu0 %vm466_vm0, %v6514_v63 }
 0x186   : > { %3064 = vmatpush1.bf16.msra.mxu1 %v9037_v58  ;;  %3111 = vmatpush1.bf16.msra.mxu0 %v9038_v2  ;;  %v9043_v58 = vld [vmem:[#allocation41_spill] sm:$0xff] }
 0x187   : > { %3112 = vmatprep.subr.bf16.mxu0 %v9039_v47  ;;  %3163 = vmatprep.subr.bf16.mxu1 %v9040_v37  ;;  %v9044_v37 = vld [vmem:[#allocation42_spill] sm:$0xff]  ;;  %v9045_v47 = vld [vmem:[#allocation40_spill] sm:$0xff] }
 0x188   : > { %3046 = vmatprep.mubr.bf16.mxu0 %v8958_v10 }
 0x189   : > { %5846 = vmatmul.mubr.msk.bf16.vlgmr.msra.gmra.mrb[16].mxu1 %vm466_vm0, %v6514_v63 }
 0x18a   : > { %3113 = vmatpush1.bf16.msra.mxu0 %v9041_v4  ;;  %3164 = vmatpush1.bf16.msra.mxu1 %v9042_v51 }
 0x18b   : > { %3114 = vmatprep.subr.bf16.mxu0 %v7394_v22  ;;  %3165 = vmatprep.subr.bf16.mxu1 %v9043_v58  ;;  %v9046_v58 = vld [vmem:[#allocation44_spill] sm:$0xff]  ;;  %v9047_v22 = vld [vmem:[#allocation46_spill] sm:$0xff] }
 0x18c   : > { %3099 = vmatprep.mubr.bf16.mxu1 %v8958_v10 }
 0x18d   : > { %5845 = vmatmul.mubr.msk.bf16.gmra.mrb[20].mxu0 %vm466_vm0, %v6515_v31 }
 0x18e   : > { %3115 = vmatpush1.bf16.msra.mxu0 %v9044_v37  ;;  %3166 = vmatpush1.bf16.msra.mxu1 %v9045_v47 }
 0x18f   : > { %3116 = vmatprep.subr.bf16.mxu0 %v7410_v24  ;;  %3167 = vmatprep.subr.bf16.mxu1 %v7402_v34  ;;  %v9048_v34 = vld [vmem:[#allocation49_spill] sm:$0xff] }
 0x190   : > { %3142 = vmatprep.mubr.bf16.mxu0 %v8958_v10 }
 0x191   : > { %5847 = vmatmul.mubr.msk.bf16.gmra.mrb[20].mxu1 %vm466_vm0, %v6515_v31 }
 0x192   : > { %3117 = vmatpush1.bf16.msra.mxu0 %v7407_v26  ;;  %3168 = vmatpush1.bf16.msra.mxu1 %v9046_v58 }
 0x193   : > { %3169 = vmatprep.subr.bf16.mxu1 %v7422_v8  ;;  %3306 = vmatprep.subr.bf16.mxu0 %v9047_v22  ;;  %v9049_v8 = vld [vmem:[#allocation51_spill] sm:$0xff]  ;;  %v7763_v22 = vld [vmem:[%s6700_s24 + $0x94] ss:$36 sps:$4 sm:$0xff]  }
 0x194   : > { %3195 = vmatprep.mubr.bf16.mxu1 %v8958_v10 }
 0x195   : > { %5848 = vmatmul.mubr.msk.bf16.vlgmr.msra.gmra.mrb[24].mxu0 %vm466_vm0, %v6514_v63 }
 0x196   : > { %3170 = vmatpush1.bf16.msra.mxu1 %v7419_v0  ;;  %3307 = vmatpush1.bf16.msra.mxu0 %v7429_v60  ;;  %v9050_v0 = vld [vmem:[#allocation52_spill] sm:$0xff] }
 0x197   : > { %3308 = vmatprep.subr.bf16.mxu0 %v9048_v34  ;;  %3359 = vmatprep.subr.bf16.mxu1 %v7437_v32  ;;  %v9051_v32 = vld [vmem:[#allocation53_spill] sm:$0xff] }
 0x198   : > { %3152 = vmatprep.mubr.bf16.mxu0 %v8958_v10 }
 0x199   : > { %5850 = vmatmul.mubr.msk.bf16.vlgmr.msra.gmra.mrb[24].mxu1 %vm466_vm0, %v6514_v63  ;;  %v7772_v63 = vld [vmem:[%s6700_s24 + $0xdc] ss:$36 sps:$4 sm:$0xff]  }
 0x19a   : > { %3309 = vmatpush1.bf16.msra.mxu0 %v9049_v8  ;;  %3360 = vmatpush1.bf16.msra.mxu1 %v7448_v17  ;;  %9052 = vst [vmem:[#allocation16_spill] sm:$0xff] %v7772_v63 }
 0x19b   : > { %3310 = vmatprep.subr.bf16.mxu0 %v7763_v22  ;;  %3361 = vmatprep.subr.bf16.mxu1 %v9050_v0  ;;  %v6516_v0 = vld [vmem:[%s8747_s2 + $0x90] sm:$0xff]  }
 0x19c   : > { %3205 = vmatprep.mubr.bf16.mxu1 %v8958_v10 }
 0x19d   : > { %5849 = vmatmul.mubr.msk.bf16.gmra.mrb[28].mxu0 %vm466_vm0, %v6515_v31 }
 0x19e   : > { %3311 = vmatpush1.bf16.msra.mxu0 %v9051_v32  ;;  %3362 = vmatpush1.bf16.msra.mxu1 %v7464_v18  ;;  %v7782_v32 = vld [vmem:[%s6700_s24 + $0xd8] ss:$36 sps:$4 sm:$0xff]  }
 0x19f   : > { %3312 = vmatprep.subr.bf16.mxu0 %v7772_v63  ;;  %3363 = vmatprep.subr.bf16.mxu1 %v7469_v29  ;;  %9053 = vst [vmem:[#allocation23_spill] sm:$0xff] %v7782_v32  ;;  %v7788_v63 = vld [vmem:[%s6700_s24 + $0x14] ss:$36 sps:$4 sm:$0xff]  }
 0x1a0   : > { %3338 = vmatprep.mubr.bf16.mxu0 %v8958_v10  ;;  %9054 = vst [vmem:[#allocation31_spill] sm:$0xff] %v7788_v63 }
 0x1a1   : > { %5851 = vmatmul.mubr.msk.bf16.gmra.mrb[28].mxu1 %vm466_vm0, %v6515_v31  ;;  %v7795_v31 = vld [vmem:[%s6700_s24 + $0x10] ss:$36 sps:$4 sm:$0xff]  }
 0x1a2   : > { %3313 = vmatpush1.bf16.msra.mxu0 %v7782_v32  ;;  %3364 = vmatpush1.bf16.msra.mxu1 %v7480_v35  ;;  %9055 = vst [vmem:[#allocation34_spill] sm:$0xff] %v7795_v31  ;;  %v7799_v35 = vld [vmem:[%s6700_s24 + $0x5c] ss:$36 sps:$4 sm:$0xff]   ;;  %v7842_v32 = vld [vmem:[%s6700_s24 + $0xac] ss:$36 sps:$4 sm:$0xff]  }
 0x1a3   : > { %3365 = vmatprep.subr.bf16.mxu1 %v7484_v36  ;;  %3412 = vmatprep.subr.bf16.mxu0 %v7788_v63  ;;  %9056 = vst [vmem:[#allocation38_spill] sm:$0xff] %v7799_v35  ;;  %v7803_v36 = vld [vmem:[%s6700_s24 + $0x1c] ss:$36 sps:$4 sm:$0xff]   ;;  %v7824_v63 = vld [vmem:[%s6700_s24 + $0x64] ss:$36 sps:$4 sm:$0xff]   ;;  %9064 = vst [vmem:[#allocation73_spill] sm:$0xff] %v7842_v32 }
 0x1a4   : > { %3391 = vmatprep.mubr.bf16.mxu1 %v8958_v10  ;;  %9057 = vst [vmem:[#allocation36_spill] sm:$0xff] %v7803_v36  ;;  %9061 = vst [vmem:[#allocation51_spill] sm:$0xff] %v7824_v63 }
 0x1a5   : > { %5862 = vmatmul.mubr.msk.bf16.vlgmr.msra.gmra.mrb[32].mxu0 %vm466_vm0, %v6516_v0 }
 0x1a6   : > { %3366 = vmatpush1.bf16.msra.mxu1 %v7491_v9  ;;  %3413 = vmatpush1.bf16.msra.mxu0 %v7795_v31  ;;  %v6517_v9 = vld [vmem:[%s8747_s2 + $0x98] sm:$0xff]  }
 0x1a7   : > { %3414 = vmatprep.subr.bf16.mxu0 %v7799_v35  ;;  %3465 = vmatprep.subr.bf16.mxu1 %v7803_v36  ;;  %v7812_v31 = vld [vmem:[%s6700_s24 + $0x58] ss:$36 sps:$4 sm:$0xff]   ;;  %v7820_v36 = vld [vmem:[%s6700_s24 + $0xa4] ss:$36 sps:$4 sm:$0xff]  }
 0x1a8   : > { %3348 = vmatprep.mubr.bf16.mxu0 %v8958_v10  ;;  %9058 = vst [vmem:[#allocation42_spill] sm:$0xff] %v7812_v31  ;;  %v7816_v35 = vld [vmem:[%s6700_s24 + $0x18] ss:$36 sps:$4 sm:$0xff]   ;;  %9060 = vst [vmem:[#allocation49_spill] sm:$0xff] %v7820_v36 }
 0x1a9   : > { %5864 = vmatmul.mubr.msk.bf16.vlgmr.msra.gmra.mrb[32].mxu1 %vm466_vm0, %v6516_v0  ;;  %9059 = vst [vmem:[#allocation44_spill] sm:$0xff] %v7816_v35 }
 0x1aa   : > { %3415 = vmatpush1.bf16.msra.mxu0 %v7812_v31  ;;  %3466 = vmatpush1.bf16.msra.mxu1 %v7816_v35  ;;  %v7830_v31 = vld [vmem:[%s6700_s24 + $0xa0] ss:$36 sps:$4 sm:$0xff]  }
 0x1ab   : > { %3416 = vmatprep.subr.bf16.mxu0 %v7820_v36  ;;  %3467 = vmatprep.subr.bf16.mxu1 %v7824_v63  ;;  %9062 = vst [vmem:[#allocation71_spill] sm:$0xff] %v7830_v31  ;;  %v7834_v35 = vld [vmem:[%s6700_s24 + $0x60] ss:$36 sps:$4 sm:$0xff]   ;;  %v7838_v36 = vld [vmem:[%s6700_s24 + $0xec] ss:$36 sps:$4 sm:$0xff]  }
 0x1ac   : > { %3401 = vmatprep.mubr.bf16.mxu1 %v8958_v10  ;;  %9063 = vst [vmem:[#allocation72_spill] sm:$0xff] %v7834_v35  ;;  %v7848_v63 = vld [vmem:[%s6700_s24 + $0xe8] ss:$36 sps:$4 sm:$0xff]  }
 0x1ad   : > { %5863 = vmatmul.mubr.msk.bf16.gmra.mrb[36].mxu0 %vm466_vm0, %v6517_v9 }
 0x1ae   : > { %3417 = vmatpush1.bf16.msra.mxu0 %v7830_v31  ;;  %3468 = vmatpush1.bf16.msra.mxu1 %v7834_v35  ;;  %v7852_v31 = vld [vmem:[%s6700_s24 + $0xa8] ss:$36 sps:$4 sm:$0xff]   ;;  %v7856_v35 = vld [vmem:[%s6700_s24 + $0xf4] ss:$36 sps:$4 sm:$0xff]  }
 0x1af   : > { %3418 = vmatprep.subr.bf16.mxu0 %v7838_v36  ;;  %3469 = vmatprep.subr.bf16.mxu1 %v7842_v32  ;;  %v7863_v32 = vld [vmem:[%s6700_s24 + $0xf0] ss:$36 sps:$4 sm:$0xff]  }
 0x1b0   : > { %3444 = vmatprep.mubr.bf16.mxu0 %v8958_v10 }
 0x1b1   : > { %5865 = vmatmul.mubr.msk.bf16.gmra.mrb[36].mxu1 %vm466_vm0, %v6517_v9 }
 0x1b2   : > { %3419 = vmatpush1.bf16.msra.mxu0 %v7848_v63  ;;  %3470 = vmatpush1.bf16.msra.mxu1 %v7852_v31 }
 0x1b3   : > { %3471 = vmatprep.subr.bf16.mxu1 %v7856_v35  ;;  %3534 = vmatprep.subr.bf16.mxu0 %v7518_v39 }
 0x1b4   : > { %3497 = vmatprep.mubr.bf16.mxu1 %v8958_v10 }
 0x1b5   : > { %5866 = vmatmul.mubr.msk.bf16.vlgmr.msra.gmra.mrb[40].mxu0 %vm466_vm0, %v6516_v0 }
 0x1b6   : > { %3472 = vmatpush1.bf16.msra.mxu1 %v7863_v32  ;;  %3535 = vmatpush1.bf16.msra.mxu0 %v7525_v40 }
 0x1b7   : > { %3536 = vmatprep.subr.bf16.mxu0 %v7529_v42  ;;  %3587 = vmatprep.subr.bf16.mxu1 %v7533_v43 }
 0x1b8   : > { %3454 = vmatprep.mubr.bf16.mxu0 %v8958_v10 }
 0x1b9   : > { %5868 = vmatmul.mubr.msk.bf16.vlgmr.msra.gmra.mrb[40].mxu1 %vm466_vm0, %v6516_v0  ;;  %v6518_v0 = vld [vmem:[%s8747_s2 + $0x80] sm:$0xff]  }
 0x1ba   : > { %3537 = vmatpush1.bf16.msra.mxu0 %v7539_v44  ;;  %3588 = vmatpush1.bf16.msra.mxu1 %v7543_v45 }
 0x1bb   : > { %3538 = vmatprep.subr.bf16.mxu0 %v7547_v46  ;;  %3589 = vmatprep.subr.bf16.mxu1 %v7551_v48  ;;  %v9065_v48 = vld [vmem:[#allocation62_spill] sm:$0xff]  ;;  %v9066_v46 = vld [vmem:[#allocation64_spill] sm:$0xff] }
 0x1bc   : > { %3507 = vmatprep.mubr.bf16.mxu1 %v8958_v10 }
 0x1bd   : > { %5867 = vmatmul.mubr.msk.bf16.gmra.mrb[44].mxu0 %vm466_vm0, %v6517_v9 }
 0x1be   : > { %3539 = vmatpush1.bf16.msra.mxu0 %v7557_v49  ;;  %3590 = vmatpush1.bf16.msra.mxu1 %v7561_v53  ;;  %v9067_v49 = vld [vmem:[#allocation65_spill] sm:$0xff] }
 0x1bf   : > { %3540 = vmatprep.subr.bf16.mxu0 %v7565_v54  ;;  %3591 = vmatprep.subr.bf16.mxu1 %v7569_v56  ;;  %v9068_v56 = vld [vmem:[#allocation66_spill] sm:$0xff] }
 0x1c0   : > { %3566 = vmatprep.mubr.bf16.mxu0 %v8958_v10  ;;  %v7895_v54 = vld [vmem:[%s6649_s20 + $0x5c] ss:$36 sps:$4 sm:$0xff]  }
 0x1c1   : > { %5869 = vmatmul.mubr.msk.bf16.gmra.mrb[44].mxu1 %vm466_vm0, %v6517_v9  ;;  %v9069_v9 = vld [vmem:[#allocation67_spill] sm:$0xff]  ;;  %9070 = vst [vmem:[#allocation74_spill] sm:$0xff] %v7895_v54 }
 0x1c2   : > { %3541 = vmatpush1.bf16.msra.mxu0 %v9065_v48  ;;  %3592 = vmatpush1.bf16.msra.mxu1 %v7582_v62  ;;  %v9071_v48 = vld [vmem:[#allocation68_spill] sm:$0xff] }
 0x1c3   : > { %3593 = vmatprep.subr.bf16.mxu1 %v9066_v46  ;;  %3640 = vmatprep.subr.bf16.mxu0 %v9067_v49  ;;  %v6519_v46 = vld [vmem:[%s8747_s2 + $0x88] sm:$0xff]  }
 0x1c4   : > { %3619 = vmatprep.mubr.bf16.mxu1 %v8958_v10 }
 0x1c5   : > { %5872 = vmatmul.mubr.msk.bf16.vlgmr.msra.gmra.mrb[32].mxu0 %vm466_vm0, %v6518_v0 }
 0x1c6   : > { %3594 = vmatpush1.bf16.msra.mxu1 %v9068_v56  ;;  %3641 = vmatpush1.bf16.msra.mxu0 %v9069_v9  ;;  %v7917_v56 = vld [vmem:[%s6649_s20 + $0x64] ss:$36 sps:$4 sm:$0xff]  }
 0x1c7   : > { %3642 = vmatprep.subr.bf16.mxu0 %v7895_v54  ;;  %3693 = vmatprep.subr.bf16.mxu1 %v9071_v48  ;;  %v7913_v48 = vld [vmem:[%s6649_s20 + $0xa4] ss:$36 sps:$4 sm:$0xff]   ;;  %9075 = vst [vmem:[#allocation78_spill] sm:$0xff] %v7917_v56 }
 0x1c8   : > { %3576 = vmatprep.mubr.bf16.mxu0 %v8958_v10 }
 0x1c9   : > { %5874 = vmatmul.mubr.msk.bf16.vlgmr.msra.gmra.mrb[32].mxu1 %vm466_vm0, %v6518_v0 }
 0x1ca   : > { %v7901_v49 = vpop.f32.mrb[0].mxu0  ;;  %3643 = vmatpush1.bf16.msra.mxu0 %v7614_v5  ;;  %3694 = vmatpush1.bf16.msra.mxu1 %v7618_v59 }
 0x1cb   : > { %9072 = vst [vmem:[#allocation75_spill] sm:$0xff] %v7901_v49  ;;  %v7908_v9 = vpop.f32.mrb[1].mxu0  ;;  %3644 = vmatprep.subr.bf16.mxu0 %v7913_v48  ;;  %3695 = vmatprep.subr.bf16.mxu1 %v7917_v56  ;;  %v7920_v49 = vpop.f32.mrb[0].mxu1  ;;  %v7935_v56 = vld [vmem:[%s6649_s20 + $0xec] ss:$36 sps:$4 sm:$0xff]  }
 0x1cc   : > { %9073 = vst [vmem:[#allocation76_spill] sm:$0xff] %v7908_v9  ;;  %v7910_v54 = vpop.f32.mrb[2].mxu0  ;;  %9076 = vst [vmem:[#allocation79_spill] sm:$0xff] %v7920_v49  ;;  %3629 = vmatprep.mubr.bf16.mxu1 %v8958_v10  ;;  %v7925_v59 = vpop.f32.mrb[1].mxu1  ;;  %v7939_v49 = vld [vmem:[%s6649_s20 + $0xac] ss:$36 sps:$4 sm:$0xff]  }
 0x1cd   : > { %9074 = vst [vmem:[#allocation77_spill] sm:$0xff] %v7910_v54  ;;  %v7922_v62 = vpop.f32.mrb[3].mxu0  ;;  %9078 = vst [vmem:[#allocation81_spill] sm:$0xff] %v7925_v59  ;;  %5873 = vmatmul.mubr.msk.bf16.gmra.mrb[36].mxu0 %vm466_vm0, %v6519_v46  ;;  %v7928_v54 = vpop.f32.mrb[2].mxu1  ;;  %v7948_v59 = vld [vmem:[%s6649_s20 + $0xa8] ss:$36 sps:$4 sm:$0xff]  }
 0x1ce   : > { %9077 = vst [vmem:[#allocation80_spill] sm:$0xff] %v7922_v62  ;;  %9079 = vst [vmem:[#allocation82_spill] sm:$0xff] %v7928_v54  ;;  %3645 = vmatpush1.bf16.msra.mxu0 %v7626_v55  ;;  %3696 = vmatpush1.bf16.msra.mxu1 %v7630_v50  ;;  %v7932_v9 = vpop.f32.mrb[3].mxu1 }
 0x1cf   : > { %9080 = vst [vmem:[#allocation83_spill] sm:$0xff] %v7932_v9  ;;  %9081 = vst [vmem:[#allocation84_spill] sm:$0xff] %v7935_v56  ;;  %3646 = vmatprep.subr.bf16.mxu0 %v7935_v56  ;;  %3697 = vmatprep.subr.bf16.mxu1 %v7939_v49 }
 0x1d0   : > { %9082 = vst [vmem:[#allocation85_spill] sm:$0xff] %v7939_v49  ;;  %3672 = vmatprep.mubr.bf16.mxu0 %v8958_v10  ;;  %9084 = vst [vmem:[#allocation87_spill] sm:$0xff] %v7948_v59  ;;  %v7957_v49 = vld [vmem:[%s6649_s20 + $0xf4] ss:$36 sps:$4 sm:$0xff]  }
 0x1d1   : > { %5875 = vmatmul.mubr.msk.bf16.gmra.mrb[36].mxu1 %vm466_vm0, %v6519_v46 }
 0x1d2   : > { %v7944_v54 = vpop.f32.mrb[4].mxu0  ;;  %3647 = vmatpush1.bf16.msra.mxu0 %v7638_v61  ;;  %3698 = vmatpush1.bf16.msra.mxu1 %v7948_v59 }
 0x1d3   : > { %9083 = vst [vmem:[#allocation86_spill] sm:$0xff] %v7944_v54  ;;  %v7951_v9 = vpop.f32.mrb[5].mxu0  ;;  %3767 = vmatprep.subr.bf16.mxu0 %v7093_v15  ;;  %3699 = vmatprep.subr.bf16.mxu1 %v7957_v49  ;;  %v7960_v56 = vpop.f32.mrb[4].mxu1 }
 0x1d4   : > { %9085 = vst [vmem:[#allocation88_spill] sm:$0xff] %v7951_v9  ;;  %v7954_v62 = vpop.f32.mrb[6].mxu0  ;;  %9087 = vst [vmem:[#allocation90_spill] sm:$0xff] %v7960_v56  ;;  %3725 = vmatprep.mubr.bf16.mxu1 %v8958_v10  ;;  %v7965_v54 = vpop.f32.mrb[5].mxu1  ;;  %v7971_v9 = vld [vmem:[%s6649_s20 + $0xf0] ss:$36 sps:$4 sm:$0xff]  }
 0x1d5   : > { %9086 = vst [vmem:[#allocation89_spill] sm:$0xff] %v7954_v62  ;;  %v7962_v50 = vpop.f32.mrb[7].mxu0  ;;  %9089 = vst [vmem:[#allocation92_spill] sm:$0xff] %v7965_v54  ;;  %5876 = vmatmul.mubr.msk.bf16.vlgmr.msra.gmra.mrb[40].mxu0 %vm466_vm0, %v6518_v0  ;;  %v7968_v59 = vpop.f32.mrb[6].mxu1 }
 0x1d6   : > { %9088 = vst [vmem:[#allocation91_spill] sm:$0xff] %v7962_v50  ;;  %9090 = vst [vmem:[#allocation93_spill] sm:$0xff] %v7968_v59  ;;  %3700 = vmatpush1.bf16.msra.mxu1 %v7971_v9  ;;  %3768 = vmatpush1.bf16.msra.mxu0 %v7104_v19  ;;  %v7975_v62 = vpop.f32.mrb[7].mxu1  ;;  %v6521_v59 = vld [vmem:[%s8747_s2 + $0xa8] sm:$0xff]  }
 0x1d7   : > { %9091 = vst [vmem:[#allocation94_spill] sm:$0xff] %v7975_v62  ;;  %3769 = vmatprep.subr.bf16.mxu0 %v7113_v23  ;;  %3820 = vmatprep.subr.bf16.mxu1 %v7086_v12 }
 0x1d8   : > { %3682 = vmatprep.mubr.bf16.mxu0 %v8958_v10 }
 0x1d9   : > { %5878 = vmatmul.mubr.msk.bf16.vlgmr.msra.gmra.mrb[40].mxu1 %vm466_vm0, %v6518_v0  ;;  %v6520_v0 = vld [vmem:[%s8747_s2 + $0xa0] sm:$0xff]  }
 0x1da   : > { %3770 = vmatpush1.bf16.msra.mxu0 %v7119_v25  ;;  %3821 = vmatpush1.bf16.msra.mxu1 %v7096_v16 }
 0x1db   : > { %3771 = vmatprep.subr.bf16.mxu0 %v7137_v33  ;;  %3822 = vmatprep.subr.bf16.mxu1 %v7124_v27 }
 0x1dc   : > { %3735 = vmatprep.mubr.bf16.mxu1 %v8958_v10 }
 0x1dd   : > { %5877 = vmatmul.mubr.msk.bf16.gmra.mrb[44].mxu0 %vm466_vm0, %v6519_v46 }
 0x1de   : > { %3772 = vmatpush1.bf16.msra.mxu0 %v7154_v57  ;;  %3823 = vmatpush1.bf16.msra.mxu1 %v7127_v28 }
 0x1df   : > { %3773 = vmatprep.subr.bf16.mxu0 %v7158_v6  ;;  %3824 = vmatprep.subr.bf16.mxu1 %v7147_v41 }
 0x1e0   : > { %3799 = vmatprep.mubr.bf16.mxu0 %v8958_v10 }
 0x1e1   : > { %5879 = vmatmul.mubr.msk.bf16.gmra.mrb[44].mxu1 %vm466_vm0, %v6519_v46 }
 0x1e2   : > { %3774 = vmatpush1.bf16.msra.mxu0 %v7162_v3  ;;  %3825 = vmatpush1.bf16.msra.mxu1 %v7144_v38 }
 0x1e3   : > { %3826 = vmatprep.subr.bf16.mxu1 %v7171_v13  ;;  %3873 = vmatprep.subr.bf16.mxu0 %v7186_v21 }
 0x1e4   : > { %3852 = vmatprep.mubr.bf16.mxu1 %v8958_v10 }
 0x1e5   : > { %5886 = vmatmul.mubr.msk.bf16.vlgmr.msra.gmra.mrb[32].mxu0 %vm466_vm0, %v6520_v0 }
 0x1e6   : > { %3827 = vmatpush1.bf16.msra.mxu1 %v7174_v14  ;;  %3874 = vmatpush1.bf16.msra.mxu0 %v7183_v20  ;;  %v9095_v14 = vld [vmem:[#allocation6_spill] sm:$0xff]  ;;  %v9096_v20 = vld [vmem:[#allocation4_spill] sm:$0xff] }
 0x1e7   : > { %3875 = vmatprep.subr.bf16.mxu0 %v7213_v52  ;;  %3926 = vmatprep.subr.bf16.mxu1 %v7197_v11  ;;  %v9098_v11 = vld [vmem:[#allocation11_spill] sm:$0xff] }
 0x1e8   : > { %v8006_v46 = vpop.f32.mrb[8].mxu0  ;;  %3809 = vmatprep.mubr.bf16.mxu0 %v8958_v10 }
 0x1e9   : > { %9092 = vst [vmem:[#allocation95_spill] sm:$0xff] %v8006_v46  ;;  %v8009_v62 = vpop.f32.mrb[9].mxu0  ;;  %5888 = vmatmul.mubr.msk.bf16.vlgmr.msra.gmra.mrb[32].mxu1 %vm466_vm0, %v6520_v0  ;;  %v9099_v46 = vld [vmem:[#allocation9_spill] sm:$0xff] }
 0x1ea   : > { %9093 = vst [vmem:[#allocation96_spill] sm:$0xff] %v8009_v62  ;;  %v8015_v54 = vpop.f32.mrb[10].mxu0  ;;  %3876 = vmatpush1.bf16.msra.mxu0 %v9095_v14  ;;  %3927 = vmatpush1.bf16.msra.mxu1 %v9096_v20  ;;  %v9104_v14 = vld [vmem:[#allocation8_spill] sm:$0xff] }
 0x1eb   : > { %9094 = vst [vmem:[#allocation97_spill] sm:$0xff] %v8015_v54  ;;  %v8019_v52 = vpop.f32.mrb[11].mxu0  ;;  %3877 = vmatprep.subr.bf16.mxu0 %v9098_v11  ;;  %3928 = vmatprep.subr.bf16.mxu1 %v9099_v46  ;;  %v9103_v54 = vld [vmem:[#allocation10_spill] sm:$0xff]  ;;  %v9107_v11 = vld [vmem:[#allocation13_spill] sm:$0xff] }
 0x1ec   : > { %9097 = vst [vmem:[#allocation98_spill] sm:$0xff] %v8019_v52  ;;  %v8023_v56 = vpop.f32.mrb[8].mxu1  ;;  %3862 = vmatprep.mubr.bf16.mxu1 %v8958_v10  ;;  %v9106_v52 = vld [vmem:[#allocation15_spill] sm:$0xff] }
 0x1ed   : > { %9100 = vst [vmem:[#allocation99_spill] sm:$0xff] %v8023_v56  ;;  %v8026_v62 = vpop.f32.mrb[9].mxu1  ;;  %5887 = vmatmul.mubr.msk.bf16.gmra.mrb[36].mxu0 %vm466_vm0, %v6521_v59 }
 0x1ee   : > { %9101 = vst [vmem:[#allocation100_spill] sm:$0xff] %v8026_v62  ;;  %v8029_v50 = vpop.f32.mrb[10].mxu1  ;;  %3878 = vmatpush1.bf16.msra.mxu0 %v9103_v54  ;;  %3929 = vmatpush1.bf16.msra.mxu1 %v9104_v14  ;;  %v9112_v54 = vld [vmem:[#allocation12_spill] sm:$0xff] }
 0x1ef   : > { %9102 = vst [vmem:[#allocation101_spill] sm:$0xff] %v8029_v50  ;;  %v8033_v20 = vpop.f32.mrb[11].mxu1  ;;  %3879 = vmatprep.subr.bf16.mxu0 %v9106_v52  ;;  %3930 = vmatprep.subr.bf16.mxu1 %v9107_v11  ;;  %v9111_v50 = vld [vmem:[#allocation14_spill] sm:$0xff] }
 0x1f0   : > { %9105 = vst [vmem:[#allocation102_spill] sm:$0xff] %v8033_v20  ;;  %v8037_v46 = vpop.f32.mrb[12].mxu0  ;;  %3905 = vmatprep.mubr.bf16.mxu0 %v8958_v10  ;;  %v9114_v20 = vld [vmem:[#allocation17_spill] sm:$0xff]  ;;  %v9115_v52 = vld [vmem:[#allocation18_spill] sm:$0xff] }
 0x1f1   : > { %9108 = vst [vmem:[#allocation103_spill] sm:$0xff] %v8037_v46  ;;  %v8040_v56 = vpop.f32.mrb[13].mxu0  ;;  %5889 = vmatmul.mubr.msk.bf16.gmra.mrb[36].mxu1 %vm466_vm0, %v6521_v59 }
 0x1f2   : > { %9109 = vst [vmem:[#allocation104_spill] sm:$0xff] %v8040_v56  ;;  %v8043_v62 = vpop.f32.mrb[14].mxu0  ;;  %3880 = vmatpush1.bf16.msra.mxu0 %v9111_v50  ;;  %3931 = vmatpush1.bf16.msra.mxu1 %v9112_v54 }
 0x1f3   : > { %9110 = vst [vmem:[#allocation105_spill] sm:$0xff] %v8043_v62  ;;  %v8047_v14 = vpop.f32.mrb[15].mxu0  ;;  %3932 = vmatprep.subr.bf16.mxu1 %v9114_v20  ;;  %4032 = vmatprep.subr.bf16.mxu0 %v9115_v52  ;;  %v9119_v62 = vld [vmem:[#allocation21_spill] sm:$0xff]  ;;  %v9122_v20 = vld [vmem:[#allocation20_spill] sm:$0xff] }
 0x1f4   : > { %9113 = vst [vmem:[#allocation14_spill] sm:$0xff] %v8047_v14  ;;  %v8051_v11 = vpop.f32.mrb[12].mxu1  ;;  %3958 = vmatprep.mubr.bf16.mxu1 %v8958_v10  ;;  %v9121_v14 = vld [vmem:[#allocation22_spill] sm:$0xff] }
 0x1f5   : > { %9116 = vst [vmem:[#allocation18_spill] sm:$0xff] %v8051_v11  ;;  %v8054_v46 = vpop.f32.mrb[13].mxu1  ;;  %5890 = vmatmul.mubr.msk.bf16.vlgmr.msra.gmra.mrb[40].mxu0 %vm466_vm0, %v6520_v0  ;;  %v9124_v11 = vld [vmem:[#allocation26_spill] sm:$0xff] }
 0x1f6   : > { %9117 = vst [vmem:[#allocation106_spill] sm:$0xff] %v8054_v46  ;;  %v8057_v56 = vpop.f32.mrb[14].mxu1  ;;  %3933 = vmatpush1.bf16.msra.mxu1 %v9022_v7  ;;  %4033 = vmatpush1.bf16.msra.mxu0 %v9119_v62  ;;  %v9123_v46 = vld [vmem:[#allocation19_spill] sm:$0xff]  ;;  %v9129_v62 = vld [vmem:[#allocation28_spill] sm:$0xff] }
 0x1f7   : > { %9118 = vst [vmem:[#allocation107_spill] sm:$0xff] %v8057_v56  ;;  %v8061_v54 = vpop.f32.mrb[15].mxu1  ;;  %4034 = vmatprep.subr.bf16.mxu0 %v9121_v14  ;;  %4085 = vmatprep.subr.bf16.mxu1 %v9122_v20  ;;  %v9125_v56 = vld [vmem:[#allocation24_spill] sm:$0xff]  ;;  %v9127_v14 = vld [vmem:[#allocation25_spill] sm:$0xff]  ;;  %v9128_v20 = vld [vmem:[#allocation30_spill] sm:$0xff] }
 0x1f8   : > { %9120 = vst [vmem:[#allocation108_spill] sm:$0xff] %v8061_v54  ;;  %3915 = vmatprep.mubr.bf16.mxu0 %v8958_v10  ;;  %v9126_v54 = vld [vmem:[#allocation29_spill] sm:$0xff] }
 0x1f9   : > { %5892 = vmatmul.mubr.msk.bf16.vlgmr.msra.gmra.mrb[40].mxu1 %vm466_vm0, %v6520_v0  ;;  %v6522_v0 = vld [vmem:[%s8747_s2 + $0xb0] sm:$0xff]  }
 0x1fa   : > { %4035 = vmatpush1.bf16.msra.mxu0 %v9026_v1  ;;  %4086 = vmatpush1.bf16.msra.mxu1 %v9123_v46 }
 0x1fb   : > { %4036 = vmatprep.subr.bf16.mxu0 %v9124_v11  ;;  %4087 = vmatprep.subr.bf16.mxu1 %v9125_v56  ;;  %v9130_v56 = vld [vmem:[#allocation27_spill] sm:$0xff]  ;;  %v9131_v11 = vld [vmem:[#allocation32_spill] sm:$0xff] }
 0x1fc   : > { %3968 = vmatprep.mubr.bf16.mxu1 %v8958_v10 }
 0x1fd   : > { %5891 = vmatmul.mubr.msk.bf16.gmra.mrb[44].mxu0 %vm466_vm0, %v6521_v59 }
 0x1fe   : > { %4037 = vmatpush1.bf16.msra.mxu0 %v9126_v54  ;;  %4088 = vmatpush1.bf16.msra.mxu1 %v9127_v14  ;;  %v9132_v54 = vld [vmem:[#allocation35_spill] sm:$0xff] }
 0x1ff   : > { %4038 = vmatprep.subr.bf16.mxu0 %v9128_v20  ;;  %4089 = vmatprep.subr.bf16.mxu1 %v9129_v62  ;;  %v9133_v62 = vld [vmem:[#allocation33_spill] sm:$0xff] }
 0x200   : > { %4064 = vmatprep.mubr.bf16.mxu0 %v8958_v10  ;;  %v9135_v20 = vld [vmem:[#allocation37_spill] sm:$0xff] }
 0x201   : > { %5893 = vmatmul.mubr.msk.bf16.gmra.mrb[44].mxu1 %vm466_vm0, %v6521_v59  ;;  %v9134_v59 = vld [vmem:[#allocation39_spill] sm:$0xff] }
 0x202   : > { %4039 = vmatpush1.bf16.msra.mxu0 %v9033_v30  ;;  %4090 = vmatpush1.bf16.msra.mxu1 %v9130_v56 }
 0x203   : > { %4091 = vmatprep.subr.bf16.mxu1 %v9131_v11  ;;  %4138 = vmatprep.subr.bf16.mxu0 %v9132_v54  ;;  %v6523_v54 = vld [vmem:[%s8747_s2 + $0xb8] sm:$0xff]   ;;  %v9136_v11 = vld [vmem:[#allocation43_spill] sm:$0xff] }
 0x204   : > { %4117 = vmatprep.mubr.bf16.mxu1 %v8958_v10 }
 0x205   : > { %5900 = vmatmul.mubr.msk.bf16.vlgmr.msra.gmra.mrb[32].mxu0 %vm466_vm0, %v6522_v0 }
 0x206   : > { %4092 = vmatpush1.bf16.msra.mxu1 %v9133_v62  ;;  %4139 = vmatpush1.bf16.msra.mxu0 %v9038_v2  ;;  %v9137_v62 = vld [vmem:[#allocation41_spill] sm:$0xff] }
 0x207   : > { %4140 = vmatprep.subr.bf16.mxu0 %v9134_v59  ;;  %4191 = vmatprep.subr.bf16.mxu1 %v9135_v20  ;;  %v9138_v20 = vld [vmem:[#allocation45_spill] sm:$0xff] }
 0x208   : > { %4074 = vmatprep.mubr.bf16.mxu0 %v8958_v10 }
 0x209   : > { %5902 = vmatmul.mubr.msk.bf16.vlgmr.msra.gmra.mrb[32].mxu1 %vm466_vm0, %v6522_v0 }
 0x20a   : > { %4141 = vmatpush1.bf16.msra.mxu0 %v9041_v4  ;;  %4192 = vmatpush1.bf16.msra.mxu1 %v9042_v51 }
 0x20b   : > { %4142 = vmatprep.subr.bf16.mxu0 %v9136_v11  ;;  %4193 = vmatprep.subr.bf16.mxu1 %v9137_v62  ;;  %v9139_v62 = vld [vmem:[#allocation48_spill] sm:$0xff]  ;;  %v9140_v11 = vld [vmem:[#allocation46_spill] sm:$0xff] }
 0x20c   : > { %4127 = vmatprep.mubr.bf16.mxu1 %v8958_v10 }
 0x20d   : > { %5901 = vmatmul.mubr.msk.bf16.gmra.mrb[36].mxu0 %vm466_vm0, %v6523_v54 }
 0x20e   : > { %4143 = vmatpush1.bf16.msra.mxu0 %v9044_v37  ;;  %4194 = vmatpush1.bf16.msra.mxu1 %v9045_v47  ;;  %v9141_v47 = vld [vmem:[#allocation47_spill] sm:$0xff] }
 0x20f   : > { %4144 = vmatprep.subr.bf16.mxu0 %v7410_v24  ;;  %4195 = vmatprep.subr.bf16.mxu1 %v9138_v20  ;;  %v9142_v20 = vld [vmem:[#allocation50_spill] sm:$0xff] }
 0x210   : > { %4170 = vmatprep.mubr.bf16.mxu0 %v8958_v10 }
 0x211   : > { %5903 = vmatmul.mubr.msk.bf16.gmra.mrb[36].mxu1 %vm466_vm0, %v6523_v54 }
 0x212   : > { %4145 = vmatpush1.bf16.msra.mxu0 %v7407_v26  ;;  %4196 = vmatpush1.bf16.msra.mxu1 %v9046_v58 }
 0x213   : > { %4197 = vmatprep.subr.bf16.mxu1 %v9139_v62  ;;  %4334 = vmatprep.subr.bf16.mxu0 %v9140_v11  ;;  %v9143_v11 = vld [vmem:[#allocation52_spill] sm:$0xff] }
 0x214   : > { %4223 = vmatprep.mubr.bf16.mxu1 %v8958_v10 }
 0x215   : > { %5904 = vmatmul.mubr.msk.bf16.vlgmr.msra.gmra.mrb[40].mxu0 %vm466_vm0, %v6522_v0 }
 0x216   : > { %4198 = vmatpush1.bf16.msra.mxu1 %v9141_v47  ;;  %4335 = vmatpush1.bf16.msra.mxu0 %v7429_v60  ;;  %v9144_v60 = vld [vmem:[#allocation53_spill] sm:$0xff] }
 0x217   : > { %4336 = vmatprep.subr.bf16.mxu0 %v9048_v34  ;;  %4387 = vmatprep.subr.bf16.mxu1 %v9142_v20  ;;  %v9145_v20 = vld [vmem:[#allocation16_spill] sm:$0xff]  ;;  %v9146_v34 = vld [vmem:[#allocation23_spill] sm:$0xff] }
 0x218   : > { %4180 = vmatprep.mubr.bf16.mxu0 %v8958_v10 }
 0x219   : > { %5906 = vmatmul.mubr.msk.bf16.vlgmr.msra.gmra.mrb[40].mxu1 %vm466_vm0, %v6522_v0  ;;  %v9149_v0 = vld [vmem:[#allocation31_spill] sm:$0xff] }
 0x21a   : > { %4337 = vmatpush1.bf16.msra.mxu0 %v9049_v8  ;;  %4388 = vmatpush1.bf16.msra.mxu1 %v7448_v17  ;;  %v9147_v8 = vld [vmem:[#allocation54_spill] sm:$0xff]  ;;  %v9148_v17 = vld [vmem:[#allocation55_spill] sm:$0xff] }
 0x21b   : > { %4338 = vmatprep.subr.bf16.mxu0 %v7763_v22  ;;  %4389 = vmatprep.subr.bf16.mxu1 %v9143_v11  ;;  %v6524_v22 = vld [vmem:[%s8747_s2 + $0xd0] sm:$0xff]  }
 0x21c   : > { %4233 = vmatprep.mubr.bf16.mxu1 %v8958_v10  ;;  %v9153_v11 = vld [vmem:[#allocation36_spill] sm:$0xff] }
 0x21d   : > { %5905 = vmatmul.mubr.msk.bf16.gmra.mrb[44].mxu0 %vm466_vm0, %v6523_v54 }
 0x21e   : > { %4339 = vmatpush1.bf16.msra.mxu0 %v9144_v60  ;;  %4390 = vmatpush1.bf16.msra.mxu1 %v7464_v18  ;;  %v9150_v18 = vld [vmem:[#allocation56_spill] sm:$0xff]  ;;  %v6525_v60 = vld [vmem:[%s8747_s2 + $0xd8] sm:$0xff]  }
 0x21f   : > { %4340 = vmatprep.subr.bf16.mxu0 %v9145_v20  ;;  %4391 = vmatprep.subr.bf16.mxu1 %v7469_v29  ;;  %v9151_v29 = vld [vmem:[#allocation34_spill] sm:$0xff] }
 0x220   : > { %4366 = vmatprep.mubr.bf16.mxu0 %v8958_v10  ;;  %v9154_v20 = vld [vmem:[#allocation42_spill] sm:$0xff] }
 0x221   : > { %5907 = vmatmul.mubr.msk.bf16.gmra.mrb[44].mxu1 %vm466_vm0, %v6523_v54  ;;  %v9152_v54 = vld [vmem:[#allocation38_spill] sm:$0xff] }
 0x222   : > { %4341 = vmatpush1.bf16.msra.mxu0 %v9146_v34  ;;  %4392 = vmatpush1.bf16.msra.mxu1 %v9147_v8  ;;  %v9155_v34 = vld [vmem:[#allocation44_spill] sm:$0xff]  ;;  %v9156_v8 = vld [vmem:[#allocation49_spill] sm:$0xff] }
 0x223   : > { %4393 = vmatprep.subr.bf16.mxu1 %v9148_v17  ;;  %4440 = vmatprep.subr.bf16.mxu0 %v9149_v0  ;;  %v9157_v17 = vld [vmem:[#allocation51_spill] sm:$0xff] }
 0x224   : > { %4419 = vmatprep.mubr.bf16.mxu1 %v8958_v10  ;;  %v9158_v0 = vld [vmem:[#allocation71_spill] sm:$0xff] }
 0x225   : > { %5918 = vmatmul.mubr.msk.bf16.vlgmr.msra.gmra.mrb[48].mxu0 %vm466_vm0, %v6524_v22 }
 0x226   : > { %4394 = vmatpush1.bf16.msra.mxu1 %v9150_v18  ;;  %4441 = vmatpush1.bf16.msra.mxu0 %v9151_v29  ;;  %v9159_v18 = vld [vmem:[#allocation72_spill] sm:$0xff]  ;;  %v9160_v29 = vld [vmem:[#allocation73_spill] sm:$0xff] }
 0x227   : > { %4442 = vmatprep.subr.bf16.mxu0 %v9152_v54  ;;  %4493 = vmatprep.subr.bf16.mxu1 %v9153_v11  ;;  %v9173_v54 = vld [vmem:[#allocation68_spill] sm:$0xff]  ;;  %v6527_v11 = vld [vmem:[%s8747_s2 + $0xc8] sm:$0xff]  }
 0x228   : > { %4376 = vmatprep.mubr.bf16.mxu0 %v8958_v10 }
 0x229   : > { %5920 = vmatmul.mubr.msk.bf16.vlgmr.msra.gmra.mrb[48].mxu1 %vm466_vm0, %v6524_v22 }
 0x22a   : > { %4443 = vmatpush1.bf16.msra.mxu0 %v9154_v20  ;;  %4494 = vmatpush1.bf16.msra.mxu1 %v9155_v34  ;;  %v9175_v20 = vld [vmem:[#allocation78_spill] sm:$0xff] }
 0x22b   : > { %4444 = vmatprep.subr.bf16.mxu0 %v9156_v8  ;;  %4495 = vmatprep.subr.bf16.mxu1 %v9157_v17  ;;  %v9176_v34 = vld [vmem:[#allocation70_spill] sm:$0xff]  ;;  %v9177_v8 = vld [vmem:[#allocation84_spill] sm:$0xff]  ;;  %v9178_v17 = vld [vmem:[#allocation85_spill] sm:$0xff] }
 0x22c   : > { %4429 = vmatprep.mubr.bf16.mxu1 %v8958_v10 }
 0x22d   : > { %5919 = vmatmul.mubr.msk.bf16.gmra.mrb[52].mxu0 %vm466_vm0, %v6525_v60 }
 0x22e   : > { %4445 = vmatpush1.bf16.msra.mxu0 %v9158_v0  ;;  %4496 = vmatpush1.bf16.msra.mxu1 %v9159_v18 }
 0x22f   : > { %4446 = vmatprep.subr.bf16.mxu0 %v7838_v36  ;;  %4497 = vmatprep.subr.bf16.mxu1 %v9160_v29  ;;  %v9162_v36 = vld [vmem:[#allocation58_spill] sm:$0xff]  ;;  %v9183_v29 = vld [vmem:[#allocation80_spill] sm:$0xff] }
 0x230   : > { %4472 = vmatprep.mubr.bf16.mxu0 %v8958_v10 }
 0x231   : > { %5921 = vmatmul.mubr.msk.bf16.gmra.mrb[52].mxu1 %vm466_vm0, %v6525_v60 }
 0x232   : > { %4447 = vmatpush1.bf16.msra.mxu0 %v7848_v63  ;;  %4498 = vmatpush1.bf16.msra.mxu1 %v7852_v31  ;;  %v9169_v63 = vld [vmem:[#allocation65_spill] sm:$0xff]  ;;  %v9171_v31 = vld [vmem:[#allocation67_spill] sm:$0xff] }
 0x233   : > { %4499 = vmatprep.subr.bf16.mxu1 %v7856_v35  ;;  %4562 = vmatprep.subr.bf16.mxu0 %v7518_v39  ;;  %v9161_v35 = vld [vmem:[#allocation57_spill] sm:$0xff]  ;;  %v9164_v39 = vld [vmem:[#allocation60_spill] sm:$0xff] }
 0x234   : > { %4525 = vmatprep.mubr.bf16.mxu1 %v8958_v10 }
 0x235   : > { %5922 = vmatmul.mubr.msk.bf16.vlgmr.msra.gmra.mrb[56].mxu0 %vm466_vm0, %v6524_v22 }
 0x236   : > { %4500 = vmatpush1.bf16.msra.mxu1 %v7863_v32  ;;  %4563 = vmatpush1.bf16.msra.mxu0 %v7525_v40  ;;  %v9163_v32 = vld [vmem:[#allocation59_spill] sm:$0xff]  ;;  %v9165_v40 = vld [vmem:[#allocation61_spill] sm:$0xff] }
 0x237   : > { %4564 = vmatprep.subr.bf16.mxu0 %v7529_v42  ;;  %4615 = vmatprep.subr.bf16.mxu1 %v7533_v43  ;;  %v6526_v42 = vld [vmem:[%s8747_s2 + $0xc0] sm:$0xff]  }
 0x238   : > { %4482 = vmatprep.mubr.bf16.mxu0 %v8958_v10  ;;  %v9166_v43 = vld [vmem:[#allocation62_spill] sm:$0xff] }
 0x239   : > { %5924 = vmatmul.mubr.msk.bf16.vlgmr.msra.gmra.mrb[56].mxu1 %vm466_vm0, %v6524_v22  ;;  %v9172_v22 = vld [vmem:[#allocation74_spill] sm:$0xff] }
 0x23a   : > { %4565 = vmatpush1.bf16.msra.mxu0 %v7539_v44  ;;  %4616 = vmatpush1.bf16.msra.mxu1 %v7543_v45  ;;  %v9167_v44 = vld [vmem:[#allocation63_spill] sm:$0xff]  ;;  %v9168_v45 = vld [vmem:[#allocation64_spill] sm:$0xff] }
 0x23b   : > { %4566 = vmatprep.subr.bf16.mxu0 %v9161_v35  ;;  %4617 = vmatprep.subr.bf16.mxu1 %v9162_v36  ;;  %v9207_v35 = vld [vmem:[#allocation6_spill] sm:$0xff] }
 0x23c   : > { %4535 = vmatprep.mubr.bf16.mxu1 %v8958_v10 }
 0x23d   : > { %5923 = vmatmul.mubr.msk.bf16.gmra.mrb[60].mxu0 %vm466_vm0, %v6525_v60 }
 0x23e   : > { %4567 = vmatpush1.bf16.msra.mxu0 %v9163_v32  ;;  %4618 = vmatpush1.bf16.msra.mxu1 %v7561_v53  ;;  %v9170_v53 = vld [vmem:[#allocation66_spill] sm:$0xff] }
 0x23f   : > { %4568 = vmatprep.subr.bf16.mxu0 %v9164_v39  ;;  %4619 = vmatprep.subr.bf16.mxu1 %v9165_v40 }
 0x240   : > { %4594 = vmatprep.mubr.bf16.mxu0 %v8958_v10 }
 0x241   : > { %5925 = vmatmul.mubr.msk.bf16.gmra.mrb[60].mxu1 %vm466_vm0, %v6525_v60  ;;  %v9174_v60 = vld [vmem:[#allocation69_spill] sm:$0xff] }
 0x242   : > { %4569 = vmatpush1.bf16.msra.mxu0 %v9166_v43  ;;  %4620 = vmatpush1.bf16.msra.mxu1 %v9167_v44  ;;  %v9200_v43 = vld [vmem:[#allocation5_spill] sm:$0xff] }
 0x243   : > { %4621 = vmatprep.subr.bf16.mxu1 %v9168_v45  ;;  %4668 = vmatprep.subr.bf16.mxu0 %v9169_v63  ;;  %v9187_v45 = vld [vmem:[#allocation83_spill] sm:$0xff] }
 0x244   : > { %4647 = vmatprep.mubr.bf16.mxu1 %v8958_v10 }
 0x245   : > { %5928 = vmatmul.mubr.msk.bf16.vlgmr.msra.gmra.mrb[48].mxu0 %vm466_vm0, %v6526_v42 }
 0x246   : > { %4622 = vmatpush1.bf16.msra.mxu1 %v9170_v53  ;;  %4669 = vmatpush1.bf16.msra.mxu0 %v9171_v31 }
 0x247   : > { %4670 = vmatprep.subr.bf16.mxu0 %v9172_v22  ;;  %4721 = vmatprep.subr.bf16.mxu1 %v9173_v54  ;;  %v9197_v22 = vld [vmem:[#allocation93_spill] sm:$0xff] }
 0x248   : > { %4604 = vmatprep.mubr.bf16.mxu0 %v8958_v10 }
 0x249   : > { %5930 = vmatmul.mubr.msk.bf16.vlgmr.msra.gmra.mrb[48].mxu1 %vm466_vm0, %v6526_v42 }
 0x24a   : > { %4671 = vmatpush1.bf16.msra.mxu0 %v7614_v5  ;;  %4722 = vmatpush1.bf16.msra.mxu1 %v9174_v60  ;;  %v221_v60 = vld [vmem:[%s8748_s3 + $0x10] sm:$0xff] }
 0x24b   : > { %4672 = vmatprep.subr.bf16.mxu0 %v7913_v48  ;;  %4723 = vmatprep.subr.bf16.mxu1 %v9175_v20  ;;  %v9179_v48 = vld [vmem:[#allocation87_spill] sm:$0xff]  ;;  %v9195_v20 = vld [vmem:[#allocation2_spill] sm:$0xff] }
 0x24c   : > { %4657 = vmatprep.mubr.bf16.mxu1 %v8958_v10 }
 0x24d   : > { %5929 = vmatmul.mubr.msk.bf16.gmra.mrb[52].mxu0 %vm466_vm0, %v6527_v11 }
 0x24e   : > { %4673 = vmatpush1.bf16.msra.mxu0 %v7626_v55  ;;  %4724 = vmatpush1.bf16.msra.mxu1 %v9176_v34 }
 0x24f   : > { %4674 = vmatprep.subr.bf16.mxu0 %v9177_v8  ;;  %4725 = vmatprep.subr.bf16.mxu1 %v9178_v17  ;;  %v9191_v8 = vld [vmem:[#allocation91_spill] sm:$0xff] }
 0x250   : > { %4700 = vmatprep.mubr.bf16.mxu0 %v8958_v10 }
 0x251   : > { %5931 = vmatmul.mubr.msk.bf16.gmra.mrb[52].mxu1 %vm466_vm0, %v6527_v11 }
 0x252   : > { %4675 = vmatpush1.bf16.msra.mxu0 %v7638_v61  ;;  %4726 = vmatpush1.bf16.msra.mxu1 %v9179_v48  ;;  %v9181_v61 = vld [vmem:[#allocation76_spill] sm:$0xff] }
 0x253   : > { %4795 = vmatprep.subr.bf16.mxu0 %v7093_v15  ;;  %4727 = vmatprep.subr.bf16.mxu1 %v7957_v49  ;;  %v9180_v15 = vld [vmem:[#allocation75_spill] sm:$0xff] }
 0x254   : > { %4753 = vmatprep.mubr.bf16.mxu1 %v8958_v10 }
 0x255   : > { %5932 = vmatmul.mubr.msk.bf16.vlgmr.msra.gmra.mrb[56].mxu0 %vm466_vm0, %v6526_v42 }
 0x256   : > { %4728 = vmatpush1.bf16.msra.mxu1 %v7971_v9  ;;  %4796 = vmatpush1.bf16.msra.mxu0 %v7104_v19  ;;  %v9182_v19 = vld [vmem:[#allocation77_spill] sm:$0xff]  ;;  %v9216_v9 = vld [vmem:[#allocation100_spill] sm:$0xff] }
 0x257   : > { %4797 = vmatprep.subr.bf16.mxu0 %v7113_v23  ;;  %4848 = vmatprep.subr.bf16.mxu1 %v7086_v12  ;;  %v219_v12 = vld [vmem:[%s8748_s3] sm:$0xff]  ;;  %v9208_v23 = vld [vmem:[#allocation4_spill] sm:$0xff] }
 0x258   : > { %v8227_v5 = vpop.f32.mrb[16].mxu0  ;;  %4710 = vmatprep.mubr.bf16.mxu0 %v8958_v10  ;;  %5338 = vperm.xlu0 %6394, %v219_v12   ;;  %v9199_v12 = vld [vmem:[#allocation7_spill] sm:$0xff] }
 0x259   : > { %v8232_v49 = vpop.f32.mrb[17].mxu0  ;;  %5934 = vmatmul.mubr.msk.bf16.vlgmr.msra.gmra.mrb[56].mxu1 %vm466_vm0, %v6526_v42  ;;  %v9186_v42 = vld [vmem:[#allocation82_spill] sm:$0xff] }
 0x25a   : > { %v8237_v0 = vpop.f32.mrb[18].mxu0  ;;  %4798 = vmatpush1.bf16.msra.mxu0 %v7119_v25  ;;  %4849 = vmatpush1.bf16.msra.mxu1 %v7096_v16  ;;  %v220_v16 = vld [vmem:[%s8748_s3 + $0x8] sm:$0xff] }
 0x25b   : > { %v8246_v18 = vpop.f32.mrb[19].mxu0  ;;  %4799 = vmatprep.subr.bf16.mxu0 %v7137_v33  ;;  %4850 = vmatprep.subr.bf16.mxu1 %v7124_v27  ;;  %v9184_v25 = vld [vmem:[#allocation79_spill] sm:$0xff]  ;;  %v9185_v27 = vld [vmem:[#allocation81_spill] sm:$0xff] }
 0x25c   : > { %v8252_v36 = vpop.f32.mrb[16].mxu1  ;;  %4763 = vmatprep.mubr.bf16.mxu1 %v8958_v10  ;;  %5343 = vperm.xlu1 %6395, %v220_v16   ;;  %v9222_v33 = vld [vmem:[#allocation15_spill] sm:$0xff] }
 0x25d   : > { %v8260_v39 = vpop.f32.mrb[17].mxu1  ;;  %5933 = vmatmul.mubr.msk.bf16.gmra.mrb[60].mxu0 %vm466_vm0, %v6527_v11 }
 0x25e   : > { %v8265_v40 = vpop.f32.mrb[18].mxu1  ;;  %4800 = vmatpush1.bf16.msra.mxu0 %v7154_v57  ;;  %4851 = vmatpush1.bf16.msra.mxu1 %v7127_v28  ;;  %v9188_v57 = vld [vmem:[#allocation86_spill] sm:$0xff] }
 0x25f   : > { %v8271_v44 = vpop.f32.mrb[19].mxu1  ;;  %4801 = vmatprep.subr.bf16.mxu0 %v7158_v6  ;;  %4852 = vmatprep.subr.bf16.mxu1 %v7147_v41  ;;  %v8288_v6 = vld [vmem:[%s8747_s2 + $0xe0] sm:$0xff]   ;;  %v9189_v41 = vld [vmem:[#allocation88_spill] sm:$0xff] }
 0x260   : > { %v8277_v53 = vpop.f32.mrb[20].mxu0  ;;  %4827 = vmatprep.mubr.bf16.mxu0 %v8958_v10  ;;  %5348 = vperm.xlu1 %6395, %v221_v60   ;;  %v9196_v60 = vld [vmem:[#allocation3_spill] sm:$0xff] }
 0x261   : > { %v8282_v28 = vpop.f32.mrb[21].mxu0  ;;  %5935 = vmatmul.mubr.msk.bf16.gmra.mrb[60].mxu1 %vm466_vm0, %v6527_v11  ;;  %v9190_v11 = vld [vmem:[#allocation89_spill] sm:$0xff] }
 0x262   : > { %v8292_v54 = vpop.f32.mrb[22].mxu0  ;;  %4802 = vmatpush1.bf16.msra.mxu0 %v7162_v3  ;;  %4853 = vmatpush1.bf16.msra.mxu1 %v7144_v38  ;;  %v222_v38 = vld [vmem:[%s8748_s3 + $0x18] sm:$0xff]  ;;  %v9192_v3 = vld [vmem:[#allocation90_spill] sm:$0xff] }
 0x263   : > { %v8301_v34 = vpop.f32.mrb[23].mxu0  ;;  %4854 = vmatprep.subr.bf16.mxu1 %v7171_v13  ;;  %4901 = vmatprep.subr.bf16.mxu0 %v7186_v21  ;;  %v9193_v13 = vld [vmem:[#allocation92_spill] sm:$0xff] }
 0x264   : > { %v8307_v48 = vpop.f32.mrb[20].mxu1  ;;  %4880 = vmatprep.mubr.bf16.mxu1 %v8958_v10  ;;  %5353 = vperm.xlu0 %6394, %v222_v38   ;;  %v9219_v38 = vld [vmem:[#allocation8_spill] sm:$0xff] }
 0x265   : > { %v8315_v16 = vpop.f32.mrb[21].mxu1  ;;  %5942 = vmatmul.mubr.msk.bf16.vlgmr.msra.gmra.mrb[48].mxu0 %vm466_vm0, %v8288_v6 }
 0x266   : > { %v8321_v17 = vpop.f32.mrb[22].mxu1  ;;  %4855 = vmatpush1.bf16.msra.mxu1 %v9195_v20  ;;  %4902 = vmatpush1.bf16.msra.mxu0 %v9196_v60  ;;  %v9212_v20 = vld [vmem:[#allocation9_spill] sm:$0xff] }
 0x267   : > { %9194 = vst [vmem:[#allocation19_spill] sm:$0xff] %v8321_v17  ;;  %v8327_v63 = vpop.f32.mrb[23].mxu1  ;;  %4903 = vmatprep.subr.bf16.mxu0 %v9199_v12  ;;  %4954 = vmatprep.subr.bf16.mxu1 %v9200_v43  ;;  %v8345_v12 = vld [vmem:[%s8747_s2 + $0xe8] sm:$0xff]  }
 0x268   : > { %9198 = vst [vmem:[#allocation25_spill] sm:$0xff] %v8327_v63  ;;  %v8333_v32 = vpop.f32.mrb[24].mxu0  ;;  %4837 = vmatprep.mubr.bf16.mxu0 %v8958_v10  ;;  %v9227_v63 = vld [vmem:[#allocation104_spill] sm:$0xff] }
 0x269   : > { %9202 = vst [vmem:[#allocation27_spill] sm:$0xff] %v8333_v32  ;;  %v8338_v60 = vpop.f32.mrb[25].mxu0  ;;  %5944 = vmatmul.mubr.msk.bf16.vlgmr.msra.gmra.mrb[48].mxu1 %vm466_vm0, %v8288_v6  ;;  %v9211_v32 = vld [vmem:[#allocation11_spill] sm:$0xff] }
 0x26a   : > { %9204 = vst [vmem:[#allocation39_spill] sm:$0xff] %v8338_v60  ;;  %v8349_v31 = vpop.f32.mrb[26].mxu0  ;;  %4904 = vmatpush1.bf16.msra.mxu0 %v9207_v35  ;;  %4955 = vmatpush1.bf16.msra.mxu1 %v9208_v23 }
 0x26b   : > { %9206 = vst [vmem:[#allocation48_spill] sm:$0xff] %v8349_v31  ;;  %v8355_v55 = vpop.f32.mrb[27].mxu0  ;;  %4905 = vmatprep.subr.bf16.mxu0 %v9211_v32  ;;  %4956 = vmatprep.subr.bf16.mxu1 %v9212_v20  ;;  %v9218_v20 = vld [vmem:[#allocation10_spill] sm:$0xff]  ;;  %v9232_v32 = vld [vmem:[#allocation17_spill] sm:$0xff] }
 0x26c   : > { %9210 = vst [vmem:[#allocation46_spill] sm:$0xff] %v8355_v55  ;;  %v8361_v17 = vpop.f32.mrb[24].mxu1  ;;  %4890 = vmatprep.mubr.bf16.mxu1 %v8958_v10 }
 0x26d   : > { %9214 = vst [vmem:[#allocation47_spill] sm:$0xff] %v8361_v17  ;;  %v8366_v23 = vpop.f32.mrb[25].mxu1  ;;  %5943 = vmatmul.mubr.msk.bf16.gmra.mrb[52].mxu0 %vm466_vm0, %v8345_v12  ;;  %v9223_v17 = vld [vmem:[#allocation13_spill] sm:$0xff] }
 0x26e   : > { %v8372_v31 = vpop.f32.mrb[26].mxu1  ;;  %4906 = vmatpush1.bf16.msra.mxu0 %v9218_v20  ;;  %4957 = vmatpush1.bf16.msra.mxu1 %v9219_v38  ;;  %v9238_v20 = vld [vmem:[#allocation107_spill] sm:$0xff] }
 0x26f   : > { %9217 = vst [vmem:[#allocation50_spill] sm:$0xff] %v8372_v31  ;;  %v8378_v21 = vpop.f32.mrb[27].mxu1  ;;  %4907 = vmatprep.subr.bf16.mxu0 %v9222_v33  ;;  %4958 = vmatprep.subr.bf16.mxu1 %v9223_v17  ;;  %v9229_v17 = vld [vmem:[#allocation12_spill] sm:$0xff]  ;;  %v9239_v33 = vld [vmem:[#allocation22_spill] sm:$0xff] }
 0x270   : > { %9221 = vst [vmem:[#allocation52_spill] sm:$0xff] %v8378_v21  ;;  %v8384_v43 = vpop.f32.mrb[28].mxu0  ;;  %4933 = vmatprep.mubr.bf16.mxu0 %v8958_v10  ;;  %v9236_v21 = vld [vmem:[#allocation106_spill] sm:$0xff] }
 0x271   : > { %9225 = vst [vmem:[#allocation53_spill] sm:$0xff] %v8384_v43  ;;  %v8389_v38 = vpop.f32.mrb[29].mxu0  ;;  %5945 = vmatmul.mubr.msk.bf16.gmra.mrb[52].mxu1 %vm466_vm0, %v8345_v12 }
 0x272   : > { %v8395_v31 = vpop.f32.mrb[30].mxu0  ;;  %4908 = vmatpush1.bf16.msra.mxu0 %v9111_v50  ;;  %4959 = vmatpush1.bf16.msra.mxu1 %v9229_v17  ;;  %v9241_v50 = vld [vmem:[#allocation108_spill] sm:$0xff] }
 0x273   : > { %9228 = vst [vmem:[#allocation16_spill] sm:$0xff] %v8395_v31  ;;  %v8401_v35 = vpop.f32.mrb[31].mxu0  ;;  %4960 = vmatprep.subr.bf16.mxu1 %v9232_v32  ;;  %5060 = vmatprep.subr.bf16.mxu0 %v9115_v52  ;;  %v9237_v52 = vld [vmem:[#allocation21_spill] sm:$0xff] }
 0x274   : > { %9231 = vst [vmem:[#allocation23_spill] sm:$0xff] %v8401_v35  ;;  %v8407_v55 = vpop.f32.mrb[28].mxu1  ;;  %4986 = vmatprep.mubr.bf16.mxu1 %v8958_v10 }
 0x275   : > { %9234 = vst [vmem:[#allocation54_spill] sm:$0xff] %v8407_v55  ;;  %v8412_v17 = vpop.f32.mrb[29].mxu1  ;;  %5946 = vmatmul.mubr.msk.bf16.vlgmr.msra.gmra.mrb[56].mxu0 %vm466_vm0, %v8288_v6  ;;  %v9240_v55 = vld [vmem:[#allocation20_spill] sm:$0xff] }
 0x276   : > { %v3271_v32 = vmax.f32 %v9236_v21, %v8412_v17  ;;  %v8418_v31 = vpop.f32.mrb[30].mxu1  ;;  %4961 = vmatpush1.bf16.msra.mxu1 %v9022_v7  ;;  %5061 = vmatpush1.bf16.msra.mxu0 %v9237_v52  ;;  %v9242_v7 = vld [vmem:[#allocation26_spill] sm:$0xff]  ;;  %v9243_v52 = vld [vmem:[#allocation24_spill] sm:$0xff] }
 0x277   : > { %v3278_v35 = vmax.f32 %v9238_v20, %v8418_v31  ;;  %v8424_v43 = vpop.f32.mrb[31].mxu1  ;;  %5062 = vmatprep.subr.bf16.mxu0 %v9239_v33  ;;  %5113 = vmatprep.subr.bf16.mxu1 %v9240_v55  ;;  %v9244_v55 = vld [vmem:[#allocation29_spill] sm:$0xff]  ;;  %v9245_v33 = vld [vmem:[#allocation30_spill] sm:$0xff] }
 0x278   : > { %v3279_v60 = vmax.f32 %v9241_v50, %v8424_v43  ;;  %4943 = vmatprep.mubr.bf16.mxu0 %v8958_v10 }
 0x279   : > { %5948 = vmatmul.mubr.msk.bf16.vlgmr.msra.gmra.mrb[56].mxu1 %vm466_vm0, %v8288_v6  ;;  %v9246_v6 = vld [vmem:[#allocation28_spill] sm:$0xff] }
 0x27a   : > { %5063 = vmatpush1.bf16.msra.mxu0 %v9026_v1  ;;  %5114 = vmatpush1.bf16.msra.mxu1 %v9123_v46  ;;  %v6530_v1 = vld [vmem:[%s8747_s2 + $0xf0] sm:$0xff]  }
 0x27b   : > { %5064 = vmatprep.subr.bf16.mxu0 %v9242_v7  ;;  %5115 = vmatprep.subr.bf16.mxu1 %v9243_v52  ;;  %v9247_v46 = vld [vmem:[#allocation32_spill] sm:$0xff]  ;;  %v9249_v7 = vld [vmem:[#allocation33_spill] sm:$0xff] }
 0x27c   : > { %4996 = vmatprep.mubr.bf16.mxu1 %v8958_v10  ;;  %v9252_v52 = vld [vmem:[#allocation41_spill] sm:$0xff] }
 0x27d   : > { %5947 = vmatmul.mubr.msk.bf16.gmra.mrb[60].mxu0 %vm466_vm0, %v8345_v12 }
 0x27e   : > { %5065 = vmatpush1.bf16.msra.mxu0 %v9244_v55  ;;  %5116 = vmatpush1.bf16.msra.mxu1 %v9127_v14  ;;  %v9248_v14 = vld [vmem:[#allocation35_spill] sm:$0xff] }
 0x27f   : > { %5066 = vmatprep.subr.bf16.mxu0 %v9245_v33  ;;  %5117 = vmatprep.subr.bf16.mxu1 %v9246_v6  ;;  %v9258_v33 = vmax.f32 %v9183_v29, %v8246_v18  ;;  %v9262_v29 = vmax.f32 %v9187_v45, %v8271_v44  ;;  %v9266_v45 = vmax.f32 %v9191_v8, %v8301_v34  ;;  %v9271_v8 = vld [vmem:[#allocation94_spill] sm:$0xff] }
 0x280   : > { %5092 = vmatprep.mubr.bf16.mxu0 %v8958_v10 }
 0x281   : > { %5949 = vmatmul.mubr.msk.bf16.gmra.mrb[60].mxu1 %vm466_vm0, %v8345_v12  ;;  %v9250_v12 = vld [vmem:[#allocation37_spill] sm:$0xff] }
 0x282   : > { %5067 = vmatpush1.bf16.msra.mxu0 %v9033_v30  ;;  %5118 = vmatpush1.bf16.msra.mxu1 %v9130_v56  ;;  %v6531_v30 = vld [vmem:[%s8747_s2 + $0xf8] sm:$0xff]   ;;  %v9251_v56 = vld [vmem:[#allocation43_spill] sm:$0xff] }
 0x283   : > { %5119 = vmatprep.subr.bf16.mxu1 %v9247_v46  ;;  %5166 = vmatprep.subr.bf16.mxu0 %v9248_v14 }
 0x284   : > { %5145 = vmatprep.mubr.bf16.mxu1 %v8958_v10 }
 0x285   : > { %5956 = vmatmul.mubr.msk.bf16.vlgmr.msra.gmra.mrb[48].mxu0 %vm466_vm0, %v6530_v1 }
 0x286   : > { %5120 = vmatpush1.bf16.msra.mxu1 %v9249_v7  ;;  %5167 = vmatpush1.bf16.msra.mxu0 %v9038_v2  ;;  %v9253_v2 = vld [vmem:[#allocation40_spill] sm:$0xff] }
 0x287   : > { %5168 = vmatprep.subr.bf16.mxu0 %v9134_v59  ;;  %5219 = vmatprep.subr.bf16.mxu1 %v9250_v12  ;;  %v9254_v59 = vld [vmem:[#allocation45_spill] sm:$0xff] }
 0x288   : > { %5102 = vmatprep.mubr.bf16.mxu0 %v8958_v10 }
 0x289   : > { %5958 = vmatmul.mubr.msk.bf16.vlgmr.msra.gmra.mrb[48].mxu1 %vm466_vm0, %v6530_v1 }
 0x28a   : > { %5169 = vmatpush1.bf16.msra.mxu0 %v9041_v4  ;;  %5220 = vmatpush1.bf16.msra.mxu1 %v9042_v51  ;;  %v9256_v4 = vmax.f32 %v9181_v61, %v8232_v49  ;;  %v9260_v61 = vmax.f32 %v9185_v27, %v8260_v39  ;;  %v9264_v27 = vmax.f32 %v9189_v41, %v8282_v28 }
 0x28b   : > { %5170 = vmatprep.subr.bf16.mxu0 %v9251_v56  ;;  %5221 = vmatprep.subr.bf16.mxu1 %v9252_v52  ;;  %v9268_v41 = vmax.f32 %v9193_v13, %v8315_v16  ;;  %v9277_v13 = vld [vmem:[#allocation96_spill] sm:$0xff] }
 0x28c   : > { %5155 = vmatprep.mubr.bf16.mxu1 %v8958_v10 }
 0x28d   : > { %5957 = vmatmul.mubr.msk.bf16.gmra.mrb[52].mxu0 %vm466_vm0, %v6531_v30 }
 0x28e   : > { %5171 = vmatpush1.bf16.msra.mxu0 %v9044_v37  ;;  %5222 = vmatpush1.bf16.msra.mxu1 %v9253_v2 }
 0x28f   : > { %5172 = vmatprep.subr.bf16.mxu0 %v7410_v24  ;;  %5223 = vmatprep.subr.bf16.mxu1 %v9254_v59 }
 0x290   : > { %5198 = vmatprep.mubr.bf16.mxu0 %v8958_v10 }
 0x291   : > { %5959 = vmatmul.mubr.msk.bf16.gmra.mrb[52].mxu1 %vm466_vm0, %v6531_v30 }
 0x292   : > { %5173 = vmatpush1.bf16.msra.mxu0 %v7407_v26  ;;  %5224 = vmatpush1.bf16.msra.mxu1 %v9046_v58  ;;  %v9255_v26 = vmax.f32 %v9180_v15, %v8227_v5  ;;  %v9259_v15 = vmax.f32 %v9184_v25, %v8252_v36  ;;  %v9263_v25 = vmax.f32 %v9188_v57, %v8277_v53 }
 0x293   : > { %5225 = vmatprep.subr.bf16.mxu1 %v9139_v62  ;;  %5251 = vmatprep.mubr.bf16.mxu1 %v8958_v10  ;;  %v9267_v57 = vmax.f32 %v9192_v3, %v8307_v48  ;;  %v9274_v3 = vld [vmem:[#allocation95_spill] sm:$0xff] }
 0x295   : > { %5960 = vmatmul.mubr.msk.bf16.vlgmr.msra.gmra.mrb[56].mxu0 %vm466_vm0, %v6530_v1 }
 0x296   : > { %5226 = vmatpush1.bf16.msra.mxu1 %v9141_v47  ;;  %5208 = vmatprep.mubr.bf16.mxu0 %v8958_v10 }
 0x299   : > { %5962 = vmatmul.mubr.msk.bf16.vlgmr.msra.gmra.mrb[56].mxu1 %vm466_vm0, %v6530_v1 }
 0x29a   : > { %5261 = vmatprep.mubr.bf16.mxu1 %v8958_v10  ;;  %v9257_v10 = vmax.f32 %v9182_v19, %v8237_v0  ;;  %v9261_v19 = vmax.f32 %v9186_v42, %v8265_v40  ;;  %v9265_v42 = vmax.f32 %v9190_v11, %v8292_v54  ;;  %v9269_v11 = vld [vmem:[#allocation19_spill] sm:$0xff] }
 0x29d   : > { %5961 = vmatmul.mubr.msk.bf16.gmra.mrb[60].mxu0 %vm466_vm0, %v6531_v30 }
 0x2a1   : > { %5963 = vmatmul.mubr.msk.bf16.gmra.mrb[60].mxu1 %vm466_vm0, %v6531_v30 }
 0x2d8   : > { %v4066_v51 = vpop.f32.mrb[32].mxu0 }
 0x2d9   : > { %v8491_v24 = vmax.f32 %v9255_v26, %v4066_v51  ;;  %v4068_v62 = vpop.f32.mrb[33].mxu0  ;;  %v9270_v51 = vmax.f32 %v9197_v22, %v9269_v11  ;;  %v9290_v11 = vld [vmem:[#allocation101_spill] sm:$0xff] }
 0x2da   : > { %v8496_v58 = vmax.f32 %v9256_v4, %v4068_v62  ;;  %v4070_v37 = vpop.f32.mrb[34].mxu0  ;;  %v9272_v62 = vld [vmem:[#allocation25_spill] sm:$0xff] }
 0x2db   : > { %v8501_v47 = vmax.f32 %v9257_v10, %v4070_v37  ;;  %v4072_v55 = vpop.f32.mrb[35].mxu0  ;;  %v9273_v4 = vmax.f32 %v9271_v8, %v9272_v62  ;;  %v9275_v10 = vld [vmem:[#allocation27_spill] sm:$0xff] }
 0x2dc   : > { %v8506_v6 = vmax.f32 %v9258_v33, %v4072_v55  ;;  %v4119_v5 = vpop.f32.mrb[32].mxu1  ;;  %v9276_v55 = vmax.f32 %v9274_v3, %v9275_v10 }
 0x2dd   : > { %v8511_v1 = vmax.f32 %v9259_v15, %v4119_v5  ;;  %v4121_v49 = vpop.f32.mrb[33].mxu1  ;;  %v9278_v5 = vld [vmem:[#allocation39_spill] sm:$0xff] }
 0x2de   : > { %v8516_v46 = vmax.f32 %v9260_v61, %v4121_v49  ;;  %v4123_v0 = vpop.f32.mrb[34].mxu1  ;;  %v9279_v15 = vmax.f32 %v9277_v13, %v9278_v5  ;;  %v9280_v61 = vld [vmem:[#allocation97_spill] sm:$0xff] }
 0x2df   : > { %v8521_v14 = vmax.f32 %v9261_v19, %v4123_v0  ;;  %v4125_v18 = vpop.f32.mrb[35].mxu1  ;;  %v9281_v0 = vld [vmem:[#allocation48_spill] sm:$0xff]  ;;  %v9297_v13 = vld [vmem:[#allocation53_spill] sm:$0xff] }
 0x2e0   : > { %v8526_v7 = vmax.f32 %v9262_v29, %v4125_v18  ;;  %v4076_v36 = vpop.f32.mrb[36].mxu0  ;;  %v9282_v19 = vmax.f32 %v9280_v61, %v9281_v0  ;;  %v9300_v0 = vld [vmem:[#allocation105_spill] sm:$0xff] }
 0x2e1   : > { %v8531_v12 = vmax.f32 %v9263_v25, %v4076_v36  ;;  %v4078_v39 = vpop.f32.mrb[37].mxu0  ;;  %v9283_v36 = vld [vmem:[#allocation98_spill] sm:$0xff] }
 0x2e2   : > { %v8536_v30 = vmax.f32 %v9264_v27, %v4078_v39  ;;  %v4080_v40 = vpop.f32.mrb[38].mxu0  ;;  %v9284_v25 = vld [vmem:[#allocation46_spill] sm:$0xff] }
 0x2e3   : > { %v8541_v56 = vmax.f32 %v9265_v42, %v4080_v40  ;;  %v4082_v44 = vpop.f32.mrb[39].mxu0  ;;  %v9285_v39 = vmax.f32 %v9283_v36, %v9284_v25  ;;  %v9286_v42 = vld [vmem:[#allocation99_spill] sm:$0xff] }
 0x2e4   : > { %v8546_v52 = vmax.f32 %v9266_v45, %v4082_v44  ;;  %v4129_v53 = vpop.f32.mrb[36].mxu1  ;;  %v9287_v44 = vld [vmem:[#allocation47_spill] sm:$0xff] }
 0x2e5   : > { %v8551_v2 = vmax.f32 %v9267_v57, %v4129_v53  ;;  %v4131_v28 = vpop.f32.mrb[37].mxu1  ;;  %v9288_v45 = vmax.f32 %v9286_v42, %v9287_v44 }
 0x2e6   : > { %v8556_v59 = vmax.f32 %v9268_v41, %v4131_v28  ;;  %v4133_v54 = vpop.f32.mrb[38].mxu1  ;;  %v9289_v28 = vmax.f32 %v9216_v9, %v8366_v23  ;;  %v9299_v23 = vmax.f32 %v9227_v63, %v8389_v38 }
 0x2e7   : > { %v8561_v26 = vmax.f32 %v9270_v51, %v4133_v54  ;;  %v4135_v34 = vpop.f32.mrb[39].mxu1  ;;  %v9291_v51 = vld [vmem:[#allocation50_spill] sm:$0xff] }
 0x2e8   : > { %v8566_v37 = vmax.f32 %v9273_v4, %v4135_v34  ;;  %v4172_v48 = vpop.f32.mrb[40].mxu0  ;;  %v9292_v34 = vmax.f32 %v9290_v11, %v9291_v51  ;;  %v9293_v4 = vld [vmem:[#allocation102_spill] sm:$0xff] }
 0x2e9   : > { %v8571_v33 = vmax.f32 %v9276_v55, %v4172_v48  ;;  %v4174_v16 = vpop.f32.mrb[41].mxu0  ;;  %v9294_v48 = vld [vmem:[#allocation52_spill] sm:$0xff] }
 0x2ea   : > { %v8576_v49 = vmax.f32 %v9279_v15, %v4174_v16  ;;  %v4176_v22 = vpop.f32.mrb[42].mxu0  ;;  %v9295_v3 = vmax.f32 %v9293_v4, %v9294_v48  ;;  %v9296_v16 = vld [vmem:[#allocation103_spill] sm:$0xff] }
 0x2eb   : > { %v8581_v18 = vmax.f32 %v9282_v19, %v4176_v22  ;;  %v4178_v29 = vpop.f32.mrb[43].mxu0  ;;  %v9298_v5 = vmax.f32 %v9296_v16, %v9297_v13  ;;  %v9301_v19 = vld [vmem:[#allocation16_spill] sm:$0xff]  ;;  %v8652_v16 = vpop.permute.xlu1 %5343 }
 0x2ec   : > { %v8586_v27 = vmax.f32 %v9285_v39, %v4178_v29  ;;  %v4225_v40 = vpop.f32.mrb[40].mxu1  ;;  %v9302_v29 = vmax.f32 %v9300_v0, %v9301_v19  ;;  %v9303_v39 = vld [vmem:[#allocation14_spill] sm:$0xff] }
 0x2ed   : > { %v8591_v53 = vmax.f32 %v9288_v45, %v4225_v40  ;;  %v4227_v57 = vpop.f32.mrb[41].mxu1  ;;  %v9304_v40 = vld [vmem:[#allocation23_spill] sm:$0xff] }
 0x2ee   : > { %v8596_v41 = vmax.f32 %v9289_v28, %v4227_v57  ;;  %v4229_v54 = vpop.f32.mrb[42].mxu1  ;;  %v9305_v42 = vmax.f32 %v9303_v39, %v9304_v40  ;;  %v9306_v57 = vld [vmem:[#allocation18_spill] sm:$0xff] }
 0x2ef   : > { %v8601_v8 = vmax.f32 %v9292_v34, %v4229_v54  ;;  %v4231_v62 = vpop.f32.mrb[43].mxu1  ;;  %v9307_v28 = vld [vmem:[#allocation54_spill] sm:$0xff] }
 0x2f0   : > { %v8606_v10 = vmax.f32 %v9295_v3, %v4231_v62  ;;  %v4182_v55 = vpop.f32.mrb[44].mxu0  ;;  %v9308_v54 = vmax.f32 %v9306_v57, %v9307_v28  ;;  %v8648_v3 = vpop.permute.xlu0 %5338 }
 0x2f1   : > { %v8611_v15 = vmax.f32 %v9298_v5, %v4182_v55  ;;  %v4184_v9 = vpop.f32.mrb[45].mxu0 }
 0x2f2   : > { %v8616_v22 = vmax.f32 %v9299_v23, %v4184_v9  ;;  %v4186_v61 = vpop.f32.mrb[46].mxu0 }
 0x2f3   : > { %v8621_v36 = vmax.f32 %v9302_v29, %v4186_v61  ;;  %v4188_v25 = vpop.f32.mrb[47].mxu0 }
 0x2f4   : > { %v8626_v44 = vmax.f32 %v9305_v42, %v4188_v25  ;;  %v4235_v45 = vpop.f32.mrb[44].mxu1  ;;  %v8672_v42 = vpop.permute.xlu1 %5348 }
 0x2f5   : > { %v8631_v11 = vmax.f32 %v9308_v54, %v4235_v45  ;;  %v4237_v63 = vpop.f32.mrb[45].mxu1 }
 0x2f6   : > { %v8636_v38 = vmax.f32 %v3271_v32, %v4237_v63  ;;  %v4239_v51 = vpop.f32.mrb[46].mxu1 }
 0x2f7   : > { %v8641_v34 = vmax.f32 %v3278_v35, %v4239_v51  ;;  %v4241_v62 = vpop.f32.mrb[47].mxu1 }
 0x2f8   : > { %v8646_v4 = vmax.f32 %v3279_v60, %v4241_v62 }
 0x358   : > { %v5094_v48 = vpop.f32.mrb[48].mxu0 }
 0x359   : > { %v5304_v21 = vmax.f32 %v8491_v24, %v5094_v48  ;;  %v5096_v17 = vpop.f32.mrb[49].mxu0 }
 0x35a   : > { %v5305_v32 = vmax.f32 %v8496_v58, %v5096_v17  ;;  %v5098_v55 = vpop.f32.mrb[50].mxu0 }
 0x35b   : > { %v5356_v31 = vadd.f32 %v8648_v3, %v5304_v21  ;;  %v5312_v35 = vmax.f32 %v8501_v47, %v5098_v55  ;;  %v5100_v20 = vpop.f32.mrb[51].mxu0 }
 0x35c   : > { %v5357_v60 = vadd.f32 %v8648_v3, %v5305_v32  ;;  %v5313_v43 = vmax.f32 %v8506_v6, %v5100_v20  ;;  %v5147_v50 = vpop.f32.mrb[48].mxu1 }
 0x35d   : > { %v5388_v13 = vmax.f32 %v5356_v31, 0.0  ;;  %v5364_v24 = vadd.f32 %v8652_v16, %v5312_v35  ;;  %v5306_v5 = vmax.f32 %v8511_v1, %v5147_v50  ;;  %v5149_v58 = vpop.f32.mrb[49].mxu1 }
 0x35e   : > { %v5389_v9 = vmax.f32 %v5357_v60, 0.0  ;;  %v5365_v23 = vadd.f32 %v8652_v16, %v5313_v43  ;;  %v5307_v61 = vmax.f32 %v8516_v46, %v5149_v58  ;;  %v5151_v0 = vpop.f32.mrb[50].mxu1 }
 0x35f   : > { %v5396_v47 = vmax.f32 %v5364_v24, 0.0  ;;  %v5358_v6 = vadd.f32 %v8648_v3, %v5306_v5  ;;  %v5314_v19 = vmax.f32 %v8521_v14, %v5151_v0  ;;  %v5153_v29 = vpop.f32.mrb[51].mxu1 }
 0x360   : > { %v5983_v1 = vpack.c.bf16 %v5389_v9, %v5388_v13  ;;  %v5397_v25 = vmax.f32 %v5365_v23, 0.0  ;;  %v5359_v39 = vadd.f32 %v8648_v3, %v5307_v61  ;;  %v5315_v40 = vmax.f32 %v8526_v7, %v5153_v29  ;;  %v5104_v46 = vpop.f32.mrb[52].mxu0  ;;  %v8679_v7 = vpop.permute.xlu0 %5353 }
 0x361   : > { %v5390_v45 = vmax.f32 %v5358_v6, 0.0  ;;  %v5366_v57 = vadd.f32 %v8652_v16, %v5314_v19  ;;  %v5320_v28 = vmax.f32 %v8531_v12, %v5104_v46  ;;  %v5106_v54 = vpop.f32.mrb[53].mxu0 }
 0x362   : > { %5516 = vst [vmem:[%s8666_s16] sm:$0xff] %v5983_v1  ;;  %v5987_v63 = vpack.c.bf16 %v5397_v25, %v5396_v47  ;;  %v5391_v14 = vmax.f32 %v5359_v39, 0.0  ;;  %v5367_v51 = vadd.f32 %v8652_v16, %v5315_v40  ;;  %v5321_v62 = vmax.f32 %v8536_v30, %v5106_v54  ;;  %v5108_v48 = vpop.f32.mrb[54].mxu0 }
 0x363   : > { %v5398_v21 = vmax.f32 %v5366_v57, 0.0  ;;  %v5372_v17 = vadd.f32 %v8672_v42, %v5320_v28  ;;  %v5328_v32 = vmax.f32 %v8541_v56, %v5108_v48  ;;  %v5110_v55 = vpop.f32.mrb[55].mxu0 }
 0x364   : > { %5520 = vst [vmem:[%s8666_s16 + $0x20] sm:$0xff] %v5987_v63  ;;  %v5984_v12 = vpack.c.bf16 %v5391_v14, %v5390_v45  ;;  %v5399_v31 = vmax.f32 %v5367_v51, 0.0  ;;  %v5373_v35 = vadd.f32 %v8672_v42, %v5321_v62  ;;  %v5329_v20 = vmax.f32 %v8546_v52, %v5110_v55  ;;  %v5157_v60 = vpop.f32.mrb[52].mxu1 }
 0x365   : > { %v5404_v30 = vmax.f32 %v5372_v17, 0.0  ;;  %v5380_v43 = vadd.f32 %v8679_v7, %v5328_v32  ;;  %v5322_v50 = vmax.f32 %v8551_v2, %v5157_v60  ;;  %v5159_v13 = vpop.f32.mrb[53].mxu1 }
 0x366   : > { %5517 = vst [vmem:[%s8666_s16 + $0x8] sm:$0xff] %v5984_v12  ;;  %v5988_v24 = vpack.c.bf16 %v5399_v31, %v5398_v21  ;;  %v5405_v5 = vmax.f32 %v5373_v35, 0.0  ;;  %v5381_v56 = vadd.f32 %v8679_v7, %v5329_v20  ;;  %v5323_v58 = vmax.f32 %v8556_v59, %v5159_v13  ;;  %v5161_v9 = vpop.f32.mrb[54].mxu1 }
 0x367   : > { %v5412_v23 = vmax.f32 %v5380_v43, 0.0  ;;  %v5374_v52 = vadd.f32 %v8672_v42, %v5322_v50  ;;  %v5330_v61 = vmax.f32 %v8561_v26, %v5161_v9  ;;  %v5163_v0 = vpop.f32.mrb[55].mxu1 }
 0x368   : > { %5521 = vst [vmem:[%s8666_s16 + $0x28] sm:$0xff] %v5988_v24  ;;  %v5991_v47 = vpack.c.bf16 %v5405_v5, %v5404_v30  ;;  %v5413_v6 = vmax.f32 %v5381_v56, 0.0  ;;  %v5375_v2 = vadd.f32 %v8672_v42, %v5323_v58  ;;  %v5331_v19 = vmax.f32 %v8566_v37, %v5163_v0  ;;  %v5200_v29 = vpop.f32.mrb[56].mxu0 }
 0x369   : > { %v5406_v1 = vmax.f32 %v5374_v52, 0.0  ;;  %v5382_v59 = vadd.f32 %v8679_v7, %v5330_v61  ;;  %v5308_v25 = vmax.f32 %v8571_v33, %v5200_v29  ;;  %v5202_v39 = vpop.f32.mrb[57].mxu0 }
 0x36a   : > { %5524 = vst [vmem:[%s8666_s16 + $0x40] sm:$0xff] %v5991_v47  ;;  %v5995_v40 = vpack.c.bf16 %v5413_v6, %v5412_v23  ;;  %v5407_v46 = vmax.f32 %v5375_v2, 0.0  ;;  %v5383_v26 = vadd.f32 %v8679_v7, %v5331_v19  ;;  %v5309_v45 = vmax.f32 %v8576_v49, %v5202_v39  ;;  %v5204_v57 = vpop.f32.mrb[58].mxu0 }
 0x36b   : > { %v5414_v28 = vmax.f32 %v5382_v59, 0.0  ;;  %v5360_v37 = vadd.f32 %v8648_v3, %v5308_v25  ;;  %v5316_v54 = vmax.f32 %v8581_v18, %v5204_v57  ;;  %v5206_v63 = vpop.f32.mrb[59].mxu0 }
 0x36c   : > { %5528 = vst [vmem:[%s8666_s16 + $0x60] sm:$0xff] %v5995_v40  ;;  %v5992_v14 = vpack.c.bf16 %v5407_v46, %v5406_v1  ;;  %v5415_v51 = vmax.f32 %v5383_v26, 0.0  ;;  %v5361_v33 = vadd.f32 %v8648_v3, %v5309_v45  ;;  %v5317_v62 = vmax.f32 %v8586_v27, %v5206_v63  ;;  %v5253_v48 = vpop.f32.mrb[56].mxu1 }
 0x36d   : > { %v5392_v21 = vmax.f32 %v5360_v37, 0.0  ;;  %v5368_v49 = vadd.f32 %v8652_v16, %v5316_v54  ;;  %v5310_v17 = vmax.f32 %v8591_v53, %v5253_v48  ;;  %v5255_v32 = vpop.f32.mrb[57].mxu1 }
 0x36e   : > { %5525 = vst [vmem:[%s8666_s16 + $0x48] sm:$0xff] %v5992_v14  ;;  %v5996_v55 = vpack.c.bf16 %v5415_v51, %v5414_v28  ;;  %v5393_v12 = vmax.f32 %v5361_v33, 0.0  ;;  %v5369_v18 = vadd.f32 %v8652_v16, %v5317_v62  ;;  %v5311_v31 = vmax.f32 %v8596_v41, %v5255_v32  ;;  %v5257_v35 = vpop.f32.mrb[58].mxu1 }
 0x36f   : > { %v5400_v20 = vmax.f32 %v5368_v49, 0.0  ;;  %v5362_v27 = vadd.f32 %v8648_v3, %v5310_v17  ;;  %v5318_v60 = vmax.f32 %v8601_v8, %v5257_v35  ;;  %v5259_v30 = vpop.f32.mrb[59].mxu1 }
 0x370   : > { %5529 = vst [vmem:[%s8666_s16 + $0x68] sm:$0xff] %v5996_v55  ;;  %v5985_v43 = vpack.c.bf16 %v5393_v12, %v5392_v21  ;;  %v5401_v50 = vmax.f32 %v5369_v18, 0.0  ;;  %v5363_v53 = vadd.f32 %v8648_v3, %v5311_v31  ;;  %v5319_v13 = vmax.f32 %v8606_v10, %v5259_v30  ;;  %v5210_v24 = vpop.f32.mrb[60].mxu0 }
 0x371   : > { %v5394_v5 = vmax.f32 %v5362_v27, 0.0  ;;  %v5370_v41 = vadd.f32 %v8652_v16, %v5318_v60  ;;  %v5324_v56 = vmax.f32 %v8611_v15, %v5210_v24  ;;  %v5212_v58 = vpop.f32.mrb[61].mxu0 }
 0x372   : > { %5518 = vst [vmem:[%s8666_s16 + $0x10] sm:$0xff] %v5985_v43  ;;  %v5989_v9 = vpack.c.bf16 %v5401_v50, %v5400_v20  ;;  %v5395_v23 = vmax.f32 %v5363_v53, 0.0  ;;  %v5371_v8 = vadd.f32 %v8652_v16, %v5319_v13  ;;  %v5325_v52 = vmax.f32 %v8616_v22, %v5212_v58  ;;  %v5214_v61 = vpop.f32.mrb[62].mxu0 }
 0x373   : > { %v5402_v3 = vmax.f32 %v5370_v41, 0.0  ;;  %v5376_v10 = vadd.f32 %v8672_v42, %v5324_v56  ;;  %v5332_v0 = vmax.f32 %v8621_v36, %v5214_v61  ;;  %v5216_v47 = vpop.f32.mrb[63].mxu0 }
 0x374   : > { %5522 = vst [vmem:[%s8666_s16 + $0x30] sm:$0xff] %v5989_v9  ;;  %v5986_v6 = vpack.c.bf16 %v5395_v23, %v5394_v5  ;;  %v5403_v2 = vmax.f32 %v5371_v8, 0.0  ;;  %v5377_v15 = vadd.f32 %v8672_v42, %v5325_v52  ;;  %v5333_v19 = vmax.f32 %v8626_v44, %v5216_v47  ;;  %v5263_v29 = vpop.f32.mrb[60].mxu1 }
 0x375   : > { %v5408_v16 = vmax.f32 %v5376_v10, 0.0  ;;  %v5384_v22 = vadd.f32 %v8679_v7, %v5332_v0  ;;  %v5326_v1 = vmax.f32 %v8631_v11, %v5263_v29  ;;  %v5265_v59 = vpop.f32.mrb[61].mxu1 }
 0x376   : > { %5519 = vst [vmem:[%s8666_s16 + $0x18] sm:$0xff] %v5986_v6  ;;  %v5990_v25 = vpack.c.bf16 %v5403_v2, %v5402_v3  ;;  %v5409_v36 = vmax.f32 %v5377_v15, 0.0  ;;  %v5385_v39 = vadd.f32 %v8679_v7, %v5333_v19  ;;  %v5327_v40 = vmax.f32 %v8636_v38, %v5265_v59  ;;  %v5267_v46 = vpop.f32.mrb[62].mxu1 }
 0x377   : > { %v5416_v26 = vmax.f32 %v5384_v22, 0.0  ;;  %v5378_v44 = vadd.f32 %v8672_v42, %v5326_v1  ;;  %v5334_v45 = vmax.f32 %v8641_v34, %v5267_v46  ;;  %v5269_v57 = vpop.f32.mrb[63].mxu1 }
 0x378   : > { %5523 = vst [vmem:[%s8666_s16 + $0x38] sm:$0xff] %v5990_v25  ;;  %v5993_v11 = vpack.c.bf16 %v5409_v36, %v5408_v16  ;;  %v5417_v28 = vmax.f32 %v5385_v39, 0.0  ;;  %v5379_v37 = vadd.f32 %v8672_v42, %v5327_v40  ;;  %v5335_v54 = vmax.f32 %v8646_v4, %v5269_v57 }
 0x379   : > { %v5410_v63 = vmax.f32 %v5378_v44, 0.0  ;;  %v5386_v38 = vadd.f32 %v8679_v7, %v5334_v45 }
 0x37a   : > { %5526 = vst [vmem:[%s8666_s16 + $0x50] sm:$0xff] %v5993_v11  ;;  %v5997_v14 = vpack.c.bf16 %v5417_v28, %v5416_v26  ;;  %v5411_v51 = vmax.f32 %v5379_v37, 0.0  ;;  %v5387_v33 = vadd.f32 %v8679_v7, %v5335_v54 }
 0x37b   : > { %v5418_v62 = vmax.f32 %v5386_v38, 0.0 }
 0x37c   : > { %5530 = vst [vmem:[%s8666_s16 + $0x70] sm:$0xff] %v5997_v14  ;;  %v5994_v34 = vpack.c.bf16 %v5411_v51, %v5410_v63  ;;  %v5419_v48 = vmax.f32 %v5387_v33, 0.0 }
 0x37e   : > { %5527 = vst [vmem:[%s8666_s16 + $0x58] sm:$0xff] %v5994_v34  ;;  %v5998_v21 = vpack.c.bf16 %v5419_v48, %v5418_v62 }
 0x380   : > { %5531 = vst [vmem:[%s8666_s16 + $0x78] sm:$0xff] %v5998_v21 }
 0x381 PF: > { %s14_s15 = sadd.s32 1, %s6602_s15  }
 0x382   : > { %p11_p4 = scmp.ge.s32.totalorder %s14_s15, 4  }
 0x384   :  { %13 = sbr.rel (!%p11_p4) target bundleno = 1 (0x1), region = 84 }

// kernel: simple_cnn_forward.5
= control target key start
LH: loop header
LB: loop body
LE: loop exit
PB: predicated region body
PF: predicated region fallthrough
CT: control target
= control target key end

     0   :  { %s8244_s15 = smov 0   ;;  %s8246_s16 = smov 0   ;;  %s8972_s0 = inlined_call_operand.vmem [shape: bf16[2,32768], index: 0, kind: input, shape index: {}]   ;;  %s8973_s1 = inlined_call_operand.vmem [shape: bf16[2,32768,64], index: 1, kind: input, shape index: {}]   ;;  %s8974_s2 = inlined_call_operand.vmem [shape: f32[2,1,64], index: 2, kind: input, shape index: {}]   ;;  %s8975_s3 = inlined_call_operand.vmem [shape: f32[2,64,10], index: 3, kind: input, shape index: {}]   ;;  %s8976_s4 = inlined_call_operand.vmem [shape: f32[2,2,10], index: 4, kind: output, shape index: {}]  }
   0x1   :  { %s8248_s17 = smov 0   ;;  %s8250_s18 = smov 0  }
   0x2   :  { %s8252_s19 = smov 0  }
   0x3 LB: > { %s23_s20 = sadd.s32 1, %s8204_s17  ;;  %s26_s21 = sadd.s32 1, %s8208_s18  ;;  %s8212_s19 = sphi %s8252_s19, %s14_s19   ;;  %s8208_s18 = sphi %s8250_s18, %s8980_s18   ;;  %s8204_s17 = sphi %s8248_s17, %s8979_s17   ;;  %s8200_s16 = sphi %s8246_s16, %s8978_s16   ;;  %s8196_s15 = sphi %s8244_s15, %s8977_s15  }
   0x4   : > { %p24_p0 = scmp.ge.s32.totalorder %s23_s20, 4  ;;  %p6338_p1 = scmp.ge.s32.totalorder %s8212_s19, 1 }
   0x5   : > { %p209_p2 = scmp.lt.s32.totalorder %s8212_s19, 9 }
   0x6   : > { %s8982_s20 = smov (%p24_p0, %s23_s20), 0  ;;  %s8984_s21 = smov (!%p24_p0, %s26_s21), %s8208_s18 }
   0x7   : > { %p210_p3 = pnand %p6338_p1, %p209_p2  ;;  %p28_p4 = scmp.ge.s32.totalorder %s8984_s21, 2 }
   0x8   : > { %s6339_s22 = sshll.u32 (!%p210_p3), %s8196_s15, 6  ;;  %s6340_s23 = sshll.u32 (!%p210_p3), %s8196_s15, 10 }
   0x9   : > { %s8986_s21 = smov (%p28_p4, %s8984_s21), 0  ;;  %213 = sbr.rel (%p210_p3) target bundleno = 989 (0x3dd), region = 36 }
   0xa   : > { %p251_p5 = scmp.lt.s32.totalorder (!%p210_p3), %s6339_s22, 255  ;;  %p256_p6 = scmp.lt.s32.totalorder (!%p210_p3), %s8200_s16, 1 }
   0xb   : > { %p258_p7 = scmp.lt.s32.totalorder (!%p210_p3), %s6340_s23, 4095  ;;  %p6346_p8 = scmp.ne.s32.totalorder (!%p210_p3), %s8196_s15, 0 }
  0x10   : > { %s8988_s22 = smov (!%p251_p5, %s6339_s22), 255  ;;  %s8990_s16 = smov (!%p256_p6, %s8200_s16), 1 }
  0x11   : > { %s8283_s26 = scalar_lea.vmem %s8972_s0, %s8988_s22  ;;  %s8992_s23 = smov (!%p258_p7, %s6340_s23), 4095  ;;  %vm282_vm0 = vcmask (!%p6346_p8), 517120   ;;  %v8214_v0 = vmov (!%p6346_p8), 0.0  }
  0x12   : > { %s6341_s27 = sshll.u32 %s8990_s16, 12  ;;  %s267_s30 = scalar_lea.vmem %s8974_s2, %s8990_s16  ;;  %283 = vst.msk [vmem:[#allocation2] sm:$0x3] (!%p6346_p8), %vm282_vm0, %v8214_v0 }
  0x13   : > { %s261_s5 = sadd.s32 %s6341_s27, %s8992_s23  ;;  %s6864_s6 = sshll.u32 %s8990_s16, 6 }
  0x14   : > { %s6342_s7 = sshll.u32 %s261_s5, 2  ;;  %s8294_s10 = scalar_lea.vmem %s8975_s3, %s6864_s6 }
  0x15   : > { %s8299_s13 = scalar_lea.vmem %s8973_s1, %s6342_s7  ;;  %s6345_s14 = sshll.u32 %s8990_s16, 1 }
  0x16   : > { %s8305_s25 = scalar_lea.vmem %s8976_s4, %s6345_s14  ;;  %281 = sbr.rel (%p6346_p8) target bundleno = 29 (0x1d), region = 40 }
  0x1d PF: > { %v7654_v1 = vld [vmem:[%s8299_s13 + $0x40] sm:$0xff]   ;;  %v7658_v5 = vld [vmem:[%s8299_s13 + $0x48] sm:$0xff]   ;;  %v7662_v9 = vld [vmem:[%s8299_s13 + $0x50] sm:$0xff]   ;;  %v1329_v29 = vlaneseq  ;;  %v8215_v37 = vmov 1966171168   ;;  %vm6134_vm1 = vcmask 517120  }
  0x1e   : > { %v7655_v2 = vld [vmem:[%s8299_s13 + $0xc0] sm:$0xff]   ;;  %6865 = vmatprep.subr.bf16.mxu0 %v7654_v1  ;;  %v7659_v6 = vld [vmem:[%s8299_s13 + $0xc8] sm:$0xff]   ;;  %v7663_v10 = vld [vmem:[%s8299_s13 + $0xd0] sm:$0xff]   ;;  %v1327_v38 = vunpack.c.l.s4 %v8215_v37  ;;  %p6859_p9 = scmp.ne.s32.totalorder %s8196_s15, 3 }
  0x1f   : > { %v7656_v3 = vld [vmem:[%s8299_s13] sm:$0xff]   ;;  %6887 = vmatprep.subr.bf16.mxu1 %v7655_v2  ;;  %v7660_v7 = vld [vmem:[%s8299_s13 + $0x8] sm:$0xff]   ;;  %v7664_v11 = vld [vmem:[%s8299_s13 + $0x10] sm:$0xff]   ;;  %v1330_v34 = vshrl.u32 %v1329_v29, 7  ;;  %vm8217_vm2 = vmmov (!%p6859_p9), 0   ;;  %vm6158_vm3 = vcmask (!%p6859_p9), 523264  }
  0x20   : > { %v7657_v4 = vld [vmem:[%s8299_s13 + $0x80] sm:$0xff]   ;;  %6866 = vmatpush3.bf16.msra.mxu0 %v7656_v3  ;;  %v7661_v8 = vld [vmem:[%s8299_s13 + $0x88] sm:$0xff]   ;;  %v7665_v12 = vld [vmem:[%s8299_s13 + $0x90] sm:$0xff]   ;;  %v1328_v41 = vunpack.c.0.s8 %v1327_v38  ;;  %vm6232_vm4 = vcmask (!%p6859_p9), 74752  }
  0x21   : > { %6888 = vmatpush3.bf16.msra.mxu1 %v7657_v4  ;;  %6867 = vmatprep.subr.bf16.mxu0 %v7658_v5  ;;  %v7666_v13 = vld [vmem:[%s8299_s13 + $0x58] sm:$0xff]   ;;  %v7670_v17 = vld [vmem:[%s8299_s13 + $0x60] sm:$0xff]   ;;  %v7674_v21 = vld [vmem:[%s8299_s13 + $0x68] sm:$0xff]  }
  0x22   : > { %6889 = vmatprep.subr.bf16.mxu1 %v7659_v6  ;;  %v7667_v14 = vld [vmem:[%s8299_s13 + $0xd8] sm:$0xff]   ;;  %v7671_v18 = vld [vmem:[%s8299_s13 + $0xe0] sm:$0xff]   ;;  %v7675_v22 = vld [vmem:[%s8299_s13 + $0xe8] sm:$0xff]   ;;  %v8343_v42 = vsub.s32 %v1328_v41, %v1330_v34 }
  0x23   : > { %v7668_v15 = vld [vmem:[%s8299_s13 + $0x18] sm:$0xff]   ;;  %v7672_v19 = vld [vmem:[%s8299_s13 + $0x20] sm:$0xff]   ;;  %v7676_v23 = vld [vmem:[%s8299_s13 + $0x28] sm:$0xff]  }
  0x24   : > { %6868 = vmatpush3.bf16.msra.mxu0 %v7660_v7  ;;  %v7669_v16 = vld [vmem:[%s8299_s13 + $0x98] sm:$0xff]   ;;  %v7673_v20 = vld [vmem:[%s8299_s13 + $0xa0] sm:$0xff]   ;;  %v7677_v24 = vld [vmem:[%s8299_s13 + $0xa8] sm:$0xff]  }
  0x25   : > { %6890 = vmatpush3.bf16.msra.mxu1 %v7661_v8  ;;  %6869 = vmatprep.subr.bf16.mxu0 %v7662_v9  ;;  %v7678_v25 = vld [vmem:[%s8299_s13 + $0x70] sm:$0xff]   ;;  %v7682_v30 = vld [vmem:[%s8299_s13 + $0x78] sm:$0xff]   ;;  %v285_v35 = vld [vmem:[%s8283_s26] sm:$0xff] }
  0x26   : > { %6891 = vmatprep.subr.bf16.mxu1 %v7663_v10  ;;  %v7679_v26 = vld [vmem:[%s8299_s13 + $0xf0] sm:$0xff]   ;;  %v7683_v31 = vld [vmem:[%s8299_s13 + $0xf8] sm:$0xff]   ;;  %v7687_v36 = vld [vmem:[%s8299_s13 + $0x140] sm:$0xff]   ;;  %v1325_v40 = vcombine.high %v285_v35, %v285_v35  ;;  %v1332_v43 = vrot.slane %v285_v35, %v8343_v42 }
  0x27   : > { %v7680_v27 = vld [vmem:[%s8299_s13 + $0x30] sm:$0xff]   ;;  %v7684_v32 = vld [vmem:[%s8299_s13 + $0x38] sm:$0xff]   ;;  %v7688_v39 = vld [vmem:[%s8299_s13 + $0x1c0] sm:$0xff]  }
  0x28   : > { %6870 = vmatpush3.bf16.msra.mxu0 %v7664_v11  ;;  %v7681_v28 = vld [vmem:[%s8299_s13 + $0xb0] sm:$0xff]   ;;  %v7685_v33 = vld [vmem:[%s8299_s13 + $0xb8] sm:$0xff]   ;;  %v8347_v44 = vrot.slane %v1325_v40, %v8343_v42  ;;  %v1340_v45 = vcombine.high %v1332_v43, %v1332_v43  ;;  %v1348_v46 = vrot.slane %v1332_v43, %v8343_v42  ;;  %v7689_v48 = vld [vmem:[%s8299_s13 + $0x100] sm:$0xff]  }
  0x29   : > { %6892 = vmatpush3.bf16.msra.mxu1 %v7665_v12  ;;  %6871 = vmatprep.subr.bf16.mxu0 %v7666_v13  ;;  %v7690_v50 = vld [vmem:[%s8299_s13 + $0x180] sm:$0xff]   ;;  %v7691_v53 = vld [vmem:[%s8299_s13 + $0x148] sm:$0xff]   ;;  %v7695_v59 = vld [vmem:[%s8299_s13 + $0x150] sm:$0xff]  }
  0x2a   : > { %6893 = vmatprep.subr.bf16.mxu1 %v7667_v14  ;;  %v1341_v47 = vcombine.high %v8347_v44, %v8347_v44  ;;  %v1362_v49 = vrot.slane %v1340_v45, %v8343_v42  ;;  %v1370_v52 = vcombine.high %v1348_v46, %v1348_v46  ;;  %v7692_v55 = vld [vmem:[%s8299_s13 + $0x1c8] sm:$0xff]   ;;  %v7696_v60 = vld [vmem:[%s8299_s13 + $0x1d0] sm:$0xff]   ;;  %v7699_v63 = vld [vmem:[%s8299_s13 + $0x158] sm:$0xff]  }
  0x2b   : > { %v7693_v56 = vld [vmem:[%s8299_s13 + $0x108] sm:$0xff]   ;;  %v7697_v61 = vld [vmem:[%s8299_s13 + $0x110] sm:$0xff]   ;;  %v7700_v0 = vld [vmem:[%s8299_s13 + $0x1d8] sm:$0xff]  }
  0x2c   : > { %6872 = vmatpush3.bf16.msra.mxu0 %v7668_v15  ;;  %v1369_v51 = vrot.slane %v1341_v47, %v8343_v42  ;;  %4885 = vmatprep.mubr.bf16.mxu0 %v1362_v49  ;;  %v1372_v54 = vcombine.high %v1362_v49, %v1362_v49  ;;  %v7694_v58 = vld [vmem:[%s8299_s13 + $0x188] sm:$0xff]   ;;  %v7698_v62 = vld [vmem:[%s8299_s13 + $0x190] sm:$0xff]   ;;  %v7701_v1 = vld [vmem:[%s8299_s13 + $0x118] sm:$0xff]  }
  0x2d   : > { %6894 = vmatpush3.bf16.msra.mxu1 %v7669_v16  ;;  %6873 = vmatprep.subr.bf16.mxu0 %v7670_v17  ;;  %v7702_v2 = vld [vmem:[%s8299_s13 + $0x198] sm:$0xff]   ;;  %v7703_v3 = vld [vmem:[%s8299_s13 + $0x160] sm:$0xff]   ;;  %v7707_v7 = vld [vmem:[%s8299_s13 + $0x168] sm:$0xff]  }
  0x2e   : > { %6895 = vmatprep.subr.bf16.mxu1 %v7671_v18  ;;  %v1373_v57 = vcombine.high %v1369_v51, %v1369_v51  ;;  %4925 = vmatprep.mubr.bf16.mxu1 %v1372_v54  ;;  %v7704_v4 = vld [vmem:[%s8299_s13 + $0x1e0] sm:$0xff]   ;;  %v7708_v8 = vld [vmem:[%s8299_s13 + $0x1e8] sm:$0xff]   ;;  %v7711_v11 = vld [vmem:[%s8299_s13 + $0x170] sm:$0xff]  }
  0x2f   : > { %v7705_v5 = vld [vmem:[%s8299_s13 + $0x120] sm:$0xff]   ;;  %v7709_v9 = vld [vmem:[%s8299_s13 + $0x128] sm:$0xff]   ;;  %v7712_v12 = vld [vmem:[%s8299_s13 + $0x1f0] sm:$0xff]  }
  0x30   : > { %6874 = vmatpush3.bf16.msra.mxu0 %v7672_v19  ;;  %v7706_v6 = vld [vmem:[%s8299_s13 + $0x1a0] sm:$0xff]   ;;  %v7710_v10 = vld [vmem:[%s8299_s13 + $0x1a8] sm:$0xff]   ;;  %v7713_v13 = vld [vmem:[%s8299_s13 + $0x130] sm:$0xff]   ;;  %v1355_v19 = vrot.slane %v8347_v44, %v8343_v42 }
  0x31   : > { %6896 = vmatpush3.bf16.msra.mxu1 %v7673_v20  ;;  %6875 = vmatprep.subr.bf16.mxu0 %v7674_v21  ;;  %v7714_v14 = vld [vmem:[%s8299_s13 + $0x1b0] sm:$0xff]   ;;  %v7715_v15 = vld [vmem:[%s8299_s13 + $0x178] sm:$0xff]   ;;  %v7719_v20 = vld [vmem:[%s8299_s13 + $0x240] sm:$0xff]  }
  0x32   : > { %6897 = vmatprep.subr.bf16.mxu1 %v7675_v22  ;;  %v7716_v16 = vld [vmem:[%s8299_s13 + $0x1f8] sm:$0xff]   ;;  %v7720_v21 = vld [vmem:[%s8299_s13 + $0x2c0] sm:$0xff]   ;;  %v7727_v29 = vld [vmem:[%s8299_s13 + $0x250] sm:$0xff]  }
  0x33   : > { %v7717_v17 = vld [vmem:[%s8299_s13 + $0x138] sm:$0xff]   ;;  %v7721_v22 = vld [vmem:[%s8299_s13 + $0x200] sm:$0xff]   ;;  %v7739_v41 = vld [vmem:[%s8299_s13 + $0x268] sm:$0xff]  }
  0x34   : > { %6876 = vmatpush3.bf16.msra.mxu0 %v7676_v23  ;;  %v7718_v18 = vld [vmem:[%s8299_s13 + $0x1b8] sm:$0xff]   ;;  %v7722_v23 = vld [vmem:[%s8299_s13 + $0x280] sm:$0xff]   ;;  %v7740_v43 = vld [vmem:[%s8299_s13 + $0x2e8] sm:$0xff]  }
  0x35   : > { %6898 = vmatpush3.bf16.msra.mxu1 %v7677_v24  ;;  %6877 = vmatprep.subr.bf16.mxu0 %v7678_v25  ;;  %v1371_v24 = vcombine.high %v1355_v19, %v1355_v19  ;;  %v7723_v25 = vld [vmem:[%s8299_s13 + $0x248] sm:$0xff]   ;;  %v7732_v34 = vld [vmem:[%s8299_s13 + $0x2d8] sm:$0xff]   ;;  %v7735_v37 = vld [vmem:[%s8299_s13 + $0x260] sm:$0xff]  }
  0x36   : > { %6899 = vmatprep.subr.bf16.mxu1 %v7679_v26  ;;  %v7724_v26 = vld [vmem:[%s8299_s13 + $0x2c8] sm:$0xff]   ;;  %v7733_v35 = vld [vmem:[%s8299_s13 + $0x218] sm:$0xff]   ;;  %v7736_v38 = vld [vmem:[%s8299_s13 + $0x2e0] sm:$0xff]  }
  0x37   : > { %v7738_v40 = vld [vmem:[%s8299_s13 + $0x2a0] sm:$0xff]   ;;  %v7741_v44 = vld [vmem:[%s8299_s13 + $0x228] sm:$0xff]  }
  0x38   : > { %6878 = vmatpush3.bf16.msra.mxu0 %v7680_v27  ;;  %v7725_v27 = vld [vmem:[%s8299_s13 + $0x208] sm:$0xff]  }
  0x39   : > { %6900 = vmatpush3.bf16.msra.mxu1 %v7681_v28  ;;  %6879 = vmatprep.subr.bf16.mxu0 %v7682_v30  ;;  %v7726_v28 = vld [vmem:[%s8299_s13 + $0x288] sm:$0xff]   ;;  %v7728_v30 = vld [vmem:[%s8299_s13 + $0x2d0] sm:$0xff]  }
  0x3a   : > { %6901 = vmatprep.subr.bf16.mxu1 %v7683_v31  ;;  %v7729_v31 = vld [vmem:[%s8299_s13 + $0x210] sm:$0xff]   ;;  %v7742_v45 = vld [vmem:[%s8299_s13 + $0x2a8] sm:$0xff]  }
  0x3b   : > { %v286_v47 = vld [vmem:[%s8283_s26 + $0x8] sm:$0xff] }
  0x3c   : > { %6880 = vmatpush3.bf16.msra.mxu0 %v7684_v32  ;;  %v7730_v32 = vld [vmem:[%s8299_s13 + $0x290] sm:$0xff]   ;;  %v1381_v49 = vrot.slane %v286_v47, %v8343_v42 }
  0x3d   : > { %6902 = vmatpush3.bf16.msra.mxu1 %v7685_v33  ;;  %6909 = vmatprep.subr.bf16.mxu0 %v7687_v36  ;;  %v7731_v33 = vld [vmem:[%s8299_s13 + $0x258] sm:$0xff]  }
  0x3e   : > { %6931 = vmatprep.subr.bf16.mxu1 %v7688_v39  ;;  %v7734_v36 = vld [vmem:[%s8299_s13 + $0x298] sm:$0xff]   ;;  %v7737_v39 = vld [vmem:[%s8299_s13 + $0x220] sm:$0xff]  }
  0x3f   : > { %4886 = vmatmul.mubr.bf16.vlgmr.msra.gmra.mrb[0].mxu0 %v1348_v46  ;;  %v7743_v46 = vld [vmem:[%s8299_s13 + $0x270] sm:$0xff]  }
  0x40   : > { %6910 = vmatpush3.bf16.msra.mxu0 %v7689_v48  ;;  %4926 = vmatmul.mubr.bf16.vlgmr.msra.gmra.mrb[0].mxu1 %v1370_v52  ;;  %v7744_v48 = vld [vmem:[%s8299_s13 + $0x2f0] sm:$0xff]  }
  0x41   : > { %6911 = vmatprep.subr.bf16.mxu0 %v7691_v53  ;;  %6932 = vmatpush3.bf16.msra.mxu1 %v7690_v50  ;;  %v1374_v50 = vcombine.high %v286_v47, %v286_v47  ;;  %v7746_v52 = vld [vmem:[%s8299_s13 + $0x2b0] sm:$0xff]   ;;  %v1389_v53 = vcombine.high %v1381_v49, %v1381_v49 }
  0x42   : > { %4965 = vmatprep.mubr.bf16.mxu0 %v1369_v51  ;;  %6933 = vmatprep.subr.bf16.mxu1 %v7692_v55  ;;  %v7745_v51 = vld [vmem:[%s8299_s13 + $0x230] sm:$0xff]   ;;  %v7747_v55 = vld [vmem:[%s8299_s13 + $0x278] sm:$0xff]  }
  0x43   : > { %5005 = vmatprep.mubr.bf16.mxu1 %v1373_v57  ;;  %v8417_v54 = vrot.slane %v1374_v50, %v8343_v42  ;;  %v1411_v57 = vrot.slane %v1389_v53, %v8343_v42  ;;  %v7794_v47 = vld [vmem:[%s8299_s13 + $0x410] sm:$0xff]   ;;  %v7797_v50 = vld [vmem:[%s8299_s13 + $0x4d8] sm:$0xff]   ;;  %v7800_v53 = vld [vmem:[%s8299_s13 + $0x460] sm:$0xff]  }
  0x44   : > { %6912 = vmatpush3.bf16.msra.mxu0 %v7693_v56  ;;  %v7748_v56 = vld [vmem:[%s8299_s13 + $0x2f8] sm:$0xff]  }
  0x45   : > { %6913 = vmatprep.subr.bf16.mxu0 %v7695_v59  ;;  %6934 = vmatpush3.bf16.msra.mxu1 %v7694_v58  ;;  %v1390_v58 = vcombine.high %v8417_v54, %v8417_v54  ;;  %v7749_v59 = vld [vmem:[%s8299_s13 + $0x238] sm:$0xff]  }
  0x46   : > { %6935 = vmatprep.subr.bf16.mxu1 %v7696_v60  ;;  %v7750_v60 = vld [vmem:[%s8299_s13 + $0x2b8] sm:$0xff]  }
  0x48   : > { %6914 = vmatpush3.bf16.msra.mxu0 %v7697_v61  ;;  %v1421_v61 = vcombine.high %v1411_v57, %v1411_v57 }
  0x49   : > { %6915 = vmatprep.subr.bf16.mxu0 %v7699_v63  ;;  %6936 = vmatpush3.bf16.msra.mxu1 %v7698_v62  ;;  %v1397_v62 = vrot.slane %v1381_v49, %v8343_v42  ;;  %v7751_v63 = vld [vmem:[%s8299_s13 + $0x340] sm:$0xff]   ;;  %v7796_v49 = vld [vmem:[%s8299_s13 + $0x458] sm:$0xff]  }
  0x4a   : > { %6937 = vmatprep.subr.bf16.mxu1 %v7700_v0  ;;  %v7752_v0 = vld [vmem:[%s8299_s13 + $0x3c0] sm:$0xff]  }
  0x4c   : > { %6916 = vmatpush3.bf16.msra.mxu0 %v7701_v1  ;;  %v1418_v1 = vrot.slane %v1390_v58, %v8343_v42  ;;  %v7805_v58 = vld [vmem:[%s8299_s13 + $0x4e8] sm:$0xff]  }
  0x4d   : > { %6917 = vmatprep.subr.bf16.mxu0 %v7703_v3  ;;  %6938 = vmatpush3.bf16.msra.mxu1 %v7702_v2  ;;  %v7753_v2 = vld [vmem:[%s8299_s13 + $0x300] sm:$0xff]  }
  0x4e   : > { %6939 = vmatprep.subr.bf16.mxu1 %v7704_v4  ;;  %v7754_v3 = vld [vmem:[%s8299_s13 + $0x380] sm:$0xff]   ;;  %v1419_v4 = vcombine.high %v1397_v62, %v1397_v62 }
  0x50   : > { %6918 = vmatpush3.bf16.msra.mxu0 %v7705_v5  ;;  %v7755_v5 = vld [vmem:[%s8299_s13 + $0x348] sm:$0xff]  }
  0x51   : > { %6919 = vmatprep.subr.bf16.mxu0 %v7707_v7  ;;  %6940 = vmatpush3.bf16.msra.mxu1 %v7706_v6  ;;  %v7756_v6 = vld [vmem:[%s8299_s13 + $0x3c8] sm:$0xff]   ;;  %v1422_v7 = vcombine.high %v1418_v1, %v1418_v1 }
  0x52   : > { %6941 = vmatprep.subr.bf16.mxu1 %v7708_v8  ;;  %v7757_v8 = vld [vmem:[%s8299_s13 + $0x308] sm:$0xff]  }
  0x54   : > { %6920 = vmatpush3.bf16.msra.mxu0 %v7709_v9  ;;  %v7758_v9 = vld [vmem:[%s8299_s13 + $0x388] sm:$0xff]  }
  0x55   : > { %6921 = vmatprep.subr.bf16.mxu0 %v7711_v11  ;;  %6942 = vmatpush3.bf16.msra.mxu1 %v7710_v10  ;;  %v7759_v10 = vld [vmem:[%s8299_s13 + $0x350] sm:$0xff]  }
  0x56   : > { %6943 = vmatprep.subr.bf16.mxu1 %v7712_v12  ;;  %v7760_v11 = vld [vmem:[%s8299_s13 + $0x3d0] sm:$0xff]  }
  0x57   : > { %v7761_v12 = vld [vmem:[%s8299_s13 + $0x310] sm:$0xff]  }
  0x58   : > { %6922 = vmatpush3.bf16.msra.mxu0 %v7713_v13  ;;  %v7762_v13 = vld [vmem:[%s8299_s13 + $0x390] sm:$0xff]  }
  0x59   : > { %6923 = vmatprep.subr.bf16.mxu0 %v7715_v15  ;;  %6944 = vmatpush3.bf16.msra.mxu1 %v7714_v14  ;;  %v7763_v14 = vld [vmem:[%s8299_s13 + $0x358] sm:$0xff]  }
  0x5a   : > { %6945 = vmatprep.subr.bf16.mxu1 %v7716_v16  ;;  %v7764_v15 = vld [vmem:[%s8299_s13 + $0x3d8] sm:$0xff]  }
  0x5b   : > { %v7765_v16 = vld [vmem:[%s8299_s13 + $0x318] sm:$0xff]  }
  0x5c   : > { %6924 = vmatpush3.bf16.msra.mxu0 %v7717_v17  ;;  %v7766_v17 = vld [vmem:[%s8299_s13 + $0x398] sm:$0xff]  }
  0x5d   : > { %6953 = vmatprep.subr.bf16.mxu0 %v7719_v20  ;;  %6946 = vmatpush3.bf16.msra.mxu1 %v7718_v18  ;;  %v7767_v18 = vld [vmem:[%s8299_s13 + $0x360] sm:$0xff]  }
  0x5e   : > { %6975 = vmatprep.subr.bf16.mxu1 %v7720_v21  ;;  %v7769_v20 = vld [vmem:[%s8299_s13 + $0x320] sm:$0xff]  }
  0x5f   : > { %4966 = vmatmul.mubr.bf16.vlgmr.msra.gmra.mrb[4].mxu0 %v1355_v19  ;;  %v7768_v19 = vld [vmem:[%s8299_s13 + $0x3e0] sm:$0xff]  }
  0x60   : > { %6954 = vmatpush3.bf16.msra.mxu0 %v7721_v22  ;;  %5006 = vmatmul.mubr.bf16.vlgmr.msra.gmra.mrb[4].mxu1 %v1371_v24  ;;  %v7770_v21 = vld [vmem:[%s8299_s13 + $0x3a0] sm:$0xff]   ;;  %v7771_v22 = vld [vmem:[%s8299_s13 + $0x368] sm:$0xff]  }
  0x61   : > { %6955 = vmatprep.subr.bf16.mxu0 %v7723_v25  ;;  %6976 = vmatpush3.bf16.msra.mxu1 %v7722_v23  ;;  %v7772_v23 = vld [vmem:[%s8299_s13 + $0x3e8] sm:$0xff]  }
  0x62   : > { %6977 = vmatprep.subr.bf16.mxu1 %v7724_v26  ;;  %5045 = vmatprep.mubr.bf16.mxu0 %v1411_v57  ;;  %v7773_v24 = vld [vmem:[%s8299_s13 + $0x328] sm:$0xff]   ;;  %v7775_v26 = vld [vmem:[%s8299_s13 + $0x370] sm:$0xff]  }
  0x63   : > { %5085 = vmatprep.mubr.bf16.mxu1 %v1421_v61  ;;  %v7774_v25 = vld [vmem:[%s8299_s13 + $0x3a8] sm:$0xff]   ;;  %v7808_v61 = vld [vmem:[%s8299_s13 + $0x470] sm:$0xff]  }
  0x64   : > { %6956 = vmatpush3.bf16.msra.mxu0 %v7725_v27  ;;  %v7776_v27 = vld [vmem:[%s8299_s13 + $0x3f0] sm:$0xff]   ;;  %v7804_v57 = vld [vmem:[%s8299_s13 + $0x468] sm:$0xff]  }
  0x65   : > { %6957 = vmatprep.subr.bf16.mxu0 %v7727_v29  ;;  %6978 = vmatpush3.bf16.msra.mxu1 %v7726_v28  ;;  %v7777_v28 = vld [vmem:[%s8299_s13 + $0x330] sm:$0xff]  }
  0x66   : > { %6979 = vmatprep.subr.bf16.mxu1 %v7728_v30  ;;  %v7778_v29 = vld [vmem:[%s8299_s13 + $0x3b0] sm:$0xff]   ;;  %v7779_v30 = vld [vmem:[%s8299_s13 + $0x378] sm:$0xff]  }
  0x68   : > { %6958 = vmatpush3.bf16.msra.mxu0 %v7729_v31  ;;  %v7780_v31 = vld [vmem:[%s8299_s13 + $0x3f8] sm:$0xff]  }
  0x69   : > { %6959 = vmatprep.subr.bf16.mxu0 %v7731_v33  ;;  %6980 = vmatpush3.bf16.msra.mxu1 %v7730_v32  ;;  %v7781_v32 = vld [vmem:[%s8299_s13 + $0x338] sm:$0xff]  }
  0x6a   : > { %6981 = vmatprep.subr.bf16.mxu1 %v7732_v34  ;;  %v7782_v33 = vld [vmem:[%s8299_s13 + $0x3b8] sm:$0xff]   ;;  %v1404_v34 = vrot.slane %v8417_v54, %v8343_v42  ;;  %v7801_v54 = vld [vmem:[%s8299_s13 + $0x4e0] sm:$0xff]  }
  0x6c   : > { %6960 = vmatpush3.bf16.msra.mxu0 %v7733_v35  ;;  %v7784_v35 = vld [vmem:[%s8299_s13 + $0x440] sm:$0xff]  }
  0x6d   : > { %6961 = vmatprep.subr.bf16.mxu0 %v7735_v37  ;;  %6982 = vmatpush3.bf16.msra.mxu1 %v7734_v36  ;;  %v7785_v36 = vld [vmem:[%s8299_s13 + $0x4c0] sm:$0xff]  }
  0x6e   : > { %6983 = vmatprep.subr.bf16.mxu1 %v7736_v38  ;;  %v7786_v37 = vld [vmem:[%s8299_s13 + $0x400] sm:$0xff]  }
  0x6f   : > { %v7787_v38 = vld [vmem:[%s8299_s13 + $0x480] sm:$0xff]  }
  0x70   : > { %6962 = vmatpush3.bf16.msra.mxu0 %v7737_v39  ;;  %v1420_v39 = vcombine.high %v1404_v34, %v1404_v34 }
  0x71   : > { %6963 = vmatprep.subr.bf16.mxu0 %v7739_v41  ;;  %6984 = vmatpush3.bf16.msra.mxu1 %v7738_v40  ;;  %v7788_v40 = vld [vmem:[%s8299_s13 + $0x448] sm:$0xff]  }
  0x72   : > { %6985 = vmatprep.subr.bf16.mxu1 %v7740_v43  ;;  %v7789_v41 = vld [vmem:[%s8299_s13 + $0x4c8] sm:$0xff]  }
  0x73   : > { %v7790_v43 = vld [vmem:[%s8299_s13 + $0x408] sm:$0xff]  }
  0x74   : > { %6964 = vmatpush3.bf16.msra.mxu0 %v7741_v44  ;;  %v7791_v44 = vld [vmem:[%s8299_s13 + $0x488] sm:$0xff]  }
  0x75   : > { %6965 = vmatprep.subr.bf16.mxu0 %v7743_v46  ;;  %6986 = vmatpush3.bf16.msra.mxu1 %v7742_v45  ;;  %v7792_v45 = vld [vmem:[%s8299_s13 + $0x450] sm:$0xff]  }
  0x76   : > { %6987 = vmatprep.subr.bf16.mxu1 %v7744_v48  ;;  %v7793_v46 = vld [vmem:[%s8299_s13 + $0x4d0] sm:$0xff]  }
  0x77   : > { %v7795_v48 = vld [vmem:[%s8299_s13 + $0x490] sm:$0xff]  }
  0x78   : > { %6966 = vmatpush3.bf16.msra.mxu0 %v7745_v51  ;;  %v7798_v51 = vld [vmem:[%s8299_s13 + $0x418] sm:$0xff]  }
  0x79   : > { %6967 = vmatprep.subr.bf16.mxu0 %v7747_v55  ;;  %6988 = vmatpush3.bf16.msra.mxu1 %v7746_v52  ;;  %v7799_v52 = vld [vmem:[%s8299_s13 + $0x498] sm:$0xff]   ;;  %v7802_v55 = vld [vmem:[%s8299_s13 + $0x420] sm:$0xff]  }
  0x7a   : > { %6989 = vmatprep.subr.bf16.mxu1 %v7748_v56  ;;  %v7803_v56 = vld [vmem:[%s8299_s13 + $0x4a0] sm:$0xff]  }
  0x7c   : > { %6968 = vmatpush3.bf16.msra.mxu0 %v7749_v59  ;;  %v7806_v59 = vld [vmem:[%s8299_s13 + $0x428] sm:$0xff]  }
  0x7d   : > { %6997 = vmatprep.subr.bf16.mxu0 %v7751_v63  ;;  %6990 = vmatpush3.bf16.msra.mxu1 %v7750_v60  ;;  %v7807_v60 = vld [vmem:[%s8299_s13 + $0x4a8] sm:$0xff]   ;;  %v7809_v63 = vld [vmem:[%s8299_s13 + $0x4f0] sm:$0xff]  }
  0x7e   : > { %7019 = vmatprep.subr.bf16.mxu1 %v7752_v0 }
  0x7f   : > { %5046 = vmatmul.mubr.bf16.vlgmr.msra.gmra.mrb[8].mxu0 %v1397_v62  ;;  %v287_v62 = vld [vmem:[%s8283_s26 + $0x10] sm:$0xff] }
  0x80   : > { %6998 = vmatpush3.bf16.msra.mxu0 %v7753_v2  ;;  %5125 = vmatprep.mubr.bf16.mxu0 %v1418_v1  ;;  %v1430_v0 = vrot.slane %v287_v62, %v8343_v42  ;;  %v1423_v1 = vcombine.high %v287_v62, %v287_v62  ;;  %v7810_v2 = vld [vmem:[%s8299_s13 + $0x430] sm:$0xff]  }
  0x81   : > { %5086 = vmatmul.mubr.bf16.vlgmr.msra.gmra.mrb[8].mxu1 %v1419_v4  ;;  %6999 = vmatprep.subr.bf16.mxu0 %v7755_v5  ;;  %v7859_v62 = vld [vmem:[%s8299_s13 + $0x610] sm:$0xff]  }
  0x82   : > { %7020 = vmatpush3.bf16.msra.mxu1 %v7754_v3  ;;  %5165 = vmatprep.mubr.bf16.mxu1 %v1422_v7  ;;  %v7811_v3 = vld [vmem:[%s8299_s13 + $0x4b0] sm:$0xff]   ;;  %v1438_v4 = vcombine.high %v1430_v0, %v1430_v0  ;;  %v8493_v5 = vrot.slane %v1423_v1, %v8343_v42  ;;  %v7813_v7 = vld [vmem:[%s8299_s13 + $0x4f8] sm:$0xff]  }
  0x83   : > { %7021 = vmatprep.subr.bf16.mxu1 %v7756_v6  ;;  %v7812_v6 = vld [vmem:[%s8299_s13 + $0x478] sm:$0xff]  }
  0x84   : > { %7000 = vmatpush3.bf16.msra.mxu0 %v7757_v8  ;;  %v1460_v8 = vrot.slane %v1438_v4, %v8343_v42  ;;  %v7862_v1 = vld [vmem:[%s8299_s13 + $0x6d8] sm:$0xff]   ;;  %v7865_v4 = vld [vmem:[%s8299_s13 + $0x660] sm:$0xff]  }
  0x85   : > { %7001 = vmatprep.subr.bf16.mxu0 %v7759_v10  ;;  %v7814_v10 = vld [vmem:[%s8299_s13 + $0x438] sm:$0xff]  }
  0x86   : > { %7022 = vmatpush3.bf16.msra.mxu1 %v7758_v9  ;;  %v1439_v9 = vcombine.high %v8493_v5, %v8493_v5 }
  0x87   : > { %7023 = vmatprep.subr.bf16.mxu1 %v7760_v11  ;;  %v7815_v11 = vld [vmem:[%s8299_s13 + $0x4b8] sm:$0xff]  }
  0x88   : > { %7002 = vmatpush3.bf16.msra.mxu0 %v7761_v12  ;;  %v1470_v12 = vcombine.high %v1460_v8, %v1460_v8 }
  0x89   : > { %7003 = vmatprep.subr.bf16.mxu0 %v7763_v14  ;;  %v7816_v14 = vld [vmem:[%s8299_s13 + $0x540] sm:$0xff]  }
  0x8a   : > { %7024 = vmatpush3.bf16.msra.mxu1 %v7762_v13  ;;  %v1446_v13 = vrot.slane %v1430_v0, %v8343_v42  ;;  %v7861_v0 = vld [vmem:[%s8299_s13 + $0x658] sm:$0xff]  }
  0x8b   : > { %7025 = vmatprep.subr.bf16.mxu1 %v7764_v15  ;;  %v7817_v15 = vld [vmem:[%s8299_s13 + $0x5c0] sm:$0xff]  }
  0x8c   : > { %7004 = vmatpush3.bf16.msra.mxu0 %v7765_v16  ;;  %v1467_v16 = vrot.slane %v1439_v9, %v8343_v42  ;;  %v7870_v9 = vld [vmem:[%s8299_s13 + $0x6e8] sm:$0xff]  }
  0x8d   : > { %7005 = vmatprep.subr.bf16.mxu0 %v7767_v18  ;;  %v7819_v18 = vld [vmem:[%s8299_s13 + $0x580] sm:$0xff]  }
  0x8e   : > { %7026 = vmatpush3.bf16.msra.mxu1 %v7766_v17  ;;  %v7818_v17 = vld [vmem:[%s8299_s13 + $0x500] sm:$0xff]  }
  0x8f   : > { %7027 = vmatprep.subr.bf16.mxu1 %v7768_v19  ;;  %v1468_v19 = vcombine.high %v1446_v13, %v1446_v13 }
  0x90   : > { %7006 = vmatpush3.bf16.msra.mxu0 %v7769_v20  ;;  %v7820_v20 = vld [vmem:[%s8299_s13 + $0x548] sm:$0xff]  }
  0x91   : > { %7007 = vmatprep.subr.bf16.mxu0 %v7771_v22  ;;  %v1471_v22 = vcombine.high %v1467_v16, %v1467_v16 }
  0x92   : > { %7028 = vmatpush3.bf16.msra.mxu1 %v7770_v21  ;;  %v7821_v21 = vld [vmem:[%s8299_s13 + $0x5c8] sm:$0xff]  }
  0x93   : > { %7029 = vmatprep.subr.bf16.mxu1 %v7772_v23  ;;  %v7822_v23 = vld [vmem:[%s8299_s13 + $0x508] sm:$0xff]  }
  0x94   : > { %7008 = vmatpush3.bf16.msra.mxu0 %v7773_v24  ;;  %v7823_v24 = vld [vmem:[%s8299_s13 + $0x588] sm:$0xff]  }
  0x95   : > { %7009 = vmatprep.subr.bf16.mxu0 %v7775_v26  ;;  %v7825_v26 = vld [vmem:[%s8299_s13 + $0x5d0] sm:$0xff]  }
  0x96   : > { %7030 = vmatpush3.bf16.msra.mxu1 %v7774_v25  ;;  %v7824_v25 = vld [vmem:[%s8299_s13 + $0x550] sm:$0xff]  }
  0x97   : > { %7031 = vmatprep.subr.bf16.mxu1 %v7776_v27  ;;  %v7826_v27 = vld [vmem:[%s8299_s13 + $0x510] sm:$0xff]  }
  0x98   : > { %7010 = vmatpush3.bf16.msra.mxu0 %v7777_v28  ;;  %v7827_v28 = vld [vmem:[%s8299_s13 + $0x590] sm:$0xff]  }
  0x99   : > { %7011 = vmatprep.subr.bf16.mxu0 %v7779_v30  ;;  %v7829_v30 = vld [vmem:[%s8299_s13 + $0x5d8] sm:$0xff]  }
  0x9a   : > { %7032 = vmatpush3.bf16.msra.mxu1 %v7778_v29  ;;  %v7828_v29 = vld [vmem:[%s8299_s13 + $0x558] sm:$0xff]  }
  0x9b   : > { %7033 = vmatprep.subr.bf16.mxu1 %v7780_v31  ;;  %v7830_v31 = vld [vmem:[%s8299_s13 + $0x518] sm:$0xff]  }
  0x9c   : > { %7012 = vmatpush3.bf16.msra.mxu0 %v7781_v32  ;;  %v7831_v32 = vld [vmem:[%s8299_s13 + $0x598] sm:$0xff]  }
  0x9d   : > { %7041 = vmatprep.subr.bf16.mxu0 %v7784_v35  ;;  %v7834_v35 = vld [vmem:[%s8299_s13 + $0x520] sm:$0xff]  }
  0x9e   : > { %7034 = vmatpush3.bf16.msra.mxu1 %v7782_v33  ;;  %v7832_v33 = vld [vmem:[%s8299_s13 + $0x560] sm:$0xff]  }
  0x9f   : > { %5126 = vmatmul.mubr.bf16.vlgmr.msra.gmra.mrb[12].mxu0 %v1404_v34  ;;  %7063 = vmatprep.subr.bf16.mxu1 %v7785_v36  ;;  %v7833_v34 = vld [vmem:[%s8299_s13 + $0x5e0] sm:$0xff]  }
  0xa0   : > { %7042 = vmatpush3.bf16.msra.mxu0 %v7786_v37  ;;  %5205 = vmatprep.mubr.bf16.mxu0 %v1460_v8  ;;  %v7835_v36 = vld [vmem:[%s8299_s13 + $0x5a0] sm:$0xff]   ;;  %v7836_v37 = vld [vmem:[%s8299_s13 + $0x568] sm:$0xff]  }
  0xa1   : > { %5166 = vmatmul.mubr.bf16.vlgmr.msra.gmra.mrb[12].mxu1 %v1420_v39  ;;  %7043 = vmatprep.subr.bf16.mxu0 %v7788_v40  ;;  %v7838_v39 = vld [vmem:[%s8299_s13 + $0x528] sm:$0xff]  }
  0xa2   : > { %7064 = vmatpush3.bf16.msra.mxu1 %v7787_v38  ;;  %5245 = vmatprep.mubr.bf16.mxu1 %v1470_v12  ;;  %v7837_v38 = vld [vmem:[%s8299_s13 + $0x5e8] sm:$0xff]   ;;  %v7873_v12 = vld [vmem:[%s8299_s13 + $0x670] sm:$0xff]  }
  0xa3   : > { %7065 = vmatprep.subr.bf16.mxu1 %v7789_v41  ;;  %v7839_v40 = vld [vmem:[%s8299_s13 + $0x5a8] sm:$0xff]   ;;  %v7840_v41 = vld [vmem:[%s8299_s13 + $0x570] sm:$0xff]  }
  0xa4   : > { %7044 = vmatpush3.bf16.msra.mxu0 %v7790_v43  ;;  %v7841_v43 = vld [vmem:[%s8299_s13 + $0x5f0] sm:$0xff]   ;;  %v7869_v8 = vld [vmem:[%s8299_s13 + $0x668] sm:$0xff]  }
  0xa5   : > { %7045 = vmatprep.subr.bf16.mxu0 %v7792_v45  ;;  %v7843_v45 = vld [vmem:[%s8299_s13 + $0x5b0] sm:$0xff]  }
  0xa6   : > { %7066 = vmatpush3.bf16.msra.mxu1 %v7791_v44  ;;  %v7842_v44 = vld [vmem:[%s8299_s13 + $0x530] sm:$0xff]  }
  0xa7   : > { %7067 = vmatprep.subr.bf16.mxu1 %v7793_v46  ;;  %v7844_v46 = vld [vmem:[%s8299_s13 + $0x578] sm:$0xff]  }
  0xa8   : > { %7046 = vmatpush3.bf16.msra.mxu0 %v7794_v47  ;;  %v7845_v47 = vld [vmem:[%s8299_s13 + $0x5f8] sm:$0xff]  }
  0xa9   : > { %7047 = vmatprep.subr.bf16.mxu0 %v7796_v49  ;;  %v7847_v49 = vld [vmem:[%s8299_s13 + $0x5b8] sm:$0xff]  }
  0xaa   : > { %7068 = vmatpush3.bf16.msra.mxu1 %v7795_v48  ;;  %v7846_v48 = vld [vmem:[%s8299_s13 + $0x538] sm:$0xff]  }
  0xab   : > { %7069 = vmatprep.subr.bf16.mxu1 %v7797_v50  ;;  %v1453_v50 = vrot.slane %v8493_v5, %v8343_v42  ;;  %v7866_v5 = vld [vmem:[%s8299_s13 + $0x6e0] sm:$0xff]  }
  0xac   : > { %7048 = vmatpush3.bf16.msra.mxu0 %v7798_v51  ;;  %v7849_v51 = vld [vmem:[%s8299_s13 + $0x640] sm:$0xff]  }
  0xad   : > { %7049 = vmatprep.subr.bf16.mxu0 %v7800_v53  ;;  %v7851_v53 = vld [vmem:[%s8299_s13 + $0x600] sm:$0xff]  }
  0xae   : > { %7070 = vmatpush3.bf16.msra.mxu1 %v7799_v52  ;;  %v7850_v52 = vld [vmem:[%s8299_s13 + $0x6c0] sm:$0xff]  }
  0xaf   : > { %7071 = vmatprep.subr.bf16.mxu1 %v7801_v54  ;;  %v7852_v54 = vld [vmem:[%s8299_s13 + $0x680] sm:$0xff]  }
  0xb0   : > { %7050 = vmatpush3.bf16.msra.mxu0 %v7802_v55  ;;  %v1469_v55 = vcombine.high %v1453_v50, %v1453_v50 }
  0xb1   : > { %7051 = vmatprep.subr.bf16.mxu0 %v7804_v57  ;;  %v7854_v57 = vld [vmem:[%s8299_s13 + $0x6c8] sm:$0xff]  }
  0xb2   : > { %7072 = vmatpush3.bf16.msra.mxu1 %v7803_v56  ;;  %v7853_v56 = vld [vmem:[%s8299_s13 + $0x648] sm:$0xff]  }
  0xb3   : > { %7073 = vmatprep.subr.bf16.mxu1 %v7805_v58  ;;  %v7855_v58 = vld [vmem:[%s8299_s13 + $0x608] sm:$0xff]  }
  0xb4   : > { %7052 = vmatpush3.bf16.msra.mxu0 %v7806_v59  ;;  %v7856_v59 = vld [vmem:[%s8299_s13 + $0x688] sm:$0xff]  }
  0xb5   : > { %7053 = vmatprep.subr.bf16.mxu0 %v7808_v61  ;;  %v7858_v61 = vld [vmem:[%s8299_s13 + $0x6d0] sm:$0xff]  }
  0xb6   : > { %7074 = vmatpush3.bf16.msra.mxu1 %v7807_v60  ;;  %v7857_v60 = vld [vmem:[%s8299_s13 + $0x650] sm:$0xff]  }
  0xb7   : > { %7075 = vmatprep.subr.bf16.mxu1 %v7809_v63  ;;  %v7860_v63 = vld [vmem:[%s8299_s13 + $0x690] sm:$0xff]  }
  0xb8   : > { %7054 = vmatpush3.bf16.msra.mxu0 %v7810_v2  ;;  %v7863_v2 = vld [vmem:[%s8299_s13 + $0x618] sm:$0xff]  }
  0xb9   : > { %7055 = vmatprep.subr.bf16.mxu0 %v7812_v6  ;;  %v7867_v6 = vld [vmem:[%s8299_s13 + $0x620] sm:$0xff]  }
  0xba   : > { %7076 = vmatpush3.bf16.msra.mxu1 %v7811_v3  ;;  %v7864_v3 = vld [vmem:[%s8299_s13 + $0x698] sm:$0xff]  }
  0xbb   : > { %7077 = vmatprep.subr.bf16.mxu1 %v7813_v7  ;;  %v7868_v7 = vld [vmem:[%s8299_s13 + $0x6a0] sm:$0xff]  }
  0xbc   : > { %7056 = vmatpush3.bf16.msra.mxu0 %v7814_v10  ;;  %v7871_v10 = vld [vmem:[%s8299_s13 + $0x628] sm:$0xff]  }
  0xbd   : > { %7085 = vmatprep.subr.bf16.mxu0 %v7816_v14  ;;  %v288_v14 = vld [vmem:[%s8283_s26 + $0x18] sm:$0xff] }
  0xbe   : > { %7078 = vmatpush3.bf16.msra.mxu1 %v7815_v11  ;;  %v7872_v11 = vld [vmem:[%s8299_s13 + $0x6a8] sm:$0xff]  }
  0xbf   : > { %5206 = vmatmul.mubr.bf16.vlgmr.msra.gmra.mrb[16].mxu0 %v1446_v13  ;;  %7107 = vmatprep.subr.bf16.mxu1 %v7817_v15  ;;  %v7874_v13 = vld [vmem:[%s8299_s13 + $0x6f0] sm:$0xff]  }
  0xc0   : > { %7086 = vmatpush3.bf16.msra.mxu0 %v7818_v17  ;;  %5285 = vmatprep.mubr.bf16.mxu0 %v1467_v16  ;;  %v7875_v15 = vld [vmem:[%s8299_s13 + $0x630] sm:$0xff]   ;;  %v1479_v16 = vrot.slane %v288_v14, %v8343_v42  ;;  %v1472_v17 = vcombine.high %v288_v14, %v288_v14  ;;  %v7915_v14 = vld [vmem:[%s8299_s13 + $0x8c0] sm:$0xff]  }
  0xc1   : > { %5246 = vmatmul.mubr.bf16.vlgmr.msra.gmra.mrb[16].mxu1 %v1468_v19  ;;  %7087 = vmatprep.subr.bf16.mxu0 %v7820_v20  ;;  %v7877_v19 = vld [vmem:[%s8299_s13 + $0x678] sm:$0xff]  }
  0xc2   : > { %7108 = vmatpush3.bf16.msra.mxu1 %v7819_v18  ;;  %5325 = vmatprep.mubr.bf16.mxu1 %v1471_v22  ;;  %v7876_v18 = vld [vmem:[%s8299_s13 + $0x6b0] sm:$0xff]   ;;  %v1487_v20 = vcombine.high %v1479_v16, %v1479_v16  ;;  %v7878_v22 = vld [vmem:[%s8299_s13 + $0x6f8] sm:$0xff]  }
  0xc3   : > { %7109 = vmatprep.subr.bf16.mxu1 %v7821_v21  ;;  %v8570_v21 = vrot.slane %v1472_v17, %v8343_v42 }
  0xc4   : > { %7088 = vmatpush3.bf16.msra.mxu0 %v7822_v23  ;;  %v7879_v23 = vld [vmem:[%s8299_s13 + $0x638] sm:$0xff]  }
  0xc5   : > { %7089 = vmatprep.subr.bf16.mxu0 %v7824_v25  ;;  %v1488_v25 = vcombine.high %v8570_v21, %v8570_v21 }
  0xc6   : > { %7110 = vmatpush3.bf16.msra.mxu1 %v7823_v24  ;;  %v1509_v24 = vrot.slane %v1487_v20, %v8343_v42  ;;  %v7920_v20 = vld [vmem:[%s8299_s13 + $0x808] sm:$0xff]  }
  0xc7   : > { %7111 = vmatprep.subr.bf16.mxu1 %v7825_v26  ;;  %v7880_v26 = vld [vmem:[%s8299_s13 + $0x6b8] sm:$0xff]  }
  0xc8   : > { %7090 = vmatpush3.bf16.msra.mxu0 %v7826_v27  ;;  %v1519_v27 = vcombine.high %v1509_v24, %v1509_v24 }
  0xc9   : > { %7091 = vmatprep.subr.bf16.mxu0 %v7828_v29  ;;  %v7881_v29 = vld [vmem:[%s8299_s13 + $0x740] sm:$0xff]  }
  0xca   : > { %7112 = vmatpush3.bf16.msra.mxu1 %v7827_v28  ;;  %v1495_v28 = vrot.slane %v1479_v16, %v8343_v42  ;;  %v7917_v16 = vld [vmem:[%s8299_s13 + $0x880] sm:$0xff]  }
  0xcb   : > { %7113 = vmatprep.subr.bf16.mxu1 %v7829_v30  ;;  %v7882_v30 = vld [vmem:[%s8299_s13 + $0x7c0] sm:$0xff]  }
  0xcc   : > { %7092 = vmatpush3.bf16.msra.mxu0 %v7830_v31  ;;  %v1516_v31 = vrot.slane %v1488_v25, %v8343_v42  ;;  %v7925_v25 = vld [vmem:[%s8299_s13 + $0x890] sm:$0xff]  }
  0xcd   : > { %7093 = vmatprep.subr.bf16.mxu0 %v7832_v33  ;;  %v7884_v33 = vld [vmem:[%s8299_s13 + $0x780] sm:$0xff]  }
  0xce   : > { %7114 = vmatpush3.bf16.msra.mxu1 %v7831_v32  ;;  %v7883_v32 = vld [vmem:[%s8299_s13 + $0x700] sm:$0xff]  }
  0xcf   : > { %7115 = vmatprep.subr.bf16.mxu1 %v7833_v34  ;;  %v1517_v34 = vcombine.high %v1495_v28, %v1495_v28 }
  0xd0   : > { %7094 = vmatpush3.bf16.msra.mxu0 %v7834_v35  ;;  %v7885_v35 = vld [vmem:[%s8299_s13 + $0x748] sm:$0xff]  }
  0xd1   : > { %7095 = vmatprep.subr.bf16.mxu0 %v7836_v37  ;;  %v1520_v37 = vcombine.high %v1516_v31, %v1516_v31 }
  0xd2   : > { %7116 = vmatpush3.bf16.msra.mxu1 %v7835_v36  ;;  %v7886_v36 = vld [vmem:[%s8299_s13 + $0x7c8] sm:$0xff]  }
  0xd3   : > { %7117 = vmatprep.subr.bf16.mxu1 %v7837_v38  ;;  %v7887_v38 = vld [vmem:[%s8299_s13 + $0x708] sm:$0xff]  }
  0xd4   : > { %7096 = vmatpush3.bf16.msra.mxu0 %v7838_v39  ;;  %v7888_v39 = vld [vmem:[%s8299_s13 + $0x788] sm:$0xff]  }
  0xd5   : > { %7097 = vmatprep.subr.bf16.mxu0 %v7840_v41  ;;  %v7890_v41 = vld [vmem:[%s8299_s13 + $0x7d0] sm:$0xff]  }
  0xd6   : > { %7118 = vmatpush3.bf16.msra.mxu1 %v7839_v40  ;;  %v7889_v40 = vld [vmem:[%s8299_s13 + $0x750] sm:$0xff]  }
  0xd7   : > { %7119 = vmatprep.subr.bf16.mxu1 %v7841_v43  ;;  %v7891_v43 = vld [vmem:[%s8299_s13 + $0x710] sm:$0xff]  }
  0xd8   : > { %7098 = vmatpush3.bf16.msra.mxu0 %v7842_v44  ;;  %v7892_v44 = vld [vmem:[%s8299_s13 + $0x790] sm:$0xff]  }
  0xd9   : > { %7099 = vmatprep.subr.bf16.mxu0 %v7844_v46  ;;  %v7894_v46 = vld [vmem:[%s8299_s13 + $0x7d8] sm:$0xff]  }
  0xda   : > { %7120 = vmatpush3.bf16.msra.mxu1 %v7843_v45  ;;  %v7893_v45 = vld [vmem:[%s8299_s13 + $0x758] sm:$0xff]  }
  0xdb   : > { %7121 = vmatprep.subr.bf16.mxu1 %v7845_v47  ;;  %v7895_v47 = vld [vmem:[%s8299_s13 + $0x718] sm:$0xff]  }
  0xdc   : > { %7100 = vmatpush3.bf16.msra.mxu0 %v7846_v48  ;;  %v7896_v48 = vld [vmem:[%s8299_s13 + $0x798] sm:$0xff]  }
  0xdd   : > { %7129 = vmatprep.subr.bf16.mxu0 %v7849_v51  ;;  %v7899_v51 = vld [vmem:[%s8299_s13 + $0x720] sm:$0xff]  }
  0xde   : > { %7122 = vmatpush3.bf16.msra.mxu1 %v7847_v49  ;;  %v7897_v49 = vld [vmem:[%s8299_s13 + $0x760] sm:$0xff]  }
  0xdf   : > { %5286 = vmatmul.mubr.bf16.vlgmr.msra.gmra.mrb[20].mxu0 %v1453_v50  ;;  %7151 = vmatprep.subr.bf16.mxu1 %v7850_v52  ;;  %v7898_v50 = vld [vmem:[%s8299_s13 + $0x7e0] sm:$0xff]  }
  0xe0   : > { %7130 = vmatpush3.bf16.msra.mxu0 %v7851_v53  ;;  %5365 = vmatprep.mubr.bf16.mxu0 %v1509_v24  ;;  %v7900_v52 = vld [vmem:[%s8299_s13 + $0x7a0] sm:$0xff]   ;;  %v7901_v53 = vld [vmem:[%s8299_s13 + $0x768] sm:$0xff]   ;;  %v7924_v24 = vld [vmem:[%s8299_s13 + $0x810] sm:$0xff]  }
  0xe1   : > { %5326 = vmatmul.mubr.bf16.vlgmr.msra.gmra.mrb[20].mxu1 %v1469_v55  ;;  %7131 = vmatprep.subr.bf16.mxu0 %v7853_v56  ;;  %v7903_v55 = vld [vmem:[%s8299_s13 + $0x728] sm:$0xff]  }
  0xe2   : > { %7152 = vmatpush3.bf16.msra.mxu1 %v7852_v54  ;;  %5405 = vmatprep.mubr.bf16.mxu1 %v1519_v27  ;;  %v7902_v54 = vld [vmem:[%s8299_s13 + $0x7e8] sm:$0xff]   ;;  %v7927_v27 = vld [vmem:[%s8299_s13 + $0x8d8] sm:$0xff]  }
  0xe3   : > { %7153 = vmatprep.subr.bf16.mxu1 %v7854_v57  ;;  %v7904_v56 = vld [vmem:[%s8299_s13 + $0x7a8] sm:$0xff]   ;;  %v7905_v57 = vld [vmem:[%s8299_s13 + $0x770] sm:$0xff]  }
  0xe4   : > { %7132 = vmatpush3.bf16.msra.mxu0 %v7855_v58 }
  0xe5   : > { %7133 = vmatprep.subr.bf16.mxu0 %v7857_v60 }
  0xe6   : > { %7154 = vmatpush3.bf16.msra.mxu1 %v7856_v59  ;;  %v7906_v59 = vld [vmem:[%s8299_s13 + $0x7f0] sm:$0xff]  }
  0xe7   : > { %7155 = vmatprep.subr.bf16.mxu1 %v7858_v61  ;;  %v7907_v61 = vld [vmem:[%s8299_s13 + $0x730] sm:$0xff]  }
  0xe8   : > { %7134 = vmatpush3.bf16.msra.mxu0 %v7859_v62 }
  0xe9   : > { %7135 = vmatprep.subr.bf16.mxu0 %v7861_v0 }
  0xea   : > { %7156 = vmatpush3.bf16.msra.mxu1 %v7860_v63 }
  0xeb   : > { %7157 = vmatprep.subr.bf16.mxu1 %v7862_v1  ;;  %v7908_v1 = vld [vmem:[%s8299_s13 + $0x7b0] sm:$0xff]  }
  0xec   : > { %7136 = vmatpush3.bf16.msra.mxu0 %v7863_v2  ;;  %v7909_v2 = vld [vmem:[%s8299_s13 + $0x778] sm:$0xff]  }
  0xed   : > { %7137 = vmatprep.subr.bf16.mxu0 %v7865_v4 }
  0xee   : > { %7158 = vmatpush3.bf16.msra.mxu1 %v7864_v3 }
  0xef   : > { %7159 = vmatprep.subr.bf16.mxu1 %v7866_v5 }
  0xf0   : > { %7138 = vmatpush3.bf16.msra.mxu0 %v7867_v6 }
  0xf1   : > { %7139 = vmatprep.subr.bf16.mxu0 %v7869_v8 }
  0xf2   : > { %7160 = vmatpush3.bf16.msra.mxu1 %v7868_v7  ;;  %v7910_v7 = vld [vmem:[%s8299_s13 + $0x7f8] sm:$0xff]  }
  0xf3   : > { %7161 = vmatprep.subr.bf16.mxu1 %v7870_v9  ;;  %v7911_v9 = vld [vmem:[%s8299_s13 + $0x738] sm:$0xff]  }
  0xf4   : > { %7140 = vmatpush3.bf16.msra.mxu0 %v7871_v10 }
  0xf5   : > { %7141 = vmatprep.subr.bf16.mxu0 %v7873_v12  ;;  %v1502_v12 = vrot.slane %v8570_v21, %v8343_v42  ;;  %v7921_v21 = vld [vmem:[%s8299_s13 + $0x888] sm:$0xff]  }
  0xf6   : > { %7162 = vmatpush3.bf16.msra.mxu1 %v7872_v11  ;;  %v7912_v11 = vld [vmem:[%s8299_s13 + $0x7b8] sm:$0xff]  }
  0xf7   : > { %7163 = vmatprep.subr.bf16.mxu1 %v7874_v13  ;;  %v7914_v13 = vld [vmem:[%s8299_s13 + $0x840] sm:$0xff]   ;;  %v1518_v17 = vcombine.high %v1502_v12, %v1502_v12 }
  0xf8   : > { %7142 = vmatpush3.bf16.msra.mxu0 %v7875_v15  ;;  %v7916_v15 = vld [vmem:[%s8299_s13 + $0x800] sm:$0xff]  }
  0xf9   : > { %7143 = vmatprep.subr.bf16.mxu0 %v7877_v19  ;;  %v7919_v19 = vld [vmem:[%s8299_s13 + $0x8c8] sm:$0xff]  }
  0xfa   : > { %7164 = vmatpush3.bf16.msra.mxu1 %v7876_v18  ;;  %v7918_v18 = vld [vmem:[%s8299_s13 + $0x848] sm:$0xff]  }
  0xfb   : > { %7165 = vmatprep.subr.bf16.mxu1 %v7878_v22  ;;  %v7922_v22 = vld [vmem:[%s8299_s13 + $0x850] sm:$0xff]  }
  0xfc   : > { %7144 = vmatpush3.bf16.msra.mxu0 %v7879_v23  ;;  %v7923_v23 = vld [vmem:[%s8299_s13 + $0x8d0] sm:$0xff]  }
  0xfd   : > { %7173 = vmatprep.subr.bf16.mxu0 %v7881_v29  ;;  %v7929_v29 = vld [vmem:[%s8299_s13 + $0x898] sm:$0xff]  }
  0xfe   : > { %7166 = vmatpush3.bf16.msra.mxu1 %v7880_v26  ;;  %v7926_v26 = vld [vmem:[%s8299_s13 + $0x858] sm:$0xff]  }
  0xff   : > { %5366 = vmatmul.mubr.bf16.vlgmr.msra.gmra.mrb[24].mxu0 %v1495_v28  ;;  %7195 = vmatprep.subr.bf16.mxu1 %v7882_v30  ;;  %v7928_v28 = vld [vmem:[%s8299_s13 + $0x818] sm:$0xff]   ;;  %v7930_v30 = vld [vmem:[%s8299_s13 + $0x860] sm:$0xff]  }
 0x100   : > { %7174 = vmatpush3.bf16.msra.mxu0 %v7883_v32  ;;  %5445 = vmatprep.mubr.bf16.mxu0 %v1516_v31  ;;  %v7931_v31 = vld [vmem:[%s8299_s13 + $0x8e0] sm:$0xff]  }
 0x101   : > { %5406 = vmatmul.mubr.bf16.vlgmr.msra.gmra.mrb[24].mxu1 %v1517_v34  ;;  %7175 = vmatprep.subr.bf16.mxu0 %v7885_v35  ;;  %v7932_v32 = vld [vmem:[%s8299_s13 + $0x820] sm:$0xff]   ;;  %v7934_v34 = vld [vmem:[%s8299_s13 + $0x868] sm:$0xff]  }
 0x102   : > { %7196 = vmatpush3.bf16.msra.mxu1 %v7884_v33  ;;  %5485 = vmatprep.mubr.bf16.mxu1 %v1520_v37  ;;  %v7933_v33 = vld [vmem:[%s8299_s13 + $0x8a0] sm:$0xff]   ;;  %v7935_v35 = vld [vmem:[%s8299_s13 + $0x8e8] sm:$0xff]  }
 0x103   : > { %7197 = vmatprep.subr.bf16.mxu1 %v7886_v36  ;;  %v7936_v36 = vld [vmem:[%s8299_s13 + $0x828] sm:$0xff]  }
 0x104   : > { %7176 = vmatpush3.bf16.msra.mxu0 %v7887_v38  ;;  %v7937_v37 = vld [vmem:[%s8299_s13 + $0x8a8] sm:$0xff]   ;;  %v7938_v38 = vld [vmem:[%s8299_s13 + $0x870] sm:$0xff]  }
 0x105   : > { %7177 = vmatprep.subr.bf16.mxu0 %v7889_v40  ;;  %v7939_v40 = vld [vmem:[%s8299_s13 + $0x8f0] sm:$0xff]  }
 0x106   : > { %7198 = vmatpush3.bf16.msra.mxu1 %v7888_v39 }
 0x107   : > { %7199 = vmatprep.subr.bf16.mxu1 %v7890_v41  ;;  %v289_v41 = vld [vmem:[%s8283_s26 + $0x20] sm:$0xff] }
 0x108   : > { %7178 = vmatpush3.bf16.msra.mxu0 %v7891_v43 }
 0x109   : > { %7179 = vmatprep.subr.bf16.mxu0 %v7893_v45  ;;  %v1528_v45 = vrot.slane %v289_v41, %v8343_v42 }
 0x10a   : > { %7200 = vmatpush3.bf16.msra.mxu1 %v7892_v44  ;;  %v7940_v44 = vld [vmem:[%s8299_s13 + $0x830] sm:$0xff]  }
 0x10b   : > { %7201 = vmatprep.subr.bf16.mxu1 %v7894_v46  ;;  %v1521_v46 = vcombine.high %v289_v41, %v289_v41 }
 0x10c   : > { %7180 = vmatpush3.bf16.msra.mxu0 %v7895_v47 }
 0x10d   : > { %7181 = vmatprep.subr.bf16.mxu0 %v7897_v49 }
 0x10e   : > { %7202 = vmatpush3.bf16.msra.mxu1 %v7896_v48 }
 0x10f   : > { %7203 = vmatprep.subr.bf16.mxu1 %v7898_v50 }
 0x110   : > { %7182 = vmatpush3.bf16.msra.mxu0 %v7899_v51 }
 0x111   : > { %7183 = vmatprep.subr.bf16.mxu0 %v7901_v53  ;;  %v7942_v53 = vld [vmem:[%s8299_s13 + $0x878] sm:$0xff]  }
 0x112   : > { %7204 = vmatpush3.bf16.msra.mxu1 %v7900_v52  ;;  %v6881_v58 = vpop.f32.mrb[0].mxu0  ;;  %v7941_v52 = vld [vmem:[%s8299_s13 + $0x8b0] sm:$0xff]  }
 0x113   : > { %v6882_v60 = vpop.f32.mrb[1].mxu0  ;;  %7205 = vmatprep.subr.bf16.mxu1 %v7902_v54  ;;  %v6903_v62 = vpop.f32.mrb[0].mxu1  ;;  %v1536_v54 = vcombine.high %v1528_v45, %v1528_v45 }
 0x114   : > { %v6883_v63 = vadd.f32 %v6882_v60, %v6881_v58  ;;  %v6884_v0 = vpop.f32.mrb[2].mxu0  ;;  %7184 = vmatpush3.bf16.msra.mxu0 %v7903_v55  ;;  %v6904_v3 = vpop.f32.mrb[1].mxu1  ;;  %v8648_v55 = vrot.slane %v1521_v46, %v8343_v42 }
 0x115   : > { %v6885_v4 = vpop.f32.mrb[3].mxu0  ;;  %7185 = vmatprep.subr.bf16.mxu0 %v7905_v57  ;;  %v6905_v5 = vadd.f32 %v6904_v3, %v6903_v62  ;;  %v6906_v6 = vpop.f32.mrb[2].mxu1  ;;  %v1558_v62 = vrot.slane %v1536_v54, %v8343_v42  ;;  %v1544_v3 = vrot.slane %v1528_v45, %v8343_v42  ;;  %v7980_v54 = vld [vmem:[%s8299_s13 + $0xac0] sm:$0xff]  }
 0x116   : > { %7206 = vmatpush3.bf16.msra.mxu1 %v7904_v56  ;;  %v6907_v8 = vpop.f32.mrb[3].mxu1  ;;  %v7946_v4 = vld [vmem:[%s8299_s13 + $0x940] sm:$0xff]  }
 0x117   : > { %7207 = vmatprep.subr.bf16.mxu1 %v7906_v59  ;;  %v8611_v10 = vadd.f32 %v6905_v5, %v6883_v63  ;;  %v7943_v59 = vld [vmem:[%s8299_s13 + $0x8f8] sm:$0xff]   ;;  %v1537_v63 = vcombine.high %v8648_v55, %v8648_v55  ;;  %v7947_v5 = vld [vmem:[%s8299_s13 + $0x9c0] sm:$0xff]  }
 0x118   : > { %7186 = vmatpush3.bf16.msra.mxu0 %v7907_v61  ;;  %v7944_v61 = vld [vmem:[%s8299_s13 + $0x838] sm:$0xff]   ;;  %v7949_v8 = vld [vmem:[%s8299_s13 + $0x980] sm:$0xff]  }
 0x119   : > { %7187 = vmatprep.subr.bf16.mxu0 %v7909_v2  ;;  %v1568_v2 = vcombine.high %v1558_v62, %v1558_v62  ;;  %v1565_v6 = vrot.slane %v1537_v63, %v8343_v42  ;;  %v7988_v63 = vld [vmem:[%s8299_s13 + $0xad0] sm:$0xff]  }
 0x11a   : > { %7208 = vmatpush3.bf16.msra.mxu1 %v7908_v1  ;;  %v7945_v1 = vld [vmem:[%s8299_s13 + $0x8b8] sm:$0xff]  }
 0x11b   : > { %7209 = vmatprep.subr.bf16.mxu1 %v7910_v7  ;;  %v7948_v7 = vld [vmem:[%s8299_s13 + $0x900] sm:$0xff]  }
 0x11c   : > { %7188 = vmatpush3.bf16.msra.mxu0 %v7911_v9  ;;  %v1566_v9 = vcombine.high %v1544_v3, %v1544_v3 }
 0x11d   : > { %7217 = vmatprep.subr.bf16.mxu0 %v7914_v13  ;;  %v7952_v13 = vld [vmem:[%s8299_s13 + $0x908] sm:$0xff]  }
 0x11e   : > { %7210 = vmatpush3.bf16.msra.mxu1 %v7912_v11  ;;  %v7951_v11 = vld [vmem:[%s8299_s13 + $0x9c8] sm:$0xff]  }
 0x11f   : > { %5446 = vmatmul.mubr.bf16.vlgmr.msra.gmra.mrb[28].mxu0 %v1502_v12  ;;  %7239 = vmatprep.subr.bf16.mxu1 %v7915_v14  ;;  %v1569_v12 = vcombine.high %v1565_v6, %v1565_v6  ;;  %v7953_v14 = vld [vmem:[%s8299_s13 + $0x988] sm:$0xff]  }
 0x120   : > { %7218 = vmatpush3.bf16.msra.mxu0 %v7916_v15  ;;  %5525 = vmatprep.mubr.bf16.mxu0 %v1558_v62  ;;  %v7954_v15 = vld [vmem:[%s8299_s13 + $0x950] sm:$0xff]  }
 0x121   : > { %5486 = vmatmul.mubr.bf16.vlgmr.msra.gmra.mrb[28].mxu1 %v1518_v17  ;;  %7219 = vmatprep.subr.bf16.mxu0 %v7918_v18  ;;  %v7956_v17 = vld [vmem:[%s8299_s13 + $0x910] sm:$0xff]  }
 0x122   : > { %7240 = vmatpush3.bf16.msra.mxu1 %v7917_v16  ;;  %5565 = vmatprep.mubr.bf16.mxu1 %v1568_v2  ;;  %v7955_v16 = vld [vmem:[%s8299_s13 + $0x9d0] sm:$0xff]   ;;  %v7991_v2 = vld [vmem:[%s8299_s13 + $0xa58] sm:$0xff]  }
 0x123   : > { %7241 = vmatprep.subr.bf16.mxu1 %v7919_v19  ;;  %v7957_v18 = vld [vmem:[%s8299_s13 + $0x990] sm:$0xff]   ;;  %v7958_v19 = vld [vmem:[%s8299_s13 + $0x958] sm:$0xff]  }
 0x124   : > { %7220 = vmatpush3.bf16.msra.mxu0 %v7920_v20  ;;  %v7959_v20 = vld [vmem:[%s8299_s13 + $0x9d8] sm:$0xff]   ;;  %v7987_v62 = vld [vmem:[%s8299_s13 + $0xa50] sm:$0xff]  }
 0x125   : > { %7221 = vmatprep.subr.bf16.mxu0 %v7922_v22  ;;  %v7961_v22 = vld [vmem:[%s8299_s13 + $0x998] sm:$0xff]  }
 0x126   : > { %7242 = vmatpush3.bf16.msra.mxu1 %v7921_v21  ;;  %v7960_v21 = vld [vmem:[%s8299_s13 + $0x918] sm:$0xff]  }
 0x127   : > { %7243 = vmatprep.subr.bf16.mxu1 %v7923_v23  ;;  %v7962_v23 = vld [vmem:[%s8299_s13 + $0x960] sm:$0xff]  }
 0x128   : > { %7222 = vmatpush3.bf16.msra.mxu0 %v7924_v24  ;;  %v7963_v24 = vld [vmem:[%s8299_s13 + $0x9e0] sm:$0xff]  }
 0x129   : > { %7223 = vmatprep.subr.bf16.mxu0 %v7926_v26  ;;  %v7965_v26 = vld [vmem:[%s8299_s13 + $0x9a0] sm:$0xff]  }
 0x12a   : > { %7244 = vmatpush3.bf16.msra.mxu1 %v7925_v25  ;;  %v7964_v25 = vld [vmem:[%s8299_s13 + $0x920] sm:$0xff]  }
 0x12b   : > { %7245 = vmatprep.subr.bf16.mxu1 %v7927_v27  ;;  %v7966_v27 = vld [vmem:[%s8299_s13 + $0x968] sm:$0xff]  }
 0x12c   : > { %7224 = vmatpush3.bf16.msra.mxu0 %v7928_v28  ;;  %v7967_v28 = vld [vmem:[%s8299_s13 + $0x9e8] sm:$0xff]  }
 0x12d   : > { %7225 = vmatprep.subr.bf16.mxu0 %v7930_v30  ;;  %v7969_v30 = vld [vmem:[%s8299_s13 + $0x9a8] sm:$0xff]  }
 0x12e   : > { %7246 = vmatpush3.bf16.msra.mxu1 %v7929_v29  ;;  %v7968_v29 = vld [vmem:[%s8299_s13 + $0x928] sm:$0xff]  }
 0x12f   : > { %7247 = vmatprep.subr.bf16.mxu1 %v7931_v31  ;;  %v7970_v31 = vld [vmem:[%s8299_s13 + $0x970] sm:$0xff]  }
 0x130   : > { %7226 = vmatpush3.bf16.msra.mxu0 %v7932_v32 }
 0x131   : > { %7227 = vmatprep.subr.bf16.mxu0 %v7934_v34 }
 0x132   : > { %7248 = vmatpush3.bf16.msra.mxu1 %v7933_v33  ;;  %v6925_v39 = vpop.f32.mrb[4].mxu0  ;;  %v7971_v33 = vld [vmem:[%s8299_s13 + $0x9f0] sm:$0xff]  }
 0x133   : > { %v6926_v43 = vpop.f32.mrb[5].mxu0  ;;  %7249 = vmatprep.subr.bf16.mxu1 %v7935_v35  ;;  %v6947_v47 = vpop.f32.mrb[4].mxu1  ;;  %v7972_v35 = vld [vmem:[%s8299_s13 + $0x930] sm:$0xff]  }
 0x134   : > { %v6927_v48 = vadd.f32 %v6926_v43, %v6925_v39  ;;  %v6928_v49 = vpop.f32.mrb[6].mxu0  ;;  %7228 = vmatpush3.bf16.msra.mxu0 %v7936_v36  ;;  %v6948_v50 = vpop.f32.mrb[5].mxu1  ;;  %v7973_v39 = vld [vmem:[%s8299_s13 + $0x9b0] sm:$0xff]  }
 0x135   : > { %v6929_v51 = vpop.f32.mrb[7].mxu0  ;;  %7229 = vmatprep.subr.bf16.mxu0 %v7938_v38  ;;  %v6949_v57 = vadd.f32 %v6948_v50, %v6947_v47  ;;  %v6950_v58 = vpop.f32.mrb[6].mxu1  ;;  %v7975_v47 = vld [vmem:[%s8299_s13 + $0x9f8] sm:$0xff]  }
 0x136   : > { %v4968_v56 = vadd.f32 %v6927_v48, %v8611_v10  ;;  %7250 = vmatpush3.bf16.msra.mxu1 %v7937_v37  ;;  %v6951_v60 = vpop.f32.mrb[7].mxu1  ;;  %v7950_v10 = vld [vmem:[%s8299_s13 + $0x948] sm:$0xff]   ;;  %v7976_v49 = vld [vmem:[%s8299_s13 + $0x938] sm:$0xff]  }
 0x137   : > { %7251 = vmatprep.subr.bf16.mxu1 %v7939_v40  ;;  %v7974_v40 = vld [vmem:[%s8299_s13 + $0x978] sm:$0xff]   ;;  %v7984_v60 = vld [vmem:[%s8299_s13 + $0xac8] sm:$0xff]  }
 0x138   : > { %v8656_v0 = vadd.f32 %v6949_v57, %v4968_v56  ;;  %7230 = vmatpush3.bf16.msra.mxu0 %v7940_v44  ;;  %v7977_v51 = vld [vmem:[%s8299_s13 + $0x9b8] sm:$0xff]   ;;  %v7981_v56 = vld [vmem:[%s8299_s13 + $0xa00] sm:$0xff]  }
 0x139   : > { %7231 = vmatprep.subr.bf16.mxu0 %v7942_v53  ;;  %v7979_v53 = vld [vmem:[%s8299_s13 + $0xa40] sm:$0xff]  }
 0x13a   : > { %7252 = vmatpush3.bf16.msra.mxu1 %v7941_v52  ;;  %v1551_v52 = vrot.slane %v8648_v55, %v8343_v42  ;;  %v7982_v57 = vld [vmem:[%s8299_s13 + $0xa80] sm:$0xff]   ;;  %v7985_v55 = vld [vmem:[%s8299_s13 + $0xa08] sm:$0xff]  }
 0x13b   : > { %7253 = vmatprep.subr.bf16.mxu1 %v7943_v59  ;;  %v7983_v59 = vld [vmem:[%s8299_s13 + $0xa48] sm:$0xff]  }
 0x13c   : > { %7232 = vmatpush3.bf16.msra.mxu0 %v7944_v61  ;;  %v1567_v58 = vcombine.high %v1551_v52, %v1551_v52  ;;  %v7986_v61 = vld [vmem:[%s8299_s13 + $0xa88] sm:$0xff]  }
 0x13d   : > { %7261 = vmatprep.subr.bf16.mxu0 %v7946_v4  ;;  %v7993_v4 = vld [vmem:[%s8299_s13 + $0xa18] sm:$0xff]  }
 0x13e   : > { %7254 = vmatpush3.bf16.msra.mxu1 %v7945_v1  ;;  %v7990_v1 = vld [vmem:[%s8299_s13 + $0xa90] sm:$0xff]  }
 0x13f   : > { %5526 = vmatmul.mubr.bf16.vlgmr.msra.gmra.mrb[32].mxu0 %v1544_v3  ;;  %7283 = vmatprep.subr.bf16.mxu1 %v7947_v5  ;;  %v7992_v3 = vld [vmem:[%s8299_s13 + $0xad8] sm:$0xff]  }
 0x140   : > { %7262 = vmatpush3.bf16.msra.mxu0 %v7948_v7  ;;  %5605 = vmatprep.mubr.bf16.mxu0 %v1565_v6  ;;  %v7994_v5 = vld [vmem:[%s8299_s13 + $0xa98] sm:$0xff]   ;;  %v7995_v6 = vld [vmem:[%s8299_s13 + $0xa60] sm:$0xff]  }
 0x141   : > { %5566 = vmatmul.mubr.bf16.vlgmr.msra.gmra.mrb[32].mxu1 %v1566_v9  ;;  %7263 = vmatprep.subr.bf16.mxu0 %v7950_v10  ;;  %v7996_v7 = vld [vmem:[%s8299_s13 + $0xae0] sm:$0xff]   ;;  %v7999_v10 = vld [vmem:[%s8299_s13 + $0xa68] sm:$0xff]  }
 0x142   : > { %7284 = vmatpush3.bf16.msra.mxu1 %v7949_v8  ;;  %5645 = vmatprep.mubr.bf16.mxu1 %v1569_v12  ;;  %v7997_v8 = vld [vmem:[%s8299_s13 + $0xa20] sm:$0xff]   ;;  %v8001_v12 = vld [vmem:[%s8299_s13 + $0xa28] sm:$0xff]  }
 0x143   : > { %7285 = vmatprep.subr.bf16.mxu1 %v7951_v11  ;;  %v7998_v9 = vld [vmem:[%s8299_s13 + $0xaa0] sm:$0xff]   ;;  %v8000_v11 = vld [vmem:[%s8299_s13 + $0xae8] sm:$0xff]  }
 0x144   : > { %7264 = vmatpush3.bf16.msra.mxu0 %v7952_v13  ;;  %v8002_v13 = vld [vmem:[%s8299_s13 + $0xaa8] sm:$0xff]  }
 0x145   : > { %7265 = vmatprep.subr.bf16.mxu0 %v7954_v15 }
 0x146   : > { %7286 = vmatpush3.bf16.msra.mxu1 %v7953_v14  ;;  %v8003_v14 = vld [vmem:[%s8299_s13 + $0xa70] sm:$0xff]  }
 0x147   : > { %7287 = vmatprep.subr.bf16.mxu1 %v7955_v16  ;;  %v8004_v16 = vld [vmem:[%s8299_s13 + $0xaf0] sm:$0xff]  }
 0x148   : > { %7266 = vmatpush3.bf16.msra.mxu0 %v7956_v17 }
 0x149   : > { %7267 = vmatprep.subr.bf16.mxu0 %v7958_v19  ;;  %v290_v19 = vld [vmem:[%s8283_s26 + $0x28] sm:$0xff] }
 0x14a   : > { %7288 = vmatpush3.bf16.msra.mxu1 %v7957_v18  ;;  %v8005_v18 = vld [vmem:[%s8299_s13 + $0xa30] sm:$0xff]  }
 0x14b   : > { %7289 = vmatprep.subr.bf16.mxu1 %v7959_v20 }
 0x14c   : > { %7268 = vmatpush3.bf16.msra.mxu0 %v7960_v21 }
 0x14d   : > { %7269 = vmatprep.subr.bf16.mxu0 %v7962_v23  ;;  %v1577_v23 = vrot.slane %v290_v19, %v8343_v42 }
 0x14e   : > { %7290 = vmatpush3.bf16.msra.mxu1 %v7961_v22 }
 0x14f   : > { %7291 = vmatprep.subr.bf16.mxu1 %v7963_v24  ;;  %v1570_v24 = vcombine.high %v290_v19, %v290_v19 }
 0x150   : > { %7270 = vmatpush3.bf16.msra.mxu0 %v7964_v25 }
 0x151   : > { %7271 = vmatprep.subr.bf16.mxu0 %v7966_v27  ;;  %v8006_v27 = vld [vmem:[%s8299_s13 + $0xab0] sm:$0xff]  }
 0x152   : > { %7292 = vmatpush3.bf16.msra.mxu1 %v7965_v26  ;;  %v6969_v32 = vpop.f32.mrb[8].mxu0 }
 0x153   : > { %v6970_v34 = vpop.f32.mrb[9].mxu0  ;;  %7293 = vmatprep.subr.bf16.mxu1 %v7967_v28  ;;  %v8007_v28 = vld [vmem:[%s8299_s13 + $0xa78] sm:$0xff]  }
 0x154   : > { %v6991_v36 = vpop.f32.mrb[8].mxu1  ;;  %v6971_v37 = vadd.f32 %v6970_v34, %v6969_v32  ;;  %v6972_v38 = vpop.f32.mrb[10].mxu0  ;;  %7272 = vmatpush3.bf16.msra.mxu0 %v7968_v29  ;;  %v8008_v32 = vld [vmem:[%s8299_s13 + $0xaf8] sm:$0xff]  }
 0x155   : > { %v6992_v41 = vpop.f32.mrb[9].mxu1  ;;  %v6973_v43 = vpop.f32.mrb[11].mxu0  ;;  %7273 = vmatprep.subr.bf16.mxu0 %v7970_v31  ;;  %v8010_v38 = vld [vmem:[%s8299_s13 + $0xab8] sm:$0xff]  }
 0x156   : > { %v5048_v44 = vadd.f32 %v6971_v37, %v8656_v0  ;;  %v6993_v45 = vadd.f32 %v6992_v41, %v6991_v36  ;;  %v6994_v46 = vpop.f32.mrb[10].mxu1  ;;  %7294 = vmatpush3.bf16.msra.mxu1 %v7969_v30  ;;  %v7989_v0 = vld [vmem:[%s8299_s13 + $0xa10] sm:$0xff]   ;;  %v8733_v36 = vrot.slane %v1570_v24, %v8343_v42  ;;  %v8011_v41 = vld [vmem:[%s8299_s13 + $0xb40] sm:$0xff]   ;;  %v8041_v24 = vld [vmem:[%s8299_s13 + $0xb38] sm:$0xff]  }
 0x157   : > { %v6995_v48 = vpop.f32.mrb[11].mxu1  ;;  %7295 = vmatprep.subr.bf16.mxu1 %v7971_v33  ;;  %v1585_v33 = vcombine.high %v1577_v23, %v1577_v23  ;;  %v8013_v46 = vld [vmem:[%s8299_s13 + $0xb00] sm:$0xff]  }
 0x158   : > { %v8693_v50 = vadd.f32 %v6993_v45, %v5048_v44  ;;  %7274 = vmatpush3.bf16.msra.mxu0 %v7972_v35  ;;  %v8009_v35 = vld [vmem:[%s8299_s13 + $0xa38] sm:$0xff]   ;;  %v1586_v43 = vcombine.high %v8733_v36, %v8733_v36  ;;  %v8012_v45 = vld [vmem:[%s8299_s13 + $0xbc0] sm:$0xff]  }
 0x159   : > { %7275 = vmatprep.subr.bf16.mxu0 %v7974_v40  ;;  %v1593_v40 = vrot.slane %v1577_v23, %v8343_v42  ;;  %v8014_v48 = vld [vmem:[%s8299_s13 + $0xb80] sm:$0xff]  }
 0x15a   : > { %7296 = vmatpush3.bf16.msra.mxu1 %v7973_v39  ;;  %v1607_v39 = vrot.slane %v1585_v33, %v8343_v42  ;;  %v8048_v33 = vld [vmem:[%s8299_s13 + $0xc48] sm:$0xff]  }
 0x15b   : > { %7297 = vmatprep.subr.bf16.mxu1 %v7975_v47  ;;  %v1614_v47 = vrot.slane %v1586_v43, %v8343_v42  ;;  %v8057_v43 = vld [vmem:[%s8299_s13 + $0xcd8] sm:$0xff]  }
 0x15c   : > { %7276 = vmatpush3.bf16.msra.mxu0 %v7976_v49  ;;  %v1617_v44 = vcombine.high %v1607_v39, %v1607_v39  ;;  %v1615_v49 = vcombine.high %v1593_v40, %v1593_v40 }
 0x15d   : > { %7305 = vmatprep.subr.bf16.mxu0 %v7979_v53  ;;  %v8017_v53 = vld [vmem:[%s8299_s13 + $0xb08] sm:$0xff]  }
 0x15e   : > { %7298 = vmatpush3.bf16.msra.mxu1 %v7977_v51  ;;  %v8016_v51 = vld [vmem:[%s8299_s13 + $0xbc8] sm:$0xff]  }
 0x15f   : > { %5606 = vmatmul.mubr.bf16.vlgmr.msra.gmra.mrb[36].mxu0 %v1551_v52  ;;  %7327 = vmatprep.subr.bf16.mxu1 %v7980_v54  ;;  %v1618_v52 = vcombine.high %v1614_v47, %v1614_v47  ;;  %v8018_v54 = vld [vmem:[%s8299_s13 + $0xb88] sm:$0xff]  }
 0x160   : > { %7306 = vmatpush3.bf16.msra.mxu0 %v7981_v56  ;;  %5685 = vmatprep.mubr.bf16.mxu0 %v1607_v39  ;;  %v8019_v56 = vld [vmem:[%s8299_s13 + $0xb50] sm:$0xff]  }
 0x161   : > { %5646 = vmatmul.mubr.bf16.vlgmr.msra.gmra.mrb[36].mxu1 %v1567_v58  ;;  %7307 = vmatprep.subr.bf16.mxu0 %v7983_v59  ;;  %v8021_v58 = vld [vmem:[%s8299_s13 + $0xb10] sm:$0xff]  }
 0x162   : > { %7328 = vmatpush3.bf16.msra.mxu1 %v7982_v57  ;;  %5725 = vmatprep.mubr.bf16.mxu1 %v1617_v44  ;;  %v8020_v57 = vld [vmem:[%s8299_s13 + $0xbd0] sm:$0xff]   ;;  %v8058_v44 = vld [vmem:[%s8299_s13 + $0xc18] sm:$0xff]  }
 0x163   : > { %7329 = vmatprep.subr.bf16.mxu1 %v7984_v60  ;;  %v8022_v59 = vld [vmem:[%s8299_s13 + $0xb90] sm:$0xff]   ;;  %v8023_v60 = vld [vmem:[%s8299_s13 + $0xb58] sm:$0xff]  }
 0x164   : > { %7308 = vmatpush3.bf16.msra.mxu0 %v7985_v55  ;;  %v8024_v55 = vld [vmem:[%s8299_s13 + $0xbd8] sm:$0xff]   ;;  %v8054_v39 = vld [vmem:[%s8299_s13 + $0xc10] sm:$0xff]  }
 0x165   : > { %7309 = vmatprep.subr.bf16.mxu0 %v7987_v62  ;;  %v8026_v62 = vld [vmem:[%s8299_s13 + $0xb98] sm:$0xff]  }
 0x166   : > { %7330 = vmatpush3.bf16.msra.mxu1 %v7986_v61  ;;  %v8025_v61 = vld [vmem:[%s8299_s13 + $0xb18] sm:$0xff]  }
 0x167   : > { %7331 = vmatprep.subr.bf16.mxu1 %v7988_v63  ;;  %v8027_v63 = vld [vmem:[%s8299_s13 + $0xb60] sm:$0xff]  }
 0x168   : > { %7310 = vmatpush3.bf16.msra.mxu0 %v7989_v0  ;;  %v8028_v0 = vld [vmem:[%s8299_s13 + $0xbe0] sm:$0xff]  }
 0x169   : > { %7311 = vmatprep.subr.bf16.mxu0 %v7991_v2  ;;  %v8030_v2 = vld [vmem:[%s8299_s13 + $0xba0] sm:$0xff]  }
 0x16a   : > { %7332 = vmatpush3.bf16.msra.mxu1 %v7990_v1  ;;  %v8029_v1 = vld [vmem:[%s8299_s13 + $0xb20] sm:$0xff]  }
 0x16b   : > { %7333 = vmatprep.subr.bf16.mxu1 %v7992_v3  ;;  %v8031_v3 = vld [vmem:[%s8299_s13 + $0xb68] sm:$0xff]  }
 0x16c   : > { %7312 = vmatpush3.bf16.msra.mxu0 %v7993_v4  ;;  %v8032_v4 = vld [vmem:[%s8299_s13 + $0xbe8] sm:$0xff]  }
 0x16d   : > { %7313 = vmatprep.subr.bf16.mxu0 %v7995_v6  ;;  %v8034_v6 = vld [vmem:[%s8299_s13 + $0xba8] sm:$0xff]  }
 0x16e   : > { %7334 = vmatpush3.bf16.msra.mxu1 %v7994_v5  ;;  %v8033_v5 = vld [vmem:[%s8299_s13 + $0xb28] sm:$0xff]  }
 0x16f   : > { %7335 = vmatprep.subr.bf16.mxu1 %v7996_v7  ;;  %v8035_v7 = vld [vmem:[%s8299_s13 + $0xb70] sm:$0xff]  }
 0x170   : > { %7314 = vmatpush3.bf16.msra.mxu0 %v7997_v8 }
 0x171   : > { %7315 = vmatprep.subr.bf16.mxu0 %v7999_v10 }
 0x172   : > { %7336 = vmatpush3.bf16.msra.mxu1 %v7998_v9  ;;  %v7013_v15 = vpop.f32.mrb[12].mxu0  ;;  %v8036_v9 = vld [vmem:[%s8299_s13 + $0xbf0] sm:$0xff]  }
 0x173   : > { %v7014_v17 = vpop.f32.mrb[13].mxu0  ;;  %7337 = vmatprep.subr.bf16.mxu1 %v8000_v11  ;;  %v8037_v11 = vld [vmem:[%s8299_s13 + $0xb30] sm:$0xff]  }
 0x174   : > { %v7035_v20 = vpop.f32.mrb[12].mxu1  ;;  %v7015_v21 = vadd.f32 %v7014_v17, %v7013_v15  ;;  %v7016_v22 = vpop.f32.mrb[14].mxu0  ;;  %7316 = vmatpush3.bf16.msra.mxu0 %v8001_v12  ;;  %v8038_v15 = vld [vmem:[%s8299_s13 + $0xbb0] sm:$0xff]  }
 0x175   : > { %v7036_v25 = vpop.f32.mrb[13].mxu1  ;;  %v7017_v26 = vpop.f32.mrb[15].mxu0  ;;  %7317 = vmatprep.subr.bf16.mxu0 %v8003_v14  ;;  %v8040_v22 = vld [vmem:[%s8299_s13 + $0xbf8] sm:$0xff]  }
 0x176   : > { %v5128_v29 = vadd.f32 %v7015_v21, %v8693_v50  ;;  %v7037_v30 = vadd.f32 %v7036_v25, %v7035_v20  ;;  %v7038_v31 = vpop.f32.mrb[14].mxu1  ;;  %7338 = vmatpush3.bf16.msra.mxu1 %v8002_v13  ;;  %v8015_v50 = vld [vmem:[%s8299_s13 + $0xb48] sm:$0xff]   ;;  %v8042_v26 = vld [vmem:[%s8299_s13 + $0xbb8] sm:$0xff]  }
 0x177   : > { %v7039_v34 = vpop.f32.mrb[15].mxu1  ;;  %7339 = vmatprep.subr.bf16.mxu1 %v8004_v16  ;;  %v8039_v16 = vld [vmem:[%s8299_s13 + $0xb78] sm:$0xff]   ;;  %v8047_v31 = vld [vmem:[%s8299_s13 + $0xc80] sm:$0xff]  }
 0x178   : > { %v8735_v37 = vadd.f32 %v7037_v30, %v5128_v29  ;;  %7318 = vmatpush3.bf16.msra.mxu0 %v8005_v18  ;;  %v8045_v29 = vld [vmem:[%s8299_s13 + $0xcc0] sm:$0xff]   ;;  %v8049_v34 = vld [vmem:[%s8299_s13 + $0xcc8] sm:$0xff]  }
 0x179   : > { %7319 = vmatprep.subr.bf16.mxu0 %v8007_v28  ;;  %v8044_v28 = vld [vmem:[%s8299_s13 + $0xc40] sm:$0xff]  }
 0x17a   : > { %7340 = vmatpush3.bf16.msra.mxu1 %v8006_v27  ;;  %v1600_v27 = vrot.slane %v8733_v36, %v8343_v42  ;;  %v8046_v30 = vld [vmem:[%s8299_s13 + $0xc00] sm:$0xff]   ;;  %v8051_v36 = vld [vmem:[%s8299_s13 + $0xc88] sm:$0xff]  }
 0x17b   : > { %7341 = vmatprep.subr.bf16.mxu1 %v8008_v32 }
 0x17c   : > { %7320 = vmatpush3.bf16.msra.mxu0 %v8009_v35  ;;  %v1616_v32 = vcombine.high %v1600_v27, %v1600_v27  ;;  %v8050_v35 = vld [vmem:[%s8299_s13 + $0xc08] sm:$0xff]  }
 0x17d   : > { %7349 = vmatprep.subr.bf16.mxu0 %v8011_v41  ;;  %v8056_v41 = vld [vmem:[%s8299_s13 + $0xc58] sm:$0xff]  }
 0x17e   : > { %7342 = vmatpush3.bf16.msra.mxu1 %v8010_v38  ;;  %v8053_v38 = vld [vmem:[%s8299_s13 + $0xcd0] sm:$0xff]  }
 0x17f   : > { %5686 = vmatmul.mubr.bf16.vlgmr.msra.gmra.mrb[40].mxu0 %v1593_v40  ;;  %7371 = vmatprep.subr.bf16.mxu1 %v8012_v45  ;;  %v8055_v40 = vld [vmem:[%s8299_s13 + $0xc90] sm:$0xff]   ;;  %v8059_v45 = vld [vmem:[%s8299_s13 + $0xc98] sm:$0xff]  }
 0x180   : > { %7350 = vmatpush3.bf16.msra.mxu0 %v8013_v46  ;;  %5765 = vmatprep.mubr.bf16.mxu0 %v1614_v47  ;;  %v8060_v46 = vld [vmem:[%s8299_s13 + $0xc60] sm:$0xff]  }
 0x181   : > { %5726 = vmatmul.mubr.bf16.vlgmr.msra.gmra.mrb[40].mxu1 %v1615_v49  ;;  %7351 = vmatprep.subr.bf16.mxu0 %v8015_v50  ;;  %v8061_v47 = vld [vmem:[%s8299_s13 + $0xce0] sm:$0xff]   ;;  %v8064_v50 = vld [vmem:[%s8299_s13 + $0xc68] sm:$0xff]  }
 0x182   : > { %7372 = vmatpush3.bf16.msra.mxu1 %v8014_v48  ;;  %5805 = vmatprep.mubr.bf16.mxu1 %v1618_v52  ;;  %v8062_v48 = vld [vmem:[%s8299_s13 + $0xc20] sm:$0xff]   ;;  %v8066_v52 = vld [vmem:[%s8299_s13 + $0xc28] sm:$0xff]  }
 0x183   : > { %7373 = vmatprep.subr.bf16.mxu1 %v8016_v51  ;;  %v8063_v49 = vld [vmem:[%s8299_s13 + $0xca0] sm:$0xff]   ;;  %v8065_v51 = vld [vmem:[%s8299_s13 + $0xce8] sm:$0xff]  }
 0x184   : > { %7352 = vmatpush3.bf16.msra.mxu0 %v8017_v53  ;;  %v8067_v53 = vld [vmem:[%s8299_s13 + $0xca8] sm:$0xff]  }
 0x185   : > { %7353 = vmatprep.subr.bf16.mxu0 %v8019_v56 }
 0x186   : > { %7374 = vmatpush3.bf16.msra.mxu1 %v8018_v54  ;;  %v8068_v54 = vld [vmem:[%s8299_s13 + $0xc70] sm:$0xff]  }
 0x187   : > { %7375 = vmatprep.subr.bf16.mxu1 %v8020_v57  ;;  %v8069_v57 = vld [vmem:[%s8299_s13 + $0xcf0] sm:$0xff]  }
 0x188   : > { %7354 = vmatpush3.bf16.msra.mxu0 %v8021_v58 }
 0x189   : > { %7355 = vmatprep.subr.bf16.mxu0 %v8023_v60 }
 0x18a   : > { %7376 = vmatpush3.bf16.msra.mxu1 %v8022_v59  ;;  %v8070_v59 = vld [vmem:[%s8299_s13 + $0xc30] sm:$0xff]  }
 0x18b   : > { %7377 = vmatprep.subr.bf16.mxu1 %v8024_v55 }
 0x18c   : > { %7356 = vmatpush3.bf16.msra.mxu0 %v8025_v61 }
 0x18d   : > { %7357 = vmatprep.subr.bf16.mxu0 %v8027_v63  ;;  %v8072_v63 = vld [vmem:[%s8299_s13 + $0xc78] sm:$0xff]  }
 0x18e   : > { %7378 = vmatpush3.bf16.msra.mxu1 %v8026_v62  ;;  %v8071_v62 = vld [vmem:[%s8299_s13 + $0xcb0] sm:$0xff]  }
 0x18f   : > { %7379 = vmatprep.subr.bf16.mxu1 %v8028_v0  ;;  %v291_v0 = vld [vmem:[%s8283_s26 + $0x30] sm:$0xff] }
 0x190   : > { %7358 = vmatpush3.bf16.msra.mxu0 %v8029_v1 }
 0x191   : > { %7359 = vmatprep.subr.bf16.mxu0 %v8031_v3  ;;  %v1626_v3 = vrot.slane %v291_v0, %v8343_v42 }
 0x192   : > { %7380 = vmatpush3.bf16.msra.mxu1 %v8030_v2  ;;  %v7057_v8 = vpop.f32.mrb[16].mxu0 }
 0x193   : > { %v7058_v10 = vpop.f32.mrb[17].mxu0  ;;  %7381 = vmatprep.subr.bf16.mxu1 %v8032_v4  ;;  %v1619_v4 = vcombine.high %v291_v0, %v291_v0  ;;  %v8106_v0 = vld [vmem:[%s8299_s13 + $0xd38] sm:$0xff]  }
 0x194   : > { %v7079_v12 = vpop.f32.mrb[16].mxu1  ;;  %v7059_v13 = vadd.f32 %v7058_v10, %v7057_v8  ;;  %v7060_v14 = vpop.f32.mrb[18].mxu0  ;;  %7360 = vmatpush3.bf16.msra.mxu0 %v8033_v5  ;;  %v8073_v8 = vld [vmem:[%s8299_s13 + $0xcf8] sm:$0xff]  }
 0x195   : > { %v7080_v17 = vpop.f32.mrb[17].mxu1  ;;  %v7061_v18 = vpop.f32.mrb[19].mxu0  ;;  %7361 = vmatprep.subr.bf16.mxu0 %v8035_v7  ;;  %v8074_v10 = vld [vmem:[%s8299_s13 + $0xc38] sm:$0xff]  }
 0x196   : > { %v5208_v19 = vadd.f32 %v7059_v13, %v8735_v37  ;;  %v7081_v20 = vadd.f32 %v7080_v17, %v7079_v12  ;;  %v7082_v21 = vpop.f32.mrb[18].mxu1  ;;  %7382 = vmatpush3.bf16.msra.mxu1 %v8034_v6  ;;  %v8052_v37 = vld [vmem:[%s8299_s13 + $0xc50] sm:$0xff]   ;;  %v8815_v12 = vrot.slane %v1619_v4, %v8343_v42  ;;  %v8075_v14 = vld [vmem:[%s8299_s13 + $0xcb8] sm:$0xff]   ;;  %v8076_v17 = vld [vmem:[%s8299_s13 + $0xd40] sm:$0xff]  }
 0x197   : > { %v7083_v23 = vpop.f32.mrb[19].mxu1  ;;  %7383 = vmatprep.subr.bf16.mxu1 %v8036_v9  ;;  %v8078_v21 = vld [vmem:[%s8299_s13 + $0xd00] sm:$0xff]  }
 0x198   : > { %v8775_v25 = vadd.f32 %v7081_v20, %v5208_v19  ;;  %7362 = vmatpush3.bf16.msra.mxu0 %v8037_v11  ;;  %v1634_v11 = vcombine.high %v1626_v3, %v1626_v3  ;;  %v1635_v18 = vcombine.high %v8815_v12, %v8815_v12  ;;  %v8077_v19 = vld [vmem:[%s8299_s13 + $0xdc0] sm:$0xff]  }
 0x199   : > { %7363 = vmatprep.subr.bf16.mxu0 %v8039_v16  ;;  %v1642_v16 = vrot.slane %v1626_v3, %v8343_v42  ;;  %v8079_v23 = vld [vmem:[%s8299_s13 + $0xd80] sm:$0xff]   ;;  %v1649_v3 = vrot.slane %v8815_v12, %v8343_v42  ;;  %v8116_v12 = vld [vmem:[%s8299_s13 + $0xe88] sm:$0xff]  }
 0x19a   : > { %7384 = vmatpush3.bf16.msra.mxu1 %v8038_v15  ;;  %v1656_v15 = vrot.slane %v1634_v11, %v8343_v42  ;;  %v8109_v4 = vld [vmem:[%s8299_s13 + $0xe40] sm:$0xff]   ;;  %v8115_v11 = vld [vmem:[%s8299_s13 + $0xe08] sm:$0xff]  }
 0x19b   : > { %7385 = vmatprep.subr.bf16.mxu1 %v8040_v22  ;;  %v1663_v22 = vrot.slane %v1635_v18, %v8343_v42  ;;  %v8122_v18 = vld [vmem:[%s8299_s13 + $0xed8] sm:$0xff]  }
 0x19c   : > { %7364 = vmatpush3.bf16.msra.mxu0 %v8041_v24  ;;  %v1666_v20 = vcombine.high %v1656_v15, %v1656_v15  ;;  %v1664_v24 = vcombine.high %v1642_v16, %v1642_v16 }
 0x19d   : > { %7393 = vmatprep.subr.bf16.mxu0 %v8044_v28  ;;  %v8082_v28 = vld [vmem:[%s8299_s13 + $0xd08] sm:$0xff]  }
 0x19e   : > { %7386 = vmatpush3.bf16.msra.mxu1 %v8042_v26  ;;  %v8081_v26 = vld [vmem:[%s8299_s13 + $0xdc8] sm:$0xff]  }
 0x19f   : > { %5766 = vmatmul.mubr.bf16.vlgmr.msra.gmra.mrb[44].mxu0 %v1600_v27  ;;  %7415 = vmatprep.subr.bf16.mxu1 %v8045_v29  ;;  %v1667_v27 = vcombine.high %v1663_v22, %v1663_v22  ;;  %v8083_v29 = vld [vmem:[%s8299_s13 + $0xd88] sm:$0xff]  }
 0x1a0   : > { %7394 = vmatpush3.bf16.msra.mxu0 %v8046_v30  ;;  %5845 = vmatprep.mubr.bf16.mxu0 %v1656_v15  ;;  %v8084_v30 = vld [vmem:[%s8299_s13 + $0xd50] sm:$0xff]  }
 0x1a1   : > { %5806 = vmatmul.mubr.bf16.vlgmr.msra.gmra.mrb[44].mxu1 %v1616_v32  ;;  %7395 = vmatprep.subr.bf16.mxu0 %v8048_v33  ;;  %v8086_v32 = vld [vmem:[%s8299_s13 + $0xd10] sm:$0xff]  }
 0x1a2   : > { %7416 = vmatpush3.bf16.msra.mxu1 %v8047_v31  ;;  %5885 = vmatprep.mubr.bf16.mxu1 %v1666_v20  ;;  %v8085_v31 = vld [vmem:[%s8299_s13 + $0xdd0] sm:$0xff]   ;;  %v8124_v20 = vld [vmem:[%s8299_s13 + $0xe98] sm:$0xff]  }
 0x1a3   : > { %7417 = vmatprep.subr.bf16.mxu1 %v8049_v34  ;;  %v8087_v33 = vld [vmem:[%s8299_s13 + $0xd90] sm:$0xff]   ;;  %v8088_v34 = vld [vmem:[%s8299_s13 + $0xd58] sm:$0xff]  }
 0x1a4   : > { %7396 = vmatpush3.bf16.msra.mxu0 %v8050_v35  ;;  %v8089_v35 = vld [vmem:[%s8299_s13 + $0xdd8] sm:$0xff]   ;;  %v8119_v15 = vld [vmem:[%s8299_s13 + $0xe10] sm:$0xff]  }
 0x1a5   : > { %7397 = vmatprep.subr.bf16.mxu0 %v8052_v37  ;;  %v8091_v37 = vld [vmem:[%s8299_s13 + $0xd98] sm:$0xff]  }
 0x1a6   : > { %7418 = vmatpush3.bf16.msra.mxu1 %v8051_v36  ;;  %v8090_v36 = vld [vmem:[%s8299_s13 + $0xd18] sm:$0xff]  }
 0x1a7   : > { %7419 = vmatprep.subr.bf16.mxu1 %v8053_v38  ;;  %v8092_v38 = vld [vmem:[%s8299_s13 + $0xd60] sm:$0xff]  }
 0x1a8   : > { %7398 = vmatpush3.bf16.msra.mxu0 %v8054_v39  ;;  %v8093_v39 = vld [vmem:[%s8299_s13 + $0xde0] sm:$0xff]  }
 0x1a9   : > { %7399 = vmatprep.subr.bf16.mxu0 %v8056_v41  ;;  %v8095_v41 = vld [vmem:[%s8299_s13 + $0xda0] sm:$0xff]  }
 0x1aa   : > { %7420 = vmatpush3.bf16.msra.mxu1 %v8055_v40  ;;  %v8094_v40 = vld [vmem:[%s8299_s13 + $0xd20] sm:$0xff]  }
 0x1ab   : > { %7421 = vmatprep.subr.bf16.mxu1 %v8057_v43  ;;  %v8096_v43 = vld [vmem:[%s8299_s13 + $0xd68] sm:$0xff]  }
 0x1ac   : > { %7400 = vmatpush3.bf16.msra.mxu0 %v8058_v44  ;;  %v8097_v44 = vld [vmem:[%s8299_s13 + $0xde8] sm:$0xff]  }
 0x1ad   : > { %7401 = vmatprep.subr.bf16.mxu0 %v8060_v46  ;;  %v8099_v46 = vld [vmem:[%s8299_s13 + $0xda8] sm:$0xff]  }
 0x1ae   : > { %7422 = vmatpush3.bf16.msra.mxu1 %v8059_v45  ;;  %v8098_v45 = vld [vmem:[%s8299_s13 + $0xd28] sm:$0xff]  }
 0x1af   : > { %7423 = vmatprep.subr.bf16.mxu1 %v8061_v47  ;;  %v8100_v47 = vld [vmem:[%s8299_s13 + $0xd70] sm:$0xff]  }
 0x1b0   : > { %7402 = vmatpush3.bf16.msra.mxu0 %v8062_v48 }
 0x1b1   : > { %7403 = vmatprep.subr.bf16.mxu0 %v8064_v50 }
 0x1b2   : > { %7424 = vmatpush3.bf16.msra.mxu1 %v8063_v49  ;;  %v7101_v56 = vpop.f32.mrb[20].mxu0  ;;  %v8101_v49 = vld [vmem:[%s8299_s13 + $0xdf0] sm:$0xff]  }
 0x1b3   : > { %v7102_v58 = vpop.f32.mrb[21].mxu0  ;;  %7425 = vmatprep.subr.bf16.mxu1 %v8065_v51  ;;  %v8102_v51 = vld [vmem:[%s8299_s13 + $0xd30] sm:$0xff]  }
 0x1b4   : > { %v7123_v60 = vpop.f32.mrb[20].mxu1  ;;  %v7103_v55 = vadd.f32 %v7102_v58, %v7101_v56  ;;  %v7104_v61 = vpop.f32.mrb[22].mxu0  ;;  %7404 = vmatpush3.bf16.msra.mxu0 %v8066_v52  ;;  %v8103_v56 = vld [vmem:[%s8299_s13 + $0xdb0] sm:$0xff]  }
 0x1b5   : > { %v7124_v1 = vpop.f32.mrb[21].mxu1  ;;  %v7105_v2 = vpop.f32.mrb[23].mxu0  ;;  %7405 = vmatprep.subr.bf16.mxu0 %v8068_v54 }
 0x1b6   : > { %v5288_v5 = vadd.f32 %v7103_v55, %v8775_v25  ;;  %v7125_v6 = vadd.f32 %v7124_v1, %v7123_v60  ;;  %v7126_v7 = vpop.f32.mrb[22].mxu1  ;;  %7426 = vmatpush3.bf16.msra.mxu1 %v8067_v53  ;;  %v8080_v25 = vld [vmem:[%s8299_s13 + $0xd48] sm:$0xff]   ;;  %v8107_v2 = vld [vmem:[%s8299_s13 + $0xdb8] sm:$0xff]  }
 0x1b7   : > { %v7127_v9 = vpop.f32.mrb[23].mxu1  ;;  %7427 = vmatprep.subr.bf16.mxu1 %v8069_v57  ;;  %v8104_v57 = vld [vmem:[%s8299_s13 + $0xd78] sm:$0xff]   ;;  %v8112_v7 = vld [vmem:[%s8299_s13 + $0xe80] sm:$0xff]  }
 0x1b8   : > { %v8817_v13 = vadd.f32 %v7125_v6, %v5288_v5  ;;  %7406 = vmatpush3.bf16.msra.mxu0 %v8070_v59  ;;  %v8110_v5 = vld [vmem:[%s8299_s13 + $0xec0] sm:$0xff]   ;;  %v8113_v9 = vld [vmem:[%s8299_s13 + $0xe48] sm:$0xff]  }
 0x1b9   : > { %7407 = vmatprep.subr.bf16.mxu0 %v8072_v63  ;;  %v8111_v6 = vld [vmem:[%s8299_s13 + $0xe00] sm:$0xff]  }
 0x1ba   : > { %7428 = vmatpush3.bf16.msra.mxu1 %v8071_v62  ;;  %v8105_v62 = vld [vmem:[%s8299_s13 + $0xdf8] sm:$0xff]  }
 0x1bb   : > { %7429 = vmatprep.subr.bf16.mxu1 %v8073_v8  ;;  %v1665_v8 = vcombine.high %v1649_v3, %v1649_v3 }
 0x1bc   : > { %7408 = vmatpush3.bf16.msra.mxu0 %v8074_v10  ;;  %v8114_v10 = vld [vmem:[%s8299_s13 + $0xec8] sm:$0xff]  }
 0x1bd   : > { %7437 = vmatprep.subr.bf16.mxu0 %v8076_v17  ;;  %v8121_v17 = vld [vmem:[%s8299_s13 + $0xe58] sm:$0xff]  }
 0x1be   : > { %7430 = vmatpush3.bf16.msra.mxu1 %v8075_v14  ;;  %v8118_v14 = vld [vmem:[%s8299_s13 + $0xed0] sm:$0xff]  }
 0x1bf   : > { %5846 = vmatmul.mubr.bf16.vlgmr.msra.gmra.mrb[48].mxu0 %v1642_v16  ;;  %7459 = vmatprep.subr.bf16.mxu1 %v8077_v19  ;;  %v8120_v16 = vld [vmem:[%s8299_s13 + $0xe90] sm:$0xff]   ;;  %v8123_v19 = vld [vmem:[%s8299_s13 + $0xe18] sm:$0xff]  }
 0x1c0   : > { %7438 = vmatpush3.bf16.msra.mxu0 %v8078_v21  ;;  %5925 = vmatprep.mubr.bf16.mxu0 %v1663_v22  ;;  %v8125_v21 = vld [vmem:[%s8299_s13 + $0xe60] sm:$0xff]  }
 0x1c1   : > { %5886 = vmatmul.mubr.bf16.vlgmr.msra.gmra.mrb[48].mxu1 %v1664_v24  ;;  %7439 = vmatprep.subr.bf16.mxu0 %v8080_v25  ;;  %v8126_v22 = vld [vmem:[%s8299_s13 + $0xee0] sm:$0xff]   ;;  %v8129_v25 = vld [vmem:[%s8299_s13 + $0xe68] sm:$0xff]  }
 0x1c2   : > { %7460 = vmatpush3.bf16.msra.mxu1 %v8079_v23  ;;  %5965 = vmatprep.mubr.bf16.mxu1 %v1667_v27  ;;  %v8127_v23 = vld [vmem:[%s8299_s13 + $0xe20] sm:$0xff]   ;;  %v8131_v27 = vld [vmem:[%s8299_s13 + $0xe28] sm:$0xff]  }
 0x1c3   : > { %7461 = vmatprep.subr.bf16.mxu1 %v8081_v26  ;;  %v8128_v24 = vld [vmem:[%s8299_s13 + $0xea0] sm:$0xff]   ;;  %v8130_v26 = vld [vmem:[%s8299_s13 + $0xee8] sm:$0xff]  }
 0x1c4   : > { %7440 = vmatpush3.bf16.msra.mxu0 %v8082_v28  ;;  %v8132_v28 = vld [vmem:[%s8299_s13 + $0xea8] sm:$0xff]  }
 0x1c5   : > { %7441 = vmatprep.subr.bf16.mxu0 %v8084_v30 }
 0x1c6   : > { %7462 = vmatpush3.bf16.msra.mxu1 %v8083_v29  ;;  %v8133_v29 = vld [vmem:[%s8299_s13 + $0xe70] sm:$0xff]  }
 0x1c7   : > { %7463 = vmatprep.subr.bf16.mxu1 %v8085_v31  ;;  %v8134_v31 = vld [vmem:[%s8299_s13 + $0xef0] sm:$0xff]  }
 0x1c8   : > { %7442 = vmatpush3.bf16.msra.mxu0 %v8086_v32 }
 0x1c9   : > { %7443 = vmatprep.subr.bf16.mxu0 %v8088_v34 }
 0x1ca   : > { %7464 = vmatpush3.bf16.msra.mxu1 %v8087_v33  ;;  %v8135_v33 = vld [vmem:[%s8299_s13 + $0xe30] sm:$0xff]  }
 0x1cb   : > { %7465 = vmatprep.subr.bf16.mxu1 %v8089_v35 }
 0x1cc   : > { %7444 = vmatpush3.bf16.msra.mxu0 %v8090_v36 }
 0x1cd   : > { %7445 = vmatprep.subr.bf16.mxu0 %v8092_v38  ;;  %v8137_v38 = vld [vmem:[%s8299_s13 + $0xe78] sm:$0xff]  }
 0x1ce   : > { %7466 = vmatpush3.bf16.msra.mxu1 %v8091_v37  ;;  %v8136_v37 = vld [vmem:[%s8299_s13 + $0xeb0] sm:$0xff]  }
 0x1cf   : > { %7467 = vmatprep.subr.bf16.mxu1 %v8093_v39 }
 0x1d0   : > { %7446 = vmatpush3.bf16.msra.mxu0 %v8094_v40 }
 0x1d1   : > { %7447 = vmatprep.subr.bf16.mxu0 %v8096_v43 }
 0x1d2   : > { %7468 = vmatpush3.bf16.msra.mxu1 %v8095_v41  ;;  %v7145_v48 = vpop.f32.mrb[24].mxu0 }
 0x1d3   : > { %v7146_v50 = vpop.f32.mrb[25].mxu0  ;;  %7469 = vmatprep.subr.bf16.mxu1 %v8097_v44 }
 0x1d4   : > { %v7167_v52 = vpop.f32.mrb[24].mxu1  ;;  %v7147_v53 = vadd.f32 %v7146_v50, %v7145_v48  ;;  %v7148_v54 = vpop.f32.mrb[26].mxu0  ;;  %7448 = vmatpush3.bf16.msra.mxu0 %v8098_v45  ;;  %v292_v45 = vld [vmem:[%s8283_s26 + $0x38] sm:$0xff] }
 0x1d5   : > { %v7168_v58 = vpop.f32.mrb[25].mxu1  ;;  %v7149_v59 = vpop.f32.mrb[27].mxu0  ;;  %7449 = vmatprep.subr.bf16.mxu0 %v8100_v47  ;;  %v8138_v47 = vld [vmem:[%s8299_s13 + $0xef8] sm:$0xff]   ;;  %v1675_v48 = vrot.slane %v292_v45, %v8343_v42  ;;  %v8141_v54 = vld [vmem:[%s8299_s13 + $0xf40] sm:$0xff]  }
 0x1d6   : > { %v5368_v60 = vadd.f32 %v7147_v53, %v8817_v13  ;;  %v7169_v55 = vadd.f32 %v7168_v58, %v7167_v52  ;;  %v7170_v61 = vpop.f32.mrb[26].mxu1  ;;  %7470 = vmatpush3.bf16.msra.mxu1 %v8099_v46  ;;  %v8117_v13 = vld [vmem:[%s8299_s13 + $0xe50] sm:$0xff]   ;;  %v8142_v59 = vld [vmem:[%s8299_s13 + $0xfc0] sm:$0xff]  }
 0x1d7   : > { %v7171_v63 = vpop.f32.mrb[27].mxu1  ;;  %7471 = vmatprep.subr.bf16.mxu1 %v8101_v49  ;;  %v1668_v49 = vcombine.high %v292_v45, %v292_v45  ;;  %v1683_v52 = vcombine.high %v1675_v48, %v1675_v48  ;;  %v1691_v53 = vrot.slane %v1675_v48, %v8343_v42 }
 0x1d8   : > { %v8857_v1 = vadd.f32 %v7169_v55, %v5368_v60  ;;  %7450 = vmatpush3.bf16.msra.mxu0 %v8102_v51  ;;  %v8139_v51 = vld [vmem:[%s8299_s13 + $0xe38] sm:$0xff]   ;;  %v8143_v55 = vld [vmem:[%s8299_s13 + $0xf00] sm:$0xff]   ;;  %v8145_v63 = vld [vmem:[%s8299_s13 + $0xf48] sm:$0xff]  }
 0x1d9   : > { %7451 = vmatprep.subr.bf16.mxu0 %v8104_v57  ;;  %v8140_v57 = vld [vmem:[%s8299_s13 + $0xeb8] sm:$0xff]   ;;  %v1705_v58 = vrot.slane %v1683_v52, %v8343_v42 }
 0x1da   : > { %7472 = vmatpush3.bf16.msra.mxu1 %v8103_v56  ;;  %v8901_v56 = vrot.slane %v1668_v49, %v8343_v42 }
 0x1db   : > { %7473 = vmatprep.subr.bf16.mxu1 %v8105_v62  ;;  %v1715_v61 = vcombine.high %v1705_v58, %v1705_v58  ;;  %v1713_v62 = vcombine.high %v1691_v53, %v1691_v53 }
 0x1dc   : > { %7452 = vmatpush3.bf16.msra.mxu0 %v8106_v0  ;;  %v1684_v60 = vcombine.high %v8901_v56, %v8901_v56 }
 0x1dd   : > { %7481 = vmatprep.subr.bf16.mxu0 %v8109_v4  ;;  %v8147_v4 = vld [vmem:[%s8299_s13 + $0xf08] sm:$0xff]  }
 0x1de   : > { %7474 = vmatpush3.bf16.msra.mxu1 %v8107_v2  ;;  %v1712_v0 = vrot.slane %v1684_v60, %v8343_v42  ;;  %v8146_v2 = vld [vmem:[%s8299_s13 + $0xfc8] sm:$0xff]  }
 0x1df   : > { %5926 = vmatmul.mubr.bf16.vlgmr.msra.gmra.mrb[52].mxu0 %v1649_v3  ;;  %7503 = vmatprep.subr.bf16.mxu1 %v8110_v5  ;;  %v8149_v5 = vld [vmem:[%s8299_s13 + $0xf50] sm:$0xff]  }
 0x1e0   : > { %7482 = vmatpush3.bf16.msra.mxu0 %v8111_v6  ;;  %6005 = vmatprep.mubr.bf16.mxu0 %v1705_v58  ;;  %v1716_v3 = vcombine.high %v1712_v0, %v1712_v0  ;;  %v8148_v6 = vld [vmem:[%s8299_s13 + $0xf88] sm:$0xff]  }
 0x1e1   : > { %5966 = vmatmul.mubr.bf16.vlgmr.msra.gmra.mrb[52].mxu1 %v1665_v8  ;;  %7483 = vmatprep.subr.bf16.mxu0 %v8113_v9  ;;  %v8151_v8 = vld [vmem:[%s8299_s13 + $0xf10] sm:$0xff]   ;;  %v8153_v9 = vld [vmem:[%s8299_s13 + $0xf58] sm:$0xff]  }
 0x1e2   : > { %7504 = vmatpush3.bf16.msra.mxu1 %v8112_v7  ;;  %6045 = vmatprep.mubr.bf16.mxu1 %v1715_v61  ;;  %v8150_v7 = vld [vmem:[%s8299_s13 + $0xfd0] sm:$0xff]  }
 0x1e3   : > { %7505 = vmatprep.subr.bf16.mxu1 %v8114_v10  ;;  %v8152_v10 = vld [vmem:[%s8299_s13 + $0xf90] sm:$0xff]  }
 0x1e4   : > { %7484 = vmatpush3.bf16.msra.mxu0 %v8115_v11  ;;  %v8154_v11 = vld [vmem:[%s8299_s13 + $0xfd8] sm:$0xff]  }
 0x1e5   : > { %7485 = vmatprep.subr.bf16.mxu0 %v8117_v13  ;;  %v8157_v13 = vld [vmem:[%s8299_s13 + $0xf60] sm:$0xff]  }
 0x1e6   : > { %7506 = vmatpush3.bf16.msra.mxu1 %v8116_v12  ;;  %v8155_v12 = vld [vmem:[%s8299_s13 + $0xf18] sm:$0xff]  }
 0x1e7   : > { %7507 = vmatprep.subr.bf16.mxu1 %v8118_v14  ;;  %v8156_v14 = vld [vmem:[%s8299_s13 + $0xf98] sm:$0xff]  }
 0x1e8   : > { %7486 = vmatpush3.bf16.msra.mxu0 %v8119_v15  ;;  %v8158_v15 = vld [vmem:[%s8299_s13 + $0xfe0] sm:$0xff]  }
 0x1e9   : > { %7487 = vmatprep.subr.bf16.mxu0 %v8121_v17  ;;  %v8161_v17 = vld [vmem:[%s8299_s13 + $0xf68] sm:$0xff]  }
 0x1ea   : > { %7508 = vmatpush3.bf16.msra.mxu1 %v8120_v16  ;;  %v8159_v16 = vld [vmem:[%s8299_s13 + $0xf20] sm:$0xff]  }
 0x1eb   : > { %7509 = vmatprep.subr.bf16.mxu1 %v8122_v18  ;;  %v8160_v18 = vld [vmem:[%s8299_s13 + $0xfa0] sm:$0xff]  }
 0x1ec   : > { %7488 = vmatpush3.bf16.msra.mxu0 %v8123_v19  ;;  %v8162_v19 = vld [vmem:[%s8299_s13 + $0xfe8] sm:$0xff]  }
 0x1ed   : > { %7489 = vmatprep.subr.bf16.mxu0 %v8125_v21  ;;  %v8165_v21 = vld [vmem:[%s8299_s13 + $0xf70] sm:$0xff]  }
 0x1ee   : > { %7510 = vmatpush3.bf16.msra.mxu1 %v8124_v20  ;;  %v8163_v20 = vld [vmem:[%s8299_s13 + $0xf28] sm:$0xff]  }
 0x1ef   : > { %7511 = vmatprep.subr.bf16.mxu1 %v8126_v22 }
 0x1f0   : > { %7490 = vmatpush3.bf16.msra.mxu0 %v8127_v23  ;;  %v8164_v23 = vld [vmem:[%s8299_s13 + $0xfa8] sm:$0xff]  }
 0x1f1   : > { %7491 = vmatprep.subr.bf16.mxu0 %v8129_v25  ;;  %v8166_v25 = vld [vmem:[%s8299_s13 + $0xff0] sm:$0xff]  }
 0x1f2   : > { %7512 = vmatpush3.bf16.msra.mxu1 %v8128_v24  ;;  %v7189_v30 = vpop.f32.mrb[28].mxu0 }
 0x1f3   : > { %v7190_v32 = vpop.f32.mrb[29].mxu0  ;;  %7513 = vmatprep.subr.bf16.mxu1 %v8130_v26 }
 0x1f4   : > { %v7211_v34 = vpop.f32.mrb[28].mxu1  ;;  %v7191_v35 = vadd.f32 %v7190_v32, %v7189_v30  ;;  %v7192_v36 = vpop.f32.mrb[30].mxu0  ;;  %7492 = vmatpush3.bf16.msra.mxu0 %v8131_v27  ;;  %v8169_v30 = vld [vmem:[%s8299_s13 + $0xf78] sm:$0xff]  }
 0x1f5   : > { %v7212_v39 = vpop.f32.mrb[29].mxu1  ;;  %v7193_v40 = vpop.f32.mrb[31].mxu0  ;;  %7493 = vmatprep.subr.bf16.mxu0 %v8133_v29  ;;  %v8167_v29 = vld [vmem:[%s8299_s13 + $0xf30] sm:$0xff]  }
 0x1f6   : > { %v5448_v41 = vadd.f32 %v7191_v35, %v8857_v1  ;;  %v7213_v43 = vadd.f32 %v7212_v39, %v7211_v34  ;;  %v7214_v44 = vpop.f32.mrb[30].mxu1  ;;  %7514 = vmatpush3.bf16.msra.mxu1 %v8132_v28  ;;  %v8144_v1 = vld [vmem:[%s8299_s13 + $0xf80] sm:$0xff]   ;;  %v8168_v36 = vld [vmem:[%s8299_s13 + $0xfb0] sm:$0xff]   ;;  %v8171_v40 = vld [vmem:[%s8299_s13 + $0xf38] sm:$0xff]  }
 0x1f7   : > { %v7215_v46 = vpop.f32.mrb[31].mxu1  ;;  %7515 = vmatprep.subr.bf16.mxu1 %v8134_v31 }
 0x1f8   : > { %v8895_v50 = vadd.f32 %v7213_v43, %v5448_v41  ;;  %7494 = vmatpush3.bf16.msra.mxu0 %v8135_v33  ;;  %v1698_v41 = vrot.slane %v8901_v56, %v8343_v42  ;;  %v8172_v43 = vld [vmem:[%s8299_s13 + $0xfb8] sm:$0xff]  }
 0x1f9   : > { %7495 = vmatprep.subr.bf16.mxu0 %v8137_v38  ;;  %v8170_v38 = vld [vmem:[%s8299_s13 + $0xff8] sm:$0xff]  }
 0x1fa   : > { %7516 = vmatpush3.bf16.msra.mxu1 %v8136_v37  ;;  %v1714_v44 = vcombine.high %v1698_v41, %v1698_v41 }
 0x1fb   : > { %7517 = vmatprep.subr.bf16.mxu1 %v8138_v47 }
 0x1fc   : > { %7496 = vmatpush3.bf16.msra.mxu0 %v8139_v51 }
 0x1fd   : > { %7525 = vmatprep.subr.bf16.mxu0 %v8141_v54 }
 0x1fe   : > { %7518 = vmatpush3.bf16.msra.mxu1 %v8140_v57 }
 0x1ff   : > { %6006 = vmatmul.mubr.bf16.vlgmr.msra.gmra.mrb[56].mxu0 %v1691_v53  ;;  %7547 = vmatprep.subr.bf16.mxu1 %v8142_v59 }
 0x200   : > { %7526 = vmatpush3.bf16.msra.mxu0 %v8143_v55  ;;  %6085 = vmatprep.mubr.bf16.mxu0 %v1712_v0 }
 0x201   : > { %6046 = vmatmul.mubr.bf16.vlgmr.msra.gmra.mrb[56].mxu1 %v1713_v62  ;;  %7527 = vmatprep.subr.bf16.mxu0 %v8145_v63 }
 0x202   : > { %7548 = vmatpush3.bf16.msra.mxu1 %v8144_v1  ;;  %6125 = vmatprep.mubr.bf16.mxu1 %v1716_v3 }
 0x203   : > { %7549 = vmatprep.subr.bf16.mxu1 %v8146_v2 }
 0x204   : > { %7528 = vmatpush3.bf16.msra.mxu0 %v8147_v4 }
 0x205   : > { %7529 = vmatprep.subr.bf16.mxu0 %v8149_v5 }
 0x206   : > { %7550 = vmatpush3.bf16.msra.mxu1 %v8148_v6 }
 0x207   : > { %7551 = vmatprep.subr.bf16.mxu1 %v8150_v7 }
 0x208   : > { %7530 = vmatpush3.bf16.msra.mxu0 %v8151_v8 }
 0x209   : > { %7531 = vmatprep.subr.bf16.mxu0 %v8153_v9 }
 0x20a   : > { %7552 = vmatpush3.bf16.msra.mxu1 %v8152_v10 }
 0x20b   : > { %7553 = vmatprep.subr.bf16.mxu1 %v8154_v11 }
 0x20c   : > { %7532 = vmatpush3.bf16.msra.mxu0 %v8155_v12 }
 0x20d   : > { %7533 = vmatprep.subr.bf16.mxu0 %v8157_v13 }
 0x20e   : > { %7554 = vmatpush3.bf16.msra.mxu1 %v8156_v14 }
 0x20f   : > { %7555 = vmatprep.subr.bf16.mxu1 %v8158_v15 }
 0x210   : > { %7534 = vmatpush3.bf16.msra.mxu0 %v8159_v16 }
 0x211   : > { %7535 = vmatprep.subr.bf16.mxu0 %v8161_v17 }
 0x212   : > { %7556 = vmatpush3.bf16.msra.mxu1 %v8160_v18  ;;  %v7233_v22 = vpop.f32.mrb[32].mxu0 }
 0x213   : > { %v7234_v24 = vpop.f32.mrb[33].mxu0  ;;  %7557 = vmatprep.subr.bf16.mxu1 %v8162_v19 }
 0x214   : > { %v7255_v26 = vpop.f32.mrb[32].mxu1  ;;  %v7235_v27 = vadd.f32 %v7234_v24, %v7233_v22  ;;  %v7236_v28 = vpop.f32.mrb[34].mxu0  ;;  %7536 = vmatpush3.bf16.msra.mxu0 %v8163_v20 }
 0x215   : > { %v7256_v31 = vpop.f32.mrb[33].mxu1  ;;  %v7237_v32 = vpop.f32.mrb[35].mxu0  ;;  %7537 = vmatprep.subr.bf16.mxu0 %v8165_v21 }
 0x216   : > { %v5528_v33 = vadd.f32 %v7235_v27, %v8895_v50  ;;  %v7257_v34 = vadd.f32 %v7256_v31, %v7255_v26  ;;  %v7258_v35 = vpop.f32.mrb[34].mxu1  ;;  %7558 = vmatpush3.bf16.msra.mxu1 %v8164_v23 }
 0x217   : > { %v7259_v37 = vpop.f32.mrb[35].mxu1  ;;  %7559 = vmatprep.subr.bf16.mxu1 %v8166_v25 }
 0x218   : > { %v5568_v39 = vadd.f32 %v7257_v34, %v5528_v33  ;;  %7538 = vmatpush3.bf16.msra.mxu0 %v8167_v29 }
 0x219   : > { %7539 = vmatprep.subr.bf16.mxu0 %v8169_v30 }
 0x21a   : > { %7560 = vmatpush3.bf16.msra.mxu1 %v8168_v36 }
 0x21b   : > { %7561 = vmatprep.subr.bf16.mxu1 %v8170_v38 }
 0x21c   : > { %7540 = vmatpush3.bf16.msra.mxu0 %v8171_v40 }
 0x21e   : > { %7562 = vmatpush3.bf16.msra.mxu1 %v8172_v43 }
 0x21f   : > { %6086 = vmatmul.mubr.bf16.vlgmr.msra.gmra.mrb[60].mxu0 %v1698_v41 }
 0x221   : > { %6126 = vmatmul.mubr.bf16.vlgmr.msra.gmra.mrb[60].mxu1 %v1714_v44 }
 0x232   : > { %v7277_v45 = vpop.f32.mrb[36].mxu0 }
 0x233   : > { %v7278_v46 = vpop.f32.mrb[37].mxu0 }
 0x234   : > { %v7299_v47 = vpop.f32.mrb[36].mxu1  ;;  %v7279_v48 = vadd.f32 %v7278_v46, %v7277_v45  ;;  %v7280_v49 = vpop.f32.mrb[38].mxu0 }
 0x235   : > { %v7300_v50 = vpop.f32.mrb[37].mxu1  ;;  %v7281_v51 = vpop.f32.mrb[39].mxu0 }
 0x236   : > { %v5608_v52 = vadd.f32 %v7279_v48, %v5568_v39  ;;  %v7301_v53 = vadd.f32 %v7300_v50, %v7299_v47  ;;  %v7302_v54 = vpop.f32.mrb[38].mxu1 }
 0x237   : > { %v7303_v57 = vpop.f32.mrb[39].mxu1 }
 0x238   : > { %v5648_v42 = vadd.f32 %v7301_v53, %v5608_v52 }
 0x252   : > { %v7321_v56 = vpop.f32.mrb[40].mxu0 }
 0x253   : > { %v7322_v58 = vpop.f32.mrb[41].mxu0 }
 0x254   : > { %v7343_v59 = vpop.f32.mrb[40].mxu1  ;;  %v7323_v60 = vadd.f32 %v7322_v58, %v7321_v56  ;;  %v7324_v55 = vpop.f32.mrb[42].mxu0 }
 0x255   : > { %v7344_v61 = vpop.f32.mrb[41].mxu1  ;;  %v7325_v62 = vpop.f32.mrb[43].mxu0 }
 0x256   : > { %v5688_v63 = vadd.f32 %v7323_v60, %v5648_v42  ;;  %v7345_v0 = vadd.f32 %v7344_v61, %v7343_v59  ;;  %v7346_v1 = vpop.f32.mrb[42].mxu1  ;;  %v284_v62 = vld [vmem:[#allocation2] sm:$0x3] }
 0x257   : > { %v7347_v2 = vpop.f32.mrb[43].mxu1 }
 0x258   : > { %v5728_v3 = vadd.f32 %v7345_v0, %v5688_v63  ;;  %v6150_v2 = vld [vmem:[%s8294_s10] sm:$0xff] (!%p6859_p9) }
 0x272   : > { %v7365_v4 = vpop.f32.mrb[44].mxu0 }
 0x273   : > { %v7366_v5 = vpop.f32.mrb[45].mxu0 }
 0x274   : > { %v7387_v6 = vpop.f32.mrb[44].mxu1  ;;  %v7367_v7 = vadd.f32 %v7366_v5, %v7365_v4  ;;  %v7368_v8 = vpop.f32.mrb[46].mxu0  ;;  %v6152_v4 = vld [vmem:[%s8294_s10 + $0x10] sm:$0xff] (!%p6859_p9)  ;;  %v8216_v5 = vmov (!%p6859_p9), 0.0|0.0  }
 0x275   : > { %v7388_v9 = vpop.f32.mrb[45].mxu1  ;;  %v7369_v10 = vpop.f32.mrb[47].mxu0  ;;  %7597 = vmatprep.subr.bf16.mxu0 (!%p6859_p9), %v8216_v5  ;;  %v8218_v8 = vmov (!%p6859_p9), 0.0  }
 0x276   : > { %v5768_v11 = vadd.f32 %v7367_v7, %v5728_v3  ;;  %v7389_v12 = vadd.f32 %v7388_v9, %v7387_v6  ;;  %v7390_v13 = vpop.f32.mrb[46].mxu1  ;;  %v6151_v3 = vld [vmem:[%s8294_s10 + $0x8] sm:$0xff] (!%p6859_p9)  ;;  %v6153_v7 = vld [vmem:[%s8294_s10 + $0x18] sm:$0xff] (!%p6859_p9)  ;;  %7594 = vmatprep.mubr.msk.f32.mxu0 (!%p6859_p9), %vm8217_vm2, %v8218_v8  ;;  %v6154_v10 = vld [vmem:[%s8294_s10 + $0x20] sm:$0xff] (!%p6859_p9) }
 0x277   : > { %v7391_v14 = vpop.f32.mrb[47].mxu1  ;;  %v7598_v6 = vpack.c.bf16 (!%p6859_p9), %v6151_v3, %v6150_v2  ;;  %v7601_v9 = vpack.c.bf16 (!%p6859_p9), %v6153_v7, %v6152_v4 }
 0x278   : > { %v5808_v15 = vadd.f32 %v7389_v12, %v5768_v11  ;;  %v6155_v11 = vld [vmem:[%s8294_s10 + $0x28] sm:$0xff] (!%p6859_p9)  ;;  %v6860_v14 = vld [vmem:[%s267_s30] ss:$0 sm:$0xff] (!%p6859_p9) }
 0x279   : > { %7599 = vmatpush3.bf16.msra.mxu0 (!%p6859_p9), %v7598_v6  ;;  %v7604_v12 = vpack.c.bf16 (!%p6859_p9), %v6155_v11, %v6154_v10 }
 0x27a   : > { %7600 = vmatprep.subr.bf16.mxu0 (!%p6859_p9), %v8216_v5 }
 0x27d   : > { %7602 = vmatpush3.bf16.msra.mxu0 (!%p6859_p9), %v7601_v9 }
 0x27e   : > { %7603 = vmatprep.subr.bf16.mxu0 (!%p6859_p9), %v8216_v5 }
 0x281   : > { %7605 = vmatpush3.bf16.msra.mxu0 (!%p6859_p9), %v7604_v12 }
 0x282   : > { %7606 = vmatprep.subr.bf16.mxu0 (!%p6859_p9), %v8216_v5 }
 0x292   : > { %v7409_v16 = vpop.f32.mrb[48].mxu0 }
 0x293   : > { %v7410_v17 = vpop.f32.mrb[49].mxu0 }
 0x294   : > { %v7431_v18 = vpop.f32.mrb[48].mxu1  ;;  %v7411_v19 = vadd.f32 %v7410_v17, %v7409_v16  ;;  %v7412_v20 = vpop.f32.mrb[50].mxu0  ;;  %v6157_v16 = vld [vmem:[%s8294_s10 + $0x38] sm:$0xff] (!%p6859_p9) }
 0x295   : > { %v7432_v21 = vpop.f32.mrb[49].mxu1  ;;  %v7413_v22 = vpop.f32.mrb[51].mxu0 }
 0x296   : > { %v5848_v23 = vadd.f32 %v7411_v19, %v5808_v15  ;;  %v7433_v24 = vadd.f32 %v7432_v21, %v7431_v18  ;;  %v7434_v25 = vpop.f32.mrb[50].mxu1  ;;  %v6156_v15 = vld [vmem:[%s8294_s10 + $0x30] sm:$0xff] (!%p6859_p9) }
 0x297   : > { %v7435_v26 = vpop.f32.mrb[51].mxu1  ;;  %v7607_v18 = vpack.c.bf16 (!%p6859_p9), %v6157_v16, %v6156_v15 }
 0x298   : > { %v5888_v27 = vadd.f32 %v7433_v24, %v5848_v23 }
 0x299   : > { %7608 = vmatpush3.bf16.msra.mxu0 (!%p6859_p9), %v7607_v18 }
 0x2b2   : > { %v7453_v28 = vpop.f32.mrb[52].mxu0 }
 0x2b3   : > { %v7454_v29 = vpop.f32.mrb[53].mxu0 }
 0x2b4   : > { %v7475_v30 = vpop.f32.mrb[52].mxu1  ;;  %v7455_v31 = vadd.f32 %v7454_v29, %v7453_v28  ;;  %v7456_v32 = vpop.f32.mrb[54].mxu0 }
 0x2b5   : > { %v7476_v33 = vpop.f32.mrb[53].mxu1  ;;  %v7457_v34 = vpop.f32.mrb[55].mxu0 }
 0x2b6   : > { %v5928_v35 = vadd.f32 %v7455_v31, %v5888_v27  ;;  %v7477_v36 = vadd.f32 %v7476_v33, %v7475_v30  ;;  %v7478_v37 = vpop.f32.mrb[54].mxu1 }
 0x2b7   : > { %v7479_v38 = vpop.f32.mrb[55].mxu1 }
 0x2b8   : > { %v5968_v39 = vadd.f32 %v7477_v36, %v5928_v35 }
 0x2d2   : > { %v7497_v40 = vpop.f32.mrb[56].mxu0 }
 0x2d3   : > { %v7498_v41 = vpop.f32.mrb[57].mxu0 }
 0x2d4   : > { %v7519_v43 = vpop.f32.mrb[56].mxu1  ;;  %v7499_v44 = vadd.f32 %v7498_v41, %v7497_v40  ;;  %v7500_v45 = vpop.f32.mrb[58].mxu0 }
 0x2d5   : > { %v7520_v46 = vpop.f32.mrb[57].mxu1  ;;  %v7501_v47 = vpop.f32.mrb[59].mxu0 }
 0x2d6   : > { %v6008_v48 = vadd.f32 %v7499_v44, %v5968_v39  ;;  %v7521_v49 = vadd.f32 %v7520_v46, %v7519_v43  ;;  %v7522_v50 = vpop.f32.mrb[58].mxu1 }
 0x2d7   : > { %v7523_v51 = vpop.f32.mrb[59].mxu1 }
 0x2d8   : > { %v6048_v52 = vadd.f32 %v7521_v49, %v6008_v48 }
 0x2f2   : > { %v7541_v53 = vpop.f32.mrb[60].mxu0 }
 0x2f3   : > { %v7542_v54 = vpop.f32.mrb[61].mxu0 }
 0x2f4   : > { %v7563_v57 = vpop.f32.mrb[60].mxu1  ;;  %v7543_v42 = vadd.f32 %v7542_v54, %v7541_v53  ;;  %v7544_v56 = vpop.f32.mrb[62].mxu0 }
 0x2f5   : > { %v7564_v58 = vpop.f32.mrb[61].mxu1  ;;  %v7545_v59 = vpop.f32.mrb[63].mxu0 }
 0x2f6   : > { %v6088_v60 = vadd.f32 %v7543_v42, %v6048_v52  ;;  %v7565_v55 = vadd.f32 %v7564_v58, %v7563_v57  ;;  %v7566_v61 = vpop.f32.mrb[62].mxu1  ;;  %6139 = sbr.rel (%p6859_p9) target bundleno = 989 (0x3dd), region = 44 }
 0x2f7   : > { %v7567_v63 = vpop.f32.mrb[63].mxu1 }
 0x2f8   : > { %v6128_v0 = vadd.f32 %v7565_v55, %v6088_v60 }
 0x2fa   : > { %v6133_v1 = vadd.f32 %v6128_v0, %v284_v62 }
 0x2fc   : > { %6135 = vst.msk [vmem:[#allocation2] sm:$0x3] %vm6134_vm1, %v6133_v1 }
 0x303   : > { %v6140_v13 = vld [vmem:[#allocation2] sm:$0x3] }
 0x304   : > { %v6148_v17 = vadd.f32 %v6860_v14, %v6140_v13 }
 0x306   : > { %v6149_v19 = vmax.f32 %v6148_v17, 0.0 }
 0x308   : > { %7595 = vmatmul.mubr.msk.f32.vlgmr.msra.gmra.mrb[0].mxu0 %vm6158_vm3, %v6149_v19 }
 0x3db   : > { %v6228_v20 = vpop.f32.mrb[0].mxu0 }
 0x3dc   : > { %6233 = vst.msk [vmem:[%s8305_s25] sm:$0x3] %vm6232_vm4, %v6228_v20  ;;  %v7596_v21 = vpop.f32.mrb[1].mxu0 }
 0x3dd PF: > { %s14_s19 = sadd.s32 1, %s8212_s19   ;;  %s8977_s15 = smov %s8204_s17 }
 0x3de   : > { %p11_p10 = scmp.ge.s32.totalorder %s14_s19, 10   ;;  %s8978_s16 = smov %s8208_s18 }
 0x3df   : > { %s8979_s17 = smov %s8982_s20  ;;  %s8980_s18 = smov %s8986_s21 }
 0x3e0   :  { %13 = sbr.rel (!%p11_p10) target bundleno = 3 (0x3), region = 83 }

</bundles_post_ra>
